<compile_context>
chip_gen: v5e
topology: v5e:2x2
jax: 0.10.0
libtpu: 0.0.40
codegen_flags: <defaults>
</compile_context>

<pallas_src>
import numpy as np
import jax
import jax.numpy as jnp
from jax.experimental import pallas as pl
from jax.experimental.pallas import tpu as pltpu

# ----------------------------------------------------------------------------
# Model geometry (fixed by the PyTorch module: 28x28x3 input).
# ----------------------------------------------------------------------------
H1, W1, C0 = 28, 28, 3          # conv1 input
C1 = 32                         # conv1 output channels
H2, W2 = 14, 14                 # conv2 input (after pool1)
C2 = 64                         # conv2 output channels
HF, WF = 7, 7                   # spatial size after pool2
FDIM = C2 * HF * WF             # 3136
FC1 = 128

WP1, WP2 = W1 + 2, W2 + 2       # padded widths (30, 16)
M1, M2 = H1 * WP1, H2 * WP2     # im2col row counts (840, 224)
R1 = (H1 + 2) * WP1 + 2         # rows of flattened padded conv1 input (902)
R2 = (H2 + 2) * WP2 + 2         # rows of flattened padded conv2 input (258)
A1ROWS = M1 - WP1 - 1           # rows of pooled conv1 map in conv-row space (809)


# ----------------------------------------------------------------------------
# In-kernel helpers (trace-time; operate on VMEM-resident values)
# ----------------------------------------------------------------------------
def _conv3x3_bias_relu_pool(xf, w, b, H, W, Cin, Cout):
    """Fused conv3x3(pad=1) + maxpool2x2 + bias + ReLU.

    xf: (rows, Cin) bf16 -- zero-padded (H+2, W+2, Cin) image flattened as
        row = i*(W+2) + j, plus 2 slack rows.
    w:  (9*Cin, Cout) bf16, rows in (ky, kx, cin) order.
    b:  (1, Cout) f32.
    Returns ((H-1)*(W+2)-1, Cout) f32; row 2i*(W+2)+2j holds the pooled,
    biased, ReLU'd output at pooled position (i, j).  Other rows are garbage
    and are never read by the caller.
    """
    wp = W + 2
    m = H * wp
    pieces = [xf[dy * wp + dx: dy * wp + dx + m, :]
              for dy in range(3) for dx in range(3)]
    patches = jnp.concatenate(pieces, axis=1)                    # (m, 9*Cin)
    y = jnp.dot(patches, w, preferred_element_type=jnp.float32)  # (m, Cout) f32
    y = jnp.maximum(y[:-wp, :], y[wp:, :])   # max over H pairs (row r, r+wp)
    y = jnp.maximum(y[:-1, :], y[1:, :])     # max over W pairs (row r, r+1)
    # bias is constant across a pool window and ReLU is monotone, so
    # maxpool(relu(conv + b)) == relu(maxpool(conv) + b).
    return jnp.maximum(y + b, 0.0)


def d_curr_kernel(xf_ref, w1_ref, b1_ref, w2_ref, b2_ref, s2_ref,
                  wf1_ref, bf1_ref, wf2_ref, bf2_ref, o_ref):
    # conv1 + ReLU + pool: 28x28x3 -> 14x14x32 (kept in conv-row layout, VMEM)
    a1 = _conv3x3_bias_relu_pool(xf_ref[0], w1_ref[...], b1_ref[...],
                                 H1, W1, C0, C1)                 # (809, 32) f32

    # Re-layout pooled conv1 map into conv2's flattened zero-padded (16x16x32)
    # layout with a 0/1 selector matmul (exact: each row picks one bf16 value).
    xf2 = jnp.dot(s2_ref[...], a1.astype(jnp.bfloat16),
                  preferred_element_type=jnp.float32)            # (258, 32) f32

    # conv2 + ReLU + pool: 14x14x32 -> 7x7x64
    a2 = _conv3x3_bias_relu_pool(xf2.astype(jnp.bfloat16), w2_ref[...],
                                 b2_ref[...], H2, W2, C1, C2)    # (207, 64) f32

    # Flatten the 7x7x64 pooled map in NHWC (h, w, c) order; w_fc1 rows were
    # permuted offline to match, so no runtime NCHW transpose is needed.
    a2 = a2.astype(jnp.bfloat16)
    rows = []
    for k in range(HF * WF):
        r = (2 * (k // WF)) * WP2 + 2 * (k % WF)
        rows.append(a2[r:r + 1, :])
    feat = jnp.concatenate(rows, axis=1)                         # (1, 3136) bf16

    # fc1 + ReLU (MXU), fc2 + sigmoid (VPU multiply + lane reduction).
    h = jnp.dot(feat, wf1_ref[...], preferred_element_type=jnp.float32)
    h = jnp.maximum(h + bf1_ref[...], 0.0)                       # (1, 128) f32
    z = jnp.sum(h * wf2_ref[...], axis=-1, keepdims=True) + bf2_ref[...]
    o_ref[0] = (1.0 / (1.0 + jnp.exp(-z))).astype(o_ref.dtype)   # (1, 1)


# ----------------------------------------------------------------------------
# Wrapper-side (one-time) parameter / constant preparation
# ----------------------------------------------------------------------------
def _pool_pad_selector():
    """0/1 matrix gathering conv1's pooled rows (row 2i*30+2j -> pooled (i,j))
    into conv2's flattened zero-padded 16x16 input layout (258 rows)."""
    s = np.zeros((R2, A1ROWS), np.float32)
    for i in range(H2):
        for j in range(W2):
            s[(i + 1) * WP2 + (j + 1), (2 * i) * WP1 + 2 * j] = 1.0
    return s


def _prep_params(params):
    # conv weights: torch OIHW -> (ky, kx, cin, cout) -> (9*Cin, Cout)
    w1 = jnp.transpose(params["w_conv1"], (2, 3, 1, 0)).reshape(9 * C0, C1)
    w2 = jnp.transpose(params["w_conv2"], (2, 3, 1, 0)).reshape(9 * C1, C2)
    # fc1 rows are stored in PyTorch's NCHW-flatten (c, h, w) order; permute
    # them once to NHWC (h, w, c) order to kill the runtime transpose.
    wf1 = params["w_fc1"].reshape(C2, HF, WF, FC1)
    wf1 = wf1.transpose(1, 2, 0, 3).reshape(FDIM, FC1)
    return dict(
        w1=w1.astype(jnp.bfloat16),
        b1=params["b_conv1"].reshape(1, C1).astype(jnp.float32),
        w2=w2.astype(jnp.bfloat16),
        b2=params["b_conv2"].reshape(1, C2).astype(jnp.float32),
        s2=jnp.asarray(_pool_pad_selector(), jnp.bfloat16),
        wf1=wf1.astype(jnp.bfloat16),
        bf1=params["b_fc1"].reshape(1, FC1).astype(jnp.float32),
        wf2=params["w_fc2"].reshape(1, FC1).astype(jnp.float32),
        bf2=params["b_fc2"].reshape(1, 1).astype(jnp.float32),
    )


def d_curr_forward(x_nchw, params):
    B = x_nchw.shape[0]
    p = _prep_params(params)
    # NCHW -> NHWC -> zero-pad -> flatten rows -> +2 slack rows -> bf16
    x = jnp.transpose(x_nchw, (0, 2, 3, 1))
    x = jnp.pad(x, ((0, 0), (1, 1), (1, 1), (0, 0)))             # (B, 30, 30, 3)
    xf = x.reshape(B, (H1 + 2) * WP1, C0)
    xf = jnp.pad(xf, ((0, 0), (0, 2), (0, 0))).astype(jnp.bfloat16)  # (B, 902, 3)

    out = pl.pallas_call(
        d_curr_kernel,
        out_shape=jax.ShapeDtypeStruct((B, 1, 1), jnp.float32),
        grid_spec=pltpu.PrefetchScalarGridSpec(
            num_scalar_prefetch=0,
            grid=(B,),
            in_specs=[
                pl.BlockSpec((1, R1, C0), lambda b: (b, 0, 0)),
                pl.BlockSpec((9 * C0, C1), lambda b: (0, 0)),
                pl.BlockSpec((1, C1), lambda b: (0, 0)),
                pl.BlockSpec((9 * C1, C2), lambda b: (0, 0)),
                pl.BlockSpec((1, C2), lambda b: (0, 0)),
                pl.BlockSpec((R2, A1ROWS), lambda b: (0, 0)),
                pl.BlockSpec((FDIM, FC1), lambda b: (0, 0)),
                pl.BlockSpec((1, FC1), lambda b: (0, 0)),
                pl.BlockSpec((1, FC1), lambda b: (0, 0)),
                pl.BlockSpec((1, 1), lambda b: (0, 0)),
            ],
            out_specs=pl.BlockSpec((1, 1, 1), lambda b: (b, 0, 0)),
        ),
        compiler_params=pltpu.CompilerParams(
            dimension_semantics=("parallel",),
        ),
    )(xf, p["w1"], p["b1"], p["w2"], p["b2"], p["s2"],
      p["wf1"], p["bf1"], p["wf2"], p["bf2"])
    return out.reshape(B, 1)


# ----------------------------------------------------------------------------
# Pure-JAX f32 reference for a numerical sanity check.
# ----------------------------------------------------------------------------
def reference_forward(x_nchw, params):
    x = jnp.transpose(x_nchw, (0, 2, 3, 1))

    def conv(x, w, b):
        y = jax.lax.conv_general_dilated(
            x, jnp.transpose(w, (2, 3, 1, 0)), (1, 1), "SAME",
            dimension_numbers=("NHWC", "HWIO", "NHWC"))
        return jnp.maximum(y + b, 0.0)

    def pool(x):
        return jax.lax.reduce_window(x, -jnp.inf, jax.lax.max,
                                     (1, 2, 2, 1), (1, 2, 2, 1), "VALID")

    x = pool(conv(x, params["w_conv1"], params["b_conv1"]))
    x = pool(conv(x, params["w_conv2"], params["b_conv2"]))
    x = jnp.transpose(x, (0, 3, 1, 2)).reshape(x.shape[0], -1)   # NCHW flatten
    h = jnp.maximum(x @ params["w_fc1"] + params["b_fc1"], 0.0)
    z = h @ params["w_fc2"] + params["b_fc2"]
    return 1.0 / (1.0 + jnp.exp(-z))


def init_params(key):
    ks = jax.random.split(key, 8)

    def n(k, shape, scale):
        return (scale * jax.random.normal(k, shape)).astype(jnp.float32)

    return {
        # conv weights kept in PyTorch OIHW shape
        "w_conv1": n(ks[0], (C1, C0, 3, 3), 0.10),
        "b_conv1": n(ks[1], (C1,), 0.10),
        "w_conv2": n(ks[2], (C2, C1, 3, 3), 0.05),
        "b_conv2": n(ks[3], (C2,), 0.05),
        # fc weights stored already transposed: (in, out), rows in (c,h,w) order
        "w_fc1": n(ks[4], (FDIM, FC1), 0.02),
        "b_fc1": n(ks[5], (FC1,), 0.02),
        "w_fc2": n(ks[6], (FC1, 1), 0.05),
        "b_fc2": n(ks[7], (1,), 0.05),
    }


if __name__ == "__main__":
    key = jax.random.PRNGKey(0)
    pkey, xkey = jax.random.split(key)
    params = init_params(pkey)
    # Input must be 28x28 so that two 2x2 pools yield the 64*7*7 flatten.
    x = jax.random.normal(xkey, (2, 3, 28, 28), dtype=jnp.float32)

    fwd = jax.jit(d_curr_forward)
    out = jax.block_until_ready(fwd(x, params))
    assert out.shape == (2, 1) and out.dtype == jnp.float32

    ref = jax.block_until_ready(reference_forward(x, params))
    assert jnp.all(jnp.isfinite(out))
    assert jnp.allclose(out, ref, atol=2e-2), (out, ref)

    print("KERNEL_OK")
</pallas_src>

<mosaic_0001>
module attributes {stable_mosaic.version = 11 : i64} {
  func.func @d_curr_kernel(%arg0: i32, %arg1: memref<1x902x3xbf16, #tpu.memory_space<vmem>>, %arg2: memref<27x32xbf16, #tpu.memory_space<vmem>>, %arg3: memref<1x32xf32, #tpu.memory_space<vmem>>, %arg4: memref<288x64xbf16, #tpu.memory_space<vmem>>, %arg5: memref<1x64xf32, #tpu.memory_space<vmem>>, %arg6: memref<258x809xbf16, #tpu.memory_space<vmem>>, %arg7: memref<3136x128xbf16, #tpu.memory_space<vmem>>, %arg8: memref<1x128xf32, #tpu.memory_space<vmem>>, %arg9: memref<1x128xf32, #tpu.memory_space<vmem>>, %arg10: memref<1x1xf32, #tpu.memory_space<vmem>>, %arg11: memref<1x1x1xf32, #tpu.memory_space<vmem>>) attributes {dimension_semantics = [#tpu.dimension_semantics<parallel>], iteration_bounds = array<i64: 2>, scalar_prefetch = 0 : i64, scratch_operands = 0 : i64, tpu.core_type = #tpu.core_type<tc>, window_params = [{transform_indices = @transform_0, window_bounds = array<i64: 1, 902, 3>}, {pipeline_mode = #tpu.pipeline_mode<synchronous>, transform_indices = @transform_1, window_bounds = array<i64: 27, 32>}, {pipeline_mode = #tpu.pipeline_mode<synchronous>, transform_indices = @transform_2, window_bounds = array<i64: 1, 32>}, {pipeline_mode = #tpu.pipeline_mode<synchronous>, transform_indices = @transform_3, window_bounds = array<i64: 288, 64>}, {pipeline_mode = #tpu.pipeline_mode<synchronous>, transform_indices = @transform_4, window_bounds = array<i64: 1, 64>}, {pipeline_mode = #tpu.pipeline_mode<synchronous>, transform_indices = @transform_5, window_bounds = array<i64: 258, 809>}, {pipeline_mode = #tpu.pipeline_mode<synchronous>, transform_indices = @transform_6, window_bounds = array<i64: 3136, 128>}, {pipeline_mode = #tpu.pipeline_mode<synchronous>, transform_indices = @transform_7, window_bounds = array<i64: 1, 128>}, {pipeline_mode = #tpu.pipeline_mode<synchronous>, transform_indices = @transform_8, window_bounds = array<i64: 1, 128>}, {pipeline_mode = #tpu.pipeline_mode<synchronous>, transform_indices = @transform_9, window_bounds = array<i64: 1, 1>}, {transform_indices = @transform_10, window_bounds = array<i64: 1, 1, 1>}]} {
    %c0 = arith.constant 0 : index
    %c0_0 = arith.constant 0 : index
    %c0_1 = arith.constant 0 : index
    %0 = vector.load %arg1[%c0, %c0_0, %c0_1] : memref<1x902x3xbf16, #tpu.memory_space<vmem>>, vector<1x902x3xbf16>
    %1 = vector.shape_cast %0 : vector<1x902x3xbf16> to vector<902x3xbf16>
    %c0_2 = arith.constant 0 : index
    %c0_3 = arith.constant 0 : index
    %2 = vector.load %arg2[%c0_2, %c0_3] : memref<27x32xbf16, #tpu.memory_space<vmem>>, vector<27x32xbf16>
    %c0_4 = arith.constant 0 : index
    %c0_5 = arith.constant 0 : index
    %3 = vector.load %arg3[%c0_4, %c0_5] : memref<1x32xf32, #tpu.memory_space<vmem>>, vector<1x32xf32>
    %4 = vector.extract_strided_slice %1 {offsets = [0, 0], sizes = [840, 3], strides = [1, 1]} : vector<902x3xbf16> to vector<840x3xbf16>
    %5 = vector.extract_strided_slice %1 {offsets = [1, 0], sizes = [840, 3], strides = [1, 1]} : vector<902x3xbf16> to vector<840x3xbf16>
    %6 = vector.extract_strided_slice %1 {offsets = [2, 0], sizes = [840, 3], strides = [1, 1]} : vector<902x3xbf16> to vector<840x3xbf16>
    %7 = vector.extract_strided_slice %1 {offsets = [30, 0], sizes = [840, 3], strides = [1, 1]} : vector<902x3xbf16> to vector<840x3xbf16>
    %8 = vector.extract_strided_slice %1 {offsets = [31, 0], sizes = [840, 3], strides = [1, 1]} : vector<902x3xbf16> to vector<840x3xbf16>
    %9 = vector.extract_strided_slice %1 {offsets = [32, 0], sizes = [840, 3], strides = [1, 1]} : vector<902x3xbf16> to vector<840x3xbf16>
    %10 = vector.extract_strided_slice %1 {offsets = [60, 0], sizes = [840, 3], strides = [1, 1]} : vector<902x3xbf16> to vector<840x3xbf16>
    %11 = vector.extract_strided_slice %1 {offsets = [61, 0], sizes = [840, 3], strides = [1, 1]} : vector<902x3xbf16> to vector<840x3xbf16>
    %12 = vector.extract_strided_slice %1 {offsets = [62, 0], sizes = [840, 3], strides = [1, 1]} : vector<902x3xbf16> to vector<840x3xbf16>
    %13 = tpu.concatenate %4, %5, %6, %7, %8, %9, %10, %11, %12 in 1 : vector<840x3xbf16>, vector<840x3xbf16>, vector<840x3xbf16>, vector<840x3xbf16>, vector<840x3xbf16>, vector<840x3xbf16>, vector<840x3xbf16>, vector<840x3xbf16>, vector<840x3xbf16> -> vector<840x27xbf16>
    %cst = arith.constant dense<0.000000e+00> : vector<840x32xf32>
    %14 = tpu.matmul %13, %2, %cst {dimension_numbers = #tpu.dot_dimension_numbers<[1], [0], [0], [1], [0, 0, 1, 1], [], []>} : vector<840x27xbf16>, vector<27x32xbf16>, vector<840x32xf32> -> vector<840x32xf32>
    %15 = vector.extract_strided_slice %14 {offsets = [0, 0], sizes = [810, 32], strides = [1, 1]} : vector<840x32xf32> to vector<810x32xf32>
    %16 = vector.extract_strided_slice %14 {offsets = [30, 0], sizes = [810, 32], strides = [1, 1]} : vector<840x32xf32> to vector<810x32xf32>
    %17 = arith.maximumf %15, %16 : vector<810x32xf32>
    %18 = vector.extract_strided_slice %17 {offsets = [0, 0], sizes = [809, 32], strides = [1, 1]} : vector<810x32xf32> to vector<809x32xf32>
    %19 = vector.extract_strided_slice %17 {offsets = [1, 0], sizes = [809, 32], strides = [1, 1]} : vector<810x32xf32> to vector<809x32xf32>
    %20 = arith.maximumf %18, %19 : vector<809x32xf32>
    %21 = vector.broadcast %3 : vector<1x32xf32> to vector<809x32xf32>
    %22 = arith.addf %20, %21 : vector<809x32xf32>
    %cst_6 = arith.constant 0.000000e+00 : f32
    %23 = vector.broadcast %cst_6 : f32 to vector<809x32xf32>
    %24 = arith.maximumf %22, %23 : vector<809x32xf32>
    %c0_7 = arith.constant 0 : index
    %c0_8 = arith.constant 0 : index
    %25 = vector.load %arg6[%c0_7, %c0_8] : memref<258x809xbf16, #tpu.memory_space<vmem>>, vector<258x809xbf16>
    %26 = arith.truncf %24 : vector<809x32xf32> to vector<809x32xbf16>
    %cst_9 = arith.constant dense<0.000000e+00> : vector<258x32xf32>
    %27 = tpu.matmul %25, %26, %cst_9 {dimension_numbers = #tpu.dot_dimension_numbers<[1], [0], [0], [1], [0, 0, 1, 1], [], []>} : vector<258x809xbf16>, vector<809x32xbf16>, vector<258x32xf32> -> vector<258x32xf32>
    %28 = arith.truncf %27 : vector<258x32xf32> to vector<258x32xbf16>
    %c0_10 = arith.constant 0 : index
    %c0_11 = arith.constant 0 : index
    %29 = vector.load %arg4[%c0_10, %c0_11] : memref<288x64xbf16, #tpu.memory_space<vmem>>, vector<288x64xbf16>
    %c0_12 = arith.constant 0 : index
    %c0_13 = arith.constant 0 : index
    %30 = vector.load %arg5[%c0_12, %c0_13] : memref<1x64xf32, #tpu.memory_space<vmem>>, vector<1x64xf32>
    %31 = vector.extract_strided_slice %28 {offsets = [0, 0], sizes = [224, 32], strides = [1, 1]} : vector<258x32xbf16> to vector<224x32xbf16>
    %32 = vector.extract_strided_slice %28 {offsets = [1, 0], sizes = [224, 32], strides = [1, 1]} : vector<258x32xbf16> to vector<224x32xbf16>
    %33 = vector.extract_strided_slice %28 {offsets = [2, 0], sizes = [224, 32], strides = [1, 1]} : vector<258x32xbf16> to vector<224x32xbf16>
    %34 = vector.extract_strided_slice %28 {offsets = [16, 0], sizes = [224, 32], strides = [1, 1]} : vector<258x32xbf16> to vector<224x32xbf16>
    %35 = vector.extract_strided_slice %28 {offsets = [17, 0], sizes = [224, 32], strides = [1, 1]} : vector<258x32xbf16> to vector<224x32xbf16>
    %36 = vector.extract_strided_slice %28 {offsets = [18, 0], sizes = [224, 32], strides = [1, 1]} : vector<258x32xbf16> to vector<224x32xbf16>
    %37 = vector.extract_strided_slice %28 {offsets = [32, 0], sizes = [224, 32], strides = [1, 1]} : vector<258x32xbf16> to vector<224x32xbf16>
    %38 = vector.extract_strided_slice %28 {offsets = [33, 0], sizes = [224, 32], strides = [1, 1]} : vector<258x32xbf16> to vector<224x32xbf16>
    %39 = vector.extract_strided_slice %28 {offsets = [34, 0], sizes = [224, 32], strides = [1, 1]} : vector<258x32xbf16> to vector<224x32xbf16>
    %40 = tpu.concatenate %31, %32, %33, %34, %35, %36, %37, %38, %39 in 1 : vector<224x32xbf16>, vector<224x32xbf16>, vector<224x32xbf16>, vector<224x32xbf16>, vector<224x32xbf16>, vector<224x32xbf16>, vector<224x32xbf16>, vector<224x32xbf16>, vector<224x32xbf16> -> vector<224x288xbf16>
    %cst_14 = arith.constant dense<0.000000e+00> : vector<224x64xf32>
    %41 = tpu.matmul %40, %29, %cst_14 {dimension_numbers = #tpu.dot_dimension_numbers<[1], [0], [0], [1], [0, 0, 1, 1], [], []>} : vector<224x288xbf16>, vector<288x64xbf16>, vector<224x64xf32> -> vector<224x64xf32>
    %42 = vector.extract_strided_slice %41 {offsets = [0, 0], sizes = [208, 64], strides = [1, 1]} : vector<224x64xf32> to vector<208x64xf32>
    %43 = vector.extract_strided_slice %41 {offsets = [16, 0], sizes = [208, 64], strides = [1, 1]} : vector<224x64xf32> to vector<208x64xf32>
    %44 = arith.maximumf %42, %43 : vector<208x64xf32>
    %45 = vector.extract_strided_slice %44 {offsets = [0, 0], sizes = [207, 64], strides = [1, 1]} : vector<208x64xf32> to vector<207x64xf32>
    %46 = vector.extract_strided_slice %44 {offsets = [1, 0], sizes = [207, 64], strides = [1, 1]} : vector<208x64xf32> to vector<207x64xf32>
    %47 = arith.maximumf %45, %46 : vector<207x64xf32>
    %48 = vector.broadcast %30 : vector<1x64xf32> to vector<207x64xf32>
    %49 = arith.addf %47, %48 : vector<207x64xf32>
    %cst_15 = arith.constant 0.000000e+00 : f32
    %50 = vector.broadcast %cst_15 : f32 to vector<207x64xf32>
    %51 = arith.maximumf %49, %50 : vector<207x64xf32>
    %52 = arith.truncf %51 : vector<207x64xf32> to vector<207x64xbf16>
    %53 = vector.extract_strided_slice %52 {offsets = [0, 0], sizes = [1, 64], strides = [1, 1]} : vector<207x64xbf16> to vector<1x64xbf16>
    %54 = vector.extract_strided_slice %52 {offsets = [2, 0], sizes = [1, 64], strides = [1, 1]} : vector<207x64xbf16> to vector<1x64xbf16>
    %55 = vector.extract_strided_slice %52 {offsets = [4, 0], sizes = [1, 64], strides = [1, 1]} : vector<207x64xbf16> to vector<1x64xbf16>
    %56 = vector.extract_strided_slice %52 {offsets = [6, 0], sizes = [1, 64], strides = [1, 1]} : vector<207x64xbf16> to vector<1x64xbf16>
    %57 = vector.extract_strided_slice %52 {offsets = [8, 0], sizes = [1, 64], strides = [1, 1]} : vector<207x64xbf16> to vector<1x64xbf16>
    %58 = vector.extract_strided_slice %52 {offsets = [10, 0], sizes = [1, 64], strides = [1, 1]} : vector<207x64xbf16> to vector<1x64xbf16>
    %59 = vector.extract_strided_slice %52 {offsets = [12, 0], sizes = [1, 64], strides = [1, 1]} : vector<207x64xbf16> to vector<1x64xbf16>
    %60 = vector.extract_strided_slice %52 {offsets = [32, 0], sizes = [1, 64], strides = [1, 1]} : vector<207x64xbf16> to vector<1x64xbf16>
    %61 = vector.extract_strided_slice %52 {offsets = [34, 0], sizes = [1, 64], strides = [1, 1]} : vector<207x64xbf16> to vector<1x64xbf16>
    %62 = vector.extract_strided_slice %52 {offsets = [36, 0], sizes = [1, 64], strides = [1, 1]} : vector<207x64xbf16> to vector<1x64xbf16>
    %63 = vector.extract_strided_slice %52 {offsets = [38, 0], sizes = [1, 64], strides = [1, 1]} : vector<207x64xbf16> to vector<1x64xbf16>
    %64 = vector.extract_strided_slice %52 {offsets = [40, 0], sizes = [1, 64], strides = [1, 1]} : vector<207x64xbf16> to vector<1x64xbf16>
    %65 = vector.extract_strided_slice %52 {offsets = [42, 0], sizes = [1, 64], strides = [1, 1]} : vector<207x64xbf16> to vector<1x64xbf16>
    %66 = vector.extract_strided_slice %52 {offsets = [44, 0], sizes = [1, 64], strides = [1, 1]} : vector<207x64xbf16> to vector<1x64xbf16>
    %67 = vector.extract_strided_slice %52 {offsets = [64, 0], sizes = [1, 64], strides = [1, 1]} : vector<207x64xbf16> to vector<1x64xbf16>
    %68 = vector.extract_strided_slice %52 {offsets = [66, 0], sizes = [1, 64], strides = [1, 1]} : vector<207x64xbf16> to vector<1x64xbf16>
    %69 = vector.extract_strided_slice %52 {offsets = [68, 0], sizes = [1, 64], strides = [1, 1]} : vector<207x64xbf16> to vector<1x64xbf16>
    %70 = vector.extract_strided_slice %52 {offsets = [70, 0], sizes = [1, 64], strides = [1, 1]} : vector<207x64xbf16> to vector<1x64xbf16>
    %71 = vector.extract_strided_slice %52 {offsets = [72, 0], sizes = [1, 64], strides = [1, 1]} : vector<207x64xbf16> to vector<1x64xbf16>
    %72 = vector.extract_strided_slice %52 {offsets = [74, 0], sizes = [1, 64], strides = [1, 1]} : vector<207x64xbf16> to vector<1x64xbf16>
    %73 = vector.extract_strided_slice %52 {offsets = [76, 0], sizes = [1, 64], strides = [1, 1]} : vector<207x64xbf16> to vector<1x64xbf16>
    %74 = vector.extract_strided_slice %52 {offsets = [96, 0], sizes = [1, 64], strides = [1, 1]} : vector<207x64xbf16> to vector<1x64xbf16>
    %75 = vector.extract_strided_slice %52 {offsets = [98, 0], sizes = [1, 64], strides = [1, 1]} : vector<207x64xbf16> to vector<1x64xbf16>
    %76 = vector.extract_strided_slice %52 {offsets = [100, 0], sizes = [1, 64], strides = [1, 1]} : vector<207x64xbf16> to vector<1x64xbf16>
    %77 = vector.extract_strided_slice %52 {offsets = [102, 0], sizes = [1, 64], strides = [1, 1]} : vector<207x64xbf16> to vector<1x64xbf16>
    %78 = vector.extract_strided_slice %52 {offsets = [104, 0], sizes = [1, 64], strides = [1, 1]} : vector<207x64xbf16> to vector<1x64xbf16>
    %79 = vector.extract_strided_slice %52 {offsets = [106, 0], sizes = [1, 64], strides = [1, 1]} : vector<207x64xbf16> to vector<1x64xbf16>
    %80 = vector.extract_strided_slice %52 {offsets = [108, 0], sizes = [1, 64], strides = [1, 1]} : vector<207x64xbf16> to vector<1x64xbf16>
    %81 = vector.extract_strided_slice %52 {offsets = [128, 0], sizes = [1, 64], strides = [1, 1]} : vector<207x64xbf16> to vector<1x64xbf16>
    %82 = vector.extract_strided_slice %52 {offsets = [130, 0], sizes = [1, 64], strides = [1, 1]} : vector<207x64xbf16> to vector<1x64xbf16>
    %83 = vector.extract_strided_slice %52 {offsets = [132, 0], sizes = [1, 64], strides = [1, 1]} : vector<207x64xbf16> to vector<1x64xbf16>
    %84 = vector.extract_strided_slice %52 {offsets = [134, 0], sizes = [1, 64], strides = [1, 1]} : vector<207x64xbf16> to vector<1x64xbf16>
    %85 = vector.extract_strided_slice %52 {offsets = [136, 0], sizes = [1, 64], strides = [1, 1]} : vector<207x64xbf16> to vector<1x64xbf16>
    %86 = vector.extract_strided_slice %52 {offsets = [138, 0], sizes = [1, 64], strides = [1, 1]} : vector<207x64xbf16> to vector<1x64xbf16>
    %87 = vector.extract_strided_slice %52 {offsets = [140, 0], sizes = [1, 64], strides = [1, 1]} : vector<207x64xbf16> to vector<1x64xbf16>
    %88 = vector.extract_strided_slice %52 {offsets = [160, 0], sizes = [1, 64], strides = [1, 1]} : vector<207x64xbf16> to vector<1x64xbf16>
    %89 = vector.extract_strided_slice %52 {offsets = [162, 0], sizes = [1, 64], strides = [1, 1]} : vector<207x64xbf16> to vector<1x64xbf16>
    %90 = vector.extract_strided_slice %52 {offsets = [164, 0], sizes = [1, 64], strides = [1, 1]} : vector<207x64xbf16> to vector<1x64xbf16>
    %91 = vector.extract_strided_slice %52 {offsets = [166, 0], sizes = [1, 64], strides = [1, 1]} : vector<207x64xbf16> to vector<1x64xbf16>
    %92 = vector.extract_strided_slice %52 {offsets = [168, 0], sizes = [1, 64], strides = [1, 1]} : vector<207x64xbf16> to vector<1x64xbf16>
    %93 = vector.extract_strided_slice %52 {offsets = [170, 0], sizes = [1, 64], strides = [1, 1]} : vector<207x64xbf16> to vector<1x64xbf16>
    %94 = vector.extract_strided_slice %52 {offsets = [172, 0], sizes = [1, 64], strides = [1, 1]} : vector<207x64xbf16> to vector<1x64xbf16>
    %95 = vector.extract_strided_slice %52 {offsets = [192, 0], sizes = [1, 64], strides = [1, 1]} : vector<207x64xbf16> to vector<1x64xbf16>
    %96 = vector.extract_strided_slice %52 {offsets = [194, 0], sizes = [1, 64], strides = [1, 1]} : vector<207x64xbf16> to vector<1x64xbf16>
    %97 = vector.extract_strided_slice %52 {offsets = [196, 0], sizes = [1, 64], strides = [1, 1]} : vector<207x64xbf16> to vector<1x64xbf16>
    %98 = vector.extract_strided_slice %52 {offsets = [198, 0], sizes = [1, 64], strides = [1, 1]} : vector<207x64xbf16> to vector<1x64xbf16>
    %99 = vector.extract_strided_slice %52 {offsets = [200, 0], sizes = [1, 64], strides = [1, 1]} : vector<207x64xbf16> to vector<1x64xbf16>
    %100 = vector.extract_strided_slice %52 {offsets = [202, 0], sizes = [1, 64], strides = [1, 1]} : vector<207x64xbf16> to vector<1x64xbf16>
    %101 = vector.extract_strided_slice %52 {offsets = [204, 0], sizes = [1, 64], strides = [1, 1]} : vector<207x64xbf16> to vector<1x64xbf16>
    %102 = tpu.concatenate %53, %54, %55, %56, %57, %58, %59, %60, %61, %62, %63, %64, %65, %66, %67, %68 in 1 : vector<1x64xbf16>, vector<1x64xbf16>, vector<1x64xbf16>, vector<1x64xbf16>, vector<1x64xbf16>, vector<1x64xbf16>, vector<1x64xbf16>, vector<1x64xbf16>, vector<1x64xbf16>, vector<1x64xbf16>, vector<1x64xbf16>, vector<1x64xbf16>, vector<1x64xbf16>, vector<1x64xbf16>, vector<1x64xbf16>, vector<1x64xbf16> -> vector<1x1024xbf16>
    %103 = tpu.concatenate %69, %70, %71, %72, %73, %74, %75, %76, %77, %78, %79, %80, %81, %82, %83, %84 in 1 : vector<1x64xbf16>, vector<1x64xbf16>, vector<1x64xbf16>, vector<1x64xbf16>, vector<1x64xbf16>, vector<1x64xbf16>, vector<1x64xbf16>, vector<1x64xbf16>, vector<1x64xbf16>, vector<1x64xbf16>, vector<1x64xbf16>, vector<1x64xbf16>, vector<1x64xbf16>, vector<1x64xbf16>, vector<1x64xbf16>, vector<1x64xbf16> -> vector<1x1024xbf16>
    %104 = tpu.concatenate %85, %86, %87, %88, %89, %90, %91, %92, %93, %94, %95, %96, %97, %98, %99, %100 in 1 : vector<1x64xbf16>, vector<1x64xbf16>, vector<1x64xbf16>, vector<1x64xbf16>, vector<1x64xbf16>, vector<1x64xbf16>, vector<1x64xbf16>, vector<1x64xbf16>, vector<1x64xbf16>, vector<1x64xbf16>, vector<1x64xbf16>, vector<1x64xbf16>, vector<1x64xbf16>, vector<1x64xbf16>, vector<1x64xbf16>, vector<1x64xbf16> -> vector<1x1024xbf16>
    %105 = tpu.concatenate %102, %103, %104, %101 in 1 : vector<1x1024xbf16>, vector<1x1024xbf16>, vector<1x1024xbf16>, vector<1x64xbf16> -> vector<1x3136xbf16>
    %c0_16 = arith.constant 0 : index
    %c0_17 = arith.constant 0 : index
    %106 = vector.load %arg7[%c0_16, %c0_17] : memref<3136x128xbf16, #tpu.memory_space<vmem>>, vector<3136x128xbf16>
    %cst_18 = arith.constant dense<0.000000e+00> : vector<1x128xf32>
    %107 = tpu.matmul %105, %106, %cst_18 {dimension_numbers = #tpu.dot_dimension_numbers<[1], [0], [0], [1], [0, 0, 1, 1], [], []>} : vector<1x3136xbf16>, vector<3136x128xbf16>, vector<1x128xf32> -> vector<1x128xf32>
    %c0_19 = arith.constant 0 : index
    %c0_20 = arith.constant 0 : index
    %108 = vector.load %arg8[%c0_19, %c0_20] : memref<1x128xf32, #tpu.memory_space<vmem>>, vector<1x128xf32>
    %109 = arith.addf %107, %108 : vector<1x128xf32>
    %cst_21 = arith.constant 0.000000e+00 : f32
    %110 = vector.broadcast %cst_21 : f32 to vector<1x128xf32>
    %111 = arith.maximumf %109, %110 : vector<1x128xf32>
    %c0_22 = arith.constant 0 : index
    %c0_23 = arith.constant 0 : index
    %112 = vector.load %arg9[%c0_22, %c0_23] : memref<1x128xf32, #tpu.memory_space<vmem>>, vector<1x128xf32>
    %113 = arith.mulf %111, %112 : vector<1x128xf32>
    %cst_24 = arith.constant dense<0.000000e+00> : vector<1xf32>
    %114 = vector.multi_reduction <add>, %113, %cst_24 [1] : vector<1x128xf32> to vector<1xf32>
    %115 = vector.shape_cast %114 : vector<1xf32> to vector<1x1xf32>
    %c0_25 = arith.constant 0 : index
    %c0_26 = arith.constant 0 : index
    %116 = vector.load %arg10[%c0_25, %c0_26] : memref<1x1xf32, #tpu.memory_space<vmem>>, vector<1x1xf32>
    %117 = arith.addf %115, %116 : vector<1x1xf32>
    %cst_27 = arith.constant 0.000000e+00 : f32
    %118 = vector.broadcast %cst_27 : f32 to vector<1x1xf32>
    %119 = arith.subf %118, %117 : vector<1x1xf32>
    %120 = math.exp %119 : vector<1x1xf32>
    %cst_28 = arith.constant 1.000000e+00 : f32
    %121 = vector.broadcast %cst_28 : f32 to vector<1x1xf32>
    %122 = arith.addf %121, %120 : vector<1x1xf32>
    %cst_29 = arith.constant 1.000000e+00 : f32
    %123 = vector.broadcast %cst_29 : f32 to vector<1x1xf32>
    %124 = arith.divf %123, %122 : vector<1x1xf32>
    %c0_30 = arith.constant 0 : index
    %c0_31 = arith.constant 0 : index
    %c0_32 = arith.constant 0 : index
    %125 = vector.load %arg11[%c0_30, %c0_31, %c0_32] : memref<1x1x1xf32, #tpu.memory_space<vmem>>, vector<1x1x1xf32>
    %126 = vector.shape_cast %125 : vector<1x1x1xf32> to vector<1x1xf32>
    %127 = vector.shape_cast %124 : vector<1x1xf32> to vector<1x1x1xf32>
    tpu.vector_store %arg11[%c0_30, %c0_31, %c0_32], %127 {strides = array<i32>} : memref<1x1x1xf32, #tpu.memory_space<vmem>>, vector<1x1x1xf32>,
    return
  }
  func.func @transform_0(%arg0: i32) -> (i32, i32, i32) {
    %c0_i32 = arith.constant 0 : i32
    %c0_i32_0 = arith.constant 0 : i32
    %c0_i32_1 = arith.constant 0 : i32
    return %arg0, %c0_i32, %c0_i32_0 : i32, i32, i32
  }
  func.func @transform_1(%arg0: i32) -> (i32, i32) {
    %c0_i32 = arith.constant 0 : i32
    %c0_i32_0 = arith.constant 0 : i32
    %c0_i32_1 = arith.constant 0 : i32
    return %c0_i32, %c0_i32_0 : i32, i32
  }
  func.func @transform_2(%arg0: i32) -> (i32, i32) {
    %c0_i32 = arith.constant 0 : i32
    %c0_i32_0 = arith.constant 0 : i32
    %c0_i32_1 = arith.constant 0 : i32
    return %c0_i32, %c0_i32_0 : i32, i32
  }
  func.func @transform_3(%arg0: i32) -> (i32, i32) {
    %c0_i32 = arith.constant 0 : i32
    %c0_i32_0 = arith.constant 0 : i32
    %c0_i32_1 = arith.constant 0 : i32
    return %c0_i32, %c0_i32_0 : i32, i32
  }
  func.func @transform_4(%arg0: i32) -> (i32, i32) {
    %c0_i32 = arith.constant 0 : i32
    %c0_i32_0 = arith.constant 0 : i32
    %c0_i32_1 = arith.constant 0 : i32
    return %c0_i32, %c0_i32_0 : i32, i32
  }
  func.func @transform_5(%arg0: i32) -> (i32, i32) {
    %c0_i32 = arith.constant 0 : i32
    %c0_i32_0 = arith.constant 0 : i32
    %c0_i32_1 = arith.constant 0 : i32
    return %c0_i32, %c0_i32_0 : i32, i32
  }
  func.func @transform_6(%arg0: i32) -> (i32, i32) {
    %c0_i32 = arith.constant 0 : i32
    %c0_i32_0 = arith.constant 0 : i32
    %c0_i32_1 = arith.constant 0 : i32
    return %c0_i32, %c0_i32_0 : i32, i32
  }
  func.func @transform_7(%arg0: i32) -> (i32, i32) {
    %c0_i32 = arith.constant 0 : i32
    %c0_i32_0 = arith.constant 0 : i32
    %c0_i32_1 = arith.constant 0 : i32
    return %c0_i32, %c0_i32_0 : i32, i32
  }
  func.func @transform_8(%arg0: i32) -> (i32, i32) {
    %c0_i32 = arith.constant 0 : i32
    %c0_i32_0 = arith.constant 0 : i32
    %c0_i32_1 = arith.constant 0 : i32
    return %c0_i32, %c0_i32_0 : i32, i32
  }
  func.func @transform_9(%arg0: i32) -> (i32, i32) {
    %c0_i32 = arith.constant 0 : i32
    %c0_i32_0 = arith.constant 0 : i32
    %c0_i32_1 = arith.constant 0 : i32
    return %c0_i32, %c0_i32_0 : i32, i32
  }
  func.func @transform_10(%arg0: i32) -> (i32, i32, i32) {
    %c0_i32 = arith.constant 0 : i32
    %c0_i32_0 = arith.constant 0 : i32
    %c0_i32_1 = arith.constant 0 : i32
    return %arg0, %c0_i32, %c0_i32_0 : i32, i32, i32
  }
}

</mosaic_0001>

<bundles_post_ra>
// kernel: d_curr_forward.1
= control target key start
LH: loop header
LB: loop body
LE: loop exit
PB: predicated region body
PF: predicated region fallthrough
CT: control target
= control target key end

     0   :  { %s13016_s15 = smov 0   ;;  %s20833_s0 = inlined_call_operand.vmem [shape: bf16[2,902,3], index: 0, kind: input, shape index: {}]   ;;  %s20834_s1 = inlined_call_operand.vmem [shape: bf16[27,32], index: 1, kind: input, shape index: {}]   ;;  %s20835_s2 = inlined_call_operand.vmem [shape: f32[1,32], index: 2, kind: input, shape index: {}]   ;;  %s20836_s3 = inlined_call_operand.vmem [shape: bf16[288,64], index: 3, kind: input, shape index: {}]   ;;  %s20837_s4 = inlined_call_operand.vmem [shape: f32[1,64], index: 4, kind: input, shape index: {}]   ;;  %s20838_s5 = inlined_call_operand.vmem [shape: bf16[258,809], index: 5, kind: input, shape index: {}]   ;;  %s20839_s6 = inlined_call_operand.vmem [shape: bf16[3136,128], index: 6, kind: input, shape index: {}]   ;;  %s20840_s7 = inlined_call_operand.vmem [shape: f32[1,128], index: 7, kind: input, shape index: {}]   ;;  %s20841_s8 = inlined_call_operand.vmem [shape: f32[1,128], index: 8, kind: input, shape index: {}]   ;;  %s20842_s9 = inlined_call_operand.<no memory space> [shape: f32[1,1], index: 9, kind: input, shape index: {}]   ;;  %s20843_s10 = inlined_call_operand.vmem [shape: f32[2,1,1], index: 10, kind: output, shape index: {}]  }
   0x1   :  { %v15_v0 = vstv %s20842_s9 }
   0x2   :  { %16 = vst [vmem:[#allocation2] sm:$0x1] %v15_v0 }
   0x3 LB: > { %s10517_s16 = sadd.s32 4294967295, %s12944_s15   ;;  %p10521_p0 = scmp.ge.s32.totalorder %s12944_s15, 1  ;;  %s12944_s15 = sphi %s13016_s15, %s22_s15  }
   0x4   : > { %p314_p1 = scmp.lt.s32.totalorder %s12944_s15, 3 }
   0x6   : > { %p315_p2 = pnand %p10521_p0, %p314_p1 }
   0x8   : > { %318 = sbr.rel (%p315_p2) target bundleno = 2718 (0xa9e), region = 60 }
   0xd   : > { %p350_p3 = scmp.lt.s32.totalorder %s10517_s16, 1  ;;  %vm1544_vm0 = vcmask 1044480   ;;  %vm1273_vm1 = vcmask 1046528   ;;  %s12946_s20 = smov 15   ;;  %vm743_vm2 = vsmask.f32 7424 }
   0xe   : > { %s12947_s21 = smov 9   ;;  %s12948_s22 = smov 6   ;;  %vm2457_vm3 = vcmask 1045504   ;;  %vm1756_vm4 = vsmask.f32 4352  ;;  %vm3107_vm6 = vcmask 23552  }
   0xf   : > { %s21032_s16 = smov (!%p350_p3, %s10517_s16), 1  ;;  %s12949_s23 = smov 24   ;;  %vm2669_vm5 = vsmask.f32 5376  ;;  %vm3215_vm7 = vcmask 48128   ;;  %vm3322_vm8 = vcmask 72704  }
  0x10   : > { %s12887_s9 = smul.u32 452, %s21032_s16  ;;  %s12950_s24 = smov 3   ;;  %vm3429_vm9 = vcmask 97280   ;;  %vm3536_vm10 = vcmask 121856   ;;  %vm3643_vm11 = vcmask 146432   ;;  %vm3750_vm12 = vcmask 171008  }
  0x11   : > { %s12951_s25 = smov 18   ;;  %s12952_s26 = smov 12   ;;  %vm3857_vm13 = vcmask 195584   ;;  %vm3975_vm14 = vcmask 220160   ;;  %vm4464_vm15 = vcmask 1041408  }
  0x12   : > { %s13030_s19 = scalar_lea.vmem %s20833_s0, %s12887_s9  ;;  %s12953_s27 = smov 21  }
  0x13   : > { %v12782_v1 = vld [vmem:[%s13030_s19 + $0xc] sm:$0xff]   ;;  %v13034_v2 = vld [vmem:[%s13030_s19 + $0x14] sm:$0xff]   ;;  %v13037_v3 = vld [vmem:[%s13030_s19] sm:$0xff]  ;;  %s12955_s12 = smov 96   ;;  %s12956_s13 = smov 64  }
  0x14   : > { %v13040_v4 = vld [vmem:[%s13030_s19 + $0x8] sm:$0xff]   ;;  %v13043_v5 = vld [vmem:[%s13030_s19 + $0x1c] sm:$0xff]   ;;  %v1545_v6 = vrot.slane %v12782_v1, 3  ;;  %v1546_v7 = vrot.slane %v13034_v2, 3  ;;  %v1274_v8 = vrot.slane %v13037_v3, 1  ;;  %v13052_v11 = vld [vmem:[%s13030_s19 + $0x10] sm:$0xff]  }
  0x15   : > { %v1275_v9 = vrot.slane %v13040_v4, 1  ;;  %v13049_v10 = vld [vmem:[%s13030_s19 + $0x24] sm:$0xff]   ;;  %v745_v12 = vshrl.u32 %v13037_v3, 16  ;;  %v747_v13 = vshll.u32 %v13037_v3, 16  ;;  %2341 = vrot.lane.b32.xlu2 %v13052_v11, %s12946_s20  ;;  %v752_v16 = vshll.u32 %v13040_v4, 16  ;;  %v13101_v57 = vld [vmem:[%s13030_s19 + $0x2c] sm:$0xff]  }
  0x16   : > { %v1547_v14 = vsel %vm1544_vm0, %v1545_v6, %v1546_v7  ;;  %v1758_v17 = vshrl.u32 %v12782_v1, 16  ;;  %v1548_v18 = vrot.slane %v13043_v5, 3  ;;  %v1761_v20 = vshll.u32 %v12782_v1, 16 }
  0x17   : > { %v1276_v15 = vsel %vm1273_vm1, %v1274_v8, %v1275_v9  ;;  %1650 = vrot.lane.b32.xlu1 %v1547_v14, %s12947_s21  ;;  %v749_v19 = vrot.slane %v747_v13, 1  ;;  %v1766_v21 = vshrl.u32 %v13034_v2, 16  ;;  %v1550_v22 = vrot.slane %v13049_v10, 3  ;;  %v13118_v8 = vld [vmem:[%s13030_s19 + $0x18] sm:$0xff]  }
  0x18   : > { %1379 = vrot.lane.b32.xlu0 %v1276_v15, %s12948_s22  ;;  %v754_v23 = vrot.slane %v752_v16, 1  ;;  %v1769_v24 = vshll.u32 %v13034_v2, 16  ;;  %v1775_v25 = vshrl.u32 %v13043_v5, 16  ;;  %v1778_v27 = vshll.u32 %v13043_v5, 16 }
  0x19   : > { %v750_v26 = vor.u32 %v749_v19, %v745_v12  ;;  %v1760_v28 = vrot.slane %v1758_v17, 3  ;;  %v1763_v29 = vrot.slane %v1761_v20, 4  ;;  %v1784_v30 = vshrl.u32 %v13049_v10, 16 }
  0x1a   : > { %v1787_v31 = vshll.u32 %v13049_v10, 16  ;;  %v1768_v32 = vrot.slane %v1766_v21, 3  ;;  %v1771_v33 = vrot.slane %v1769_v24, 4  ;;  %v2670_v34 = vrot.slane %v1775_v25, 2  ;;  %v12792_v21 = vld [vmem:[%s13030_s19 + $0x34] sm:$0xff]  }
  0x1b   : > { %v2671_v35 = vrot.slane %v1778_v27, 3  ;;  %v13078_v36 = vsel %vm1544_vm0, %v1548_v18, %v1550_v22  ;;  %v755_v37 = vsel %vm743_vm2, %v750_v26, %v754_v23  ;;  %v2673_v38 = vrot.slane %v1784_v30, 2 }
  0x1c   : > { %v2674_v39 = vrot.slane %v1787_v31, 3  ;;  %v2459_v40 = vrot.slane %v13049_v10, 2  ;;  %v2458_v41 = vrot.slane %v13043_v5, 2  ;;  %v1764_v42 = vor.u32 %v1763_v29, %v1760_v28 }
  0x1d   : > { %v1772_v43 = vor.u32 %v1771_v33, %v1768_v32  ;;  %v2672_v44 = vor.u32 %v2671_v35, %v2670_v34  ;;  %v760_v47 = vshll.u32 %v13052_v11, 16  ;;  %v756_v48 = vshrl.u32 %v13040_v4, 16 }
  0x1e   : > { %v2675_v45 = vor.u32 %v2674_v39, %v2673_v38  ;;  %v2460_v46 = vsel %vm2457_vm3, %v2458_v41, %v2459_v40  ;;  %v1777_v54 = vrot.slane %v1775_v25, 3  ;;  %v1780_v55 = vrot.slane %v1778_v27, 4 }
  0x1f   : > { %3001 = vrot.lane.b32.xlu1 %v13078_v36, %s12949_s23  ;;  %2563 = vrot.lane.b32.xlu2 %v2460_v46, %s12951_s25  ;;  %v758_v49 = vor.u32 %v756_v48, %v754_v23  ;;  %v1773_v50 = vsel %vm1756_vm4, %v1764_v42, %v1772_v43  ;;  %v762_v52 = vrot.slane %v760_v47, 1  ;;  %v1277_v56 = vrot.slane %v13052_v11, 1 }
  0x20   : > { %1167 = vrot.lane.b32.xlu0 %v755_v37, %s12950_s24  ;;  %v2676_v51 = vsel %vm2669_vm5, %v2672_v44, %v2675_v45  ;;  %v1781_v58 = vor.u32 %v1780_v55, %v1777_v54  ;;  %v1793_v59 = vshrl.u32 %v13101_v57, 16  ;;  %v1796_v60 = vshll.u32 %v13101_v57, 16  ;;  %v13164_v44 = vld [vmem:[%s13030_s19 + $0x3c] sm:$0xff]  }
  0x21   : > { %v763_v53 = vsel %vm743_vm2, %v758_v49, %v762_v52  ;;  %v1278_v61 = vsel %vm1273_vm1, %v1275_v9, %v1277_v56  ;;  %v1549_v62 = vsel %vm1544_vm0, %v1546_v7, %v1548_v18  ;;  %v2461_v5 = vrot.slane %v13101_v57, 2 }
  0x22   : > { %v1782_v63 = vsel %vm1756_vm4, %v1772_v43, %v1781_v58  ;;  %v2677_v0 = vrot.slane %v1793_v59, 2  ;;  %v2678_v1 = vrot.slane %v1796_v60, 3  ;;  %v764_v7 = vshrl.u32 %v13052_v11, 16 }
  0x23   : > { %v2462_v2 = vsel %vm2457_vm3, %v2459_v40, %v2461_v5  ;;  %v768_v9 = vshll.u32 %v13118_v8, 16  ;;  %v1552_v13 = vrot.slane %v13101_v57, 3  ;;  %v1279_v16 = vrot.slane %v13118_v8, 1 }
  0x24   : > { %v2679_v6 = vor.u32 %v2678_v1, %v2677_v0  ;;  %v766_v14 = vor.u32 %v764_v7, %v762_v52  ;;  %v1786_v19 = vrot.slane %v1784_v30, 3  ;;  %v1789_v20 = vrot.slane %v1787_v31, 4  ;;  %v13148_v30 = vld [vmem:[%s13030_s19 + $0x20] sm:$0xff]  }
  0x25   : > { %v770_v15 = vrot.slane %v768_v9, 1  ;;  %v1553_v17 = vsel %vm1544_vm0, %v1550_v22, %v1552_v13  ;;  %v1280_v23 = vsel %vm1273_vm1, %v1277_v56, %v1279_v16  ;;  %v1802_v25 = vshrl.u32 %v12792_v21, 16 }
  0x26   : > { %v2680_v12 = vsel %vm2669_vm5, %v2675_v45, %v2679_v6  ;;  %v1790_v24 = vor.u32 %v1789_v20, %v1786_v19  ;;  %v1805_v26 = vshll.u32 %v12792_v21, 16  ;;  %v2463_v10 = vrot.slane %v12792_v21, 2  ;;  %v10541_v20 = vld [vmem:[%s20834_s1 + $0x8] sm:$0xf] }
  0x27   : > { %2233 = vrot.lane.b32.xlu1 %v1773_v50, %s12952_s26  ;;  %1169 = vrot.lane.b32.xlu2 %v763_v53, %s12950_s24  ;;  %v771_v18 = vsel %vm743_vm2, %v766_v14, %v770_v15  ;;  %v2681_v27 = vrot.slane %v1802_v25, 2  ;;  %v1554_v31 = vrot.slane %v12792_v21, 3  ;;  %v772_v34 = vshrl.u32 %v13118_v8, 16  ;;  %v13174_v50 = vld [vmem:[%s13030_s19 + $0x28] sm:$0xff]  }
  0x28   : > { %2891 = vrot.lane.b32.xlu0 %v2676_v51, %s12953_s27  ;;  %v1791_v22 = vsel %vm1756_vm4, %v1781_v58, %v1790_v24  ;;  %v2682_v28 = vrot.slane %v1805_v26, 3  ;;  %v2464_v32 = vsel %vm2457_vm3, %v2461_v5, %v2463_v10  ;;  %v776_v35 = vshll.u32 %v13148_v30, 16  ;;  %v13195_v5 = vld [vmem:[%s13030_s19 + $0x44] sm:$0xff]   ;;  %v11938_v21 = vld [vmem:[%s20834_s1 + $0x8] sm:$0x30] }
  0x29   : > { %v774_v37 = vor.u32 %v772_v34, %v770_v15  ;;  %v1281_v39 = vrot.slane %v13148_v30, 1  ;;  %v1795_v42 = vrot.slane %v1793_v59, 3  ;;  %v1798_v43 = vrot.slane %v1796_v60, 4  ;;  %v11937_v34 = vld [vmem:[%s20834_s1] sm:$0xff] }
  0x2a   : > { %v2683_v29 = vor.u32 %v2682_v28, %v2681_v27  ;;  %v778_v38 = vrot.slane %v776_v35, 1  ;;  %v1811_v46 = vshrl.u32 %v13164_v44, 16  ;;  %v1814_v47 = vshll.u32 %v13164_v44, 16 }
  0x2b   : > { %v1282_v41 = vsel %vm1273_vm1, %v1279_v16, %v1281_v39  ;;  %v1799_v45 = vor.u32 %v1798_v43, %v1795_v42  ;;  %v2465_v48 = vrot.slane %v13164_v44, 2  ;;  %v780_v54 = vshrl.u32 %v13148_v30, 16 }
  0x2c   : > { %v2684_v33 = vsel %vm2669_vm5, %v2679_v6, %v2683_v29  ;;  %v779_v40 = vsel %vm743_vm2, %v774_v37, %v778_v38  ;;  %v2685_v51 = vrot.slane %v1811_v46, 2  ;;  %v2686_v52 = vrot.slane %v1814_v47, 3 }
  0x2d   : > { %v1800_v49 = vsel %vm1756_vm4, %v1790_v24, %v1799_v45  ;;  %v2466_v53 = vsel %vm2457_vm3, %v2463_v10, %v2465_v48  ;;  %v1556_v56 = vrot.slane %v13164_v44, 3  ;;  %v784_v57 = vshll.u32 %v13174_v50, 16 }
  0x2e   : > { %v2687_v55 = vor.u32 %v2686_v52, %v2685_v51  ;;  %v782_v58 = vor.u32 %v780_v54, %v778_v38  ;;  %v1807_v0 = vrot.slane %v1805_v26, 4  ;;  %v1283_v1 = vrot.slane %v13174_v50, 1  ;;  %v13267_v52 = vld [vmem:[%s13030_s19 + $0x38] sm:$0xff]  }
  0x2f   : > { %1652 = vrot.lane.b32.xlu1 %v1549_v62, %s12947_s21  ;;  %2235 = vrot.lane.b32.xlu2 %v1782_v63, %s12952_s26  ;;  %v1557_v60 = vsel %vm1544_vm0, %v1554_v31, %v1556_v56  ;;  %v1804_v63 = vrot.slane %v1802_v25, 3  ;;  %v1823_v7 = vshll.u32 %v13195_v5, 16  ;;  %v2467_v15 = vrot.slane %v13195_v5, 2 }
  0x30   : > { %1381 = vrot.lane.b32.xlu0 %v1278_v61, %s12948_s22  ;;  %v2688_v59 = vsel %vm2669_vm5, %v2683_v29, %v2687_v55  ;;  %v786_v61 = vrot.slane %v784_v57, 1  ;;  %v1284_v9 = vsel %vm1273_vm1, %v1281_v39, %v1283_v1  ;;  %v10542_v25 = vor.u32 %v11938_v21, %v10541_v20 }
  0x31   : > { %v1808_v6 = vor.u32 %v1807_v0, %v1804_v63  ;;  %v2690_v14 = vrot.slane %v1823_v7, 3  ;;  %v2468_v19 = vsel %vm2457_vm3, %v2465_v48, %v2467_v15  ;;  %v20844_v26 = vmov 65535  }
  0x32   : > { %v787_v62 = vsel %vm743_vm2, %v782_v58, %v786_v61  ;;  %v1558_v29 = vrot.slane %v13195_v5, 3  ;;  %v1813_v38 = vrot.slane %v1811_v46, 3  ;;  %v1816_v39 = vrot.slane %v1814_v47, 4 }
  0x33   : > { %v1287_v0 = vrot.slane %v13267_v52, 1 }
  0x34   : > { %v1817_v42 = vor.u32 %v1816_v39, %v1813_v38 }
  0x36   : > { %v1818_v44 = vsel %vm1756_vm4, %v1808_v6, %v1817_v42 }
  0x37   : > { %2565 = vrot.lane.b32.xlu1 %v2462_v2, %s12951_s25  ;;  %2893 = vrot.lane.b32.xlu2 %v2680_v12, %s12953_s27  ;;  %v1820_v2 = vshrl.u32 %v13195_v5, 16  ;;  %v1809_v12 = vsel %vm1756_vm4, %v1799_v45, %v1808_v6 }
  0x38   : > { %2343 = vrot.lane.b32.xlu0 %v13118_v8, %s12946_s20 }
  0x3f   : > { %1171 = vrot.lane.b32.xlu1 %v771_v18, %s12950_s24  ;;  %1383 = vrot.lane.b32.xlu2 %v1280_v23, %s12948_s22  ;;  %v13213_v18 = vld [vmem:[%s13030_s19 + $0x30] sm:$0xff]   ;;  %v788_v23 = vshrl.u32 %v13174_v50, 16 }
  0x40   : > { %3003 = vrot.lane.b32.xlu0 %v1553_v17, %s12949_s23  ;;  %v792_v24 = vshll.u32 %v13213_v18, 16 }
  0x47   : > { %2237 = vrot.lane.b32.xlu1 %v1791_v22, %s12952_s26  ;;  %2345 = vrot.lane.b32.xlu2 %v13148_v30, %s12946_s20  ;;  %v4084_v22 = vsel %vm1544_vm0, 4294967295, %v20844_v26 }
  0x48   : > { %1654 = vrot.lane.b32.xlu0 %v13078_v36, %s12947_s21  ;;  %v1555_v36 = vsel %vm1544_vm0, %v1552_v13, %v1554_v31  ;;  %v2689_v13 = vrot.slane %v1820_v2, 2  ;;  %v4085_v27 = vsel %vm2457_vm3, %v4084_v22, 0  ;;  %v790_v31 = vor.u32 %v788_v23, %v786_v61 }
  0x49   : > { %v4087_v10 = vand.u32 %v10542_v25, %v4085_v27 }
  0x4b   : > { %4095 = vmatpush.bf16.msra.mxu0 %v4087_v10 }
  0x4f   : > { %2895 = vrot.lane.b32.xlu1 %v2684_v33, %s12953_s27  ;;  %3005 = vrot.lane.b32.xlu2 %v1555_v36, %s12949_s23  ;;  %v1285_v33 = vrot.slane %v13213_v18, 1 }
  0x50   : > { %2567 = vrot.lane.b32.xlu0 %v2464_v32, %s12951_s25  ;;  %v794_v32 = vrot.slane %v792_v24, 1  ;;  %4096 = vmatpush.bf16.msra.mxu0 %v11937_v34 }
  0x52   : > { %v795_v37 = vsel %vm743_vm2, %v790_v31, %v794_v32 }
  0x57   : > { %1385 = vrot.lane.b32.xlu1 %v1282_v41, %s12948_s22  ;;  %1656 = vrot.lane.b32.xlu2 %v1553_v17, %s12947_s21  ;;  %v2691_v17 = vor.u32 %v2690_v14, %v2689_v13  ;;  %v1286_v41 = vsel %vm1273_vm1, %v1283_v1, %v1285_v33  ;;  %v1825_v13 = vrot.slane %v1823_v7, 4 }
  0x58   : > { %1173 = vrot.lane.b32.xlu0 %v779_v40, %s12950_s24  ;;  %v13246_v40 = vld [vmem:[%s13030_s19 + $0x4c] sm:$0xff]  }
  0x59   : > { %v2692_v28 = vsel %vm2669_vm5, %v2687_v55, %v2691_v17  ;;  %v1829_v43 = vshrl.u32 %v13246_v40, 16  ;;  %v1832_v45 = vshll.u32 %v13246_v40, 16  ;;  %v1560_v55 = vrot.slane %v13246_v40, 3 }
  0x5b   : > { %v2693_v47 = vrot.slane %v1829_v43, 2  ;;  %v2694_v48 = vrot.slane %v1832_v45, 3  ;;  %v13282_v61 = vsel %vm1544_vm0, %v1558_v29, %v1560_v55 }
  0x5d   : > { %v13264_v51 = vor.u32 %v2694_v48, %v2693_v47 }
  0x5f   : > { %2347 = vrot.lane.b32.xlu1 %v13174_v50, %s12946_s20  ;;  %2569 = vrot.lane.b32.xlu2 %v2466_v53, %s12951_s25  ;;  %v2696_v58 = vsel %vm2669_vm5, %v2691_v17, %v13264_v51  ;;  %v1288_v17 = vsel %vm1273_vm1, %v1285_v33, %v1287_v0  ;;  %v13326_v33 = vld [vmem:[%s13030_s19 + $0x40] sm:$0xff]  }
  0x60   : > { %2239 = vrot.lane.b32.xlu0 %v1800_v49, %s12952_s26  ;;  %v2469_v49 = vrot.slane %v13246_v40, 2 }
  0x62   : > { %v2470_v57 = vsel %vm2457_vm3, %v2467_v15, %v2469_v49 }
  0x67   : > { %3007 = vrot.lane.b32.xlu1 %v1557_v60, %s12949_s23  ;;  %1175 = vrot.lane.b32.xlu2 %v787_v62, %s12950_s24 }
  0x68   : > { %2897 = vrot.lane.b32.xlu0 %v2688_v59, %s12953_s27  ;;  %v796_v59 = vshrl.u32 %v13213_v18, 16 }
  0x6a   : > { %v798_v62 = vor.u32 %v796_v59, %v794_v32  ;;  %v13364_v59 = vld [vmem:[%s13030_s19 + $0x5c] sm:$0xff]  }
  0x6f   : > { %1658 = vrot.lane.b32.xlu1 %v1555_v36, %s12947_s21  ;;  %2241 = vrot.lane.b32.xlu2 %v1809_v12, %s12952_s26  ;;  %v13210_v16 = vpop.permute.xlu2 %2341  ;;  %v1559_v36 = vsel %vm1544_vm0, %v1556_v56, %v1558_v29  ;;  %v1822_v12 = vrot.slane %v1820_v2, 3 }
  0x70   : > { %1387 = vrot.lane.b32.xlu0 %v1284_v9, %s12948_s22 }
  0x77   : > { %2571 = vrot.lane.b32.xlu1 %v2468_v19, %s12951_s25  ;;  %2899 = vrot.lane.b32.xlu2 %v2692_v28, %s12953_s27  ;;  %v13302_v19 = vld [vmem:[%s13030_s19 + $0x54] sm:$0xff]  }
  0x78   : > { %2349 = vrot.lane.b32.xlu0 %v13213_v18, %s12946_s20  ;;  %v1838_v5 = vshrl.u32 %v13302_v19, 16  ;;  %v1841_v2 = vshll.u32 %v13302_v19, 16  ;;  %v2471_v25 = vrot.slane %v13302_v19, 2 }
  0x79   : > { %v13237_v35 = vpop.permute.xlu2 %2563 }
  0x7a   : > { %v2697_v29 = vrot.slane %v1838_v5, 2  ;;  %v2698_v31 = vrot.slane %v1841_v2, 3  ;;  %v2472_v34 = vsel %vm2457_vm3, %v2469_v49, %v2471_v25 }
  0x7f   : > { %1177 = vrot.lane.b32.xlu1 %v795_v37, %s12950_s24  ;;  %1389 = vrot.lane.b32.xlu2 %v1286_v41, %s12948_s22  ;;  %v808_v37 = vshll.u32 %v13326_v33, 16 }
  0x80   : > { %3009 = vrot.lane.b32.xlu0 %v1559_v36, %s12949_s23 }
  0x81   : > { %v13254_v46 = vpop.permute.xlu2 %1169 }
  0x82   : > { %v3111_v38 = vsel %vm3107_vm6, %v13040_v4, %v13254_v46 }
  0x87   : > { %2243 = vrot.lane.b32.xlu1 %v1818_v44, %s12952_s26  ;;  %2351 = vrot.lane.b32.xlu2 %v13267_v52, %s12946_s20 }
  0x88   : > { %1660 = vrot.lane.b32.xlu0 %v1557_v60, %s12947_s21  ;;  %v800_v60 = vshll.u32 %v13267_v52, 16 }
  0x89   : > { %v1651_v53 = vpop.permute.xlu1 %1650  ;;  %v13272_v56 = vpop.permute.xlu2 %2235 }
  0x8a   : > { %v1380_v54 = vpop.permute.xlu0 %1379  ;;  %v802_v63 = vrot.slane %v800_v60, 1 }
  0x8c   : > { %v803_v15 = vsel %vm743_vm2, %v798_v62, %v802_v63  ;;  %v1850_v62 = vshll.u32 %v13364_v59, 16 }
  0x8f   : > { %2901 = vrot.lane.b32.xlu1 %v2696_v58, %s12953_s27  ;;  %3011 = vrot.lane.b32.xlu2 %v13282_v61, %s12949_s23 }
  0x90   : > { %2573 = vrot.lane.b32.xlu0 %v2470_v57, %s12951_s25  ;;  %v1834_v57 = vrot.slane %v1832_v45, 4  ;;  %v1847_v45 = vshrl.u32 %v13364_v59, 16 }
  0x91   : > { %v3002_v1 = vpop.permute.xlu1 %3001  ;;  %v13295_v14 = vpop.permute.xlu2 %2893 }
  0x92   : > { %v1168_v6 = vpop.permute.xlu0 %1167 }
  0x93   : > { %v3109_v9 = vsel %vm3107_vm6, %v13037_v3, %v1168_v6  ;;  %v1826_v3 = vor.u32 %v1825_v13, %v1822_v12  ;;  %v2702_v13 = vrot.slane %v1850_v62, 3 }
  0x94   : > { %v3217_v20 = vsel %vm3215_vm7, %v3109_v9, %v1380_v54  ;;  %v1831_v54 = vrot.slane %v1829_v43, 3 }
  0x95   : > { %v3324_v21 = vsel %vm3322_vm8, %v3217_v20, %v1651_v53  ;;  %v1827_v27 = vsel %vm1756_vm4, %v1817_v42, %v1826_v3  ;;  %v1562_v42 = vrot.slane %v13302_v19, 3  ;;  %v810_v53 = vrot.slane %v808_v37, 1 }
  0x96   : > { %v1835_v40 = vor.u32 %v1834_v57, %v1831_v54  ;;  %v2473_v20 = vrot.slane %v13364_v59, 2  ;;  %v1840_v37 = vrot.slane %v1838_v5, 3 }
  0x97   : > { %1391 = vrot.lane.b32.xlu1 %v1288_v17, %s12948_s22  ;;  %1662 = vrot.lane.b32.xlu2 %v1559_v36, %s12947_s21  ;;  %v804_v36 = vshrl.u32 %v13267_v52, 16  ;;  %v13351_v4 = vsel %vm1544_vm0, %v1560_v55, %v1562_v42 }
  0x98   : > { %1179 = vrot.lane.b32.xlu0 %v803_v15, %s12950_s24  ;;  %v1836_v12 = vsel %vm1756_vm4, %v1826_v3, %v1835_v40 }
  0x99   : > { %v2234_v7 = vpop.permute.xlu1 %2233  ;;  %v13316_v28 = vpop.permute.xlu2 %1383  ;;  %v806_v44 = vor.u32 %v804_v36, %v802_v63 }
  0x9a   : > { %v2892_v23 = vpop.permute.xlu0 %2891  ;;  %v3431_v24 = vsel %vm3429_vm9, %v3324_v21, %v2234_v7 }
  0x9b   : > { %v3538_v22 = vsel %vm3536_vm10, %v3431_v24, %v13210_v16  ;;  %v811_v46 = vsel %vm743_vm2, %v806_v44, %v810_v53  ;;  %v812_v24 = vshrl.u32 %v13326_v33, 16 }
  0x9c   : > { %v3645_v10 = vsel %vm3643_vm11, %v3538_v22, %v13237_v35  ;;  %v2699_v35 = vor.u32 %v2698_v31, %v2697_v29 }
  0x9d   : > { %v3752_v32 = vsel %vm3750_vm12, %v3645_v10, %v2892_v23  ;;  %v13393_v23 = vld [vmem:[%s13030_s19 + $0x48] sm:$0xff]  }
  0x9e   : > { %v3859_v16 = vsel %vm3857_vm13, %v3752_v32, %v3002_v1  ;;  %v2700_v49 = vsel %vm2669_vm5, %v13264_v51, %v2699_v35  ;;  %v1289_v51 = vrot.slane %v13326_v33, 1  ;;  %v816_v22 = vshll.u32 %v13393_v23, 16 }
  0x9f   : > { %10543 = vmatmul.msk.bf16.vlgmr.msra.gmra.mxu0 %vm3975_vm14, %v3859_v16  ;;  %2353 = vrot.lane.b32.xlu1 %v13326_v33, %s12946_s20  ;;  %v1291_v16 = vrot.slane %v13393_v23, 1 }
  0xa0   : > { %2245 = vrot.lane.b32.xlu0 %v1827_v27, %s12952_s26  ;;  %2575 = vrot.lane.b32.xlu2 %v2472_v34, %s12951_s25  ;;  %v1290_v6 = vsel %vm1273_vm1, %v1287_v0, %v1289_v51  ;;  %v818_v32 = vrot.slane %v816_v22, 1 }
  0xa1   : > { %v1653_v41 = vpop.permute.xlu1 %1652  ;;  %v13343_v47 = vpop.permute.xlu2 %2345  ;;  %v1292_v44 = vsel %vm1273_vm1, %v1289_v51, %v1291_v16 }
  0xa2   : > { %v1382_v39 = vpop.permute.xlu0 %1381 }
  0xa3   : > { %v3219_v48 = vsel %vm3215_vm7, %v3111_v38, %v1382_v39  ;;  %v1843_v38 = vrot.slane %v1841_v2, 4  ;;  %v13423_v39 = vld [vmem:[%s13030_s19 + $0x64] sm:$0xff]  }
  0xa4   : > { %v3326_v58 = vsel %vm3322_vm8, %v3219_v48, %v1653_v41  ;;  %v1856_v19 = vshrl.u32 %v13423_v39, 16  ;;  %v1859_v2 = vshll.u32 %v13423_v39, 16 }
  0xa5   : > { %v3433_v43 = vsel %vm3429_vm9, %v3326_v58, %v13272_v56  ;;  %v2701_v56 = vrot.slane %v1847_v45, 2  ;;  %v1844_v5 = vor.u32 %v1843_v38, %v1840_v37 }
  0xa6   : > { %v2705_v58 = vrot.slane %v1856_v19, 2  ;;  %v2706_v51 = vrot.slane %v1859_v2, 3 }
  0xa7   : > { %3013 = vrot.lane.b32.xlu1 %v13351_v4, %s12949_s23  ;;  %v2703_v7 = vor.u32 %v2702_v13, %v2701_v56 }
  0xa8   : > { %2903 = vrot.lane.b32.xlu0 %v2700_v49, %s12953_s27  ;;  %1181 = vrot.lane.b32.xlu2 %v811_v46, %s12950_s24 }
  0xa9   : > { %v2566_v60 = vpop.permute.xlu1 %2565  ;;  %v3006_v1 = vpop.permute.xlu2 %3005  ;;  %v2704_v27 = vsel %vm2669_vm5, %v2699_v35, %v2703_v7 }
  0xaa   : > { %v2344_v55 = vpop.permute.xlu0 %2343 }
  0xab   : > { %v3540_v63 = vsel %vm3536_vm10, %v3433_v43, %v2344_v55  ;;  %v2475_v55 = vrot.slane %v13423_v39, 2 }
  0xac   : > { %v3647_v9 = vsel %vm3643_vm11, %v3540_v63, %v2566_v60  ;;  %v13451_v60 = vld [vmem:[%s13030_s19 + $0x50] sm:$0xff]  }
  0xad   : > { %v3754_v15 = vsel %vm3750_vm12, %v3647_v9, %v13295_v14  ;;  %v2474_v14 = vsel %vm2457_vm3, %v2471_v25, %v2473_v20  ;;  %v814_v25 = vor.u32 %v812_v24, %v810_v53  ;;  %v824_v56 = vshll.u32 %v13451_v60, 16 }
  0xaf   : > { %1664 = vrot.lane.b32.xlu1 %v13282_v61, %s12947_s21 }
  0xb0   : > { %1393 = vrot.lane.b32.xlu0 %v1290_v6, %s12948_s22  ;;  %2247 = vrot.lane.b32.xlu2 %v1836_v12, %s12952_s26  ;;  %v820_v12 = vshrl.u32 %v13393_v23, 16 }
  0xb1   : > { %v1172_v17 = vpop.permute.xlu1 %1171  ;;  %v13390_v21 = vpop.permute.xlu2 %1656 }
  0xb2   : > { %v3004_v0 = vpop.permute.xlu0 %3003  ;;  %v3113_v61 = vsel %vm3107_vm6, %v13052_v11, %v1172_v17  ;;  %v1564_v11 = vrot.slane %v13364_v59, 3  ;;  %v822_v17 = vor.u32 %v820_v12, %v818_v32  ;;  %v13541_v12 = vld [vmem:[%s13030_s19 + $0x74] sm:$0xff]  }
  0xb3   : > { %v3861_v3 = vsel %vm3857_vm13, %v3754_v15, %v3004_v0  ;;  %v3221_v10 = vsel %vm3215_vm7, %v3113_v61, %v13316_v28  ;;  %v819_v28 = vsel %vm743_vm2, %v814_v25, %v818_v32  ;;  %v1293_v61 = vrot.slane %v13451_v60, 1 }
  0xb4   : > { %10544 = vmatmul.msk.bf16.gmra.mxu0 %vm3975_vm14, %v3861_v3  ;;  %v13415_v35 = vsel %vm1544_vm0, %v1562_v42, %v1564_v11 }
  0xb7   : > { %2577 = vrot.lane.b32.xlu1 %v2474_v14, %s12951_s25 }
  0xb8   : > { %2355 = vrot.lane.b32.xlu0 %v13393_v23, %s12946_s20  ;;  %2905 = vrot.lane.b32.xlu2 %v2704_v27, %s12953_s27  ;;  %v1849_v27 = vrot.slane %v1847_v45, 3 }
  0xb9   : > { %v2238_v31 = vpop.permute.xlu1 %2237  ;;  %v13412_v36 = vpop.permute.xlu2 %2569 }
  0xba   : > { %v1655_v29 = vpop.permute.xlu0 %1654 }
  0xbb   : > { %v3328_v34 = vsel %vm3322_vm8, %v3221_v10, %v1655_v29  ;;  %v1852_v10 = vrot.slane %v1850_v62, 4  ;;  %v1294_v29 = vsel %vm1273_vm1, %v1291_v16, %v1293_v61 }
  0xbc   : > { %v3435_v41 = vsel %vm3429_vm9, %v3328_v34, %v2238_v31 }
  0xbd   : > { %v3542_v42 = vsel %vm3536_vm10, %v3435_v41, %v13343_v47  ;;  %v1845_v47 = vsel %vm1756_vm4, %v1835_v40, %v1844_v5  ;;  %v1566_v40 = vrot.slane %v13423_v39, 3  ;;  %v1853_v31 = vor.u32 %v1852_v10, %v1849_v27 }
  0xbe   : > { %v2479_v27 = vrot.slane %v13541_v12, 2 }
  0xbf   : > { %1183 = vrot.lane.b32.xlu1 %v819_v28, %s12950_s24  ;;  %v13465_v15 = vsel %vm1544_vm0, %v1564_v11, %v1566_v40  ;;  %v13484_v11 = vld [vmem:[%s13030_s19 + $0x6c] sm:$0xff]   ;;  %v1854_v38 = vsel %vm1756_vm4, %v1844_v5, %v1853_v31 }
  0xc0   : > { %3015 = vrot.lane.b32.xlu0 %v13415_v35, %s12949_s23  ;;  %1395 = vrot.lane.b32.xlu2 %v1292_v44, %s12948_s22  ;;  %v1865_v25 = vshrl.u32 %v13484_v11, 16  ;;  %v1868_v45 = vshll.u32 %v13484_v11, 16  ;;  %v2477_v34 = vrot.slane %v13484_v11, 2  ;;  %v13510_v44 = vld [vmem:[%s13030_s19 + $0x58] sm:$0xff]  }
  0xc1   : > { %v2896_v49 = vpop.permute.xlu1 %2895  ;;  %v13437_v54 = vpop.permute.xlu2 %1175 }
  0xc2   : > { %v2568_v48 = vpop.permute.xlu0 %2567  ;;  %v2710_v41 = vrot.slane %v1868_v45, 3  ;;  %v3117_v5 = vsel %vm3107_vm6, %v13148_v30, %v13437_v54  ;;  %v1858_v54 = vrot.slane %v1856_v19, 3 }
  0xc3   : > { %v3649_v53 = vsel %vm3643_vm11, %v3542_v42, %v2568_v48  ;;  %v828_v42 = vshrl.u32 %v13451_v60, 16 }
  0xc4   : > { %v3756_v46 = vsel %vm3750_vm12, %v3649_v53, %v2896_v49  ;;  %v832_v49 = vshll.u32 %v13510_v44, 16 }
  0xc5   : > { %v3863_v57 = vsel %vm3857_vm13, %v3756_v46, %v3006_v1  ;;  %v2707_v1 = vor.u32 %v2706_v51, %v2705_v58 }
  0xc6   : > { %10545 = vmatmul.msk.bf16.gmra.mxu0 %vm3975_vm14, %v3863_v57  ;;  %v1568_v57 = vrot.slane %v13484_v11, 3 }
  0xc7   : > { %2249 = vrot.lane.b32.xlu1 %v1845_v47, %s12952_s26  ;;  %v2708_v13 = vsel %vm2669_vm5, %v2703_v7, %v2707_v1 }
  0xc8   : > { %1666 = vrot.lane.b32.xlu0 %v13351_v4, %s12947_s21  ;;  %2357 = vrot.lane.b32.xlu2 %v13451_v60, %s12946_s20  ;;  %v2476_v4 = vsel %vm2457_vm3, %v2473_v20, %v2475_v55 }
  0xc9   : > { %v1386_v63 = vpop.permute.xlu1 %1385  ;;  %v13456_v6 = vpop.permute.xlu2 %2241 }
  0xca   : > { %v1174_v43 = vpop.permute.xlu0 %1173 }
  0xcb   : > { %v3115_v9 = vsel %vm3107_vm6, %v13118_v8, %v1174_v43  ;;  %v826_v8 = vrot.slane %v824_v56, 1  ;;  %v834_v43 = vrot.slane %v832_v49, 1  ;;  %v1867_v49 = vrot.slane %v1865_v25, 3 }
  0xcc   : > { %v3223_v0 = vsel %vm3215_vm7, %v3115_v9, %v1386_v63  ;;  %v13528_v63 = vsel %vm1544_vm0, %v1566_v40, %v1568_v57  ;;  %v1861_v9 = vrot.slane %v1859_v2, 4  ;;  %v1874_v2 = vshrl.u32 %v13541_v12, 16 }
  0xcd   : > { %v3330_v7 = vsel %vm3322_vm8, %v3223_v0, %v13390_v21  ;;  %v827_v22 = vsel %vm743_vm2, %v822_v17, %v826_v8  ;;  %v830_v47 = vor.u32 %v828_v42, %v826_v8 }
  0xce   : > { %v1862_v39 = vor.u32 %v1861_v9, %v1858_v54 }
  0xcf   : > { %2907 = vrot.lane.b32.xlu1 %v2708_v13, %s12953_s27  ;;  %v835_v30 = vsel %vm743_vm2, %v830_v47, %v834_v43  ;;  %v1877_v13 = vshll.u32 %v13541_v12, 16 }
  0xd0   : > { %2579 = vrot.lane.b32.xlu0 %v2476_v4, %s12951_s25  ;;  %3017 = vrot.lane.b32.xlu2 %v13465_v15, %s12949_s23 }
  0xd1   : > { %v2348_v20 = vpop.permute.xlu1 %2347  ;;  %v13476_v24 = vpop.permute.xlu2 %2899 }
  0xd2   : > { %v2240_v3 = vpop.permute.xlu0 %2239 }
  0xd3   : > { %v3437_v14 = vsel %vm3429_vm9, %v3330_v7, %v2240_v3  ;;  %v2714_v7 = vrot.slane %v1877_v13, 3 }
  0xd4   : > { %v3544_v21 = vsel %vm3536_vm10, %v3437_v14, %v2348_v20  ;;  %v1863_v20 = vsel %vm1756_vm4, %v1853_v31, %v1862_v39  ;;  %v13570_v31 = vld [vmem:[%s13030_s19 + $0x60] sm:$0xff]  }
  0xd5   : > { %v3651_v59 = vsel %vm3643_vm11, %v3544_v21, %v13412_v36  ;;  %v2709_v36 = vrot.slane %v1865_v25, 2 }
  0xd7   : > { %1397 = vrot.lane.b32.xlu1 %v1294_v29, %s12948_s22  ;;  %v2711_v48 = vor.u32 %v2710_v41, %v2709_v36  ;;  %v1297_v41 = vrot.slane %v13570_v31, 1 }
  0xd8   : > { %1185 = vrot.lane.b32.xlu0 %v827_v22, %s12950_s24  ;;  %1668 = vrot.lane.b32.xlu2 %v13415_v35, %s12947_s21  ;;  %v2478_v35 = vsel %vm2457_vm3, %v2475_v55, %v2477_v34 }
  0xd9   : > { %v3008_v32 = vpop.permute.xlu1 %3007  ;;  %v13501_v37 = vpop.permute.xlu2 %1389  ;;  %v2712_v55 = vsel %vm2669_vm5, %v2707_v1, %v2711_v48  ;;  %v1295_v1 = vrot.slane %v13510_v44, 1 }
  0xda   : > { %v2898_v62 = vpop.permute.xlu0 %2897 }
  0xdb   : > { %v3758_v16 = vsel %vm3750_vm12, %v3651_v59, %v2898_v62  ;;  %v1296_v8 = vsel %vm1273_vm1, %v1293_v61, %v1295_v1  ;;  %v836_v59 = vshrl.u32 %v13510_v44, 16  ;;  %v840_v62 = vshll.u32 %v13570_v31, 16 }
  0xdc   : > { %v3865_v28 = vsel %vm3857_vm13, %v3758_v16, %v3008_v32  ;;  %v1298_v47 = vsel %vm1273_vm1, %v1295_v1, %v1297_v41 }
  0xdd   : > { %10546 = vmatmul.msk.bf16.gmra.mxu0 %vm3975_vm14, %v3865_v28  ;;  %v1570_v28 = vrot.slane %v13541_v12, 3  ;;  %v842_v36 = vrot.slane %v840_v62, 1 }
  0xdf   : > { %2359 = vrot.lane.b32.xlu1 %v13510_v44, %s12946_s20 }
  0xe0   : > { %2251 = vrot.lane.b32.xlu0 %v1854_v38, %s12952_s26  ;;  %2581 = vrot.lane.b32.xlu2 %v2478_v35, %s12951_s25 }
  0xe1   : > { %v1659_v46 = vpop.permute.xlu1 %1658  ;;  %v13523_v58 = vpop.permute.xlu2 %2351 }
  0xe2   : > { %v1388_v53 = vpop.permute.xlu0 %1387 }
  0xe3   : > { %v3225_v51 = vsel %vm3215_vm7, %v3117_v5, %v1388_v53  ;;  %v1870_v5 = vrot.slane %v1868_v45, 4  ;;  %v13598_v53 = vld [vmem:[%s13030_s19 + $0x7c] sm:$0xff]  }
  0xe4   : > { %v3332_v4 = vsel %vm3322_vm8, %v3225_v51, %v1659_v46  ;;  %v1883_v11 = vshrl.u32 %v13598_v53, 16  ;;  %v1886_v45 = vshll.u32 %v13598_v53, 16 }
  0xe5   : > { %v3439_v19 = vsel %vm3429_vm9, %v3332_v4, %v13456_v6  ;;  %v2713_v6 = vrot.slane %v1874_v2, 2  ;;  %v1871_v25 = vor.u32 %v1870_v5, %v1867_v49 }
  0xe6   : > { %v2717_v4 = vrot.slane %v1883_v11, 2  ;;  %v2718_v1 = vrot.slane %v1886_v45, 3 }
  0xe7   : > { %3019 = vrot.lane.b32.xlu1 %v13528_v63, %s12949_s23  ;;  %v2715_v29 = vor.u32 %v2714_v7, %v2713_v6 }
  0xe8   : > { %2909 = vrot.lane.b32.xlu0 %v2712_v55, %s12953_s27  ;;  %1187 = vrot.lane.b32.xlu2 %v835_v30, %s12950_s24 }
  0xe9   : > { %v2572_v56 = vpop.permute.xlu1 %2571  ;;  %v3012_v17 = vpop.permute.xlu2 %3011  ;;  %v2716_v32 = vsel %vm2669_vm5, %v2711_v48, %v2715_v29  ;;  %v13590_v48 = vsel %vm1544_vm0, %v1568_v57, %v1570_v28 }
  0xea   : > { %v2350_v40 = vpop.permute.xlu0 %2349 }
  0xeb   : > { %v3546_v0 = vsel %vm3536_vm10, %v3439_v19, %v2350_v40  ;;  %v2481_v40 = vrot.slane %v13598_v53, 2 }
  0xec   : > { %v3653_v3 = vsel %vm3643_vm11, %v3546_v0, %v2572_v56  ;;  %v13626_v56 = vld [vmem:[%s13030_s19 + $0x68] sm:$0xff]  }
  0xed   : > { %v3760_v14 = vsel %vm3750_vm12, %v3653_v3, %v13476_v24  ;;  %v2480_v24 = vsel %vm2457_vm3, %v2477_v34, %v2479_v27  ;;  %v838_v34 = vor.u32 %v836_v59, %v834_v43  ;;  %v848_v6 = vshll.u32 %v13626_v56, 16 }
  0xef   : > { %1670 = vrot.lane.b32.xlu1 %v13465_v15, %s12947_s21 }
  0xf0   : > { %1399 = vrot.lane.b32.xlu0 %v1296_v8, %s12948_s22  ;;  %2253 = vrot.lane.b32.xlu2 %v1863_v20, %s12952_s26  ;;  %v844_v20 = vshrl.u32 %v13570_v31, 16 }
  0xf1   : > { %v1178_v22 = vpop.permute.xlu1 %1177  ;;  %v13567_v21 = vpop.permute.xlu2 %1662 }
  0xf2   : > { %v3010_v61 = vpop.permute.xlu0 %3009  ;;  %v3119_v15 = vsel %vm3107_vm6, %v13174_v50, %v1178_v22  ;;  %v846_v22 = vor.u32 %v844_v20, %v842_v36 }
  0xf3   : > { %v3867_v10 = vsel %vm3857_vm13, %v3760_v14, %v3010_v61  ;;  %v3227_v16 = vsel %vm3215_vm7, %v3119_v15, %v13501_v37  ;;  %v843_v37 = vsel %vm743_vm2, %v838_v34, %v842_v36 }
  0xf4   : > { %10547 = vmatmul.msk.bf16.gmra.mxu0 %vm3975_vm14, %v3867_v10 }
  0xf7   : > { %2583 = vrot.lane.b32.xlu1 %v2480_v24, %s12951_s25 }
  0xf8   : > { %2361 = vrot.lane.b32.xlu0 %v13570_v31, %s12946_s20  ;;  %2911 = vrot.lane.b32.xlu2 %v2716_v32, %s12953_s27  ;;  %v1876_v32 = vrot.slane %v1874_v2, 3 }
  0xf9   : > { %v2244_v38 = vpop.permute.xlu1 %2243 }
  0xfa   : > { %v1661_v50 = vpop.permute.xlu0 %1660  ;;  %v13587_v42 = vpop.permute.xlu2 %2575 }
  0xfb   : > { %v3334_v35 = vsel %vm3322_vm8, %v3227_v16, %v1661_v50  ;;  %v1879_v16 = vrot.slane %v1877_v13, 4 }
  0xfc   : > { %v3441_v46 = vsel %vm3429_vm9, %v3334_v35, %v2244_v38 }
  0xfd   : > { %v3548_v57 = vsel %vm3536_vm10, %v3441_v46, %v13523_v58  ;;  %v1872_v58 = vsel %vm1756_vm4, %v1862_v39, %v1871_v25  ;;  %v1572_v39 = vrot.slane %v13598_v53, 3  ;;  %v1880_v38 = vor.u32 %v1879_v16, %v1876_v32 }
  0xff   : > { %1189 = vrot.lane.b32.xlu1 %v843_v37, %s12950_s24  ;;  %v13640_v14 = vsel %vm1544_vm0, %v1570_v28, %v1572_v39  ;;  %v13659_v28 = vld [vmem:[%s13030_s19 + $0x84] sm:$0xff]   ;;  %v1881_v5 = vsel %vm1756_vm4, %v1871_v25, %v1880_v38 }
 0x100   : > { %3021 = vrot.lane.b32.xlu0 %v13590_v48, %s12949_s23  ;;  %1401 = vrot.lane.b32.xlu2 %v1298_v47, %s12948_s22  ;;  %v1892_v34 = vshrl.u32 %v13659_v28, 16  ;;  %v1895_v2 = vshll.u32 %v13659_v28, 16  ;;  %v2483_v35 = vrot.slane %v13659_v28, 2 }
 0x101   : > { %v2902_v55 = vpop.permute.xlu1 %2901 }
 0x102   : > { %v2574_v51 = vpop.permute.xlu0 %2573  ;;  %v13612_v54 = vpop.permute.xlu2 %1181  ;;  %v2722_v46 = vrot.slane %v1895_v2, 3 }
 0x103   : > { %v3655_v43 = vsel %vm3643_vm11, %v3548_v57, %v2574_v51  ;;  %v2484_v57 = vsel %vm2457_vm3, %v2481_v40, %v2483_v35  ;;  %v852_v51 = vshrl.u32 %v13626_v56, 16 }
 0x104   : > { %v3762_v30 = vsel %vm3750_vm12, %v3655_v43, %v2902_v55  ;;  %v3123_v43 = vsel %vm3107_vm6, %v13267_v52, %v13612_v54  ;;  %v1885_v54 = vrot.slane %v1883_v11, 3 }
 0x105   : > { %v3869_v9 = vsel %vm3857_vm13, %v3762_v30, %v3012_v17  ;;  %v2719_v17 = vor.u32 %v2718_v1, %v2717_v4 }
 0x106   : > { %10548 = vmatmul.msk.bf16.gmra.mxu0 %vm3975_vm14, %v3869_v9  ;;  %v1574_v9 = vrot.slane %v13659_v28, 3 }
 0x107   : > { %2255 = vrot.lane.b32.xlu1 %v1872_v58, %s12952_s26  ;;  %v2720_v7 = vsel %vm2669_vm5, %v2715_v29, %v2719_v17 }
 0x108   : > { %1672 = vrot.lane.b32.xlu0 %v13528_v63, %s12947_s21  ;;  %2363 = vrot.lane.b32.xlu2 %v13626_v56, %s12946_s20  ;;  %v2482_v63 = vsel %vm2457_vm3, %v2479_v27, %v2481_v40  ;;  %v1299_v27 = vrot.slane %v13626_v56, 1 }
 0x109   : > { %v1392_v0 = vpop.permute.xlu1 %1391 }
 0x10a   : > { %v1180_v19 = vpop.permute.xlu0 %1179  ;;  %v13631_v8 = vpop.permute.xlu2 %2247  ;;  %v1300_v50 = vsel %vm1273_vm1, %v1297_v41, %v1299_v27 }
 0x10b   : > { %v3121_v3 = vsel %vm3107_vm6, %v13213_v18, %v1180_v19  ;;  %v850_v18 = vrot.slane %v848_v6, 1 }
 0x10c   : > { %v3229_v61 = vsel %vm3215_vm7, %v3121_v3, %v1392_v0  ;;  %v13709_v3 = vsel %vm1544_vm0, %v1572_v39, %v1574_v9  ;;  %v13724_v39 = vld [vmem:[%s13030_s19 + $0x8c] sm:$0xff]  }
 0x10d   : > { %v3336_v29 = vsel %vm3322_vm8, %v3229_v61, %v13567_v21  ;;  %v851_v62 = vsel %vm743_vm2, %v846_v22, %v850_v18  ;;  %v854_v4 = vor.u32 %v852_v51, %v850_v18  ;;  %v1901_v61 = vshrl.u32 %v13724_v39, 16 }
 0x10e   : > { %v1904_v22 = vshll.u32 %v13724_v39, 16 }
 0x10f   : > { %2913 = vrot.lane.b32.xlu1 %v2720_v7, %s12953_s27 }
 0x110   : > { %2585 = vrot.lane.b32.xlu0 %v2482_v63, %s12951_s25  ;;  %3023 = vrot.lane.b32.xlu2 %v13640_v14, %s12949_s23  ;;  %v1888_v63 = vrot.slane %v1886_v45, 4 }
 0x111   : > { %v2354_v15 = vpop.permute.xlu1 %2353 }
 0x112   : > { %v2246_v10 = vpop.permute.xlu0 %2245  ;;  %v13651_v59 = vpop.permute.xlu2 %2905  ;;  %v13729_v45 = vor.u32 %v1888_v63, %v1885_v54 }
 0x113   : > { %v3443_v24 = vsel %vm3429_vm9, %v3336_v29, %v2246_v10 }
 0x114   : > { %v3550_v21 = vsel %vm3536_vm10, %v3443_v24, %v2354_v15  ;;  %v2725_v24 = vrot.slane %v1901_v61, 2 }
 0x115   : > { %v3657_v12 = vsel %vm3643_vm11, %v3550_v21, %v13587_v42  ;;  %v2721_v42 = vrot.slane %v1892_v34, 2 }
 0x117   : > { %1403 = vrot.lane.b32.xlu1 %v1300_v50, %s12948_s22  ;;  %v2723_v55 = vor.u32 %v2722_v46, %v2721_v42  ;;  %v2485_v50 = vrot.slane %v13724_v39, 2 }
 0x118   : > { %1191 = vrot.lane.b32.xlu0 %v851_v62, %s12950_s24  ;;  %1674 = vrot.lane.b32.xlu2 %v13590_v48, %s12947_s21  ;;  %v13685_v48 = vld [vmem:[%s13030_s19 + $0x70] sm:$0xff]   ;;  %v2726_v62 = vrot.slane %v1904_v22, 3 }
 0x119   : > { %v3014_v41 = vpop.permute.xlu1 %3013  ;;  %v856_v25 = vshll.u32 %v13685_v48, 16  ;;  %v2724_v19 = vsel %vm2669_vm5, %v2719_v17, %v2723_v55  ;;  %v1301_v17 = vrot.slane %v13685_v48, 1 }
 0x11a   : > { %v2904_v13 = vpop.permute.xlu0 %2903  ;;  %v13676_v49 = vpop.permute.xlu2 %1395 }
 0x11b   : > { %v3764_v36 = vsel %vm3750_vm12, %v3657_v12, %v2904_v13  ;;  %v858_v0 = vrot.slane %v856_v25, 1  ;;  %v1302_v29 = vsel %vm1273_vm1, %v1299_v27, %v1301_v17  ;;  %v13754_v12 = vor.u32 %v2726_v62, %v2725_v24 }
 0x11c   : > { %v3871_v37 = vsel %vm3857_vm13, %v3764_v36, %v3014_v41  ;;  %v13687_v47 = vpop.f32.mrf.mxu0  ;;  %v860_v41 = vshrl.u32 %v13685_v48, 16 }
 0x11d   : > { %10549 = vmatmul.msk.bf16.gmra.mxu0 %vm3975_vm14, %v3871_v37  ;;  %v859_v52 = vsel %vm743_vm2, %v854_v4, %v858_v0  ;;  %v1894_v4 = vrot.slane %v1892_v34, 3 }
 0x11f   : > { %2365 = vrot.lane.b32.xlu1 %v13685_v48, %s12946_s20 }
 0x120   : > { %2257 = vrot.lane.b32.xlu0 %v1881_v5, %s12952_s26  ;;  %2587 = vrot.lane.b32.xlu2 %v2484_v57, %s12951_s25  ;;  %v2728_v5 = vsel %vm2669_vm5, %v2723_v55, %v13754_v12 }
 0x121   : > { %v1665_v58 = vpop.permute.xlu1 %1664 }
 0x122   : > { %v1394_v30 = vpop.permute.xlu0 %1393  ;;  %v13702_v1 = vpop.permute.xlu2 %2357 }
 0x123   : > { %v3231_v40 = vsel %vm3215_vm7, %v3123_v43, %v1394_v30 }
 0x124   : > { %v3338_v20 = vsel %vm3322_vm8, %v3231_v40, %v1665_v58  ;;  %v13718_v6 = vpop.f32.mrf.mxu0  ;;  %v1897_v40 = vrot.slane %v1895_v2, 4 }
 0x125   : > { %v3445_v53 = vsel %vm3429_vm9, %v3338_v20, %v13631_v8  ;;  %v1890_v8 = vsel %vm1756_vm4, %v1880_v38, %v13729_v45 }
 0x126   : > { %v13808_v54 = vor.u32 %v1897_v40, %v1894_v4 }
 0x127   : > { %3025 = vrot.lane.b32.xlu1 %v13709_v3, %s12949_s23 }
 0x128   : > { %2915 = vrot.lane.b32.xlu0 %v2724_v19, %s12953_s27  ;;  %1193 = vrot.lane.b32.xlu2 %v859_v52, %s12950_s24  ;;  %v13797_v19 = vld [vmem:[%s13030_s19 + $0x94] sm:$0xff]  }
 0x129   : > { %v2578_v11 = vpop.permute.xlu1 %2577  ;;  %v1910_v28 = vshrl.u32 %v13797_v19, 16  ;;  %v1913_v2 = vshll.u32 %v13797_v19, 16 }
 0x12a   : > { %v2356_v7 = vpop.permute.xlu0 %2355  ;;  %v3018_v10 = vpop.permute.xlu2 %3017 }
 0x12b   : > { %v3552_v18 = vsel %vm3536_vm10, %v3445_v53, %v2356_v7  ;;  %v2730_v24 = vrot.slane %v1913_v2, 3 }
 0x12c   : > { %v3659_v15 = vsel %vm3643_vm11, %v3552_v18, %v2578_v11 }
 0x12d   : > { %v3766_v27 = vsel %vm3750_vm12, %v3659_v15, %v13651_v59  ;;  %v2486_v59 = vsel %vm2457_vm3, %v2483_v35, %v2485_v50  ;;  %v862_v35 = vor.u32 %v860_v41, %v858_v0  ;;  %v1899_v15 = vsel %vm1756_vm4, %v13729_v45, %v13808_v54 }
 0x12f   : > { %1676 = vrot.lane.b32.xlu1 %v13640_v14, %s12947_s21  ;;  %v13760_v14 = vld [vmem:[%s13030_s19 + $0x78] sm:$0xff]  }
 0x130   : > { %1405 = vrot.lane.b32.xlu0 %v1302_v29, %s12948_s22  ;;  %2259 = vrot.lane.b32.xlu2 %v1890_v8, %s12952_s26  ;;  %v864_v37 = vshll.u32 %v13760_v14, 16  ;;  %v1303_v55 = vrot.slane %v13760_v14, 1  ;;  %v2729_v8 = vrot.slane %v1910_v28, 2 }
 0x131   : > { %v13747_v32 = vpop.f32.mrf.mxu0  ;;  %v1184_v21 = vpop.permute.xlu1 %1183 }
 0x132   : > { %v3016_v16 = vpop.permute.xlu0 %3015  ;;  %v13757_v13 = vpop.permute.xlu2 %1668  ;;  %v3125_v36 = vsel %vm3107_vm6, %v13326_v33, %v1184_v21  ;;  %v1576_v33 = vrot.slane %v13724_v39, 3  ;;  %v866_v57 = vrot.slane %v864_v37, 1  ;;  %v1304_v52 = vsel %vm1273_vm1, %v1301_v17, %v1303_v55 }
 0x133   : > { %v3873_v38 = vsel %vm3857_vm13, %v3766_v27, %v3016_v16  ;;  %v3233_v42 = vsel %vm3215_vm7, %v3125_v36, %v13676_v49  ;;  %v13839_v27 = vld [vmem:[%s13030_s19 + $0x80] sm:$0xff]   ;;  %v13841_v45 = vor.u32 %v2730_v24, %v2729_v8  ;;  %v868_v37 = vshrl.u32 %v13760_v14, 16 }
 0x134   : > { %10550 = vmatmul.msk.bf16.gmra.mxu0 %vm3975_vm14, %v3873_v38  ;;  %v13789_v49 = vsel %vm1544_vm0, %v1574_v9, %v1576_v33  ;;  %v867_v58 = vsel %vm743_vm2, %v862_v35, %v866_v57 }
 0x137   : > { %2589 = vrot.lane.b32.xlu1 %v2486_v59, %s12951_s25 }
 0x138   : > { %2367 = vrot.lane.b32.xlu0 %v13760_v14, %s12946_s20  ;;  %2917 = vrot.lane.b32.xlu2 %v2728_v5, %s12953_s27  ;;  %v872_v5 = vshll.u32 %v13839_v27, 16 }
 0x139   : > { %v13780_v51 = vpop.f32.mrf.mxu0  ;;  %v2250_v25 = vpop.permute.xlu1 %2249 }
 0x13a   : > { %v1667_v46 = vpop.permute.xlu0 %1666  ;;  %v13784_v30 = vpop.permute.xlu2 %2581  ;;  %v4465_v7 = vrot.slane %v13780_v51, 6 }
 0x13b   : > { %v3340_v43 = vsel %vm3322_vm8, %v3233_v42, %v1667_v46  ;;  %v2732_v46 = vsel %vm2669_vm5, %v13754_v12, %v13841_v45 }
 0x13c   : > { %v3447_v0 = vsel %vm3429_vm9, %v3340_v43, %v2250_v25  ;;  %v870_v43 = vor.u32 %v868_v37, %v866_v57  ;;  %v13932_v37 = vld [vmem:[%s13030_s19 + $0x88] sm:$0xff]  }
 0x13d   : > { %v3554_v9 = vsel %vm3536_vm10, %v3447_v0, %v13702_v1 }
 0x13f   : > { %1195 = vrot.lane.b32.xlu1 %v867_v58, %s12950_s24  ;;  %v874_v58 = vrot.slane %v872_v5, 1  ;;  %v876_v5 = vshrl.u32 %v13839_v27, 16 }
 0x140   : > { %3027 = vrot.lane.b32.xlu0 %v13789_v49, %s12949_s23  ;;  %1407 = vrot.lane.b32.xlu2 %v1304_v52, %s12948_s22 }
 0x141   : > { %v2908_v20 = vpop.permute.xlu1 %2907 }
 0x142   : > { %v2580_v34 = vpop.permute.xlu0 %2579  ;;  %v13819_v11 = vpop.permute.xlu2 %1187 }
 0x143   : > { %v3661_v63 = vsel %vm3643_vm11, %v3554_v9, %v2580_v34  ;;  %v13814_v17 = vpop.f32.mrf.mxu0  ;;  %v875_v34 = vsel %vm743_vm2, %v870_v43, %v874_v58 }
 0x144   : > { %v3768_v1 = vsel %vm3750_vm12, %v3661_v63, %v2908_v20  ;;  %v4466_v53 = vrot.slane %v13814_v17, 6  ;;  %v1903_v63 = vrot.slane %v1901_v61, 3  ;;  %v1906_v20 = vrot.slane %v1904_v22, 4 }
 0x145   : > { %v3875_v18 = vsel %vm3857_vm13, %v3768_v1, %v3018_v10  ;;  %v2487_v10 = vrot.slane %v13797_v19, 2 }
 0x146   : > { %v4467_v29 = vsel %vm4464_vm15, %v4465_v7, %v4466_v53  ;;  %10551 = vmatmul.msk.bf16.gmra.mxu0 %vm3975_vm14, %v3875_v18  ;;  %v13893_v7 = vld [vmem:[%s13030_s19 + $0x9c] sm:$0xff]  }
 0x147   : > { %v13832_v62 = vmax.f32 %v13687_v47, %v4467_v29  ;;  %2261 = vrot.lane.b32.xlu1 %v1899_v15, %s12952_s26  ;;  %v1578_v47 = vrot.slane %v13797_v19, 3  ;;  %v2488_v41 = vsel %vm2457_vm3, %v2485_v50, %v2487_v10  ;;  %v1919_v61 = vshrl.u32 %v13893_v7, 16 }
 0x148   : > { %1678 = vrot.lane.b32.xlu0 %v13709_v3, %s12947_s21  ;;  %2369 = vrot.lane.b32.xlu2 %v13839_v27, %s12946_s20  ;;  %v1922_v39 = vshll.u32 %v13893_v7, 16  ;;  %v2489_v24 = vrot.slane %v13893_v7, 2 }
 0x149   : > { %v1398_v21 = vpop.permute.xlu1 %1397  ;;  %v4975_v25 = vrot.slane %v13832_v62, 1 }
 0x14a   : > { %v1186_v16 = vpop.permute.xlu0 %1185  ;;  %v13849_v3 = vpop.permute.xlu2 %2253 }
 0x14b   : > { %v13845_v38 = vpop.f32.mrf.mxu0  ;;  %v3127_v59 = vsel %vm3107_vm6, %v13393_v23, %v1186_v16  ;;  %v13867_v23 = vsel %vm1544_vm0, %v1576_v33, %v1578_v47  ;;  %v1305_v33 = vrot.slane %v13839_v27, 1 }
 0x14c   : > { %v4468_v36 = vrot.slane %v13845_v38, 6  ;;  %v3235_v50 = vsel %vm3215_vm7, %v3127_v59, %v1398_v21  ;;  %v2734_v59 = vrot.slane %v1922_v39, 3 }
 0x14e   : > { %v4469_v42 = vsel %vm4464_vm15, %v4466_v53, %v4468_v36  ;;  %v13903_v53 = vor.u32 %v1906_v20, %v1903_v63 }
 0x14f   : > { %v13870_v35 = vmax.f32 %v13718_v6, %v4469_v42  ;;  %2919 = vrot.lane.b32.xlu1 %v2732_v46, %s12953_s27  ;;  %v3342_v6 = vsel %vm3322_vm8, %v3235_v50, %v13757_v13  ;;  %v1306_v13 = vsel %vm1273_vm1, %v1303_v55, %v1305_v33  ;;  %v3129_v46 = vsel %vm3107_vm6, %v13451_v60, %v13819_v11 }
 0x150   : > { %2591 = vrot.lane.b32.xlu0 %v2488_v41, %s12951_s25  ;;  %3029 = vrot.lane.b32.xlu2 %v13867_v23, %s12949_s23  ;;  %v1908_v21 = vsel %vm1756_vm4, %v13808_v54, %v13903_v53  ;;  %v2490_v54 = vsel %vm2457_vm3, %v2487_v10, %v2489_v24  ;;  %v1580_v10 = vrot.slane %v13893_v7, 3 }
 0x151   : > { %v4976_v12 = vrot.slane %v13870_v35, 1  ;;  %v2360_v40 = vpop.permute.xlu1 %2359 }
 0x152   : > { %v2252_v4 = vpop.permute.xlu0 %2251  ;;  %v13884_v9 = vpop.permute.xlu2 %2911 }
 0x153   : > { %v4977_v0 = vsel %vm1273_vm1, %v4975_v25, %v4976_v12  ;;  %v3449_v52 = vsel %vm3429_vm9, %v3342_v6, %v2252_v4  ;;  %v878_v4 = vor.u32 %v876_v5, %v874_v58 }
 0x154   : > { %v5280_v57 = vmax.f32 %v13832_v62, %v4977_v0  ;;  %v3556_v1 = vsel %vm3536_vm10, %v3449_v52, %v2360_v40 }
 0x155   : > { %v3663_v22 = vsel %vm3643_vm11, %v3556_v1, %v13784_v30 }
 0x157   : > { %1409 = vrot.lane.b32.xlu1 %v1306_v13, %s12948_s22 }
 0x158   : > { %1197 = vrot.lane.b32.xlu0 %v875_v34, %s12950_s24  ;;  %1680 = vrot.lane.b32.xlu2 %v13789_v49, %s12947_s21  ;;  %v2733_v49 = vrot.slane %v1919_v61, 2 }
 0x159   : > { %v3020_v8 = vpop.permute.xlu1 %3019 }
 0x15a   : > { %v13909_v18 = vpop.f32.mrf.mxu0  ;;  %v2910_v29 = vpop.permute.xlu0 %2909  ;;  %v13953_v50 = vor.u32 %v2734_v59, %v2733_v49 }
 0x15b   : > { %v4470_v55 = vrot.slane %v13909_v18, 6  ;;  %v3770_v15 = vsel %vm3750_vm12, %v3663_v22, %v2910_v29  ;;  %v13917_v16 = vpop.permute.xlu2 %1401  ;;  %v1915_v29 = vrot.slane %v1913_v2, 4 }
 0x15c   : > { %v3877_v62 = vsel %vm3857_vm13, %v3770_v15, %v3020_v8  ;;  %v2736_v58 = vsel %vm2669_vm5, %v13841_v45, %v13953_v50  ;;  %v1912_v45 = vrot.slane %v1910_v28, 3  ;;  %v13993_v15 = vld [vmem:[%s13030_s19 + $0xa4] sm:$0xff]  }
 0x15d   : > { %v4471_v30 = vsel %vm4464_vm15, %v4468_v36, %v4470_v55  ;;  %10552 = vmatmul.msk.bf16.gmra.mxu0 %vm3975_vm14, %v3877_v62  ;;  %v13938_v36 = vld [vmem:[%s20835_s2] ss:$0 sm:$0xff] }
 0x15e   : > { %v13929_v41 = vmax.f32 %v13747_v32, %v4471_v30  ;;  %v880_v32 = vshll.u32 %v13932_v37, 16  ;;  %v5385_v40 = vadd.f32 %v13938_v36, %v5280_v57  ;;  %v14000_v2 = vor.u32 %v1915_v29, %v1912_v45 }
 0x15f   : > { %2371 = vrot.lane.b32.xlu1 %v13932_v37, %s12946_s20  ;;  %v1928_v30 = vshrl.u32 %v13993_v15, 16 }
 0x160   : > { %v4978_v42 = vrot.slane %v13929_v41, 1  ;;  %2263 = vrot.lane.b32.xlu0 %v1908_v21, %s12952_s26  ;;  %2593 = vrot.lane.b32.xlu2 %v2490_v54, %s12951_s25  ;;  %v882_v63 = vrot.slane %v880_v32, 1  ;;  %v5487_v1 = vmax.f32 %v5385_v40, 0.0  ;;  %v1931_v21 = vshll.u32 %v13993_v15, 16 }
 0x161   : > { %v1671_v60 = vpop.permute.xlu1 %1670 }
 0x162   : > { %v13955_v25 = vpop.f32.mrf.mxu0  ;;  %v1400_v43 = vpop.permute.xlu0 %1399  ;;  %v4979_v6 = vsel %vm1273_vm1, %v4976_v12, %v4978_v42  ;;  %v883_v57 = vsel %vm743_vm2, %v878_v4, %v882_v63 }
 0x163   : > { %v4472_v0 = vrot.slane %v13955_v25, 6  ;;  %v5281_v11 = vmax.f32 %v13870_v35, %v4979_v6  ;;  %v3237_v52 = vsel %vm3215_vm7, %v3129_v46, %v1400_v43  ;;  %v13964_v34 = vpop.permute.xlu2 %2363  ;;  %v13976_v35 = vsel %vm1544_vm0, %v1578_v47, %v1580_v10 }
 0x164   : > { %v3344_v22 = vsel %vm3322_vm8, %v3237_v52, %v1671_v60  ;;  %v1917_v46 = vsel %vm1756_vm4, %v13903_v53, %v14000_v2  ;;  %v2738_v43 = vrot.slane %v1931_v21, 3  ;;  %v2491_v6 = vrot.slane %v13993_v15, 2 }
 0x165   : > { %v4473_v20 = vsel %vm4464_vm15, %v4470_v55, %v4472_v0  ;;  %v5386_v12 = vadd.f32 %v13938_v36, %v5281_v11  ;;  %v3451_v28 = vsel %vm3429_vm9, %v3344_v22, %v13849_v3 }
 0x166   : > { %v13980_v13 = vmax.f32 %v13780_v51, %v4473_v20  ;;  %v1307_v51 = vrot.slane %v13932_v37, 1  ;;  %v14043_v20 = vld [vmem:[%s13030_s19 + $0x90] sm:$0xff]  }
 0x167   : > { %v5488_v55 = vmax.f32 %v5386_v12, 0.0  ;;  %3031 = vrot.lane.b32.xlu1 %v13976_v35, %s12949_s23 }
 0x168   : > { %2921 = vrot.lane.b32.xlu0 %v2736_v58, %s12953_s27  ;;  %v4980_v47 = vrot.slane %v13980_v13, 1  ;;  %1199 = vrot.lane.b32.xlu2 %v883_v57, %s12950_s24  ;;  %v1308_v3 = vsel %vm1273_vm1, %v1305_v33, %v1307_v51  ;;  %v884_v58 = vshrl.u32 %v13932_v37, 16  ;;  %v888_v57 = vshll.u32 %v14043_v20, 16 }
 0x169   : > { %v13995_v8 = vpack.c.bf16 %v5488_v55, %v5487_v1  ;;  %v2584_v19 = vpop.permute.xlu1 %2583 }
 0x16a   : > { %v2362_v62 = vpop.permute.xlu0 %2361  ;;  %v4981_v49 = vsel %vm1273_vm1, %v4978_v42, %v4980_v47  ;;  %v2737_v42 = vrot.slane %v1928_v30, 2  ;;  %v886_v45 = vor.u32 %v884_v58, %v882_v63 }
 0x16b   : > { %v3558_v59 = vsel %vm3536_vm10, %v3451_v28, %v2362_v62  ;;  %v14006_v5 = vpop.permute.xlu2 %3023  ;;  %v5282_v54 = vmax.f32 %v13929_v41, %v4981_v49  ;;  %v1309_v49 = vrot.slane %v14043_v20, 1 }
 0x16c   : > { %v3665_v32 = vsel %vm3643_vm11, %v3558_v59, %v2584_v19  ;;  %v14033_v11 = vor.u32 %v2738_v43, %v2737_v42  ;;  %v14094_v43 = vld [vmem:[%s13030_s19 + $0xac] sm:$0xff]  }
 0x16d   : > { %v3772_v41 = vsel %vm3750_vm12, %v3665_v32, %v13884_v9 }
 0x16f   : > { %1682 = vrot.lane.b32.xlu1 %v13867_v23, %s12947_s21 }
 0x170   : > { %1411 = vrot.lane.b32.xlu0 %v1308_v3, %s12948_s22  ;;  %2265 = vrot.lane.b32.xlu2 %v1917_v46, %s12952_s26 }
 0x171   : > { %v14025_v33 = vpop.f32.mrf.mxu0  ;;  %v1190_v40 = vpop.permute.xlu1 %1189 }
 0x172   : > { %v4474_v4 = vrot.slane %v14025_v33, 6  ;;  %v3022_v53 = vpop.permute.xlu0 %3021  ;;  %v3131_v12 = vsel %vm3107_vm6, %v13510_v44, %v1190_v40 }
 0x173   : > { %v3879_v60 = vsel %vm3857_vm13, %v3772_v41, %v3022_v53  ;;  %v14037_v23 = vpop.permute.xlu2 %1674  ;;  %v3239_v44 = vsel %vm3215_vm7, %v3131_v12, %v13917_v16  ;;  %v5387_v16 = vadd.f32 %v13938_v36, %v5282_v54  ;;  %v1924_v54 = vrot.slane %v1922_v39, 4 }
 0x174   : > { %v4475_v52 = vsel %vm4464_vm15, %v4472_v0, %v4474_v4  ;;  %10553 = vmatmul.msk.bf16.gmra.mxu0 %vm3975_vm14, %v3879_v60  ;;  %v2492_v0 = vsel %vm2457_vm3, %v2489_v24, %v2491_v6  ;;  %v1582_v24 = vrot.slane %v13993_v15, 3 }
 0x175   : > { %v14040_v9 = vmax.f32 %v13814_v17, %v4475_v52  ;;  %v2740_v17 = vsel %vm2669_vm5, %v13953_v50, %v14033_v11  ;;  %v14068_v50 = vrot.slane %v888_v57, 1  ;;  %v5489_v41 = vmax.f32 %v5387_v16, 0.0  ;;  %v14143_v16 = vld [vmem:[%s13030_s19 + $0x98] sm:$0xff]  }
 0x176   : > { %v14084_v32 = vsel %vm1544_vm0, %v1580_v10, %v1582_v24  ;;  %v1937_v52 = vshrl.u32 %v14094_v43, 16 }
 0x177   : > { %v4982_v1 = vrot.slane %v14040_v9, 1  ;;  %2595 = vrot.lane.b32.xlu1 %v2492_v0, %s12951_s25  ;;  %v891_v42 = vsel %vm743_vm2, %v886_v45, %v14068_v50 }
 0x178   : > { %2373 = vrot.lane.b32.xlu0 %v14043_v20, %s12946_s20  ;;  %2923 = vrot.lane.b32.xlu2 %v2740_v17, %s12953_s27 }
 0x179   : > { %v14063_v22 = vpop.f32.mrf.mxu0  ;;  %v4983_v29 = vsel %vm1273_vm1, %v4980_v47, %v4982_v1  ;;  %v2256_v19 = vpop.permute.xlu1 %2255 }
 0x17a   : > { %v4476_v55 = vrot.slane %v14063_v22, 6  ;;  %v1673_v28 = vpop.permute.xlu0 %1672  ;;  %v5283_v62 = vmax.f32 %v13980_v13, %v4983_v29  ;;  %v1921_v13 = vrot.slane %v1919_v61, 3  ;;  %v1310_v61 = vsel %vm1273_vm1, %v1307_v51, %v1309_v49 }
 0x17b   : > { %v3346_v63 = vsel %vm3322_vm8, %v3239_v44, %v1673_v28  ;;  %v14076_v47 = vpop.permute.xlu2 %2587  ;;  %v1940_v51 = vshll.u32 %v14094_v43, 16  ;;  %v2741_v29 = vrot.slane %v1937_v52, 2 }
 0x17c   : > { %v4477_v59 = vsel %vm4464_vm15, %v4474_v4, %v4476_v55  ;;  %v5388_v3 = vadd.f32 %v13938_v36, %v5283_v62  ;;  %v3453_v53 = vsel %vm3429_vm9, %v3346_v63, %v2256_v19  ;;  %v14107_v7 = vor.u32 %v1924_v54, %v1921_v13 }
 0x17d   : > { %v4775_v46 = vmax.f32 %v13845_v38, %v4477_v59  ;;  %v3560_v40 = vsel %vm3536_vm10, %v3453_v53, %v13964_v34  ;;  %v2742_v28 = vrot.slane %v1940_v51, 3  ;;  %v1584_v63 = vrot.slane %v14094_v43, 3 }
 0x17e   : > { %v5490_v4 = vmax.f32 %v5388_v3, 0.0  ;;  %v892_v53 = vshrl.u32 %v14043_v20, 16 }
 0x17f   : > { %v4984_v10 = vrot.slane %v4775_v46, 1  ;;  %1201 = vrot.lane.b32.xlu1 %v891_v42, %s12950_s24  ;;  %v14145_v19 = vor.u32 %v2742_v28, %v2741_v29 }
 0x180   : > { %3033 = vrot.lane.b32.xlu0 %v14084_v32, %s12949_s23  ;;  %v14104_v38 = vpack.c.bf16 %v5490_v4, %v5489_v41  ;;  %1413 = vrot.lane.b32.xlu2 %v1310_v61, %s12948_s22  ;;  %v896_v61 = vshll.u32 %v14143_v16, 16 }
 0x181   : > { %v4985_v39 = vsel %vm1273_vm1, %v4982_v1, %v4984_v10  ;;  %v2914_v0 = vpop.permute.xlu1 %2913 }
 0x182   : > { %v2586_v60 = vpop.permute.xlu0 %2585  ;;  %v5284_v58 = vmax.f32 %v14040_v9, %v4985_v39  ;;  %v1926_v9 = vsel %vm1756_vm4, %v14000_v2, %v14107_v7 }
 0x183   : > { %v3667_v12 = vsel %vm3643_vm11, %v3560_v40, %v2586_v60  ;;  %v14117_v57 = vpop.f32.mrf.mxu0  ;;  %v14121_v34 = vpop.permute.xlu2 %1193 }
 0x184   : > { %v3774_v1 = vsel %vm3750_vm12, %v3667_v12, %v2914_v0  ;;  %v4478_v17 = vrot.slane %v14117_v57, 6  ;;  %v5389_v42 = vadd.f32 %v13938_v36, %v5284_v58  ;;  %v898_v12 = vrot.slane %v896_v61, 1 }
 0x185   : > { %v3881_v44 = vsel %vm3857_vm13, %v3774_v1, %v14006_v5 }
 0x186   : > { %v4479_v45 = vsel %vm4464_vm15, %v4476_v55, %v4478_v17  ;;  %10554 = vmatmul.msk.bf16.gmra.mxu0 %vm3975_vm14, %v3881_v44  ;;  %v2493_v55 = vrot.slane %v14094_v43, 2  ;;  %v5491_v60 = vmax.f32 %v5389_v42, 0.0 }
 0x187   : > { %v14135_v62 = vmax.f32 %v13909_v18, %v4479_v45  ;;  %2267 = vrot.lane.b32.xlu1 %v1926_v9, %s12952_s26 }
 0x188   : > { %1684 = vrot.lane.b32.xlu0 %v13976_v35, %s12947_s21  ;;  %2375 = vrot.lane.b32.xlu2 %v14143_v16, %s12946_s20  ;;  %v2494_v4 = vsel %vm2457_vm3, %v2491_v6, %v2493_v55 }
 0x189   : > { %v4986_v5 = vrot.slane %v14135_v62, 1  ;;  %v1404_v59 = vpop.permute.xlu1 %1403 }
 0x18a   : > { %v1192_v2 = vpop.permute.xlu0 %1191 }
 0x18b   : > { %v14149_v18 = vpop.f32.mrf.mxu0  ;;  %v4987_v35 = vsel %vm1273_vm1, %v4984_v10, %v4986_v5  ;;  %v14154_v13 = vpop.permute.xlu2 %2259  ;;  %v3133_v41 = vsel %vm3107_vm6, %v13570_v31, %v1192_v2  ;;  %v14176_v31 = vsel %vm1544_vm0, %v1582_v24, %v1584_v63  ;;  %v1311_v24 = vrot.slane %v14143_v16, 1 }
 0x18c   : > { %v4480_v3 = vrot.slane %v14149_v18, 6  ;;  %v5285_v54 = vmax.f32 %v4775_v46, %v4987_v35  ;;  %v2744_v46 = vsel %vm2669_vm5, %v14033_v11, %v14145_v19  ;;  %v3241_v40 = vsel %vm3215_vm7, %v3133_v41, %v1404_v59  ;;  %v14204_v35 = vld [vmem:[%s13030_s19 + $0xb4] sm:$0xff]  }
 0x18d   : > { %v894_v11 = vor.u32 %v892_v53, %v14068_v50  ;;  %v1930_v2 = vrot.slane %v1928_v30, 3  ;;  %v1933_v59 = vrot.slane %v1931_v21, 4  ;;  %v1946_v30 = vshrl.u32 %v14204_v35, 16 }
 0x18e   : > { %v4481_v10 = vsel %vm4464_vm15, %v4478_v17, %v4480_v3  ;;  %v5390_v39 = vadd.f32 %v13938_v36, %v5285_v54  ;;  %v3348_v17 = vsel %vm3322_vm8, %v3241_v40, %v14037_v23  ;;  %v1312_v23 = vsel %vm1273_vm1, %v1309_v49, %v1311_v24 }
 0x18f   : > { %v14179_v6 = vmax.f32 %v13955_v25, %v4481_v10  ;;  %2925 = vrot.lane.b32.xlu1 %v2744_v46, %s12953_s27  ;;  %v899_v28 = vsel %vm743_vm2, %v894_v11, %v898_v12  ;;  %v1949_v15 = vshll.u32 %v14204_v35, 16  ;;  %v2495_v53 = vrot.slane %v14204_v35, 2 }
 0x190   : > { %2597 = vrot.lane.b32.xlu0 %v2494_v4, %s12951_s25  ;;  %v5492_v58 = vmax.f32 %v5390_v39, 0.0  ;;  %3035 = vrot.lane.b32.xlu2 %v14176_v31, %s12949_s23 }
 0x191   : > { %v4988_v0 = vrot.slane %v14179_v6, 1  ;;  %v2366_v44 = vpop.permute.xlu1 %2365  ;;  %v2746_v39 = vrot.slane %v1949_v15, 3 }
 0x192   : > { %v2258_v1 = vpop.permute.xlu0 %2257  ;;  %v14189_v25 = vpack.c.bf16 %v5492_v58, %v5491_v60  ;;  %v14243_v60 = vld [vmem:[%s13030_s19 + $0xa0] sm:$0xff]   ;;  %v900_v58 = vshrl.u32 %v14143_v16, 16 }
 0x193   : > { %v4989_v45 = vsel %vm1273_vm1, %v4986_v5, %v4988_v0  ;;  %v3455_v50 = vsel %vm3429_vm9, %v3348_v17, %v2258_v1  ;;  %v14195_v9 = vpop.permute.xlu2 %2917  ;;  %v904_v11 = vshll.u32 %v14243_v60, 16 }
 0x194   : > { %v5286_v29 = vmax.f32 %v14135_v62, %v4989_v45  ;;  %v3562_v5 = vsel %vm3536_vm10, %v3455_v50, %v2366_v44  ;;  %v14214_v62 = vor.u32 %v1933_v59, %v1930_v2  ;;  %v902_v45 = vor.u32 %v900_v58, %v898_v12 }
 0x195   : > { %v3669_v21 = vsel %vm3643_vm11, %v3562_v5, %v14076_v47  ;;  %v906_v5 = vrot.slane %v904_v11, 1 }
 0x196   : > { %v1935_v46 = vsel %vm1756_vm4, %v14107_v7, %v14214_v62 }
 0x197   : > { %1415 = vrot.lane.b32.xlu1 %v1312_v23, %s12948_s22 }
 0x198   : > { %1203 = vrot.lane.b32.xlu0 %v899_v28, %s12950_s24  ;;  %1686 = vrot.lane.b32.xlu2 %v14084_v32, %s12947_s21  ;;  %v2745_v32 = vrot.slane %v1946_v30, 2  ;;  %v5391_v28 = vadd.f32 %v13938_v36, %v5286_v29  ;;  %v907_v29 = vsel %vm743_vm2, %v902_v45, %v906_v5 }
 0x199   : > { %v3026_v4 = vpop.permute.xlu1 %3025 }
 0x19a   : > { %v14220_v54 = vpop.f32.mrf.mxu0  ;;  %v2916_v42 = vpop.permute.xlu0 %2915  ;;  %v14259_v1 = vor.u32 %v2746_v39, %v2745_v32 }
 0x19b   : > { %v4482_v49 = vrot.slane %v14220_v54, 6  ;;  %v3776_v41 = vsel %vm3750_vm12, %v3669_v21, %v2916_v42  ;;  %v14228_v10 = vpop.permute.xlu2 %1407 }
 0x19c   : > { %v3883_v61 = vsel %vm3857_vm13, %v3776_v41, %v3026_v4  ;;  %v2748_v12 = vsel %vm2669_vm5, %v14145_v19, %v14259_v1  ;;  %v5493_v41 = vmax.f32 %v5391_v28, 0.0  ;;  %v1939_v19 = vrot.slane %v1937_v52, 3 }
 0x19d   : > { %v4483_v47 = vsel %vm4464_vm15, %v4480_v3, %v4482_v49  ;;  %10555 = vmatmul.msk.bf16.gmra.mxu0 %vm3975_vm14, %v3883_v61  ;;  %v2496_v3 = vsel %vm2457_vm3, %v2493_v55, %v2495_v53  ;;  %v1586_v55 = vrot.slane %v14204_v35, 3  ;;  %v1942_v4 = vrot.slane %v1940_v51, 4 }
 0x19e   : > { %v14240_v40 = vmax.f32 %v14025_v33, %v4483_v47  ;;  %v3135_v33 = vsel %vm3107_vm6, %v13626_v56, %v14121_v34  ;;  %v14299_v47 = vld [vmem:[%s13030_s19 + $0xbc] sm:$0xff]  }
 0x19f   : > { %2377 = vrot.lane.b32.xlu1 %v14243_v60, %s12946_s20  ;;  %v14306_v51 = vor.u32 %v1942_v4, %v1939_v19  ;;  %v1955_v39 = vshrl.u32 %v14299_v47, 16  ;;  %v1958_v58 = vshll.u32 %v14299_v47, 16 }
 0x1a0   : > { %v4990_v7 = vrot.slane %v14240_v40, 1  ;;  %2269 = vrot.lane.b32.xlu0 %v1935_v46, %s12952_s26  ;;  %2599 = vrot.lane.b32.xlu2 %v2496_v3, %s12951_s25 }
 0x1a1   : > { %v1677_v56 = vpop.permute.xlu1 %1676  ;;  %v2750_v28 = vrot.slane %v1958_v58, 3 }
 0x1a2   : > { %v14261_v17 = vpop.f32.mrf.mxu0  ;;  %v1406_v44 = vpop.permute.xlu0 %1405  ;;  %v4991_v50 = vsel %vm1273_vm1, %v4988_v0, %v4990_v7 }
 0x1a3   : > { %v4484_v2 = vrot.slane %v14261_v17, 6  ;;  %v5287_v34 = vmax.f32 %v14179_v6, %v4991_v50  ;;  %v3243_v59 = vsel %vm3215_vm7, %v3135_v33, %v1406_v44  ;;  %v14270_v23 = vpop.permute.xlu2 %2369  ;;  %v14282_v6 = vsel %vm1544_vm0, %v1584_v63, %v1586_v55 }
 0x1a4   : > { %v1944_v50 = vsel %vm1756_vm4, %v14214_v62, %v14306_v51 }
 0x1a5   : > { %v4485_v21 = vsel %vm4464_vm15, %v4482_v49, %v4484_v2  ;;  %v5392_v0 = vadd.f32 %v13938_v36, %v5287_v34  ;;  %v3350_v49 = vsel %vm3322_vm8, %v3243_v59, %v1677_v56  ;;  %v2497_v34 = vrot.slane %v14299_v47, 2 }
 0x1a6   : > { %v14286_v42 = vmax.f32 %v14063_v22, %v4485_v21  ;;  %v1313_v22 = vrot.slane %v14243_v60, 1  ;;  %v3457_v52 = vsel %vm3429_vm9, %v3350_v49, %v14154_v13 }
 0x1a7   : > { %v5494_v61 = vmax.f32 %v5392_v0, 0.0  ;;  %3037 = vrot.lane.b32.xlu1 %v14282_v6, %s12949_s23 }
 0x1a8   : > { %2927 = vrot.lane.b32.xlu0 %v2748_v12, %s12953_s27  ;;  %v4992_v63 = vrot.slane %v14286_v42, 1  ;;  %1205 = vrot.lane.b32.xlu2 %v907_v29, %s12950_s24  ;;  %v1314_v13 = vsel %vm1273_vm1, %v1311_v24, %v1313_v22 }
 0x1a9   : > { %v14301_v46 = vpack.c.bf16 %v5494_v61, %v5493_v41  ;;  %v2590_v43 = vpop.permute.xlu1 %2589  ;;  %v908_v41 = vshrl.u32 %v14243_v60, 16  ;;  %v1588_v61 = vrot.slane %v14299_v47, 3 }
 0x1aa   : > { %v2368_v32 = vpop.permute.xlu0 %2367  ;;  %v4993_v3 = vsel %vm1273_vm1, %v4990_v7, %v4992_v63  ;;  %v2749_v7 = vrot.slane %v1955_v39, 2 }
 0x1ab   : > { %v3564_v11 = vsel %vm3536_vm10, %v3457_v52, %v2368_v32  ;;  %v14312_v33 = vpop.permute.xlu2 %3029  ;;  %v5288_v44 = vmax.f32 %v14240_v40, %v4993_v3  ;;  %v910_v32 = vor.u32 %v908_v41, %v906_v5 }
 0x1ac   : > { %v3671_v45 = vsel %vm3643_vm11, %v3564_v11, %v2590_v43  ;;  %v14339_v12 = vor.u32 %v2750_v28, %v2749_v7  ;;  %v14390_v28 = vsel %vm1544_vm0, %v1586_v55, %v1588_v61 }
 0x1ad   : > { %v3778_v40 = vsel %vm3750_vm12, %v3671_v45, %v14195_v9 }
 0x1af   : > { %1688 = vrot.lane.b32.xlu1 %v14176_v31, %s12947_s21  ;;  %v14344_v31 = vld [vmem:[%s13030_s19 + $0xa8] sm:$0xff]  }
 0x1b0   : > { %1417 = vrot.lane.b32.xlu0 %v1314_v13, %s12948_s22  ;;  %2271 = vrot.lane.b32.xlu2 %v1944_v50, %s12952_s26  ;;  %v912_v49 = vshll.u32 %v14344_v31, 16  ;;  %v5393_v13 = vadd.f32 %v13938_v36, %v5288_v44  ;;  %v1315_v45 = vrot.slane %v14344_v31, 1 }
 0x1b1   : > { %v14331_v24 = vpop.f32.mrf.mxu0  ;;  %v1196_v21 = vpop.permute.xlu1 %1195 }
 0x1b2   : > { %v4486_v56 = vrot.slane %v14331_v24, 6  ;;  %v3028_v62 = vpop.permute.xlu0 %3027  ;;  %v3137_v19 = vsel %vm3107_vm6, %v13685_v48, %v1196_v21  ;;  %v1316_v55 = vsel %vm1273_vm1, %v1313_v22, %v1315_v45 }
 0x1b3   : > { %v3885_v59 = vsel %vm3857_vm13, %v3778_v40, %v3028_v62  ;;  %v14346_v29 = vpop.permute.xlu2 %1680  ;;  %v3245_v48 = vsel %vm3215_vm7, %v3137_v19, %v14228_v10  ;;  %v1948_v40 = vrot.slane %v1946_v30, 3  ;;  %v14400_v62 = vld [vmem:[%s13030_s19 + $0xc4] sm:$0xff]  }
 0x1b4   : > { %v4487_v0 = vsel %vm4464_vm15, %v4484_v2, %v4486_v56  ;;  %10556 = vmatmul.msk.bf16.gmra.mxu0 %vm3975_vm14, %v3885_v59  ;;  %v2498_v2 = vsel %vm2457_vm3, %v2495_v53, %v2497_v34  ;;  %v14372_v53 = vrot.slane %v912_v49, 1  ;;  %v5495_v59 = vmax.f32 %v5393_v13, 0.0 }
 0x1b5   : > { %v14349_v9 = vmax.f32 %v14117_v57, %v4487_v0  ;;  %v2752_v57 = vsel %vm2669_vm5, %v14259_v1, %v14339_v12  ;;  %v1964_v49 = vshrl.u32 %v14400_v62, 16  ;;  %v1967_v19 = vshll.u32 %v14400_v62, 16 }
 0x1b7   : > { %v4994_v4 = vrot.slane %v14349_v9, 1  ;;  %2601 = vrot.lane.b32.xlu1 %v2498_v2, %s12951_s25 }
 0x1b8   : > { %2379 = vrot.lane.b32.xlu0 %v14344_v31, %s12946_s20  ;;  %2929 = vrot.lane.b32.xlu2 %v2752_v57, %s12953_s27 }
 0x1b9   : > { %v14370_v52 = vpop.f32.mrf.mxu0  ;;  %v4995_v43 = vsel %vm1273_vm1, %v4992_v63, %v4994_v4  ;;  %v2262_v10 = vpop.permute.xlu1 %2261 }
 0x1ba   : > { %v4488_v3 = vrot.slane %v14370_v52, 6  ;;  %v1679_v1 = vpop.permute.xlu0 %1678  ;;  %v5289_v11 = vmax.f32 %v14286_v42, %v4995_v43  ;;  %v915_v42 = vsel %vm743_vm2, %v910_v32, %v14372_v53 }
 0x1bb   : > { %v3352_v5 = vsel %vm3322_vm8, %v3245_v48, %v1679_v1  ;;  %v14382_v7 = vpop.permute.xlu2 %2593 }
 0x1bc   : > { %v4489_v50 = vsel %vm4464_vm15, %v4486_v56, %v4488_v3  ;;  %v5394_v63 = vadd.f32 %v13938_v36, %v5289_v11  ;;  %v1951_v56 = vrot.slane %v1949_v15, 4  ;;  %v3459_v0 = vsel %vm3429_vm9, %v3352_v5, %v2262_v10  ;;  %v14451_v5 = vld [vmem:[%s13030_s19 + $0xb0] sm:$0xff]  }
 0x1bd   : > { %v4781_v44 = vmax.f32 %v14149_v18, %v4489_v50  ;;  %v3566_v30 = vsel %vm3536_vm10, %v3459_v0, %v14270_v23  ;;  %v2753_v10 = vrot.slane %v1964_v49, 2  ;;  %v2754_v50 = vrot.slane %v1967_v19, 3 }
 0x1be   : > { %v5496_v21 = vmax.f32 %v5394_v63, 0.0  ;;  %v14415_v41 = vor.u32 %v1951_v56, %v1948_v40  ;;  %v1590_v40 = vrot.slane %v14400_v62, 3 }
 0x1bf   : > { %1207 = vrot.lane.b32.xlu1 %v915_v42, %s12950_s24  ;;  %v4996_v35 = vrot.slane %v4781_v44, 1  ;;  %v14453_v42 = vor.u32 %v2754_v50, %v2753_v10  ;;  %v14497_v50 = vld [vmem:[%s13030_s19 + $0xcc] sm:$0xff]  }
 0x1c0   : > { %3039 = vrot.lane.b32.xlu0 %v14390_v28, %s12949_s23  ;;  %v14410_v18 = vpack.c.bf16 %v5496_v21, %v5495_v59  ;;  %1419 = vrot.lane.b32.xlu2 %v1316_v55, %s12948_s22  ;;  %v1953_v13 = vsel %vm1756_vm4, %v14306_v51, %v14415_v41  ;;  %v2499_v51 = vrot.slane %v14400_v62, 2  ;;  %v916_v55 = vshrl.u32 %v14344_v31, 16 }
 0x1c1   : > { %v2920_v2 = vpop.permute.xlu1 %2919  ;;  %v4997_v1 = vsel %vm1273_vm1, %v4994_v4, %v4996_v35 }
 0x1c2   : > { %v2592_v15 = vpop.permute.xlu0 %2591  ;;  %v5290_v4 = vmax.f32 %v14349_v9, %v4997_v1  ;;  %v2500_v0 = vsel %vm2457_vm3, %v2497_v34, %v2499_v51  ;;  %v1317_v1 = vrot.slane %v14451_v5, 1 }
 0x1c3   : > { %v3673_v22 = vsel %vm3643_vm11, %v3566_v30, %v2592_v15  ;;  %v14421_v57 = vpop.f32.mrf.mxu0  ;;  %v14425_v23 = vpop.permute.xlu2 %1199  ;;  %v920_v30 = vshll.u32 %v14451_v5, 16 }
 0x1c4   : > { %v3780_v48 = vsel %vm3750_vm12, %v3673_v22, %v2920_v2  ;;  %v4490_v32 = vrot.slane %v14421_v57, 6  ;;  %v5395_v59 = vadd.f32 %v13938_v36, %v5290_v4 }
 0x1c5   : > { %v3887_v43 = vsel %vm3857_vm13, %v3780_v48, %v14312_v33  ;;  %v922_v2 = vrot.slane %v920_v30, 1 }
 0x1c6   : > { %v4491_v11 = vsel %vm4464_vm15, %v4488_v3, %v4490_v32  ;;  %10557 = vmatmul.msk.bf16.gmra.mxu0 %vm3975_vm14, %v3887_v43 }
 0x1c7   : > { %v14442_v33 = vmax.f32 %v14220_v54, %v4491_v11  ;;  %2273 = vrot.lane.b32.xlu1 %v1953_v13, %s12952_s26 }
 0x1c8   : > { %1690 = vrot.lane.b32.xlu0 %v14282_v6, %s12947_s21  ;;  %2381 = vrot.lane.b32.xlu2 %v14451_v5, %s12946_s20 }
 0x1c9   : > { %v4998_v3 = vrot.slane %v14442_v33, 1  ;;  %v1410_v54 = vpop.permute.xlu1 %1409 }
 0x1ca   : > { %v1198_v63 = vpop.permute.xlu0 %1197 }
 0x1cb   : > { %v4999_v6 = vsel %vm1273_vm1, %v4996_v35, %v4998_v3  ;;  %v14461_v9 = vpop.permute.xlu2 %2265  ;;  %v3139_v21 = vsel %vm3107_vm6, %v13760_v14, %v1198_v63  ;;  %v2756_v35 = vsel %vm2669_vm5, %v14339_v12, %v14453_v42  ;;  %v14480_v14 = vsel %vm1544_vm0, %v1588_v61, %v1590_v40  ;;  %v14486_v48 = vpop.f32.mrf.mxu0 }
 0x1cc   : > { %v5291_v56 = vmax.f32 %v4781_v44, %v4999_v6  ;;  %v3247_v34 = vsel %vm3215_vm7, %v3139_v21, %v1410_v54  ;;  %v5497_v44 = vmax.f32 %v5395_v59, 0.0  ;;  %v918_v12 = vor.u32 %v916_v55, %v14372_v53 }
 0x1cd   : > { %v3354_v11 = vsel %vm3322_vm8, %v3247_v34, %v14346_v29  ;;  %v1957_v63 = vrot.slane %v1955_v39, 3  ;;  %v1960_v54 = vrot.slane %v1958_v58, 4  ;;  %v1318_v29 = vsel %vm1273_vm1, %v1315_v45, %v1317_v1  ;;  %v14538_v34 = vld [vmem:[%s13030_s19 + $0xb8] sm:$0xff]  }
 0x1ce   : > { %v5396_v15 = vadd.f32 %v13938_v36, %v5291_v56  ;;  %v923_v4 = vsel %vm743_vm2, %v918_v12, %v922_v2  ;;  %v1973_v56 = vshrl.u32 %v14497_v50, 16  ;;  %v1976_v59 = vshll.u32 %v14497_v50, 16 }
 0x1cf   : > { %2931 = vrot.lane.b32.xlu1 %v2756_v35, %s12953_s27  ;;  %v14516_v39 = vor.u32 %v1960_v54, %v1957_v63  ;;  %v2501_v55 = vrot.slane %v14497_v50, 2 }
 0x1d0   : > { %2603 = vrot.lane.b32.xlu0 %v2500_v0, %s12951_s25  ;;  %v5498_v22 = vmax.f32 %v5396_v15, 0.0  ;;  %3041 = vrot.lane.b32.xlu2 %v14480_v14, %s12949_s23  ;;  %v2757_v35 = vrot.slane %v1973_v56, 2  ;;  %v2758_v15 = vrot.slane %v1976_v59, 3 }
 0x1d1   : > { %v2372_v13 = vpop.permute.xlu1 %2371 }
 0x1d2   : > { %v2264_v43 = vpop.permute.xlu0 %2263  ;;  %v14491_v61 = vpack.c.bf16 %v5498_v22, %v5497_v44  ;;  %v2502_v44 = vsel %vm2457_vm3, %v2499_v51, %v2501_v55  ;;  %v924_v22 = vshrl.u32 %v14451_v5, 16  ;;  %v14545_v12 = vor.u32 %v2758_v15, %v2757_v35 }
 0x1d3   : > { %v3461_v10 = vsel %vm3429_vm9, %v3354_v11, %v2264_v43  ;;  %v14499_v53 = vpop.permute.xlu2 %2923  ;;  %v928_v43 = vshll.u32 %v14538_v34, 16  ;;  %v1592_v51 = vrot.slane %v14497_v50, 3  ;;  %v1319_v35 = vrot.slane %v14538_v34, 1 }
 0x1d4   : > { %v3568_v6 = vsel %vm3536_vm10, %v3461_v10, %v2372_v13  ;;  %v926_v63 = vor.u32 %v924_v22, %v922_v2  ;;  %v2760_v54 = vsel %vm2669_vm5, %v14453_v42, %v14545_v12 }
 0x1d5   : > { %v3675_v47 = vsel %vm3643_vm11, %v3568_v6, %v14382_v7  ;;  %v4492_v6 = vrot.slane %v14486_v48, 6  ;;  %v14573_v2 = vsel %vm1544_vm0, %v1590_v40, %v1592_v51 }
 0x1d7   : > { %1421 = vrot.lane.b32.xlu1 %v1318_v29, %s12948_s22  ;;  %v4493_v40 = vsel %vm4464_vm15, %v4490_v32, %v4492_v6 }
 0x1d8   : > { %1209 = vrot.lane.b32.xlu0 %v923_v4, %s12950_s24  ;;  %1692 = vrot.lane.b32.xlu2 %v14390_v28, %s12947_s21  ;;  %v1962_v28 = vsel %vm1756_vm4, %v14415_v41, %v14516_v39  ;;  %v3141_v41 = vsel %vm3107_vm6, %v13839_v27, %v14425_v23 }
 0x1d9   : > { %v3032_v0 = vpop.permute.xlu1 %3031 }
 0x1da   : > { %v14520_v58 = vpop.f32.mrf.mxu0  ;;  %v2922_v21 = vpop.permute.xlu0 %2921 }
 0x1db   : > { %v3782_v45 = vsel %vm3750_vm12, %v3675_v47, %v2922_v21  ;;  %v14531_v7 = vpop.permute.xlu2 %1413  ;;  %v4494_v27 = vrot.slane %v14520_v58, 6  ;;  %v14566_v47 = vrot.slane %v928_v43, 1 }
 0x1dc   : > { %v3889_v30 = vsel %vm3857_vm13, %v3782_v45, %v3032_v0  ;;  %v1966_v45 = vrot.slane %v1964_v49, 3  ;;  %v1969_v0 = vrot.slane %v1967_v19, 4  ;;  %v14592_v49 = vld [vmem:[%s13030_s19 + $0xd4] sm:$0xff]  }
 0x1dd   : > { %10558 = vmatmul.msk.bf16.gmra.mxu0 %vm3975_vm14, %v3889_v30  ;;  %v931_v42 = vsel %vm743_vm2, %v926_v63, %v14566_v47  ;;  %v4495_v15 = vsel %vm4464_vm15, %v4492_v6, %v4494_v27 }
 0x1de   : > { %v14600_v32 = vor.u32 %v1969_v0, %v1966_v45  ;;  %v2503_v45 = vrot.slane %v14592_v49, 2 }
 0x1df   : > { %2383 = vrot.lane.b32.xlu1 %v14538_v34, %s12946_s20 }
 0x1e0   : > { %2275 = vrot.lane.b32.xlu0 %v1962_v28, %s12952_s26  ;;  %2605 = vrot.lane.b32.xlu2 %v2502_v44, %s12951_s25 }
 0x1e1   : > { %v1683_v4 = vpop.permute.xlu1 %1682 }
 0x1e2   : > { %v14553_v11 = vpop.f32.mrf.mxu0  ;;  %v1412_v13 = vpop.permute.xlu0 %1411 }
 0x1e3   : > { %v4496_v10 = vrot.slane %v14553_v11, 6  ;;  %v14561_v29 = vpop.permute.xlu2 %2375  ;;  %v3249_v23 = vsel %vm3215_vm7, %v3141_v41, %v1412_v13  ;;  %v4783_v41 = vmax.f32 %v14261_v17, %v4493_v40  ;;  %v1982_v13 = vshrl.u32 %v14592_v49, 16 }
 0x1e4   : > { %v3356_v30 = vsel %vm3322_vm8, %v3249_v23, %v1683_v4  ;;  %v1985_v4 = vshll.u32 %v14592_v49, 16  ;;  %v1971_v17 = vsel %vm1756_vm4, %v14516_v39, %v14600_v32 }
 0x1e5   : > { %v4497_v21 = vsel %vm4464_vm15, %v4494_v27, %v4496_v10  ;;  %v3463_v19 = vsel %vm3429_vm9, %v3356_v30, %v14461_v9  ;;  %v4784_v9 = vmax.f32 %v14331_v24, %v4495_v15  ;;  %v2761_v6 = vrot.slane %v1982_v13, 2 }
 0x1e6   : > { %v14596_v62 = vmax.f32 %v14370_v52, %v4497_v21  ;;  %v1320_v52 = vsel %vm1273_vm1, %v1317_v1, %v1319_v35  ;;  %v2762_v27 = vrot.slane %v1985_v4, 3  ;;  %v5000_v23 = vrot.slane %v4783_v41, 1 }
 0x1e7   : > { %3043 = vrot.lane.b32.xlu1 %v14573_v2, %s12949_s23  ;;  %v5002_v1 = vrot.slane %v4784_v9, 1 }
 0x1e8   : > { %2933 = vrot.lane.b32.xlu0 %v2760_v54, %s12953_s27  ;;  %1211 = vrot.lane.b32.xlu2 %v931_v42, %s12950_s24  ;;  %v5004_v63 = vrot.slane %v14596_v62, 1 }
 0x1e9   : > { %v2596_v44 = vpop.permute.xlu1 %2595 }
 0x1ea   : > { %v2374_v28 = vpop.permute.xlu0 %2373  ;;  %v5005_v40 = vsel %vm1273_vm1, %v5002_v1, %v5004_v63 }
 0x1eb   : > { %v3570_v22 = vsel %vm3536_vm10, %v3463_v19, %v2374_v28  ;;  %v14603_v43 = vpop.permute.xlu2 %3035 }
 0x1ec   : > { %v3677_v54 = vsel %vm3643_vm11, %v3570_v22, %v2596_v44  ;;  %v14648_v44 = vld [vmem:[%s13030_s19 + $0xc0] sm:$0xff]   ;;  %v932_v22 = vshrl.u32 %v14538_v34, 16 }
 0x1ed   : > { %v3784_v42 = vsel %vm3750_vm12, %v3677_v54, %v14499_v53  ;;  %v5001_v53 = vsel %vm1273_vm1, %v4998_v3, %v5000_v23  ;;  %v2504_v3 = vsel %vm2457_vm3, %v2501_v55, %v2503_v45  ;;  %v936_v54 = vshll.u32 %v14648_v44, 16 }
 0x1ef   : > { %1694 = vrot.lane.b32.xlu1 %v14480_v14, %s12947_s21  ;;  %v14635_v14 = vor.u32 %v2762_v27, %v2761_v6  ;;  %v5292_v6 = vmax.f32 %v14442_v33, %v5001_v53 }
 0x1f0   : > { %1423 = vrot.lane.b32.xlu0 %v1320_v52, %s12948_s22  ;;  %2277 = vrot.lane.b32.xlu2 %v1971_v17, %s12952_s26  ;;  %v5003_v52 = vsel %vm1273_vm1, %v5000_v23, %v5002_v1  ;;  %v5294_v17 = vmax.f32 %v4784_v9, %v5005_v40  ;;  %v1594_v9 = vrot.slane %v14592_v49, 3  ;;  %v934_v1 = vor.u32 %v932_v22, %v14566_v47 }
 0x1f1   : > { %v14626_v24 = vpop.f32.mrf.mxu0  ;;  %v1202_v30 = vpop.permute.xlu1 %1201  ;;  %v2764_v27 = vsel %vm2669_vm5, %v14545_v12, %v14635_v14  ;;  %v1321_v40 = vrot.slane %v14648_v44, 1 }
 0x1f2   : > { %v4498_v39 = vrot.slane %v14626_v24, 6  ;;  %v3034_v21 = vpop.permute.xlu0 %3033 }
 0x1f3   : > { %v3891_v0 = vsel %vm3857_vm13, %v3784_v42, %v3034_v21  ;;  %v14642_v28 = vpop.permute.xlu2 %1686  ;;  %v14676_v21 = vrot.slane %v936_v54, 1 }
 0x1f4   : > { %v4499_v15 = vsel %vm4464_vm15, %v4496_v10, %v4498_v39  ;;  %10559 = vmatmul.msk.bf16.gmra.mxu0 %vm3975_vm14, %v3891_v0  ;;  %v3143_v10 = vsel %vm3107_vm6, %v13932_v37, %v1202_v30  ;;  %v5293_v37 = vmax.f32 %v4783_v41, %v5003_v52  ;;  %v5399_v0 = vadd.f32 %v13938_v36, %v5294_v17  ;;  %v14706_v17 = vld [vmem:[%s13030_s19 + $0xdc] sm:$0xff]  }
 0x1f5   : > { %v14645_v19 = vmax.f32 %v14421_v57, %v4499_v15  ;;  %v3251_v23 = vsel %vm3215_vm7, %v3143_v10, %v14531_v7  ;;  %v5397_v30 = vadd.f32 %v13938_v36, %v5292_v6  ;;  %v1975_v52 = vrot.slane %v1973_v56, 3 }
 0x1f6   : > { %v5398_v53 = vadd.f32 %v13938_v36, %v5293_v37  ;;  %v1322_v56 = vsel %vm1273_vm1, %v1319_v35, %v1321_v40  ;;  %v1991_v35 = vshrl.u32 %v14706_v17, 16 }
 0x1f7   : > { %v5006_v57 = vrot.slane %v14645_v19, 1  ;;  %2607 = vrot.lane.b32.xlu1 %v2504_v3, %s12951_s25  ;;  %v5501_v3 = vmax.f32 %v5399_v0, 0.0 }
 0x1f8   : > { %2385 = vrot.lane.b32.xlu0 %v14648_v44, %s12946_s20  ;;  %2935 = vrot.lane.b32.xlu2 %v2764_v27, %s12953_s27 }
 0x1f9   : > { %v14670_v55 = vpop.f32.mrf.mxu0  ;;  %v5007_v33 = vsel %vm1273_vm1, %v5004_v63, %v5006_v57  ;;  %v2268_v7 = vpop.permute.xlu1 %2267 }
 0x1fa   : > { %v4500_v42 = vrot.slane %v14670_v55, 6  ;;  %v1685_v12 = vpop.permute.xlu0 %1684  ;;  %v5295_v41 = vmax.f32 %v14596_v62, %v5007_v33  ;;  %v14694_v62 = vsel %vm1544_vm0, %v1592_v51, %v1594_v9  ;;  %v5499_v51 = vmax.f32 %v5397_v30, 0.0 }
 0x1fb   : > { %v3358_v63 = vsel %vm3322_vm8, %v3251_v23, %v1685_v12  ;;  %v14687_v22 = vpop.permute.xlu2 %2599  ;;  %v1994_v33 = vshll.u32 %v14706_v17, 16 }
 0x1fc   : > { %v4501_v47 = vsel %vm4464_vm15, %v4498_v39, %v4500_v42  ;;  %v5400_v15 = vadd.f32 %v13938_v36, %v5295_v41  ;;  %v1978_v39 = vrot.slane %v1976_v59, 4  ;;  %v939_v36 = vsel %vm743_vm2, %v934_v1, %v14676_v21 }
 0x1fd   : > { %v14701_v10 = vmax.f32 %v14486_v48, %v4501_v47  ;;  %v3465_v6 = vsel %vm3429_vm9, %v3358_v63, %v2268_v7  ;;  %v5500_v59 = vmax.f32 %v5398_v53, 0.0  ;;  %v2765_v53 = vrot.slane %v1991_v35, 2 }
 0x1fe   : > { %v5502_v54 = vmax.f32 %v5400_v15, 0.0  ;;  %v14718_v27 = vor.u32 %v1978_v39, %v1975_v52  ;;  %v3572_v23 = vsel %vm3536_vm10, %v3465_v6, %v14561_v29  ;;  %v2766_v52 = vrot.slane %v1994_v33, 3 }
 0x1ff   : > { %v5008_v50 = vrot.slane %v14701_v10, 1  ;;  %1213 = vrot.lane.b32.xlu1 %v939_v36, %s12950_s24  ;;  %v5727_v30 = vpack.c.bf16 %v5500_v59, %v5499_v51  ;;  %v14754_v36 = vld [vmem:[%s13030_s19 + $0xc8] sm:$0xff]  }
 0x200   : > { %3045 = vrot.lane.b32.xlu0 %v14694_v62, %s12949_s23  ;;  %v5728_v48 = vpack.c.bf16 %v5502_v54, %v5501_v3  ;;  %1425 = vrot.lane.b32.xlu2 %v1322_v56, %s12948_s22  ;;  %v14757_v3 = vor.u32 %v2766_v52, %v2765_v53 }
 0x201   : > { %v5009_v37 = vsel %vm1273_vm1, %v5006_v57, %v5008_v50  ;;  %v2926_v0 = vpop.permute.xlu1 %2925 }
 0x202   : > { %6414 = vmatpush.bf16.msra.mxu1 %v5728_v48  ;;  %v2598_v1 = vpop.permute.xlu0 %2597  ;;  %v5296_v12 = vmax.f32 %v14645_v19, %v5009_v37  ;;  %v1980_v19 = vsel %vm1756_vm4, %v14600_v32, %v14718_v27 }
 0x203   : > { %v3679_v41 = vsel %vm3643_vm11, %v3572_v23, %v2598_v1  ;;  %v14728_v7 = vpop.f32.mrf.mxu0  ;;  %v14732_v47 = vpop.permute.xlu2 %1205  ;;  %v940_v23 = vshrl.u32 %v14648_v44, 16 }
 0x204   : > { %v3786_v57 = vsel %vm3750_vm12, %v3679_v41, %v2926_v0  ;;  %v4502_v29 = vrot.slane %v14728_v7, 6 }
 0x205   : > { %v3893_v63 = vsel %vm3857_vm13, %v3786_v57, %v14603_v43 }
 0x206   : > { %v4503_v15 = vsel %vm4464_vm15, %v4500_v42, %v4502_v29  ;;  %10560 = vmatmul.msk.bf16.gmra.mxu0 %vm3975_vm14, %v3893_v63  ;;  %6415 = vmatpush.bf16.msra.mxu1 %v5727_v30  ;;  %v2505_v42 = vrot.slane %v14706_v17, 2 }
 0x207   : > { %v14746_v39 = vmax.f32 %v14520_v58, %v4503_v15  ;;  %2279 = vrot.lane.b32.xlu1 %v1980_v19, %s12952_s26 }
 0x208   : > { %1696 = vrot.lane.b32.xlu0 %v14573_v2, %s12947_s21  ;;  %2387 = vrot.lane.b32.xlu2 %v14754_v36, %s12946_s20  ;;  %v1596_v2 = vrot.slane %v14706_v17, 3  ;;  %v14924_v17 = vld [vmem:[%s13030_s19 + $0xec] sm:$0xff]  }
 0x209   : > { %v5010_v43 = vrot.slane %v14746_v39, 1  ;;  %v1416_v58 = vpop.permute.xlu1 %1415 }
 0x20a   : > { %6416 = vmatpush.bf16.msra.mxu1 %v14491_v61  ;;  %v1204_v32 = vpop.permute.xlu0 %1203  ;;  %v14772_v61 = vld [vmem:[%s20835_s2] ss:$0 sm:$0xff] }
 0x20b   : > { %v14761_v54 = vpop.f32.mrf.mxu0  ;;  %v5011_v6 = vsel %vm1273_vm1, %v5008_v50, %v5010_v43  ;;  %v14766_v48 = vpop.permute.xlu2 %2271  ;;  %v5401_v51 = vadd.f32 %v14772_v61, %v5296_v12  ;;  %v3145_v37 = vsel %vm3107_vm6, %v14043_v20, %v1204_v32  ;;  %v2506_v50 = vsel %vm2457_vm3, %v2503_v45, %v2505_v42 }
 0x20c   : > { %v4504_v56 = vrot.slane %v14761_v54, 6  ;;  %v5297_v59 = vmax.f32 %v14701_v10, %v5011_v6  ;;  %v944_v10 = vshll.u32 %v14754_v36, 16  ;;  %v2768_v12 = vsel %vm2669_vm5, %v14635_v14, %v14757_v3 }
 0x20d   : > { %v14795_v45 = vsel %vm1544_vm0, %v1594_v9, %v1596_v2  ;;  %v3253_v0 = vsel %vm3215_vm7, %v3145_v37, %v1416_v58  ;;  %v942_v14 = vor.u32 %v940_v23, %v14676_v21  ;;  %v1984_v58 = vrot.slane %v1982_v13, 3 }
 0x20e   : > { %v4505_v1 = vsel %vm4464_vm15, %v4502_v29, %v4504_v56  ;;  %6417 = vmatpush.bf16.msra.mxu1 %v14410_v18  ;;  %v5402_v20 = vadd.f32 %v14772_v61, %v5297_v59  ;;  %v5503_v18 = vmax.f32 %v5401_v51, 0.0  ;;  %v946_v29 = vrot.slane %v944_v10, 1  ;;  %v14824_v59 = vld [vmem:[%s13030_s19 + $0xe4] sm:$0xff]  }
 0x20f   : > { %v14798_v41 = vmax.f32 %v14553_v11, %v4505_v1  ;;  %2937 = vrot.lane.b32.xlu1 %v2768_v12, %s12953_s27  ;;  %v1323_v11 = vrot.slane %v14754_v36, 1  ;;  %v3360_v15 = vsel %vm3322_vm8, %v3253_v0, %v14642_v28  ;;  %v1987_v6 = vrot.slane %v1985_v4, 4  ;;  %v14866_v0 = vld [vmem:[%s13030_s19 + $0xd0] sm:$0xff]  }
 0x210   : > { %2609 = vrot.lane.b32.xlu0 %v2506_v50, %s12951_s25  ;;  %v5504_v57 = vmax.f32 %v5402_v20, 0.0  ;;  %3047 = vrot.lane.b32.xlu2 %v14795_v45, %s12949_s23  ;;  %v947_v32 = vsel %vm743_vm2, %v942_v14, %v946_v29  ;;  %v2000_v49 = vshrl.u32 %v14824_v59, 16  ;;  %v2003_v4 = vshll.u32 %v14824_v59, 16 }
 0x211   : > { %v5012_v30 = vrot.slane %v14798_v41, 1  ;;  %v2378_v19 = vpop.permute.xlu1 %2377  ;;  %v1324_v28 = vsel %vm1273_vm1, %v1321_v40, %v1323_v11  ;;  %v14835_v13 = vor.u32 %v1987_v6, %v1984_v58  ;;  %v2507_v23 = vrot.slane %v14824_v59, 2 }
 0x212   : > { %6418 = vmatpush.bf16.msra.mxu1 %v14301_v46  ;;  %v2270_v9 = vpop.permute.xlu0 %2269  ;;  %v14809_v63 = vpack.c.bf16 %v5504_v57, %v5503_v18  ;;  %v2770_v12 = vrot.slane %v2003_v4, 3  ;;  %v952_v57 = vshll.u32 %v14866_v0, 16 }
 0x213   : > { %v5013_v21 = vsel %vm1273_vm1, %v5010_v43, %v5012_v30  ;;  %v3467_v53 = vsel %vm3429_vm9, %v3360_v15, %v2270_v9  ;;  %v14815_v52 = vpop.permute.xlu2 %2929  ;;  %v1598_v9 = vrot.slane %v14824_v59, 3 }
 0x214   : > { %v5298_v46 = vmax.f32 %v14746_v39, %v5013_v21  ;;  %v3574_v39 = vsel %vm3536_vm10, %v3467_v53, %v2378_v19  ;;  %v954_v58 = vrot.slane %v952_v57, 1 }
 0x216   : > { %6419 = vmatpush.bf16.msra.mxu1 %v14189_v25  ;;  %v3681_v25 = vsel %vm3643_vm11, %v3574_v39, %v14687_v22  ;;  %v5403_v21 = vadd.f32 %v14772_v61, %v5298_v46 }
 0x217   : > { %1427 = vrot.lane.b32.xlu1 %v1324_v28, %s12948_s22 }
 0x218   : > { %1215 = vrot.lane.b32.xlu0 %v947_v32, %s12950_s24  ;;  %1698 = vrot.lane.b32.xlu2 %v14694_v62, %s12947_s21  ;;  %v2769_v62 = vrot.slane %v2000_v49, 2  ;;  %v5505_v39 = vmax.f32 %v5403_v21, 0.0  ;;  %v2509_v21 = vrot.slane %v14924_v17, 2 }
 0x219   : > { %v3038_v50 = vpop.permute.xlu1 %3037 }
 0x21a   : > { %v14841_v43 = vpop.f32.mrf.mxu0  ;;  %6420 = vmatpush.bf16.msra.mxu1 %v14104_v38  ;;  %v2928_v40 = vpop.permute.xlu0 %2927  ;;  %v1989_v38 = vsel %vm1756_vm4, %v14718_v27, %v14835_v13  ;;  %v948_v27 = vshrl.u32 %v14754_v36, 16 }
 0x21b   : > { %v4506_v51 = vrot.slane %v14841_v43, 6  ;;  %v3788_v37 = vsel %vm3750_vm12, %v3681_v25, %v2928_v40  ;;  %v14850_v1 = vpop.permute.xlu2 %1419  ;;  %v1993_v25 = vrot.slane %v1991_v35, 3  ;;  %v1996_v40 = vrot.slane %v1994_v33, 4 }
 0x21c   : > { %v3895_v10 = vsel %vm3857_vm13, %v3788_v37, %v3038_v50  ;;  %v950_v15 = vor.u32 %v948_v27, %v946_v29  ;;  %v2012_v27 = vshll.u32 %v14924_v17, 16 }
 0x21d   : > { %v4507_v22 = vsel %vm4464_vm15, %v4504_v56, %v4506_v51  ;;  %10561 = vmatmul.msk.bf16.gmra.mxu0 %vm3975_vm14, %v3895_v10  ;;  %v2508_v56 = vsel %vm2457_vm3, %v2505_v42, %v2507_v23 }
 0x21e   : > { %v14862_v20 = vmax.f32 %v14626_v24, %v4507_v22  ;;  %6421 = vmatpush.bf16.msra.mxu1 %v13995_v8  ;;  %v3147_v8 = vsel %vm3107_vm6, %v14143_v16, %v14732_v47  ;;  %v14882_v24 = vor.u32 %v2770_v12, %v2769_v62  ;;  %v955_v46 = vsel %vm743_vm2, %v950_v15, %v954_v58 }
 0x21f   : > { %2389 = vrot.lane.b32.xlu1 %v14866_v0, %s12946_s20  ;;  %v14929_v22 = vor.u32 %v1996_v40, %v1993_v25  ;;  %v2774_v15 = vrot.slane %v2012_v27, 3 }
 0x220   : > { %v5014_v18 = vrot.slane %v14862_v20, 1  ;;  %2281 = vrot.lane.b32.xlu0 %v1989_v38, %s12952_s26  ;;  %2611 = vrot.lane.b32.xlu2 %v2508_v56, %s12951_s25  ;;  %v2772_v29 = vsel %vm2669_vm5, %v14757_v3, %v14882_v24  ;;  %v2009_v56 = vshrl.u32 %v14924_v17, 16 }
 0x221   : > { %v1689_v16 = vpop.permute.xlu1 %1688 }
 0x222   : > { %v14884_v14 = vpop.f32.mrf.mxu0  ;;  %v1418_v42 = vpop.permute.xlu0 %1417  ;;  %v5015_v19 = vsel %vm1273_vm1, %v5012_v30, %v5014_v18 }
 0x223   : > { %v4508_v53 = vrot.slane %v14884_v14, 6  ;;  %v5299_v47 = vmax.f32 %v14798_v41, %v5015_v19  ;;  %v14892_v32 = vpop.permute.xlu2 %2381  ;;  %v3255_v28 = vsel %vm3215_vm7, %v3147_v8, %v1418_v42  ;;  %v14905_v41 = vsel %vm1544_vm0, %v1596_v2, %v1598_v9 }
 0x224   : > { %v3362_v37 = vsel %vm3322_vm8, %v3255_v28, %v1689_v16  ;;  %v1325_v2 = vrot.slane %v14866_v0, 1  ;;  %v2773_v42 = vrot.slane %v2009_v56, 2 }
 0x225   : > { %v4509_v6 = vsel %vm4464_vm15, %v4506_v51, %v4508_v53  ;;  %v5404_v30 = vadd.f32 %v14772_v61, %v5299_v47 }
 0x226   : > { %v14913_v3 = vmax.f32 %v14670_v55, %v4509_v6  ;;  %v3469_v55 = vsel %vm3429_vm9, %v3362_v37, %v14766_v48  ;;  %v1326_v57 = vsel %vm1273_vm1, %v1323_v11, %v1325_v2  ;;  %v14962_v6 = vor.u32 %v2774_v15, %v2773_v42 }
 0x227   : > { %v5506_v51 = vmax.f32 %v5404_v30, 0.0  ;;  %3049 = vrot.lane.b32.xlu1 %v14905_v41, %s12949_s23  ;;  %v956_v30 = vshrl.u32 %v14866_v0, 16 }
 0x228   : > { %2939 = vrot.lane.b32.xlu0 %v2772_v29, %s12953_s27  ;;  %v5016_v50 = vrot.slane %v14913_v3, 1  ;;  %1217 = vrot.lane.b32.xlu2 %v955_v46, %s12950_s24  ;;  %v14972_v29 = vld [vmem:[%s13030_s19 + $0xd8] sm:$0xff]  }
 0x229   : > { %v14921_v10 = vpack.c.bf16 %v5506_v51, %v5505_v39  ;;  %v2602_v33 = vpop.permute.xlu1 %2601  ;;  %v960_v39 = vshll.u32 %v14972_v29, 16  ;;  %v958_v51 = vor.u32 %v956_v30, %v954_v58 }
 0x22a   : > { %v2380_v35 = vpop.permute.xlu0 %2379  ;;  %v5017_v38 = vsel %vm1273_vm1, %v5014_v18, %v5016_v50  ;;  %v1998_v18 = vsel %vm1756_vm4, %v14835_v13, %v14929_v22 }
 0x22b   : > { %v3576_v62 = vsel %vm3536_vm10, %v3469_v55, %v2380_v35  ;;  %v14933_v12 = vpop.permute.xlu2 %3041  ;;  %v5300_v48 = vmax.f32 %v14862_v20, %v5017_v38 }
 0x22c   : > { %v3683_v8 = vsel %vm3643_vm11, %v3576_v62, %v2602_v33  ;;  %v1327_v62 = vrot.slane %v14972_v29, 1 }
 0x22d   : > { %v3790_v20 = vsel %vm3750_vm12, %v3683_v8, %v14815_v52 }
 0x22f   : > { %1700 = vrot.lane.b32.xlu1 %v14795_v45, %s12947_s21 }
 0x230   : > { %1429 = vrot.lane.b32.xlu0 %v1326_v57, %s12948_s22  ;;  %2283 = vrot.lane.b32.xlu2 %v1998_v18, %s12952_s26 }
 0x231   : > { %v14954_v11 = vpop.f32.mrf.mxu0  ;;  %v1208_v47 = vpop.permute.xlu1 %1207 }
 0x232   : > { %v4510_v19 = vrot.slane %v14954_v11, 6  ;;  %v3040_v13 = vpop.permute.xlu0 %3039  ;;  %v3149_v46 = vsel %vm3107_vm6, %v14243_v60, %v1208_v47 }
 0x233   : > { %v3897_v16 = vsel %vm3857_vm13, %v3790_v20, %v3040_v13  ;;  %v14966_v45 = vpop.permute.xlu2 %1692  ;;  %v3257_v60 = vsel %vm3215_vm7, %v3149_v46, %v14850_v1  ;;  %v5405_v1 = vadd.f32 %v14772_v61, %v5300_v48  ;;  %v2005_v48 = vrot.slane %v2003_v4, 4  ;;  %v15023_v20 = vld [vmem:[%s13030_s19 + $0xf4] sm:$0xff]  }
 0x234   : > { %v4511_v28 = vsel %vm4464_vm15, %v4508_v53, %v4510_v19  ;;  %10562 = vmatmul.msk.bf16.gmra.mxu0 %vm3975_vm14, %v3897_v16  ;;  %v2510_v53 = vsel %vm2457_vm3, %v2507_v23, %v2509_v21  ;;  %v1600_v23 = vrot.slane %v14924_v17, 3  ;;  %v2018_v30 = vshrl.u32 %v15023_v20, 16 }
 0x235   : > { %v14969_v52 = vmax.f32 %v14728_v7, %v4511_v28  ;;  %v2776_v7 = vsel %vm2669_vm5, %v14882_v24, %v14962_v6  ;;  %v14997_v24 = vrot.slane %v960_v39, 1 }
 0x236   : > { %v15013_v18 = vsel %vm1544_vm0, %v1598_v9, %v1600_v23 }
 0x237   : > { %v5018_v25 = vrot.slane %v14969_v52, 1  ;;  %2613 = vrot.lane.b32.xlu1 %v2510_v53, %s12951_s25  ;;  %v963_v15 = vsel %vm743_vm2, %v958_v51, %v14997_v24 }
 0x238   : > { %2391 = vrot.lane.b32.xlu0 %v14972_v29, %s12946_s20  ;;  %2941 = vrot.lane.b32.xlu2 %v2776_v7, %s12953_s27 }
 0x239   : > { %v14992_v40 = vpop.f32.mrf.mxu0  ;;  %v5019_v37 = vsel %vm1273_vm1, %v5016_v50, %v5018_v25  ;;  %v2274_v38 = vpop.permute.xlu1 %2273 }
 0x23a   : > { %v4512_v35 = vrot.slane %v14992_v40, 6  ;;  %v1691_v55 = vpop.permute.xlu0 %1690  ;;  %v5301_v33 = vmax.f32 %v14913_v3, %v5019_v37  ;;  %v2002_v3 = vrot.slane %v2000_v49, 3  ;;  %v1328_v49 = vsel %vm1273_vm1, %v1325_v2, %v1327_v62 }
 0x23b   : > { %v3364_v58 = vsel %vm3322_vm8, %v3257_v60, %v1691_v55  ;;  %v15005_v50 = vpop.permute.xlu2 %2605  ;;  %v2021_v2 = vshll.u32 %v15023_v20, 16  ;;  %v2777_v55 = vrot.slane %v2018_v30, 2 }
 0x23c   : > { %v4513_v57 = vsel %vm4464_vm15, %v4510_v19, %v4512_v35  ;;  %v5406_v8 = vadd.f32 %v14772_v61, %v5301_v33  ;;  %v5507_v19 = vmax.f32 %v5405_v1, 0.0  ;;  %v3471_v16 = vsel %vm3429_vm9, %v3364_v58, %v2274_v38  ;;  %v15072_v38 = vld [vmem:[%s13030_s19 + $0xe0] sm:$0xff]  }
 0x23d   : > { %v4793_v42 = vmax.f32 %v14761_v54, %v4513_v57  ;;  %v15036_v59 = vor.u32 %v2005_v48, %v2002_v3  ;;  %v3578_v47 = vsel %vm3536_vm10, %v3471_v16, %v14892_v32  ;;  %v2778_v33 = vrot.slane %v2021_v2, 3 }
 0x23e   : > { %v5508_v13 = vmax.f32 %v5406_v8, 0.0  ;;  %v1602_v8 = vrot.slane %v15023_v20, 3 }
 0x23f   : > { %v5020_v9 = vrot.slane %v4793_v42, 1  ;;  %1219 = vrot.lane.b32.xlu1 %v963_v15, %s12950_s24  ;;  %v15074_v57 = vor.u32 %v2778_v33, %v2777_v55 }
 0x240   : > { %3051 = vrot.lane.b32.xlu0 %v15013_v18, %s12949_s23  ;;  %v15033_v54 = vpack.c.bf16 %v5508_v13, %v5507_v19  ;;  %1431 = vrot.lane.b32.xlu2 %v1328_v49, %s12948_s22  ;;  %v964_v49 = vshrl.u32 %v14972_v29, 16 }
 0x241   : > { %v5021_v4 = vsel %vm1273_vm1, %v5018_v25, %v5020_v9  ;;  %v2932_v39 = vpop.permute.xlu1 %2931 }
 0x242   : > { %v2604_v28 = vpop.permute.xlu0 %2603  ;;  %v5302_v46 = vmax.f32 %v14969_v52, %v5021_v4  ;;  %v2007_v52 = vsel %vm1756_vm4, %v14929_v22, %v15036_v59 }
 0x243   : > { %v3685_v53 = vsel %vm3643_vm11, %v3578_v47, %v2604_v28  ;;  %v15046_v7 = vpop.f32.mrf.mxu0  ;;  %v15050_v32 = vpop.permute.xlu2 %1211 }
 0x244   : > { %v3792_v25 = vsel %vm3750_vm12, %v3685_v53, %v2932_v39  ;;  %v4514_v60 = vrot.slane %v15046_v7, 6  ;;  %v5407_v19 = vadd.f32 %v14772_v61, %v5302_v46 }
 0x245   : > { %v3899_v51 = vsel %vm3857_vm13, %v3792_v25, %v14933_v12 }
 0x246   : > { %v4515_v37 = vsel %vm4464_vm15, %v4512_v35, %v4514_v60  ;;  %10563 = vmatmul.msk.bf16.gmra.mxu0 %vm3975_vm14, %v3899_v51  ;;  %v2511_v35 = vrot.slane %v15023_v20, 2  ;;  %v5509_v46 = vmax.f32 %v5407_v19, 0.0 }
 0x247   : > { %v15064_v1 = vmax.f32 %v14841_v43, %v4515_v37  ;;  %2285 = vrot.lane.b32.xlu1 %v2007_v52, %s12952_s26 }
 0x248   : > { %1702 = vrot.lane.b32.xlu0 %v14905_v41, %s12947_s21  ;;  %2393 = vrot.lane.b32.xlu2 %v15072_v38, %s12946_s20  ;;  %v2512_v16 = vsel %vm2457_vm3, %v2509_v21, %v2511_v35 }
 0x249   : > { %v5022_v12 = vrot.slane %v15064_v1, 1  ;;  %v1422_v58 = vpop.permute.xlu1 %1421 }
 0x24a   : > { %v1210_v22 = vpop.permute.xlu0 %1209 }
 0x24b   : > { %v15078_v43 = vpop.f32.mrf.mxu0  ;;  %v5023_v41 = vsel %vm1273_vm1, %v5020_v9, %v5022_v12  ;;  %v15083_v48 = vpop.permute.xlu2 %2277  ;;  %v3151_v13 = vsel %vm3107_vm6, %v14344_v31, %v1210_v22  ;;  %v968_v9 = vshll.u32 %v15072_v38, 16  ;;  %v15105_v31 = vsel %vm1544_vm0, %v1600_v23, %v1602_v8 }
 0x24c   : > { %v4516_v3 = vrot.slane %v15078_v43, 6  ;;  %v5303_v15 = vmax.f32 %v4793_v42, %v5023_v41  ;;  %v2780_v42 = vsel %vm2669_vm5, %v14962_v6, %v15074_v57  ;;  %v3259_v28 = vsel %vm3215_vm7, %v3151_v13, %v1422_v58 }
 0x24d   : > { %v966_v6 = vor.u32 %v964_v49, %v14997_v24  ;;  %v970_v39 = vrot.slane %v968_v9, 1  ;;  %v1329_v23 = vrot.slane %v15072_v38, 1  ;;  %v3366_v51 = vsel %vm3322_vm8, %v3259_v28, %v14966_v45 }
 0x24e   : > { %v4517_v4 = vsel %vm4464_vm15, %v4514_v60, %v4516_v3  ;;  %v5408_v47 = vadd.f32 %v14772_v61, %v5303_v15  ;;  %v2011_v58 = vrot.slane %v2009_v56, 3  ;;  %v2014_v41 = vrot.slane %v2012_v27, 4  ;;  %v15133_v15 = vld [vmem:[%s13030_s19 + $0xfc] sm:$0xff]  }
 0x24f   : > { %v15108_v21 = vmax.f32 %v14884_v14, %v4517_v4  ;;  %2943 = vrot.lane.b32.xlu1 %v2780_v42, %s12953_s27  ;;  %v971_v22 = vsel %vm743_vm2, %v966_v6, %v970_v39  ;;  %v1330_v45 = vsel %vm1273_vm1, %v1327_v62, %v1329_v23  ;;  %v2027_v56 = vshrl.u32 %v15133_v15, 16 }
 0x250   : > { %2615 = vrot.lane.b32.xlu0 %v2512_v16, %s12951_s25  ;;  %v5510_v53 = vmax.f32 %v5408_v47, 0.0  ;;  %3053 = vrot.lane.b32.xlu2 %v15105_v31, %s12949_s23  ;;  %v2030_v17 = vshll.u32 %v15133_v15, 16  ;;  %v2513_v9 = vrot.slane %v15133_v15, 2  ;;  %v972_v6 = vshrl.u32 %v15072_v38, 16 }
 0x251   : > { %v5024_v25 = vrot.slane %v15108_v21, 1  ;;  %v2384_v37 = vpop.permute.xlu1 %2383 }
 0x252   : > { %v2276_v60 = vpop.permute.xlu0 %2275  ;;  %v15118_v14 = vpack.c.bf16 %v5510_v53, %v5509_v46  ;;  %v2782_v28 = vrot.slane %v2030_v17, 3  ;;  %v15172_v53 = vld [vmem:[%s13030_s19 + $0xe8] sm:$0xff]  }
 0x253   : > { %v5025_v52 = vsel %vm1273_vm1, %v5022_v12, %v5024_v25  ;;  %v3473_v24 = vsel %vm3429_vm9, %v3366_v51, %v2276_v60  ;;  %v15124_v55 = vpop.permute.xlu2 %2935  ;;  %v976_v60 = vshll.u32 %v15172_v53, 16 }
 0x254   : > { %v5304_v33 = vmax.f32 %v15064_v1, %v5025_v52  ;;  %v3580_v12 = vsel %vm3536_vm10, %v3473_v24, %v2384_v37  ;;  %v15143_v1 = vor.u32 %v2014_v41, %v2011_v58  ;;  %v1604_v52 = vrot.slane %v15133_v15, 3 }
 0x255   : > { %v3687_v27 = vsel %vm3643_vm11, %v3580_v12, %v15005_v50  ;;  %v974_v24 = vor.u32 %v972_v6, %v970_v39  ;;  %v978_v12 = vrot.slane %v976_v60, 1 }
 0x256   : > { %v2016_v47 = vsel %vm1756_vm4, %v15036_v59, %v15143_v1  ;;  %v5409_v58 = vadd.f32 %v14772_v61, %v5304_v33 }
 0x257   : > { %1433 = vrot.lane.b32.xlu1 %v1330_v45, %s12948_s22 }
 0x258   : > { %1221 = vrot.lane.b32.xlu0 %v971_v22, %s12950_s24  ;;  %1704 = vrot.lane.b32.xlu2 %v15013_v18, %s12947_s21  ;;  %v2781_v18 = vrot.slane %v2027_v56, 2  ;;  %v5511_v33 = vmax.f32 %v5409_v58, 0.0 }
 0x259   : > { %v3044_v49 = vpop.permute.xlu1 %3043 }
 0x25a   : > { %v15149_v19 = vpop.f32.mrf.mxu0  ;;  %v2934_v13 = vpop.permute.xlu0 %2933  ;;  %v15188_v51 = vor.u32 %v2782_v28, %v2781_v18 }
 0x25b   : > { %v4518_v62 = vrot.slane %v15149_v19, 6  ;;  %v3794_v16 = vsel %vm3750_vm12, %v3687_v27, %v2934_v13  ;;  %v15157_v42 = vpop.permute.xlu2 %1425 }
 0x25c   : > { %v3901_v4 = vsel %vm3857_vm13, %v3794_v16, %v3044_v49  ;;  %v2784_v13 = vsel %vm2669_vm5, %v15074_v57, %v15188_v51  ;;  %v2020_v49 = vrot.slane %v2018_v30, 3  ;;  %v2023_v57 = vrot.slane %v2021_v2, 4 }
 0x25d   : > { %v4519_v50 = vsel %vm4464_vm15, %v4516_v3, %v4518_v62  ;;  %10564 = vmatmul.msk.bf16.gmra.mxu0 %vm3975_vm14, %v3901_v4  ;;  %v2514_v3 = vsel %vm2457_vm3, %v2511_v35, %v2513_v9 }
 0x25e   : > { %v15169_v46 = vmax.f32 %v14954_v11, %v4519_v50  ;;  %v3153_v11 = vsel %vm3107_vm6, %v14451_v5, %v15050_v32  ;;  %v15232_v28 = vor.u32 %v2023_v57, %v2020_v49  ;;  %v980_v57 = vshrl.u32 %v15172_v53, 16 }
 0x25f   : > { %2395 = vrot.lane.b32.xlu1 %v15172_v53, %s12946_s20 }
 0x260   : > { %v5026_v59 = vrot.slane %v15169_v46, 1  ;;  %2287 = vrot.lane.b32.xlu0 %v2016_v47, %s12952_s26  ;;  %2617 = vrot.lane.b32.xlu2 %v2514_v3, %s12951_s25 }
 0x261   : > { %v1695_v5 = vpop.permute.xlu1 %1694 }
 0x262   : > { %v15190_v37 = vpop.f32.mrf.mxu0  ;;  %v1424_v35 = vpop.permute.xlu0 %1423  ;;  %v5027_v22 = vsel %vm1273_vm1, %v5024_v25, %v5026_v59  ;;  %v15210_v25 = vsel %vm1544_vm0, %v1602_v8, %v1604_v52  ;;  %v1331_v8 = vrot.slane %v15172_v53, 1 }
 0x263   : > { %v4520_v41 = vrot.slane %v15190_v37, 6  ;;  %v5305_v32 = vmax.f32 %v15108_v21, %v5027_v22  ;;  %v15198_v45 = vpop.permute.xlu2 %2387  ;;  %v3261_v27 = vsel %vm3215_vm7, %v3153_v11, %v1424_v35  ;;  %v979_v21 = vsel %vm743_vm2, %v974_v24, %v978_v12 }
 0x264   : > { %v3368_v50 = vsel %vm3322_vm8, %v3261_v27, %v1695_v5  ;;  %v2025_v24 = vsel %vm1756_vm4, %v15143_v1, %v15232_v28 }
 0x265   : > { %v5410_v39 = vadd.f32 %v14772_v61, %v5305_v32  ;;  %v4521_v16 = vsel %vm4464_vm15, %v4518_v62, %v4520_v41  ;;  %v15226_v62 = vld [vmem:[%s13030_s19 + $0x104] sm:$0xff]   ;;  %v3475_v30 = vsel %vm3429_vm9, %v3368_v50, %v15083_v48 }
 0x266   : > { %v4797_v20 = vmax.f32 %v14992_v40, %v4521_v16  ;;  %v2036_v60 = vshrl.u32 %v15226_v62, 16  ;;  %v2039_v11 = vshll.u32 %v15226_v62, 16  ;;  %v1332_v40 = vsel %vm1273_vm1, %v1329_v23, %v1331_v8 }
 0x267   : > { %v5512_v4 = vmax.f32 %v5410_v39, 0.0  ;;  %3055 = vrot.lane.b32.xlu1 %v15210_v25, %s12949_s23  ;;  %v2515_v27 = vrot.slane %v15226_v62, 2 }
 0x268   : > { %2945 = vrot.lane.b32.xlu0 %v2784_v13, %s12953_s27  ;;  %1223 = vrot.lane.b32.xlu2 %v979_v21, %s12950_s24  ;;  %v5028_v35 = vrot.slane %v4797_v20, 1  ;;  %v2785_v22 = vrot.slane %v2036_v60, 2  ;;  %v2786_v58 = vrot.slane %v2039_v11, 3 }
 0x269   : > { %v15223_v47 = vpack.c.bf16 %v5512_v4, %v5511_v33  ;;  %v2608_v2 = vpop.permute.xlu1 %2607 }
 0x26a   : > { %v2386_v18 = vpop.permute.xlu0 %2385  ;;  %v15263_v21 = vor.u32 %v2786_v58, %v2785_v22  ;;  %v5029_v33 = vsel %vm1273_vm1, %v5026_v59, %v5028_v35 }
 0x26b   : > { %v3582_v3 = vsel %vm3536_vm10, %v3475_v30, %v2386_v18  ;;  %v15235_v6 = vpop.permute.xlu2 %3047  ;;  %v5306_v50 = vmax.f32 %v15169_v46, %v5029_v33  ;;  %v1606_v30 = vrot.slane %v15226_v62, 3 }
 0x26c   : > { %v3689_v48 = vsel %vm3643_vm11, %v3582_v3, %v2608_v2  ;;  %v982_v2 = vor.u32 %v980_v57, %v978_v12 }
 0x26d   : > { %v3796_v5 = vsel %vm3750_vm12, %v3689_v48, %v15124_v55  ;;  %v15271_v55 = vld [vmem:[%s13030_s19 + $0xf0] sm:$0xff]  }
 0x26e   : > { %v984_v4 = vshll.u32 %v15271_v55, 16 }
 0x26f   : > { %1706 = vrot.lane.b32.xlu1 %v15105_v31, %s12947_s21 }
 0x270   : > { %1435 = vrot.lane.b32.xlu0 %v1332_v40, %s12948_s22  ;;  %2289 = vrot.lane.b32.xlu2 %v2025_v24, %s12952_s26  ;;  %v5411_v40 = vadd.f32 %v14772_v61, %v5306_v50 }
 0x271   : > { %v15255_v23 = vpop.f32.mrf.mxu0  ;;  %v1214_v39 = vpop.permute.xlu1 %1213 }
 0x272   : > { %v4522_v32 = vrot.slane %v15255_v23, 6  ;;  %v3046_v1 = vpop.permute.xlu0 %3045  ;;  %v3155_v59 = vsel %vm3107_vm6, %v14538_v34, %v1214_v39  ;;  %v5513_v39 = vmax.f32 %v5411_v40, 0.0 }
 0x273   : > { %v3903_v13 = vsel %vm3857_vm13, %v3796_v5, %v3046_v1  ;;  %v15273_v16 = vpop.permute.xlu2 %1698  ;;  %v3263_v34 = vsel %vm3215_vm7, %v3155_v59, %v15157_v42  ;;  %v1333_v42 = vrot.slane %v15271_v55, 1  ;;  %v2029_v5 = vrot.slane %v2027_v56, 3 }
 0x274   : > { %v4523_v31 = vsel %vm4464_vm15, %v4520_v41, %v4522_v32  ;;  %10565 = vmatmul.msk.bf16.gmra.mxu0 %vm3975_vm14, %v3903_v13  ;;  %v2516_v41 = vsel %vm2457_vm3, %v2513_v9, %v2515_v27  ;;  %v15298_v9 = vrot.slane %v984_v4, 1  ;;  %v2032_v1 = vrot.slane %v2030_v17, 4  ;;  %v15326_v13 = vld [vmem:[%s13030_s19 + $0x10c] sm:$0xff]  }
 0x275   : > { %v15276_v49 = vmax.f32 %v15046_v7, %v4523_v31  ;;  %v2788_v7 = vsel %vm2669_vm5, %v15188_v51, %v15263_v21  ;;  %v2045_v4 = vshrl.u32 %v15326_v13, 16  ;;  %v2048_v59 = vshll.u32 %v15326_v13, 16 }
 0x276   : > { %v15341_v17 = vor.u32 %v2032_v1, %v2029_v5 }
 0x277   : > { %v5030_v18 = vrot.slane %v15276_v49, 1  ;;  %2619 = vrot.lane.b32.xlu1 %v2516_v41, %s12951_s25 }
 0x278   : > { %2397 = vrot.lane.b32.xlu0 %v15271_v55, %s12946_s20  ;;  %2947 = vrot.lane.b32.xlu2 %v2788_v7, %s12953_s27 }
 0x279   : > { %v5031_v46 = vsel %vm1273_vm1, %v5028_v35, %v5030_v18  ;;  %v15305_v48 = vpop.f32.mrf.mxu0  ;;  %v2280_v24 = vpop.permute.xlu1 %2279  ;;  %v15317_v35 = vsel %vm1544_vm0, %v1604_v52, %v1606_v30  ;;  %v1334_v52 = vsel %vm1273_vm1, %v1331_v8, %v1333_v42 }
 0x27a   : > { %v1697_v3 = vpop.permute.xlu0 %1696  ;;  %v5307_v51 = vmax.f32 %v4797_v20, %v5031_v46  ;;  %v987_v20 = vsel %vm743_vm2, %v982_v2, %v15298_v9  ;;  %v2034_v2 = vsel %vm1756_vm4, %v15232_v28, %v15341_v17  ;;  %v2789_v46 = vrot.slane %v2045_v4, 2 }
 0x27b   : > { %v3370_v12 = vsel %vm3322_vm8, %v3263_v34, %v1697_v3  ;;  %v15309_v22 = vpop.permute.xlu2 %2611  ;;  %v2790_v3 = vrot.slane %v2048_v59, 3 }
 0x27c   : > { %v5412_v58 = vadd.f32 %v14772_v61, %v5307_v51  ;;  %v3477_v31 = vsel %vm3429_vm9, %v3370_v12, %v2280_v24  ;;  %v2517_v51 = vrot.slane %v15326_v13, 2 }
 0x27d   : > { %v3584_v15 = vsel %vm3536_vm10, %v3477_v31, %v15198_v45  ;;  %v15369_v24 = vor.u32 %v2790_v3, %v2789_v46 }
 0x27e   : > { %v5514_v33 = vmax.f32 %v5412_v58, 0.0  ;;  %v1608_v58 = vrot.slane %v15326_v13, 3  ;;  %v2518_v1 = vsel %vm2457_vm3, %v2515_v27, %v2517_v51 }
 0x27f   : > { %1225 = vrot.lane.b32.xlu1 %v987_v20, %s12950_s24 }
 0x280   : > { %3057 = vrot.lane.b32.xlu0 %v15317_v35, %s12949_s23  ;;  %v15336_v57 = vpack.c.bf16 %v5514_v33, %v5513_v39  ;;  %1437 = vrot.lane.b32.xlu2 %v1334_v52, %s12948_s22  ;;  %v988_v39 = vshrl.u32 %v15271_v55, 16  ;;  %v2792_v52 = vsel %vm2669_vm5, %v15263_v21, %v15369_v24 }
 0x281   : > { %v2938_v41 = vpop.permute.xlu1 %2937 }
 0x282   : > { %v2610_v56 = vpop.permute.xlu0 %2609  ;;  %v990_v21 = vor.u32 %v988_v39, %v15298_v9 }
 0x283   : > { %v3691_v8 = vsel %vm3643_vm11, %v3584_v15, %v2610_v56  ;;  %v15347_v50 = vpop.f32.mrf.mxu0  ;;  %v15350_v34 = vpop.permute.xlu2 %1217  ;;  %v4524_v15 = vrot.slane %v15305_v48, 6 }
 0x284   : > { %v3798_v7 = vsel %vm3750_vm12, %v3691_v8, %v2938_v41  ;;  %v4526_v31 = vrot.slane %v15347_v50, 6 }
 0x285   : > { %v3905_v45 = vsel %vm3857_vm13, %v3798_v7, %v15235_v6  ;;  %v15367_v6 = vld [vmem:[%s13030_s19 + $0xf8] sm:$0xff]  }
 0x286   : > { %10566 = vmatmul.msk.bf16.gmra.mxu0 %vm3975_vm14, %v3905_v45  ;;  %v992_v33 = vshll.u32 %v15367_v6, 16  ;;  %v4527_v41 = vsel %vm4464_vm15, %v4524_v15, %v4526_v31  ;;  %v1335_v45 = vrot.slane %v15367_v6, 1 }
 0x287   : > { %2291 = vrot.lane.b32.xlu1 %v2034_v2, %s12952_s26 }
 0x288   : > { %1708 = vrot.lane.b32.xlu0 %v15210_v25, %s12947_s21  ;;  %2399 = vrot.lane.b32.xlu2 %v15367_v6, %s12946_s20  ;;  %v15405_v8 = vrot.slane %v992_v33, 1 }
 0x289   : > { %v1428_v28 = vpop.permute.xlu1 %1427 }
 0x28a   : > { %v1216_v40 = vpop.permute.xlu0 %1215 }
 0x28b   : > { %v15373_v12 = vpop.f32.mrf.mxu0  ;;  %v15377_v25 = vpop.permute.xlu2 %2283  ;;  %v3157_v5 = vsel %vm3107_vm6, %v14648_v44, %v1216_v40  ;;  %v15398_v44 = vsel %vm1544_vm0, %v1606_v30, %v1608_v58  ;;  %v4525_v30 = vsel %vm4464_vm15, %v4522_v32, %v4524_v15  ;;  %v15421_v40 = vld [vmem:[%s13030_s19 + $0x114] sm:$0xff]   ;;  %v2041_v32 = vrot.slane %v2039_v11, 4 }
 0x28c   : > { %v4528_v20 = vrot.slane %v15373_v12, 6  ;;  %v3265_v27 = vsel %vm3215_vm7, %v3157_v5, %v1428_v28  ;;  %v995_v5 = vsel %vm743_vm2, %v990_v21, %v15405_v8  ;;  %v4799_v39 = vmax.f32 %v15078_v43, %v4525_v30 }
 0x28d   : > { %v3372_v2 = vsel %vm3322_vm8, %v3265_v27, %v15273_v16  ;;  %v4800_v16 = vmax.f32 %v15149_v19, %v4527_v41  ;;  %v2057_v62 = vshll.u32 %v15421_v40, 16 }
 0x28e   : > { %v4529_v56 = vsel %vm4464_vm15, %v4526_v31, %v4528_v20  ;;  %v5032_v15 = vrot.slane %v4799_v39, 1 }
 0x28f   : > { %2949 = vrot.lane.b32.xlu1 %v2792_v52, %s12953_s27  ;;  %v15417_v9 = vmax.f32 %v15190_v37, %v4529_v56  ;;  %v1336_v37 = vsel %vm1273_vm1, %v1333_v42, %v1335_v45  ;;  %v5034_v11 = vrot.slane %v4800_v16, 1 }
 0x290   : > { %2621 = vrot.lane.b32.xlu0 %v2518_v1, %s12951_s25  ;;  %3059 = vrot.lane.b32.xlu2 %v15398_v44, %s12949_s23  ;;  %v2038_v1 = vrot.slane %v2036_v60, 3  ;;  %v2054_v60 = vshrl.u32 %v15421_v40, 16 }
 0x291   : > { %v2390_v46 = vpop.permute.xlu1 %2389  ;;  %v5036_v31 = vrot.slane %v15417_v9, 1 }
 0x292   : > { %v2282_v7 = vpop.permute.xlu0 %2281  ;;  %v15444_v19 = vor.u32 %v2041_v32, %v2038_v1  ;;  %v15472_v1 = vld [vmem:[%s13030_s19 + $0x100] sm:$0xff]  }
 0x293   : > { %v3479_v3 = vsel %vm3429_vm9, %v3372_v2, %v2282_v7  ;;  %v15423_v28 = vpop.permute.xlu2 %2941  ;;  %v5037_v41 = vsel %vm1273_vm1, %v5034_v11, %v5036_v31  ;;  %v2519_v7 = vrot.slane %v15421_v40, 2  ;;  %v2794_v2 = vrot.slane %v2057_v62, 3 }
 0x294   : > { %v3586_v33 = vsel %vm3536_vm10, %v3479_v3, %v2390_v46  ;;  %v2043_v3 = vsel %vm1756_vm4, %v15341_v17, %v15444_v19  ;;  %v5310_v32 = vmax.f32 %v4800_v16, %v5037_v41  ;;  %v996_v17 = vshrl.u32 %v15367_v6, 16 }
 0x295   : > { %v3693_v42 = vsel %vm3643_vm11, %v3586_v33, %v15309_v22  ;;  %v2793_v22 = vrot.slane %v2054_v60, 2  ;;  %v5035_v33 = vsel %vm1273_vm1, %v5032_v15, %v5034_v11  ;;  %v1000_v16 = vshll.u32 %v15472_v1, 16 }
 0x296   : > { %v5415_v41 = vadd.f32 %v14772_v61, %v5310_v32 }
 0x297   : > { %1439 = vrot.lane.b32.xlu1 %v1336_v37, %s12948_s22  ;;  %v5033_v37 = vsel %vm1273_vm1, %v5030_v18, %v5032_v15  ;;  %v3159_v18 = vsel %vm3107_vm6, %v14754_v36, %v15350_v34 }
 0x298   : > { %1227 = vrot.lane.b32.xlu0 %v995_v5, %s12950_s24  ;;  %1710 = vrot.lane.b32.xlu2 %v15317_v35, %s12947_s21  ;;  %v5308_v11 = vmax.f32 %v15276_v49, %v5033_v37 }
 0x299   : > { %v3050_v21 = vpop.permute.xlu1 %3049 }
 0x29a   : > { %v15448_v52 = vpop.f32.mrf.mxu0  ;;  %v2940_v43 = vpop.permute.xlu0 %2939  ;;  %v5413_v32 = vadd.f32 %v14772_v61, %v5308_v11 }
 0x29b   : > { %v4530_v27 = vrot.slane %v15448_v52, 6  ;;  %v3800_v56 = vsel %vm3750_vm12, %v3693_v42, %v2940_v43  ;;  %v15461_v46 = vpop.permute.xlu2 %1431  ;;  %v15486_v42 = vor.u32 %v2794_v2, %v2793_v22  ;;  %v15509_v2 = vrot.slane %v1000_v16, 1 }
 0x29c   : > { %v3907_v30 = vsel %vm3857_vm13, %v3800_v56, %v3050_v21  ;;  %v1610_v56 = vrot.slane %v15421_v40, 3 }
 0x29d   : > { %v4531_v35 = vsel %vm4464_vm15, %v4528_v20, %v4530_v27  ;;  %10567 = vmatmul.msk.bf16.gmra.mxu0 %vm3975_vm14, %v3907_v30  ;;  %v2520_v20 = vsel %vm2457_vm3, %v2517_v51, %v2519_v7  ;;  %v5309_v51 = vmax.f32 %v4799_v39, %v5035_v33  ;;  %v998_v30 = vor.u32 %v996_v17, %v15405_v8 }
 0x29e   : > { %v15469_v5 = vmax.f32 %v15255_v23, %v4531_v35  ;;  %v2796_v49 = vsel %vm2669_vm5, %v15369_v24, %v15486_v42  ;;  %v5517_v24 = vmax.f32 %v5415_v41, 0.0  ;;  %v2047_v33 = vrot.slane %v2045_v4, 3 }
 0x29f   : > { %2401 = vrot.lane.b32.xlu1 %v15472_v1, %s12946_s20  ;;  %v5414_v8 = vadd.f32 %v14772_v61, %v5309_v51  ;;  %v15539_v51 = vld [vmem:[%s13030_s19 + $0x11c] sm:$0xff]  }
 0x2a0   : > { %v5038_v23 = vrot.slane %v15469_v5, 1  ;;  %2293 = vrot.lane.b32.xlu0 %v2043_v3, %s12952_s26  ;;  %2623 = vrot.lane.b32.xlu2 %v2520_v20, %s12951_s25  ;;  %v2050_v20 = vrot.slane %v2048_v59, 4  ;;  %v5515_v59 = vmax.f32 %v5413_v32, 0.0  ;;  %v2521_v32 = vrot.slane %v15539_v51, 2 }
 0x2a1   : > { %v1701_v34 = vpop.permute.xlu1 %1700  ;;  %v5516_v16 = vmax.f32 %v5414_v8, 0.0 }
 0x2a2   : > { %v15495_v43 = vpop.f32.mrf.mxu0  ;;  %v1430_v15 = vpop.permute.xlu0 %1429  ;;  %v5039_v21 = vsel %vm1273_vm1, %v5036_v31, %v5038_v23 }
 0x2a3   : > { %v4532_v36 = vrot.slane %v15495_v43, 6  ;;  %v5311_v22 = vmax.f32 %v15417_v9, %v5039_v21  ;;  %v15507_v39 = vpop.permute.xlu2 %2393  ;;  %v3267_v35 = vsel %vm3215_vm7, %v3159_v18, %v1430_v15  ;;  %v15520_v9 = vsel %vm1544_vm0, %v1608_v58, %v1610_v56 }
 0x2a4   : > { %v3374_v58 = vsel %vm3322_vm8, %v3267_v35, %v1701_v34  ;;  %v1337_v18 = vrot.slane %v15472_v1, 1  ;;  %v15544_v15 = vor.u32 %v2050_v20, %v2047_v33  ;;  %v2063_v34 = vshrl.u32 %v15539_v51, 16 }
 0x2a5   : > { %v4533_v31 = vsel %vm4464_vm15, %v4530_v27, %v4532_v36  ;;  %v5416_v3 = vadd.f32 %v14772_v61, %v5311_v22  ;;  %v1003_v27 = vsel %vm743_vm2, %v998_v30, %v15509_v2  ;;  %v2066_v22 = vshll.u32 %v15539_v51, 16 }
 0x2a6   : > { %v15530_v17 = vmax.f32 %v15305_v48, %v4533_v31  ;;  %v3481_v48 = vsel %vm3429_vm9, %v3374_v58, %v15377_v25  ;;  %v1338_v25 = vsel %vm1273_vm1, %v1335_v45, %v1337_v18  ;;  %v15588_v58 = vld [vmem:[%s13030_s19 + $0x108] sm:$0xff]  }
 0x2a7   : > { %v5518_v37 = vmax.f32 %v5416_v3, 0.0  ;;  %3061 = vrot.lane.b32.xlu1 %v15520_v9, %s12949_s23  ;;  %v2797_v3 = vrot.slane %v2063_v34, 2  ;;  %v2798_v8 = vrot.slane %v2066_v22, 3 }
 0x2a8   : > { %2951 = vrot.lane.b32.xlu0 %v2796_v49, %s12953_s27  ;;  %v5040_v11 = vrot.slane %v15530_v17, 1  ;;  %1229 = vrot.lane.b32.xlu2 %v1003_v27, %s12950_s24  ;;  %v5735_v49 = vpack.c.bf16 %v5516_v16, %v5515_v59 }
 0x2a9   : > { %v5736_v61 = vpack.c.bf16 %v5518_v37, %v5517_v24  ;;  %v2614_v13 = vpop.permute.xlu1 %2613  ;;  %v15578_v33 = vor.u32 %v2798_v8, %v2797_v3 }
 0x2aa   : > { %v2392_v4 = vpop.permute.xlu0 %2391  ;;  %v5041_v21 = vsel %vm1273_vm1, %v5038_v23, %v5040_v11  ;;  %v2052_v23 = vsel %vm1756_vm4, %v15444_v19, %v15544_v15 }
 0x2ab   : > { %6507 = vmatpush.bf16.msra.mxu2 %v5736_v61  ;;  %v3588_v41 = vsel %vm3536_vm10, %v3481_v48, %v2392_v4  ;;  %v15548_v30 = vpop.permute.xlu2 %3053  ;;  %v5312_v31 = vmax.f32 %v15469_v5, %v5041_v21  ;;  %v1004_v61 = vshrl.u32 %v15472_v1, 16 }
 0x2ac   : > { %v3695_v35 = vsel %vm3643_vm11, %v3588_v41, %v2614_v13  ;;  %v15622_v41 = vld [vmem:[%s20835_s2] ss:$0 sm:$0xff] }
 0x2ad   : > { %v3802_v5 = vsel %vm3750_vm12, %v3695_v35, %v15423_v28  ;;  %v1006_v13 = vor.u32 %v1004_v61, %v15509_v2 }
 0x2af   : > { %6508 = vmatpush.bf16.msra.mxu2 %v5735_v49  ;;  %1712 = vrot.lane.b32.xlu1 %v15398_v44, %s12947_s21  ;;  %v5417_v49 = vadd.f32 %v15622_v41, %v5312_v31  ;;  %v2059_v31 = vrot.slane %v2057_v62, 4 }
 0x2b0   : > { %1441 = vrot.lane.b32.xlu0 %v1338_v25, %s12948_s22  ;;  %2295 = vrot.lane.b32.xlu2 %v2052_v23, %s12952_s26 }
 0x2b1   : > { %v15569_v45 = vpop.f32.mrf.mxu0  ;;  %v1220_v37 = vpop.permute.xlu1 %1219 }
 0x2b2   : > { %v4534_v24 = vrot.slane %v15569_v45, 6  ;;  %v3052_v19 = vpop.permute.xlu0 %3051  ;;  %v3161_v16 = vsel %vm3107_vm6, %v14866_v0, %v1220_v37 }
 0x2b3   : > { %v3909_v27 = vsel %vm3857_vm13, %v3802_v5, %v3052_v19  ;;  %6509 = vmatpush.bf16.msra.mxu2 %v15336_v57  ;;  %v15582_v20 = vpop.permute.xlu2 %1704  ;;  %v2522_v57 = vsel %vm2457_vm3, %v2519_v7, %v2521_v32  ;;  %v3269_v0 = vsel %vm3215_vm7, %v3161_v16, %v15461_v46  ;;  %v1612_v7 = vrot.slane %v15539_v51, 3 }
 0x2b4   : > { %v4535_v44 = vsel %vm4464_vm15, %v4532_v36, %v4534_v24  ;;  %10568 = vmatmul.msk.bf16.gmra.mxu0 %vm3975_vm14, %v3909_v27  ;;  %v1008_v36 = vshll.u32 %v15588_v58, 16  ;;  %v5519_v19 = vmax.f32 %v5417_v49, 0.0 }
 0x2b5   : > { %v15585_v28 = vmax.f32 %v15347_v50, %v4535_v44  ;;  %v2800_v50 = vsel %vm2669_vm5, %v15486_v42, %v15578_v33  ;;  %v15637_v3 = vsel %vm1544_vm0, %v1610_v56, %v1612_v7 }
 0x2b6   : > { %v15615_v42 = vrot.slane %v1008_v36, 1 }
 0x2b7   : > { %v5042_v4 = vrot.slane %v15585_v28, 1  ;;  %6510 = vmatpush.bf16.msra.mxu2 %v15223_v47  ;;  %2625 = vrot.lane.b32.xlu1 %v2522_v57, %s12951_s25 }
 0x2b8   : > { %2403 = vrot.lane.b32.xlu0 %v15588_v58, %s12946_s20  ;;  %2953 = vrot.lane.b32.xlu2 %v2800_v50, %s12953_s27  ;;  %v1011_v5 = vsel %vm743_vm2, %v1006_v13, %v15615_v42 }
 0x2b9   : > { %v15609_v48 = vpop.f32.mrf.mxu0  ;;  %v5043_v47 = vsel %vm1273_vm1, %v5040_v11, %v5042_v4  ;;  %v2286_v2 = vpop.permute.xlu1 %2285  ;;  %v1339_v11 = vrot.slane %v15588_v58, 1 }
 0x2ba   : > { %v4536_v59 = vrot.slane %v15609_v48, 6  ;;  %v1703_v21 = vpop.permute.xlu0 %1702  ;;  %v5313_v46 = vmax.f32 %v15530_v17, %v5043_v47 }
 0x2bb   : > { %6511 = vmatpush.bf16.msra.mxu2 %v15118_v14  ;;  %v3376_v35 = vsel %vm3322_vm8, %v3269_v0, %v1703_v21  ;;  %v15629_v23 = vpop.permute.xlu2 %2617  ;;  %v2056_v14 = vrot.slane %v2054_v60, 3  ;;  %v1340_v40 = vsel %vm1273_vm1, %v1337_v18, %v1339_v11 }
 0x2bc   : > { %v4537_v25 = vsel %vm4464_vm15, %v4534_v24, %v4536_v59  ;;  %v5418_v17 = vadd.f32 %v15622_v41, %v5313_v46  ;;  %v15647_v24 = vld [vmem:[%s13030_s19 + $0x124] sm:$0xff]   ;;  %v3483_v37 = vsel %vm3429_vm9, %v3376_v35, %v2286_v2 }
 0x2bd   : > { %v4805_v8 = vmax.f32 %v15373_v12, %v4537_v25  ;;  %v15661_v62 = vor.u32 %v2059_v31, %v2056_v14  ;;  %v2072_v61 = vshrl.u32 %v15647_v24, 16  ;;  %v2075_v18 = vshll.u32 %v15647_v24, 16 }
 0x2be   : > { %v5520_v27 = vmax.f32 %v5418_v17, 0.0 }
 0x2bf   : > { %6512 = vmatpush.bf16.msra.mxu2 %v15033_v54  ;;  %v5044_v60 = vrot.slane %v4805_v8, 1  ;;  %1231 = vrot.lane.b32.xlu1 %v1011_v5, %s12950_s24  ;;  %v3590_v54 = vsel %vm3536_vm10, %v3483_v37, %v15507_v39  ;;  %v2802_v21 = vrot.slane %v2075_v18, 3 }
 0x2c0   : > { %3063 = vrot.lane.b32.xlu0 %v15637_v3, %s12949_s23  ;;  %v15658_v12 = vpack.c.bf16 %v5520_v27, %v5519_v19  ;;  %1443 = vrot.lane.b32.xlu2 %v1340_v40, %s12948_s22  ;;  %v1012_v27 = vshrl.u32 %v15588_v58, 16 }
 0x2c1   : > { %v5045_v56 = vsel %vm1273_vm1, %v5042_v4, %v5044_v60  ;;  %v2944_v36 = vpop.permute.xlu1 %2943 }
 0x2c2   : > { %v2616_v44 = vpop.permute.xlu0 %2615  ;;  %v5314_v16 = vmax.f32 %v15585_v28, %v5045_v56  ;;  %v2061_v28 = vsel %vm1756_vm4, %v15544_v15, %v15661_v62  ;;  %v2523_v15 = vrot.slane %v15647_v24, 2 }
 0x2c3   : > { %v3697_v57 = vsel %vm3643_vm11, %v3590_v54, %v2616_v44  ;;  %v15671_v50 = vpop.f32.mrf.mxu0  ;;  %6513 = vmatpush.bf16.msra.mxu2 %v14921_v10  ;;  %v15676_v0 = vpop.permute.xlu2 %1223  ;;  %v2801_v10 = vrot.slane %v2072_v61, 2 }
 0x2c4   : > { %v3804_v4 = vsel %vm3750_vm12, %v3697_v57, %v2944_v36  ;;  %v4538_v39 = vrot.slane %v15671_v50, 6  ;;  %v5419_v31 = vadd.f32 %v15622_v41, %v5314_v16  ;;  %v2524_v19 = vsel %vm2457_vm3, %v2521_v32, %v2523_v15 }
 0x2c5   : > { %v3911_v13 = vsel %vm3857_vm13, %v3804_v4, %v15548_v30  ;;  %v15701_v2 = vor.u32 %v2802_v21, %v2801_v10  ;;  %v2065_v21 = vrot.slane %v2063_v34, 3 }
 0x2c6   : > { %v4539_v47 = vsel %vm4464_vm15, %v4536_v59, %v4538_v39  ;;  %10569 = vmatmul.msk.bf16.gmra.mxu0 %vm3975_vm14, %v3911_v13  ;;  %v15699_v59 = vld [vmem:[%s13030_s19 + $0x110] sm:$0xff]   ;;  %v5521_v54 = vmax.f32 %v5419_v31, 0.0 }
 0x2c7   : > { %v15690_v46 = vmax.f32 %v15448_v52, %v4539_v47  ;;  %6514 = vmatpush.bf16.msra.mxu2 %v14809_v63  ;;  %2297 = vrot.lane.b32.xlu1 %v2061_v28, %s12952_s26  ;;  %v1614_v63 = vrot.slane %v15647_v24, 3  ;;  %v1016_v37 = vshll.u32 %v15699_v59, 16  ;;  %v15860_v24 = vld [vmem:[%s13030_s19 + $0x134] sm:$0xff]  }
 0x2c8   : > { %1714 = vrot.lane.b32.xlu0 %v15520_v9, %s12947_s21  ;;  %2405 = vrot.lane.b32.xlu2 %v15699_v59, %s12946_s20 }
 0x2c9   : > { %v5046_v30 = vrot.slane %v15690_v46, 1  ;;  %v1434_v52 = vpop.permute.xlu1 %1433  ;;  %v1018_v16 = vrot.slane %v1016_v37, 1 }
 0x2ca   : > { %v1222_v49 = vpop.permute.xlu0 %1221 }
 0x2cb   : > { %v15705_v25 = vpop.f32.mrf.mxu0  ;;  %v5047_v9 = vsel %vm1273_vm1, %v5044_v60, %v5046_v30  ;;  %v15710_v17 = vpop.permute.xlu2 %2289  ;;  %v3163_v5 = vsel %vm3107_vm6, %v14972_v29, %v1222_v49  ;;  %v15732_v29 = vsel %vm1544_vm0, %v1612_v7, %v1614_v63  ;;  %v1341_v7 = vrot.slane %v15699_v59, 1 }
 0x2cc   : > { %v4540_v35 = vrot.slane %v15705_v25, 6  ;;  %v5315_v14 = vmax.f32 %v4805_v8, %v5047_v9  ;;  %v2804_v8 = vsel %vm2669_vm5, %v15578_v33, %v15701_v2  ;;  %v3271_v56 = vsel %vm3215_vm7, %v3163_v5, %v1434_v52  ;;  %v15760_v52 = vld [vmem:[%s13030_s19 + $0x12c] sm:$0xff]  }
 0x2cd   : > { %v1014_v33 = vor.u32 %v1012_v27, %v15615_v42  ;;  %v3378_v4 = vsel %vm3322_vm8, %v3271_v56, %v15582_v20  ;;  %v2068_v49 = vrot.slane %v2066_v22, 4  ;;  %v1342_v20 = vsel %vm1273_vm1, %v1339_v11, %v1341_v7  ;;  %v15799_v56 = vld [vmem:[%s13030_s19 + $0x118] sm:$0xff]  }
 0x2ce   : > { %v4541_v40 = vsel %vm4464_vm15, %v4538_v39, %v4540_v35  ;;  %v5420_v60 = vadd.f32 %v15622_v41, %v5315_v14  ;;  %v2081_v34 = vshrl.u32 %v15760_v52, 16  ;;  %v2084_v51 = vshll.u32 %v15760_v52, 16 }
 0x2cf   : > { %v15735_v32 = vmax.f32 %v15495_v43, %v4541_v40  ;;  %2955 = vrot.lane.b32.xlu1 %v2804_v8, %s12953_s27  ;;  %v1019_v10 = vsel %vm743_vm2, %v1014_v33, %v1018_v16 }
 0x2d0   : > { %2627 = vrot.lane.b32.xlu0 %v2524_v19, %s12951_s25  ;;  %v5522_v44 = vmax.f32 %v5420_v60, 0.0  ;;  %3065 = vrot.lane.b32.xlu2 %v15732_v29, %s12949_s23  ;;  %v2525_v19 = vrot.slane %v15760_v52, 2  ;;  %v2806_v8 = vrot.slane %v2084_v51, 3 }
 0x2d1   : > { %v5048_v57 = vrot.slane %v15735_v32, 1  ;;  %v2396_v39 = vpop.permute.xlu1 %2395 }
 0x2d2   : > { %v2288_v36 = vpop.permute.xlu0 %2287  ;;  %v15745_v43 = vpack.c.bf16 %v5522_v44, %v5521_v54  ;;  %v1020_v54 = vshrl.u32 %v15699_v59, 16  ;;  %v1024_v44 = vshll.u32 %v15799_v56, 16  ;;  %v10598_v59 = vld [vmem:[%s20838_s5] sm:$0xf] }
 0x2d3   : > { %v5049_v13 = vsel %vm1273_vm1, %v5046_v30, %v5048_v57  ;;  %v3485_v42 = vsel %vm3429_vm9, %v3378_v4, %v2288_v36  ;;  %v15751_v47 = vpop.permute.xlu2 %2947  ;;  %v1616_v4 = vrot.slane %v15760_v52, 3  ;;  %v10626_v52 = vld [vmem:[%s20838_s5 + $0x38] sm:$0xf] }
 0x2d4   : > { %v5316_v28 = vmax.f32 %v15690_v46, %v5049_v13  ;;  %v3592_v30 = vsel %vm3536_vm10, %v3485_v42, %v2396_v39  ;;  %v15770_v46 = vor.u32 %v2068_v49, %v2065_v21  ;;  %v1022_v39 = vor.u32 %v1020_v54, %v1018_v16 }
 0x2d5   : > { %v3699_v22 = vsel %vm3643_vm11, %v3592_v30, %v15629_v23  ;;  %v15827_v49 = vrot.slane %v1024_v44, 1  ;;  %v2090_v54 = vshrl.u32 %v15860_v24, 16  ;;  %v2093_v44 = vshll.u32 %v15860_v24, 16 }
 0x2d6   : > { %v2070_v40 = vsel %vm1756_vm4, %v15661_v62, %v15770_v46  ;;  %v5421_v42 = vadd.f32 %v15622_v41, %v5316_v28 }
 0x2d7   : > { %1445 = vrot.lane.b32.xlu1 %v1342_v20, %s12948_s22  ;;  %v1027_v28 = vsel %vm743_vm2, %v1022_v39, %v15827_v49  ;;  %v2809_v39 = vrot.slane %v2090_v54, 2 }
 0x2d8   : > { %1233 = vrot.lane.b32.xlu0 %v1019_v10, %s12950_s24  ;;  %1716 = vrot.lane.b32.xlu2 %v15637_v3, %s12947_s21  ;;  %v2805_v3 = vrot.slane %v2081_v34, 2 }
 0x2d9   : > { %v3056_v5 = vpop.permute.xlu1 %3055 }
 0x2da   : > { %v15776_v9 = vpop.f32.mrf.mxu0  ;;  %v2946_v14 = vpop.permute.xlu0 %2945  ;;  %v15815_v33 = vor.u32 %v2806_v8, %v2805_v3 }
 0x2db   : > { %v4542_v11 = vrot.slane %v15776_v9, 6  ;;  %v3806_v31 = vsel %vm3750_vm12, %v3699_v22, %v2946_v14  ;;  %v15784_v37 = vpop.permute.xlu2 %1437  ;;  %v5523_v22 = vmax.f32 %v5421_v42, 0.0  ;;  %v2074_v14 = vrot.slane %v2072_v61, 3 }
 0x2dc   : > { %v3913_v27 = vsel %vm3857_vm13, %v3806_v31, %v3056_v5  ;;  %v2808_v16 = vsel %vm2669_vm5, %v15701_v2, %v15815_v33  ;;  %v2077_v2 = vrot.slane %v2075_v18, 4 }
 0x2dd   : > { %v4543_v23 = vsel %vm4464_vm15, %v4540_v35, %v4542_v11  ;;  %10570 = vmatmul.msk.bf16.gmra.mxu0 %vm3975_vm14, %v3913_v27  ;;  %v2526_v35 = vsel %vm2457_vm3, %v2523_v15, %v2525_v19 }
 0x2de   : > { %v15796_v60 = vmax.f32 %v15569_v45, %v4543_v23  ;;  %v3165_v45 = vsel %vm3107_vm6, %v15072_v38, %v15676_v0 }
 0x2df   : > { %2407 = vrot.lane.b32.xlu1 %v15799_v56, %s12946_s20 }
 0x2e0   : > { %v5050_v62 = vrot.slane %v15796_v60, 1  ;;  %2299 = vrot.lane.b32.xlu0 %v2070_v40, %s12952_s26  ;;  %2629 = vrot.lane.b32.xlu2 %v2526_v35, %s12951_s25  ;;  %v15865_v40 = vor.u32 %v2077_v2, %v2074_v14  ;;  %v1028_v14 = vshrl.u32 %v15799_v56, 16 }
 0x2e1   : > { %v1707_v38 = vpop.permute.xlu1 %1706 }
 0x2e2   : > { %v15817_v36 = vpop.f32.mrf.mxu0  ;;  %v1436_v15 = vpop.permute.xlu0 %1435  ;;  %v5051_v13 = vsel %vm1273_vm1, %v5048_v57, %v5050_v62 }
 0x2e3   : > { %v4544_v10 = vrot.slane %v15817_v36, 6  ;;  %v5317_v0 = vmax.f32 %v15735_v32, %v5051_v13  ;;  %v15825_v21 = vpop.permute.xlu2 %2399  ;;  %v3273_v30 = vsel %vm3215_vm7, %v3165_v45, %v1436_v15  ;;  %v15840_v32 = vsel %vm1544_vm0, %v1614_v63, %v1616_v4 }
 0x2e4   : > { %v3380_v5 = vsel %vm3322_vm8, %v3273_v30, %v1707_v38  ;;  %v1343_v63 = vrot.slane %v15799_v56, 1  ;;  %v2810_v13 = vrot.slane %v2093_v44, 3 }
 0x2e5   : > { %v4545_v20 = vsel %vm4464_vm15, %v4542_v11, %v4544_v10  ;;  %v5422_v57 = vadd.f32 %v15622_v41, %v5317_v0 }
 0x2e6   : > { %v15849_v11 = vmax.f32 %v15609_v48, %v4545_v20  ;;  %v3487_v48 = vsel %vm3429_vm9, %v3380_v5, %v15710_v17  ;;  %v1344_v45 = vsel %vm1273_vm1, %v1341_v7, %v1343_v63  ;;  %v11942_v7 = vld [vmem:[%s20838_s5 + $0x18] sm:$0xf0]  ;;  %v2527_v20 = vrot.slane %v15860_v24, 2 }
 0x2e7   : > { %v5524_v31 = vmax.f32 %v5422_v57, 0.0  ;;  %3067 = vrot.lane.b32.xlu1 %v15840_v32, %s12949_s23  ;;  %v15904_v57 = vor.u32 %v2810_v13, %v2809_v39 }
 0x2e8   : > { %2957 = vrot.lane.b32.xlu0 %v2808_v16, %s12953_s27  ;;  %v5052_v27 = vrot.slane %v15849_v11, 1  ;;  %1235 = vrot.lane.b32.xlu2 %v1027_v28, %s12950_s24 }
 0x2e9   : > { %v15857_v23 = vpack.c.bf16 %v5524_v31, %v5523_v22  ;;  %v2620_v18 = vpop.permute.xlu1 %2619  ;;  %v15914_v22 = vld [vmem:[%s13030_s19 + $0x120] sm:$0xff]  }
 0x2ea   : > { %v2398_v61 = vpop.permute.xlu0 %2397  ;;  %v5053_v3 = vsel %vm1273_vm1, %v5050_v62, %v5052_v27  ;;  %v2079_v62 = vsel %vm1756_vm4, %v15770_v46, %v15865_v40  ;;  %v1032_v31 = vshll.u32 %v15914_v22, 16 }
 0x2eb   : > { %v3594_v8 = vsel %vm3536_vm10, %v3487_v48, %v2398_v61  ;;  %v15869_v35 = vpop.permute.xlu2 %3059  ;;  %v5318_v17 = vmax.f32 %v15796_v60, %v5053_v3  ;;  %v10599_v60 = vor.u32 %v11942_v7, %v10598_v59  ;;  %v1030_v48 = vor.u32 %v1028_v14, %v15827_v49 }
 0x2ec   : > { %v3701_v15 = vsel %vm3643_vm11, %v3594_v8, %v2620_v18 }
 0x2ed   : > { %v3808_v42 = vsel %vm3750_vm12, %v3701_v15, %v15751_v47  ;;  %6422 = vmatmul.bf16.vlgmr.msra.gmra.mxu1 %v10599_v60 }
 0x2ef   : > { %1718 = vrot.lane.b32.xlu1 %v15732_v29, %s12947_s21 }
 0x2f0   : > { %1447 = vrot.lane.b32.xlu0 %v1344_v45, %s12948_s22  ;;  %2301 = vrot.lane.b32.xlu2 %v2079_v62, %s12952_s26  ;;  %v5423_v45 = vadd.f32 %v15622_v41, %v5318_v17  ;;  %v1345_v62 = vrot.slane %v15914_v22, 1  ;;  %v2086_v17 = vrot.slane %v2084_v51, 4  ;;  %v11949_v51 = vld [vmem:[%s20838_s5 + $0x50] sm:$0xf0] }
 0x2f1   : > { %v15896_v46 = vpop.f32.mrf.mxu0  ;;  %v1226_v16 = vpop.permute.xlu1 %1225 }
 0x2f2   : > { %v4546_v38 = vrot.slane %v15896_v46, 6  ;;  %v3058_v0 = vpop.permute.xlu0 %3057  ;;  %v3167_v2 = vsel %vm3107_vm6, %v15172_v53, %v1226_v16 }
 0x2f3   : > { %v3915_v30 = vsel %vm3857_vm13, %v3808_v42, %v3058_v0  ;;  %v15908_v28 = vpop.permute.xlu2 %1710  ;;  %v3275_v53 = vsel %vm3215_vm7, %v3167_v2, %v15784_v37  ;;  %v15966_v42 = vld [vmem:[%s13030_s19 + $0x13c] sm:$0xff]  }
 0x2f4   : > { %v4547_v29 = vsel %vm4464_vm15, %v4544_v10, %v4546_v38  ;;  %10571 = vmatmul.msk.bf16.gmra.mxu0 %vm3975_vm14, %v3915_v30  ;;  %v2528_v10 = vsel %vm2457_vm3, %v2525_v19, %v2527_v20  ;;  %v1618_v19 = vrot.slane %v15860_v24, 3  ;;  %v2099_v2 = vshrl.u32 %v15966_v42, 16 }
 0x2f5   : > { %v15911_v47 = vmax.f32 %v15671_v50, %v4547_v29  ;;  %v2812_v50 = vsel %vm2669_vm5, %v15815_v33, %v15904_v57  ;;  %v15940_v33 = vrot.slane %v1032_v31, 1 }
 0x2f6   : > { %v15956_v59 = vsel %vm1544_vm0, %v1616_v4, %v1618_v19 }
 0x2f7   : > { %v5054_v5 = vrot.slane %v15911_v47, 1  ;;  %2631 = vrot.lane.b32.xlu1 %v2528_v10, %s12951_s25  ;;  %v1035_v60 = vsel %vm743_vm2, %v1030_v48, %v15940_v33  ;;  %v2102_v10 = vshll.u32 %v15966_v42, 16 }
 0x2f8   : > { %2409 = vrot.lane.b32.xlu0 %v15914_v22, %s12946_s20  ;;  %2959 = vrot.lane.b32.xlu2 %v2812_v50, %s12953_s27 }
 0x2f9   : > { %v15934_v61 = vpop.f32.mrf.mxu0  ;;  %v5055_v18 = vsel %vm1273_vm1, %v5052_v27, %v5054_v5  ;;  %v2292_v15 = vpop.permute.xlu1 %2291 }
 0x2fa   : > { %v4548_v3 = vrot.slane %v15934_v61, 6  ;;  %v1709_v8 = vpop.permute.xlu0 %1708  ;;  %v5319_v37 = vmax.f32 %v15849_v11, %v5055_v18  ;;  %v2083_v11 = vrot.slane %v2081_v34, 3  ;;  %v1346_v34 = vsel %vm1273_vm1, %v1343_v63, %v1345_v62 }
 0x2fb   : > { %v3382_v49 = vsel %vm3322_vm8, %v3275_v53, %v1709_v8  ;;  %v15948_v27 = vpop.permute.xlu2 %2623  ;;  %v10627_v63 = vor.u32 %v11949_v51, %v10626_v52  ;;  %v1036_v51 = vshrl.u32 %v15914_v22, 16 }
 0x2fc   : > { %v4549_v39 = vsel %vm4464_vm15, %v4546_v38, %v4548_v3  ;;  %v5424_v13 = vadd.f32 %v15622_v41, %v5319_v37  ;;  %v5525_v38 = vmax.f32 %v5423_v45, 0.0  ;;  %v3489_v30 = vsel %vm3429_vm9, %v3382_v49, %v2292_v15  ;;  %v16021_v49 = vld [vmem:[%s13030_s19 + $0x128] sm:$0xff]  }
 0x2fd   : > { %v4811_v7 = vmax.f32 %v15705_v25, %v4549_v39  ;;  %v15985_v16 = vor.u32 %v2086_v17, %v2083_v11  ;;  %v3596_v29 = vsel %vm3536_vm10, %v3489_v30, %v15825_v21  ;;  %6427 = vmatmul.bf16.gmra.mxu1 %v10627_v63  ;;  %v2813_v45 = vrot.slane %v2099_v2, 2 }
 0x2fe   : > { %v5526_v0 = vmax.f32 %v5424_v13, 0.0  ;;  %v2814_v15 = vrot.slane %v2102_v10, 3  ;;  %v1620_v17 = vrot.slane %v15966_v42, 3 }
 0x2ff   : > { %v5056_v4 = vrot.slane %v4811_v7, 1  ;;  %1237 = vrot.lane.b32.xlu1 %v1035_v60, %s12950_s24 }
 0x300   : > { %3069 = vrot.lane.b32.xlu0 %v15956_v59, %s12949_s23  ;;  %v15976_v25 = vpack.c.bf16 %v5526_v0, %v5525_v38  ;;  %1449 = vrot.lane.b32.xlu2 %v1346_v34, %s12948_s22  ;;  %v16023_v13 = vor.u32 %v2814_v15, %v2813_v45 }
 0x301   : > { %v5057_v56 = vsel %vm1273_vm1, %v5054_v5, %v5056_v4  ;;  %v2950_v53 = vpop.permute.xlu1 %2949 }
 0x302   : > { %v2622_v14 = vpop.permute.xlu0 %2621  ;;  %v5320_v31 = vmax.f32 %v15911_v47, %v5057_v56  ;;  %v2088_v47 = vsel %vm1756_vm4, %v15865_v40, %v15985_v16  ;;  %v2816_v56 = vsel %vm2669_vm5, %v15904_v57, %v16023_v13  ;;  %v10654_v57 = vld [vmem:[%s20838_s5 + $0x70] sm:$0xf] }
 0x303   : > { %v3703_v50 = vsel %vm3643_vm11, %v3596_v29, %v2622_v14  ;;  %v15995_v48 = vpop.f32.mrf.mxu0  ;;  %v15999_v18 = vpop.permute.xlu2 %1229 }
 0x304   : > { %v3810_v5 = vsel %vm3750_vm12, %v3703_v50, %v2950_v53  ;;  %v4550_v21 = vrot.slane %v15995_v48, 6  ;;  %v5425_v30 = vadd.f32 %v15622_v41, %v5320_v31  ;;  %v11956_v31 = vld [vmem:[%s20838_s5 + $0x88] sm:$0xf0] }
 0x305   : > { %v3917_v8 = vsel %vm3857_vm13, %v3810_v5, %v15869_v35  ;;  %v10655_v53 = vor.u32 %v11956_v31, %v10654_v57  ;;  %v16129_v57 = vld [vmem:[%s13030_s19 + $0x130] sm:$0xff]  }
 0x306   : > { %v4551_v37 = vsel %vm4464_vm15, %v4548_v3, %v4550_v21  ;;  %10572 = vmatmul.msk.bf16.gmra.mxu0 %vm3975_vm14, %v3917_v8  ;;  %v2529_v3 = vrot.slane %v15966_v42, 2  ;;  %v5527_v29 = vmax.f32 %v5425_v30, 0.0 }
 0x307   : > { %v16013_v39 = vmax.f32 %v15776_v9, %v4551_v37  ;;  %2303 = vrot.lane.b32.xlu1 %v2088_v47, %s12952_s26 }
 0x308   : > { %1720 = vrot.lane.b32.xlu0 %v15840_v32, %s12947_s21  ;;  %2411 = vrot.lane.b32.xlu2 %v16021_v49, %s12946_s20  ;;  %v2530_v52 = vsel %vm2457_vm3, %v2527_v20, %v2529_v3 }
 0x309   : > { %v5058_v35 = vrot.slane %v16013_v39, 1  ;;  %v1440_v11 = vpop.permute.xlu1 %1439 }
 0x30a   : > { %v1228_v40 = vpop.permute.xlu0 %1227 }
 0x30b   : > { %v16027_v9 = vpop.f32.mrf.mxu0  ;;  %v5059_v32 = vsel %vm1273_vm1, %v5056_v4, %v5058_v35  ;;  %v16034_v38 = vpop.permute.xlu2 %2295  ;;  %v3169_v34 = vsel %vm3107_vm6, %v15271_v55, %v1228_v40  ;;  %v1040_v4 = vshll.u32 %v16021_v49, 16  ;;  %v16055_v55 = vsel %vm1544_vm0, %v1618_v19, %v1620_v17 }
 0x30c   : > { %v4552_v60 = vrot.slane %v16027_v9, 6  ;;  %v5321_v0 = vmax.f32 %v4811_v7, %v5059_v32  ;;  %v3277_v63 = vsel %vm3215_vm7, %v3169_v34, %v1440_v11  ;;  %v1038_v19 = vor.u32 %v1036_v51, %v15940_v33 }
 0x30d   : > { %v1042_v50 = vrot.slane %v1040_v4, 1  ;;  %v3384_v37 = vsel %vm3322_vm8, %v3277_v63, %v15908_v28  ;;  %6432 = vmatmul.bf16.gmra.mxu1 %v10655_v53  ;;  %v2092_v11 = vrot.slane %v2090_v54, 3  ;;  %v2095_v32 = vrot.slane %v2093_v44, 4 }
 0x30e   : > { %v5426_v7 = vadd.f32 %v15622_v41, %v5321_v0  ;;  %v4553_v20 = vsel %vm4464_vm15, %v4550_v21, %v4552_v60  ;;  %v1347_v21 = vrot.slane %v16021_v49, 1  ;;  %v16085_v0 = vld [vmem:[%s13030_s19 + $0x144] sm:$0xff]  }
 0x30f   : > { %2961 = vrot.lane.b32.xlu1 %v2816_v56, %s12953_s27  ;;  %v4813_v45 = vmax.f32 %v15817_v36, %v4553_v20  ;;  %v1043_v40 = vsel %vm743_vm2, %v1038_v19, %v1042_v50  ;;  %v16095_v34 = vor.u32 %v2095_v32, %v2092_v11  ;;  %v2108_v24 = vshrl.u32 %v16085_v0, 16 }
 0x310   : > { %2633 = vrot.lane.b32.xlu0 %v2530_v52, %s12951_s25  ;;  %v5528_v14 = vmax.f32 %v5426_v7, 0.0  ;;  %3071 = vrot.lane.b32.xlu2 %v16055_v55, %s12949_s23  ;;  %v1348_v36 = vsel %vm1273_vm1, %v1345_v62, %v1347_v21  ;;  %v2111_v54 = vshll.u32 %v16085_v0, 16  ;;  %v2531_v56 = vrot.slane %v16085_v0, 2 }
 0x311   : > { %v2402_v47 = vpop.permute.xlu1 %2401  ;;  %v5060_v30 = vrot.slane %v4813_v45, 1 }
 0x312   : > { %v2294_v5 = vpop.permute.xlu0 %2293  ;;  %v16071_v8 = vpack.c.bf16 %v5528_v14, %v5527_v29  ;;  %v2817_v29 = vrot.slane %v2108_v24, 2 }
 0x313   : > { %v3491_v33 = vsel %vm3429_vm9, %v3384_v37, %v2294_v5  ;;  %v16077_v15 = vpop.permute.xlu2 %2953  ;;  %v5061_v7 = vsel %vm1273_vm1, %v5058_v35, %v5060_v30  ;;  %v2818_v35 = vrot.slane %v2111_v54, 3  ;;  %v3171_v37 = vsel %vm3107_vm6, %v15367_v6, %v15999_v18 }
 0x314   : > { %v3598_v28 = vsel %vm3536_vm10, %v3491_v33, %v2402_v47  ;;  %v5322_v31 = vmax.f32 %v16013_v39, %v5061_v7  ;;  %v11963_v39 = vld [vmem:[%s20838_s5 + $0xc0] sm:$0xf0]  ;;  %v1622_v33 = vrot.slane %v16085_v0, 3  ;;  %v10738_v0 = vld [vmem:[%s20838_s5 + $0x118] sm:$0xf] }
 0x315   : > { %v3705_v44 = vsel %vm3643_vm11, %v3598_v28, %v15948_v27  ;;  %v16148_v53 = vor.u32 %v2818_v35, %v2817_v29  ;;  %v16189_v35 = vld [vmem:[%s13030_s19 + $0x14c] sm:$0xff]  }
 0x316   : > { %v5427_v11 = vadd.f32 %v15622_v41, %v5322_v31 }
 0x317   : > { %1451 = vrot.lane.b32.xlu1 %v1348_v36, %s12948_s22  ;;  %v2820_v6 = vsel %vm2669_vm5, %v16023_v13, %v16148_v53  ;;  %v2104_v13 = vrot.slane %v2102_v10, 4 }
 0x318   : > { %1239 = vrot.lane.b32.xlu0 %v1043_v40, %s12950_s24  ;;  %1722 = vrot.lane.b32.xlu2 %v15956_v59, %s12947_s21  ;;  %v2097_v59 = vsel %vm1756_vm4, %v15985_v16, %v16095_v34  ;;  %v1044_v16 = vshrl.u32 %v16021_v49, 16  ;;  %v10710_v49 = vld [vmem:[%s20838_s5 + $0xe0] sm:$0xf] }
 0x319   : > { %v3062_v4 = vpop.permute.xlu1 %3061 }
 0x31a   : > { %v16101_v52 = vpop.f32.mrf.mxu0  ;;  %v2952_v22 = vpop.permute.xlu0 %2951  ;;  %v1046_v36 = vor.u32 %v1044_v16, %v1042_v50  ;;  %v16172_v50 = vsel %vm1544_vm0, %v1620_v17, %v1622_v33  ;;  %v1349_v17 = vrot.slane %v16129_v57, 1  ;;  %v2117_v16 = vshrl.u32 %v16189_v35, 16 }
 0x31b   : > { %v4554_v62 = vrot.slane %v16101_v52, 6  ;;  %v3812_v51 = vsel %vm3750_vm12, %v3705_v44, %v2952_v22  ;;  %v16112_v63 = vpop.permute.xlu2 %1443 }
 0x31c   : > { %v3919_v27 = vsel %vm3857_vm13, %v3812_v51, %v3062_v4  ;;  %v2101_v4 = vrot.slane %v2099_v2, 3 }
 0x31d   : > { %v4555_v20 = vsel %vm4464_vm15, %v4552_v60, %v4554_v62  ;;  %10573 = vmatmul.msk.bf16.gmra.mxu0 %vm3975_vm14, %v3919_v27  ;;  %v2532_v60 = vsel %vm2457_vm3, %v2529_v3, %v2531_v56  ;;  %v1048_v3 = vshll.u32 %v16129_v57, 16 }
 0x31e   : > { %v16126_v14 = vmax.f32 %v15896_v46, %v4555_v20  ;;  %v10682_v46 = vld [vmem:[%s20838_s5 + $0xa8] sm:$0xf]  ;;  %v16194_v10 = vor.u32 %v2104_v13, %v2101_v4 }
 0x31f   : > { %2413 = vrot.lane.b32.xlu1 %v16129_v57, %s12946_s20  ;;  %v10683_v5 = vor.u32 %v11963_v39, %v10682_v46  ;;  %v1050_v18 = vrot.slane %v1048_v3, 1  ;;  %v2120_v46 = vshll.u32 %v16189_v35, 16  ;;  %v1350_v39 = vsel %vm1273_vm1, %v1347_v21, %v1349_v17  ;;  %v11970_v21 = vld [vmem:[%s20838_s5 + $0xf8] sm:$0xf0] }
 0x320   : > { %v5062_v19 = vrot.slane %v16126_v14, 1  ;;  %2305 = vrot.lane.b32.xlu0 %v2097_v59, %s12952_s26  ;;  %2635 = vrot.lane.b32.xlu2 %v2532_v60, %s12951_s25 }
 0x321   : > { %v1713_v32 = vpop.permute.xlu1 %1712  ;;  %6437 = vmatmul.bf16.gmra.mxu1 %v10683_v5  ;;  %v2821_v5 = vrot.slane %v2117_v16, 2 }
 0x322   : > { %v1442_v47 = vpop.permute.xlu0 %1441  ;;  %v5063_v40 = vsel %vm1273_vm1, %v5060_v30, %v5062_v19  ;;  %v1051_v30 = vsel %vm743_vm2, %v1046_v36, %v1050_v18  ;;  %v16181_v20 = vpop.f32.mrf.mxu0 }
 0x323   : > { %v5323_v28 = vmax.f32 %v4813_v45, %v5063_v40  ;;  %v16160_v44 = vpop.permute.xlu2 %2405  ;;  %v3279_v22 = vsel %vm3215_vm7, %v3171_v37, %v1442_v47  ;;  %v5529_v45 = vmax.f32 %v5427_v11, 0.0  ;;  %v2822_v37 = vrot.slane %v2120_v46, 3 }
 0x324   : > { %v3386_v27 = vsel %vm3322_vm8, %v3279_v22, %v1713_v32  ;;  %v10711_v47 = vor.u32 %v11970_v21, %v10710_v49  ;;  %v2533_v32 = vrot.slane %v16189_v35, 2  ;;  %v2113_v49 = vrot.slane %v2111_v54, 4 }
 0x325   : > { %v5428_v51 = vadd.f32 %v15622_v41, %v5323_v28  ;;  %v3493_v42 = vsel %vm3429_vm9, %v3386_v27, %v16034_v38  ;;  %v2106_v38 = vsel %vm1756_vm4, %v16095_v34, %v16194_v10  ;;  %v16230_v22 = vor.u32 %v2822_v37, %v2821_v5 }
 0x326   : > { %v4556_v27 = vrot.slane %v16181_v20, 6  ;;  %v2110_v37 = vrot.slane %v2108_v24, 3  ;;  %v11977_v24 = vld [vmem:[%s20838_s5 + $0x130] sm:$0xf0] }
 0x327   : > { %v5530_v7 = vmax.f32 %v5428_v51, 0.0  ;;  %3073 = vrot.lane.b32.xlu1 %v16172_v50, %s12949_s23  ;;  %v2534_v51 = vsel %vm2457_vm3, %v2531_v56, %v2533_v32  ;;  %v2824_v4 = vsel %vm2669_vm5, %v16148_v53, %v16230_v22  ;;  %v1624_v56 = vrot.slane %v16189_v35, 3 }
 0x328   : > { %2963 = vrot.lane.b32.xlu0 %v2820_v6, %s12953_s27  ;;  %1241 = vrot.lane.b32.xlu2 %v1051_v30, %s12950_s24  ;;  %v16236_v6 = vld [vmem:[%s13030_s19 + $0x138] sm:$0xff]  }
 0x329   : > { %v16186_v59 = vpack.c.bf16 %v5530_v7, %v5529_v45  ;;  %v2626_v2 = vpop.permute.xlu1 %2625  ;;  %v1052_v45 = vshrl.u32 %v16129_v57, 16  ;;  %v1056_v30 = vshll.u32 %v16236_v6, 16  ;;  %v10739_v57 = vor.u32 %v11977_v24, %v10738_v0 }
 0x32a   : > { %v2404_v29 = vpop.permute.xlu0 %2403 }
 0x32b   : > { %v3600_v31 = vsel %vm3536_vm10, %v3493_v42, %v2404_v29  ;;  %v16197_v60 = vpop.permute.xlu2 %3065  ;;  %v1054_v53 = vor.u32 %v1052_v45, %v1050_v18  ;;  %v16275_v18 = vsel %vm1544_vm0, %v1622_v33, %v1624_v56 }
 0x32c   : > { %v3707_v3 = vsel %vm3643_vm11, %v3600_v31, %v2626_v2  ;;  %v16261_v2 = vrot.slane %v1056_v30, 1 }
 0x32d   : > { %v3814_v40 = vsel %vm3750_vm12, %v3707_v3, %v16077_v15 }
 0x32f   : > { %1724 = vrot.lane.b32.xlu1 %v16055_v55, %s12947_s21 }
 0x330   : > { %1453 = vrot.lane.b32.xlu0 %v1350_v39, %s12948_s22  ;;  %2307 = vrot.lane.b32.xlu2 %v2106_v38, %s12952_s26 }
 0x331   : > { %v16223_v34 = vpop.f32.mrf.mxu0  ;;  %v1232_v28 = vpop.permute.xlu1 %1231  ;;  %6442 = vmatmul.bf16.gmra.mxu1 %v10711_v47  ;;  %v4557_v47 = vsel %vm4464_vm15, %v4554_v62, %v4556_v27 }
 0x332   : > { %v3064_v11 = vpop.permute.xlu0 %3063  ;;  %v3173_v15 = vsel %vm3107_vm6, %v15472_v1, %v1232_v28  ;;  %v4558_v13 = vrot.slane %v16223_v34, 6  ;;  %v4815_v62 = vmax.f32 %v15934_v61, %v4557_v47  ;;  %v10600_v28 = vld [vmem:[%s20838_s5 + $0x1c] sm:$0xf0] }
 0x333   : > { %v3921_v36 = vsel %vm3857_vm13, %v3814_v40, %v3064_v11  ;;  %v16233_v55 = vpop.permute.xlu2 %1716  ;;  %v3281_v1 = vsel %vm3215_vm7, %v3173_v15, %v16112_v63  ;;  %v1351_v63 = vrot.slane %v16236_v6, 1  ;;  %v1059_v40 = vsel %vm743_vm2, %v1054_v53, %v16261_v2  ;;  %v16290_v11 = vld [vmem:[%s13030_s19 + $0x154] sm:$0xff]  }
 0x334   : > { %10574 = vmatmul.msk.bf16.gmra.mxu0 %vm3975_vm14, %v3921_v36  ;;  %v4559_v39 = vsel %vm4464_vm15, %v4556_v27, %v4558_v13  ;;  %v2126_v45 = vshrl.u32 %v16290_v11, 16  ;;  %v2129_v30 = vshll.u32 %v16290_v11, 16 }
 0x335   : > { %v4816_v36 = vmax.f32 %v15995_v48, %v4559_v39  ;;  %v16308_v48 = vor.u32 %v2113_v49, %v2110_v37 }
 0x336   : > { %v2825_v49 = vrot.slane %v2126_v45, 2  ;;  %v2826_v47 = vrot.slane %v2129_v30, 3 }
 0x337   : > { %2637 = vrot.lane.b32.xlu1 %v2534_v51, %s12951_s25  ;;  %v5066_v27 = vrot.slane %v4816_v36, 1  ;;  %v2115_v37 = vsel %vm1756_vm4, %v16194_v10, %v16308_v48  ;;  %v2535_v10 = vrot.slane %v16290_v11, 2 }
 0x338   : > { %2415 = vrot.lane.b32.xlu0 %v16236_v6, %s12946_s20  ;;  %2965 = vrot.lane.b32.xlu2 %v2824_v4, %s12953_s27  ;;  %v16357_v24 = vor.u32 %v2826_v47, %v2825_v49  ;;  %v11946_v47 = vld [vmem:[%s20838_s5 + $0x3c] sm:$0xf] }
 0x339   : > { %v16256_v7 = vpop.f32.mrf.mxu0  ;;  %v2298_v31 = vpop.permute.xlu1 %2297 }
 0x33a   : > { %v4560_v29 = vrot.slane %v16256_v7, 6  ;;  %v1715_v42 = vpop.permute.xlu0 %1714 }
 0x33b   : > { %v3388_v3 = vsel %vm3322_vm8, %v3281_v1, %v1715_v42  ;;  %v16267_v38 = vpop.permute.xlu2 %2629 }
 0x33c   : > { %v4561_v5 = vsel %vm4464_vm15, %v4558_v13, %v4560_v29  ;;  %v3495_v33 = vsel %vm3429_vm9, %v3388_v3, %v2298_v31  ;;  %v5064_v3 = vrot.slane %v4815_v62, 1 }
 0x33d   : > { %v16282_v21 = vmax.f32 %v16027_v9, %v4561_v5  ;;  %v1352_v9 = vsel %vm1273_vm1, %v1349_v17, %v1351_v63  ;;  %v11939_v17 = vld [vmem:[%s20838_s5 + $0x4] sm:$0xf]  ;;  %v3602_v15 = vsel %vm3536_vm10, %v3495_v33, %v16160_v44 }
 0x33e   : > { %v10603_v61 = vor.u32 %v11939_v17, %v10600_v28  ;;  %v5065_v0 = vsel %vm1273_vm1, %v5062_v19, %v5064_v3  ;;  %v1626_v28 = vrot.slane %v16290_v11, 3 }
 0x33f   : > { %1243 = vrot.lane.b32.xlu1 %v1059_v40, %s12950_s24  ;;  %v5068_v54 = vrot.slane %v16282_v21, 1 }
 0x340   : > { %3075 = vrot.lane.b32.xlu0 %v16275_v18, %s12949_s23  ;;  %1455 = vrot.lane.b32.xlu2 %v1352_v9, %s12948_s22  ;;  %v16352_v9 = vld [vmem:[%s13030_s19 + $0x140] sm:$0xff]  }
 0x341   : > { %v2956_v13 = vpop.permute.xlu1 %2955  ;;  %6447 = vmatmul.bf16.gmra.mxu1 %v10739_v57  ;;  %6515 = vmatmul.bf16.vlgmr.msra.gmra.mxu2 %v10603_v61  ;;  %v5069_v39 = vsel %vm1273_vm1, %v5066_v27, %v5068_v54  ;;  %v5324_v61 = vmax.f32 %v16126_v14, %v5065_v0  ;;  %v2828_v14 = vsel %vm2669_vm5, %v16230_v22, %v16357_v24 }
 0x342   : > { %v2628_v51 = vpop.permute.xlu0 %2627 }
 0x343   : > { %v3709_v4 = vsel %vm3643_vm11, %v3602_v15, %v2628_v51  ;;  %v16324_v1 = vpop.f32.mrf.mxu0  ;;  %v16328_v44 = vpop.permute.xlu2 %1235 }
 0x344   : > { %v3816_v42 = vsel %vm3750_vm12, %v3709_v4, %v2956_v13  ;;  %v4562_v53 = vrot.slane %v16324_v1, 6  ;;  %v1060_v13 = vshrl.u32 %v16236_v6, 16 }
 0x345   : > { %v3923_v31 = vsel %vm3857_vm13, %v3816_v42, %v16197_v60  ;;  %v5067_v60 = vsel %vm1273_vm1, %v5064_v3, %v5066_v27  ;;  %v1064_v27 = vshll.u32 %v16352_v9, 16  ;;  %v5429_v3 = vadd.f32 %v15622_v41, %v5324_v61 }
 0x346   : > { %v4563_v5 = vsel %vm4464_vm15, %v4560_v29, %v4562_v53  ;;  %10575 = vmatmul.msk.bf16.gmra.mxu0 %vm3975_vm14, %v3923_v31  ;;  %v5326_v29 = vmax.f32 %v4816_v36, %v5069_v39  ;;  %v5325_v57 = vmax.f32 %v4815_v62, %v5067_v60 }
 0x347   : > { %v16343_v40 = vmax.f32 %v16101_v52, %v4563_v5  ;;  %2309 = vrot.lane.b32.xlu1 %v2115_v37, %s12952_s26  ;;  %v10766_v5 = vld [vmem:[%s20838_s5 + $0x150] sm:$0xf]  ;;  %v16409_v37 = vrot.slane %v1064_v27, 1  ;;  %v5531_v61 = vmax.f32 %v5429_v3, 0.0  ;;  %v2122_v27 = vrot.slane %v2120_v46, 4 }
 0x348   : > { %1726 = vrot.lane.b32.xlu0 %v16172_v50, %s12947_s21  ;;  %2417 = vrot.lane.b32.xlu2 %v16352_v9, %s12946_s20  ;;  %v5431_v19 = vadd.f32 %v15622_v41, %v5326_v29  ;;  %v5430_v42 = vadd.f32 %v15622_v41, %v5325_v57  ;;  %v1353_v57 = vrot.slane %v16352_v9, 1 }
 0x349   : > { %v5070_v33 = vrot.slane %v16343_v40, 1  ;;  %v1446_v50 = vpop.permute.xlu1 %1445 }
 0x34a   : > { %v1234_v52 = vpop.permute.xlu0 %1233  ;;  %v5533_v39 = vmax.f32 %v5431_v19, 0.0 }
 0x34b   : > { %v16361_v36 = vpop.f32.mrf.mxu0  ;;  %v5071_v17 = vsel %vm1273_vm1, %v5068_v54, %v5070_v33  ;;  %v16369_v4 = vpop.permute.xlu2 %2301  ;;  %v3175_v62 = vsel %vm3107_vm6, %v15588_v58, %v1234_v52  ;;  %v2536_v54 = vsel %vm2457_vm3, %v2533_v32, %v2535_v10  ;;  %v16393_v32 = vsel %vm1544_vm0, %v1624_v56, %v1626_v28  ;;  %v11984_v56 = vld [vmem:[%s20838_s5 + $0x168] sm:$0xf0] }
 0x34c   : > { %v4564_v15 = vrot.slane %v16361_v36, 6  ;;  %v5327_v51 = vmax.f32 %v16282_v21, %v5071_v17  ;;  %v10767_v49 = vor.u32 %v11984_v56, %v10766_v5  ;;  %v5532_v52 = vmax.f32 %v5430_v42, 0.0 }
 0x34e   : > { %v4565_v21 = vsel %vm4464_vm15, %v4562_v53, %v4564_v15  ;;  %v5432_v58 = vadd.f32 %v15622_v41, %v5327_v51  ;;  %v3283_v53 = vsel %vm3215_vm7, %v3175_v62, %v1446_v50  ;;  %v10628_v41 = vld [vmem:[%s20838_s5 + $0x54] sm:$0xf0] }
 0x34f   : > { %v16396_v31 = vmax.f32 %v16181_v20, %v4565_v21  ;;  %2967 = vrot.lane.b32.xlu1 %v2828_v14, %s12953_s27  ;;  %v1062_v20 = vor.u32 %v1060_v13, %v16261_v2  ;;  %v10631_v2 = vor.u32 %v11946_v47, %v10628_v41  ;;  %v3390_v50 = vsel %vm3322_vm8, %v3283_v53, %v16233_v55  ;;  %v16437_v21 = vld [vmem:[%s13030_s19 + $0x15c] sm:$0xff]  }
 0x350   : > { %2639 = vrot.lane.b32.xlu0 %v2536_v54, %s12951_s25  ;;  %v5534_v22 = vmax.f32 %v5432_v58, 0.0  ;;  %3077 = vrot.lane.b32.xlu2 %v16393_v32, %s12949_s23  ;;  %v2119_v55 = vrot.slane %v2117_v16, 3  ;;  %v1354_v14 = vsel %vm1273_vm1, %v1351_v63, %v1353_v57  ;;  %v2135_v35 = vshrl.u32 %v16437_v21, 16 }
 0x351   : > { %v5072_v60 = vrot.slane %v16396_v31, 1  ;;  %v2408_v17 = vpop.permute.xlu1 %2407  ;;  %6452 = vmatmul.bf16.gmra.mxu1 %v10767_v49  ;;  %6520 = vmatmul.bf16.gmra.mxu2 %v10631_v2  ;;  %v1067_v13 = vsel %vm743_vm2, %v1062_v20, %v16409_v37  ;;  %v2138_v46 = vshll.u32 %v16437_v21, 16  ;;  %v16479_v49 = vld [vmem:[%s13030_s19 + $0x148] sm:$0xff]   ;;  %v1068_v47 = vshrl.u32 %v16352_v9, 16 }
 0x352   : > { %v2300_v29 = vpop.permute.xlu0 %2299  ;;  %v5744_v0 = vpack.c.bf16 %v5534_v22, %v5533_v39  ;;  %v16447_v16 = vor.u32 %v2122_v27, %v2119_v55  ;;  %v2537_v22 = vrot.slane %v16437_v21, 2  ;;  %v2829_v56 = vrot.slane %v2135_v35, 2  ;;  %v16521_v55 = vld [vmem:[%s20835_s2] ss:$0 sm:$0xff] }
 0x353   : > { %v5073_v51 = vsel %vm1273_vm1, %v5070_v33, %v5072_v60  ;;  %v3497_v19 = vsel %vm3429_vm9, %v3390_v50, %v2300_v29  ;;  %v16427_v62 = vpop.permute.xlu2 %2959  ;;  %v5743_v33 = vpack.c.bf16 %v5532_v52, %v5531_v61  ;;  %v2830_v20 = vrot.slane %v2138_v46, 3  ;;  %v11991_v29 = vld [vmem:[%s20838_s5 + $0x1a0] sm:$0xf0]  ;;  %v11953_v50 = vld [vmem:[%s20838_s5 + $0x74] sm:$0xf] }
 0x354   : > { %6600 = vmatpush.bf16.msra.mxu3 %v5744_v0  ;;  %v5328_v54 = vmax.f32 %v16343_v40, %v5073_v51  ;;  %v3604_v40 = vsel %vm3536_vm10, %v3497_v19, %v2408_v17  ;;  %v1072_v41 = vshll.u32 %v16479_v49, 16  ;;  %v12916_v0 = vld [vmem:[%s13030_s19 + $0x110] sm:$0xff]  }
 0x355   : > { %v3711_v58 = vsel %vm3643_vm11, %v3604_v40, %v16267_v38  ;;  %v16502_v52 = vor.u32 %v2830_v20, %v2829_v56  ;;  %v10656_v17 = vld [vmem:[%s20838_s5 + $0x8c] sm:$0xf0] }
 0x356   : > { %v10659_v61 = vor.u32 %v11953_v50, %v10656_v17  ;;  %v5433_v27 = vadd.f32 %v16521_v55, %v5328_v54 }
 0x357   : > { %1457 = vrot.lane.b32.xlu1 %v1354_v14, %s12948_s22  ;;  %v2832_v54 = vsel %vm2669_vm5, %v16357_v24, %v16502_v52  ;;  %v2131_v24 = vrot.slane %v2129_v30, 4  ;;  %v16565_v30 = vld [vmem:[%s13030_s19 + $0x164] sm:$0xff]  }
 0x358   : > { %1245 = vrot.lane.b32.xlu0 %v1067_v13, %s12950_s24  ;;  %6601 = vmatpush.bf16.msra.mxu3 %v5743_v33 }
 0x359   : > { %1728 = vrot.lane.b32.xlu2 %v16275_v18, %s12947_s21  ;;  %v3068_v39 = vpop.permute.xlu1 %3067  ;;  %v2124_v18 = vsel %vm1756_vm4, %v16308_v48, %v16447_v16 }
 0x35a   : > { %v16453_v42 = vpop.f32.mrf.mxu0  ;;  %v2958_v6 = vpop.permute.xlu0 %2957 }
 0x35b   : > { %v4566_v63 = vrot.slane %v16453_v42, 6  ;;  %v3818_v53 = vsel %vm3750_vm12, %v3711_v58, %v2958_v6  ;;  %v16462_v5 = vpop.permute.xlu2 %1449  ;;  %v16529_v58 = vrot.slane %v1072_v41, 1  ;;  %v11943_v41 = vld [vmem:[%s20838_s5 + $0x20] sm:$0xf0] }
 0x35c   : > { %v3925_v3 = vsel %vm3857_vm13, %v3818_v53, %v3068_v39  ;;  %6602 = vmatpush.bf16.msra.mxu3 %v16186_v59  ;;  %v2128_v39 = vrot.slane %v2126_v45, 3 }
 0x35d   : > { %v4567_v38 = vsel %vm4464_vm15, %v4564_v15, %v4566_v63  ;;  %10576 = vmatmul.msk.bf16.gmra.mxu0 %vm3975_vm14, %v3925_v3  ;;  %v2538_v15 = vsel %vm2457_vm3, %v2535_v10, %v2537_v22  ;;  %v3177_v10 = vsel %vm3107_vm6, %v12916_v0, %v16328_v44  ;;  %v1070_v44 = vor.u32 %v1068_v47, %v16409_v37  ;;  %v10606_v47 = vld [vmem:[%s20838_s5 + $0x8] sm:$0xf] }
 0x35e   : > { %v16476_v59 = vmax.f32 %v16223_v34, %v4567_v38  ;;  %v10794_v34 = vld [vmem:[%s20838_s5 + $0x188] sm:$0xf]  ;;  %v2147_v0 = vshll.u32 %v16565_v30, 16 }
 0x35f   : > { %2419 = vrot.lane.b32.xlu1 %v16479_v49, %s12946_s20  ;;  %v10795_v2 = vor.u32 %v11991_v29, %v10794_v34  ;;  %v2144_v29 = vshrl.u32 %v16565_v30, 16 }
 0x360   : > { %v5074_v48 = vrot.slane %v16476_v59, 1  ;;  %2311 = vrot.lane.b32.xlu0 %v2124_v18, %s12952_s26  ;;  %6603 = vmatpush.bf16.msra.mxu3 %v16071_v8  ;;  %v1628_v8 = vrot.slane %v16437_v21, 3 }
 0x361   : > { %2641 = vrot.lane.b32.xlu2 %v2538_v15, %s12951_s25  ;;  %v1719_v14 = vpop.permute.xlu1 %1718  ;;  %6457 = vmatmul.bf16.gmra.mxu1 %v10795_v2  ;;  %v16570_v15 = vor.u32 %v2131_v24, %v2128_v39  ;;  %v10607_v2 = vor.u32 %v11943_v41, %v10606_v47  ;;  %v2833_v17 = vrot.slane %v2144_v29, 2  ;;  %v1076_v39 = vshrl.u32 %v16479_v49, 16  ;;  %v12918_v24 = vld [vmem:[%s13030_s19 + $0x118] sm:$0xff]  }
 0x362   : > { %v16511_v51 = vpop.f32.mrf.mxu0  ;;  %v1448_v19 = vpop.permute.xlu0 %1447  ;;  %v5075_v13 = vsel %vm1273_vm1, %v5072_v60, %v5074_v48  ;;  %6525 = vmatmul.bf16.gmra.mxu2 %v10659_v61  ;;  %v10684_v61 = vld [vmem:[%s20838_s5 + $0xc4] sm:$0xf0] }
 0x363   : > { %v4568_v33 = vrot.slane %v16511_v51, 6  ;;  %v5329_v40 = vmax.f32 %v16396_v31, %v5075_v13  ;;  %v16527_v37 = vpop.permute.xlu2 %2411  ;;  %v3285_v6 = vsel %vm3215_vm7, %v3177_v10, %v1448_v19  ;;  %v1075_v31 = vsel %vm743_vm2, %v1070_v44, %v16529_v58 }
 0x364   : > { %6604 = vmatpush.bf16.msra.mxu3 %v15976_v25  ;;  %v16544_v25 = vsel %vm1544_vm0, %v1626_v28, %v1628_v8  ;;  %v3392_v18 = vsel %vm3322_vm8, %v3285_v6, %v1719_v14  ;;  %v1355_v28 = vrot.slane %v16479_v49, 1  ;;  %v2834_v19 = vrot.slane %v2147_v0, 3 }
 0x365   : > { %v4569_v60 = vsel %vm4464_vm15, %v4566_v63, %v4568_v33  ;;  %v5434_v53 = vadd.f32 %v16521_v55, %v5329_v40  ;;  %v5535_v63 = vmax.f32 %v5433_v27, 0.0  ;;  %v2539_v40 = vrot.slane %v16565_v30, 2 }
 0x366   : > { %v16553_v3 = vmax.f32 %v16256_v7, %v4569_v60  ;;  %v3499_v7 = vsel %vm3429_vm9, %v3392_v18, %v16369_v4  ;;  %v1078_v47 = vor.u32 %v1076_v39, %v16529_v58  ;;  %v11967_v39 = vld [vmem:[%s20838_s5 + $0xe4] sm:$0xf] }
 0x367   : > { %v5536_v38 = vmax.f32 %v5434_v53, 0.0  ;;  %3079 = vrot.lane.b32.xlu1 %v16544_v25, %s12949_s23 }
 0x368   : > { %2969 = vrot.lane.b32.xlu0 %v2832_v54, %s12953_s27  ;;  %6605 = vmatpush.bf16.msra.mxu3 %v15857_v23  ;;  %v5076_v45 = vrot.slane %v16553_v3, 1  ;;  %v16630_v54 = vor.u32 %v2834_v19, %v2833_v17 }
 0x369   : > { %v16562_v56 = vpack.c.bf16 %v5536_v38, %v5535_v63  ;;  %1247 = vrot.lane.b32.xlu2 %v1075_v31, %s12950_s24  ;;  %v2632_v20 = vpop.permute.xlu1 %2631  ;;  %v16642_v63 = vld [vmem:[%s13030_s19 + $0x150] sm:$0xff]  }
 0x36a   : > { %v2410_v11 = vpop.permute.xlu0 %2409  ;;  %v16575_v23 = vsel %vm1273_vm1, %v5074_v48, %v5076_v45  ;;  %v1356_v48 = vsel %vm1273_vm1, %v1353_v57, %v1355_v28  ;;  %v16606_v9 = vpop.f32.mrf.mxu1  ;;  %v10822_v57 = vld [vmem:[%s20838_s5 + $0x1c0] sm:$0xf]  ;;  %v1080_v18 = vshll.u32 %v16642_v63, 16 }
 0x36b   : > { %v3606_v34 = vsel %vm3536_vm10, %v3499_v7, %v2410_v11  ;;  %v16585_v4 = vpop.permute.xlu2 %3071  ;;  %v5330_v10 = vmax.f32 %v16476_v59, %v16575_v23  ;;  %v11960_v59 = vld [vmem:[%s20838_s5 + $0xac] sm:$0xf] }
 0x36c   : > { %6606 = vmatpush.bf16.msra.mxu3 %v15745_v43  ;;  %v3713_v50 = vsel %vm3643_vm11, %v3606_v34, %v2632_v20  ;;  %v2133_v43 = vsel %vm1756_vm4, %v16447_v16, %v16570_v15  ;;  %v11998_v16 = vld [vmem:[%s20838_s5 + $0x1d8] sm:$0xf0] }
 0x36d   : > { %v3820_v13 = vsel %vm3750_vm12, %v3713_v50, %v16427_v62 }
 0x36f   : > { %1730 = vrot.lane.b32.xlu1 %v16393_v32, %s12947_s21  ;;  %v10687_v32 = vor.u32 %v11960_v59, %v10684_v61  ;;  %v2140_v59 = vrot.slane %v2138_v46, 4 }
 0x370   : > { %1459 = vrot.lane.b32.xlu0 %v1356_v48, %s12948_s22  ;;  %6607 = vmatpush.bf16.msra.mxu3 %v15658_v12  ;;  %v10823_v12 = vor.u32 %v11998_v16, %v10822_v57  ;;  %v16672_v48 = vrot.slane %v1080_v18, 1  ;;  %v10634_v57 = vld [vmem:[%s20838_s5 + $0x40] sm:$0xf]  ;;  %v2137_v16 = vrot.slane %v2135_v35, 3 }
 0x371   : > { %v16619_v44 = vpop.f32.mrf.mxu0  ;;  %2313 = vrot.lane.b32.xlu2 %v2133_v43, %s12952_s26  ;;  %v1238_v6 = vpop.permute.xlu1 %1237  ;;  %v1357_v43 = vrot.slane %v16642_v63, 1 }
 0x372   : > { %v4570_v27 = vrot.slane %v16619_v44, 6  ;;  %v3070_v14 = vpop.permute.xlu0 %3069  ;;  %6462 = vmatmul.bf16.gmra.mxu1 %v10823_v12  ;;  %6530 = vmatmul.bf16.gmra.mxu2 %v10687_v32  ;;  %v3179_v38 = vsel %vm3107_vm6, %v12918_v24, %v1238_v6  ;;  %v16659_v7 = vpop.f32.mrf.mxu1  ;;  %v16701_v12 = vld [vmem:[%s13030_s19 + $0x16c] sm:$0xff]   ;;  %v16728_v49 = vor.u32 %v2140_v59, %v2137_v16  ;;  %v10712_v24 = vld [vmem:[%s20838_s5 + $0xfc] sm:$0xf0] }
 0x373   : > { %v3927_v60 = vsel %vm3857_vm13, %v3820_v13, %v3070_v14  ;;  %6608 = vmatmul.bf16.vlgmr.msra.gmra.mxu3 %v10607_v2  ;;  %v16636_v53 = vpop.permute.xlu2 %1722  ;;  %v3287_v20 = vsel %vm3215_vm7, %v3179_v38, %v16462_v5  ;;  %v5435_v2 = vadd.f32 %v16521_v55, %v5330_v10  ;;  %v1083_v13 = vsel %vm743_vm2, %v1078_v47, %v16672_v48 }
 0x374   : > { %v4571_v62 = vsel %vm4464_vm15, %v4568_v33, %v4570_v27  ;;  %10577 = vmatmul.msk.bf16.gmra.mxu0 %vm3975_vm14, %v3927_v60  ;;  %v2540_v33 = vsel %vm2457_vm3, %v2537_v22, %v2539_v40  ;;  %v1630_v22 = vrot.slane %v16565_v30, 3  ;;  %v1358_v35 = vsel %vm1273_vm1, %v1355_v28, %v1357_v43  ;;  %v12005_v60 = vld [vmem:[%s20838_s5 + $0x210] sm:$0xf0] }
 0x375   : > { %v16639_v31 = vmax.f32 %v16324_v1, %v4571_v62  ;;  %v2836_v1 = vsel %vm2669_vm5, %v16502_v52, %v16630_v54  ;;  %v2153_v28 = vshrl.u32 %v16701_v12, 16 }
 0x376   : > { %v16694_v10 = vsel %vm1544_vm0, %v1628_v8, %v1630_v22  ;;  %v10850_v8 = vld [vmem:[%s20838_s5 + $0x1f8] sm:$0xf] }
 0x377   : > { %v5078_v11 = vrot.slane %v16639_v31, 1  ;;  %2643 = vrot.lane.b32.xlu1 %v2540_v33, %s12951_s25  ;;  %v10851_v62 = vor.u32 %v12005_v60, %v10850_v8  ;;  %v10662_v60 = vld [vmem:[%s20838_s5 + $0x78] sm:$0xf] }
 0x378   : > { %2421 = vrot.lane.b32.xlu0 %v16642_v63, %s12946_s20 }
 0x379   : > { %v16664_v23 = vpop.f32.mrf.mxu0  ;;  %v5079_v52 = vsel %vm1273_vm1, %v5076_v45, %v5078_v11  ;;  %2971 = vrot.lane.b32.xlu2 %v2836_v1, %s12953_s27  ;;  %v2304_v50 = vpop.permute.xlu1 %2303  ;;  %v2156_v1 = vshll.u32 %v16701_v12, 16 }
 0x37a   : > { %v4572_v41 = vrot.slane %v16664_v23, 6  ;;  %v1721_v34 = vpop.permute.xlu0 %1720  ;;  %v5331_v5 = vmax.f32 %v16553_v3, %v5079_v52  ;;  %v11950_v3 = vld [vmem:[%s20838_s5 + $0x58] sm:$0xf0] }
 0x37b   : > { %v3394_v17 = vsel %vm3322_vm8, %v3287_v20, %v1721_v34  ;;  %v16680_v45 = vpop.permute.xlu2 %2635  ;;  %v10635_v46 = vor.u32 %v11950_v3, %v10634_v57  ;;  %v10715_v20 = vor.u32 %v11967_v39, %v10712_v24  ;;  %v12919_v39 = vld [vmem:[%s13030_s19 + $0x120] sm:$0xff]  }
 0x37c   : > { %v4573_v58 = vsel %vm4464_vm15, %v4570_v27, %v4572_v41  ;;  %v5436_v19 = vadd.f32 %v16521_v55, %v5331_v5  ;;  %v5537_v27 = vmax.f32 %v5435_v2, 0.0  ;;  %v3501_v32 = vsel %vm3429_vm9, %v3394_v17, %v2304_v50 }
 0x37d   : > { %v16704_v61 = vmax.f32 %v16361_v36, %v4573_v58  ;;  %v16717_v36 = vpop.f32.mrf.mxu1  ;;  %v3608_v33 = vsel %vm3536_vm10, %v3501_v32, %v16527_v37  ;;  %v2142_v58 = vsel %vm1756_vm4, %v16570_v15, %v16728_v49  ;;  %v2837_v17 = vrot.slane %v2153_v28, 2 }
 0x37e   : > { %v5538_v14 = vmax.f32 %v5436_v19, 0.0  ;;  %v2838_v19 = vrot.slane %v2156_v1, 3  ;;  %v2541_v15 = vrot.slane %v16701_v12, 2 }
 0x37f   : > { %v5080_v21 = vrot.slane %v16704_v61, 1  ;;  %1249 = vrot.lane.b32.xlu1 %v1083_v13, %s12950_s24 }
 0x380   : > { %3081 = vrot.lane.b32.xlu0 %v16694_v10, %s12949_s23  ;;  %v16725_v6 = vpack.c.bf16 %v5538_v14, %v5537_v27  ;;  %v16774_v59 = vor.u32 %v2838_v19, %v2837_v17  ;;  %v1632_v27 = vrot.slane %v16701_v12, 3 }
 0x381   : > { %v5081_v38 = vsel %vm1273_vm1, %v5078_v11, %v5080_v21  ;;  %1461 = vrot.lane.b32.xlu2 %v1358_v35, %s12948_s22  ;;  %v2962_v34 = vpop.permute.xlu1 %2961  ;;  %v1084_v35 = vshrl.u32 %v16642_v63, 16 }
 0x382   : > { %v2634_v18 = vpop.permute.xlu0 %2633  ;;  %v5332_v47 = vmax.f32 %v16639_v31, %v5081_v38  ;;  %6467 = vmatmul.bf16.gmra.mxu1 %v10851_v62  ;;  %6535 = vmatmul.bf16.gmra.mxu2 %v10715_v20  ;;  %v11957_v62 = vld [vmem:[%s20838_s5 + $0x90] sm:$0xf0] }
 0x383   : > { %v3715_v52 = vsel %vm3643_vm11, %v3608_v33, %v2634_v18  ;;  %v16744_v5 = vpop.f32.mrf.mxu0  ;;  %6613 = vmatmul.bf16.gmra.mxu3 %v10635_v46  ;;  %v16748_v2 = vpop.permute.xlu2 %1241  ;;  %v2840_v33 = vsel %vm2669_vm5, %v16630_v54, %v16774_v59  ;;  %v1086_v54 = vor.u32 %v1084_v35, %v16672_v48  ;;  %v10740_v48 = vld [vmem:[%s20838_s5 + $0x134] sm:$0xf0] }
 0x384   : > { %v3822_v11 = vsel %vm3750_vm12, %v3715_v52, %v2962_v34  ;;  %v4574_v37 = vrot.slane %v16744_v5, 6  ;;  %v5437_v38 = vadd.f32 %v16521_v55, %v5332_v47  ;;  %v10663_v52 = vor.u32 %v11957_v62, %v10662_v60 }
 0x385   : > { %v3929_v50 = vsel %vm3857_vm13, %v3822_v11, %v16585_v4  ;;  %v16767_v4 = vld [vmem:[%s13030_s19 + $0x158] sm:$0xff]  }
 0x386   : > { %v4575_v31 = vsel %vm4464_vm15, %v4572_v41, %v4574_v37  ;;  %10578 = vmatmul.msk.bf16.gmra.mxu0 %vm3975_vm14, %v3929_v50  ;;  %v16769_v41 = vpop.f32.mrf.mxu1 }
 0x387   : > { %v16762_v57 = vmax.f32 %v16453_v42, %v4575_v31  ;;  %2315 = vrot.lane.b32.xlu1 %v2142_v58, %s12952_s26  ;;  %v5539_v58 = vmax.f32 %v5437_v38, 0.0 }
 0x388   : > { %1732 = vrot.lane.b32.xlu0 %v16544_v25, %s12947_s21  ;;  %v1088_v25 = vshll.u32 %v16767_v4, 16 }
 0x389   : > { %v5082_v3 = vrot.slane %v16762_v57, 1  ;;  %2423 = vrot.lane.b32.xlu2 %v16767_v4, %s12946_s20  ;;  %v1452_v42 = vpop.permute.xlu1 %1451 }
 0x38a   : > { %v1240_v16 = vpop.permute.xlu0 %1239  ;;  %v16809_v20 = vrot.slane %v1088_v25, 1 }
 0x38b   : > { %v16778_v13 = vpop.f32.mrf.mxu0  ;;  %v5083_v14 = vsel %vm1273_vm1, %v5080_v21, %v5082_v3  ;;  %v16785_v46 = vpop.permute.xlu2 %2307  ;;  %v3181_v24 = vsel %vm3107_vm6, %v12919_v39, %v1240_v16  ;;  %v2542_v21 = vsel %vm2457_vm3, %v2539_v40, %v2541_v15  ;;  %v16816_v40 = vsel %vm1544_vm0, %v1630_v22, %v1632_v27  ;;  %v12012_v22 = vld [vmem:[%s20838_s5 + $0x248] sm:$0xf0] }
 0x38c   : > { %v4576_v32 = vrot.slane %v16778_v13, 6  ;;  %v5333_v8 = vmax.f32 %v16704_v61, %v5083_v14  ;;  %v3289_v34 = vsel %vm3215_vm7, %v3181_v24, %v1452_v42  ;;  %v1359_v16 = vrot.slane %v16767_v4, 1 }
 0x38d   : > { %v3396_v25 = vsel %vm3322_vm8, %v3289_v34, %v16636_v53  ;;  %v1091_v24 = vsel %vm743_vm2, %v1086_v54, %v16809_v20  ;;  %v2146_v53 = vrot.slane %v2144_v29, 3 }
 0x38e   : > { %v4577_v61 = vsel %vm4464_vm15, %v4574_v37, %v4576_v32  ;;  %v5438_v18 = vadd.f32 %v16521_v55, %v5333_v8  ;;  %v16824_v11 = vpop.f32.mrf.mxu1  ;;  %v10878_v37 = vld [vmem:[%s20838_s5 + $0x230] sm:$0xf]  ;;  %v1360_v38 = vsel %vm1273_vm1, %v1357_v43, %v1359_v16 }
 0x38f   : > { %v16819_v47 = vmax.f32 %v16511_v51, %v4577_v61  ;;  %v11974_v51 = vld [vmem:[%s20838_s5 + $0x11c] sm:$0xf]  ;;  %2973 = vrot.lane.b32.xlu1 %v2840_v33, %s12953_s27  ;;  %v10879_v50 = vor.u32 %v12012_v22, %v10878_v37 }
 0x390   : > { %2645 = vrot.lane.b32.xlu0 %v2542_v21, %s12951_s25  ;;  %v5540_v17 = vmax.f32 %v5438_v18, 0.0  ;;  %v10743_v42 = vor.u32 %v11974_v51, %v10740_v48  ;;  %v2149_v21 = vrot.slane %v2147_v0, 4  ;;  %v11964_v51 = vld [vmem:[%s20838_s5 + $0xc8] sm:$0xf0] }
 0x391   : > { %v5084_v31 = vrot.slane %v16819_v47, 1  ;;  %3083 = vrot.lane.b32.xlu2 %v16816_v40, %s12949_s23  ;;  %v2414_v14 = vpop.permute.xlu1 %2413 }
 0x392   : > { %v2306_v19 = vpop.permute.xlu0 %2305  ;;  %6472 = vmatmul.bf16.gmra.mxu1 %v10879_v50  ;;  %v16848_v8 = vpack.c.bf16 %v5540_v17, %v5539_v58  ;;  %6540 = vmatmul.bf16.gmra.mxu2 %v10743_v42  ;;  %v16873_v29 = vor.u32 %v2149_v21, %v2146_v53  ;;  %v1092_v42 = vshrl.u32 %v16767_v4, 16 }
 0x393   : > { %v5085_v35 = vsel %vm1273_vm1, %v5082_v3, %v5084_v31  ;;  %6618 = vmatmul.bf16.gmra.mxu3 %v10663_v52  ;;  %v3503_v60 = vsel %vm3429_vm9, %v3396_v25, %v2306_v19  ;;  %v16851_v62 = vpop.permute.xlu2 %2965  ;;  %v16861_v3 = vld [vmem:[%s13030_s19 + $0x174] sm:$0xff]   ;;  %v16910_v19 = vld [vmem:[%s13030_s19 + $0x160] sm:$0xff]  }
 0x394   : > { %v5334_v39 = vmax.f32 %v16762_v57, %v5085_v35  ;;  %v3610_v61 = vsel %vm3536_vm10, %v3503_v60, %v2414_v14  ;;  %v2162_v30 = vshrl.u32 %v16861_v3, 16  ;;  %v2165_v0 = vshll.u32 %v16861_v3, 16  ;;  %v12019_v60 = vld [vmem:[%s20838_s5 + $0x280] sm:$0xf0] }
 0x395   : > { %v3717_v33 = vsel %vm3643_vm11, %v3610_v61, %v16680_v45  ;;  %v2543_v54 = vrot.slane %v16861_v3, 2  ;;  %v10690_v45 = vld [vmem:[%s20838_s5 + $0xb0] sm:$0xf]  ;;  %v2151_v50 = vsel %vm1756_vm4, %v16728_v49, %v16873_v29  ;;  %v1096_v14 = vshll.u32 %v16910_v19, 16  ;;  %v11981_v61 = vld [vmem:[%s20838_s5 + $0x154] sm:$0xf] }
 0x396   : > { %v16870_v57 = vpop.f32.mrf.mxu1  ;;  %v2841_v48 = vrot.slane %v2162_v30, 2  ;;  %v2842_v58 = vrot.slane %v2165_v0, 3  ;;  %v10691_v49 = vor.u32 %v11964_v51, %v10690_v45  ;;  %v1634_v21 = vrot.slane %v16861_v3, 3 }
 0x397   : > { %1463 = vrot.lane.b32.xlu1 %v1360_v38, %s12948_s22 }
 0x398   : > { %1251 = vrot.lane.b32.xlu0 %v1091_v24, %s12950_s24  ;;  %v16934_v53 = vor.u32 %v2842_v58, %v2841_v48  ;;  %v16955_v58 = vrot.slane %v1096_v14, 1 }
 0x399   : > { %1734 = vrot.lane.b32.xlu2 %v16694_v10, %s12947_s21  ;;  %v3074_v34 = vpop.permute.xlu1 %3073 }
 0x39a   : > { %v16879_v63 = vpop.f32.mrf.mxu0  ;;  %v2964_v43 = vpop.permute.xlu0 %2963 }
 0x39b   : > { %v4578_v18 = vrot.slane %v16879_v63, 6  ;;  %v3824_v52 = vsel %vm3750_vm12, %v3717_v33, %v2964_v43  ;;  %v16887_v22 = vpop.permute.xlu2 %1455  ;;  %v10768_v33 = vld [vmem:[%s20838_s5 + $0x16c] sm:$0xf0] }
 0x39c   : > { %v3931_v37 = vsel %vm3857_vm13, %v3824_v52, %v3074_v34  ;;  %v10771_v45 = vor.u32 %v11981_v61, %v10768_v33 }
 0x39d   : > { %v4579_v10 = vsel %vm4464_vm15, %v4576_v32, %v4578_v18  ;;  %10579 = vmatmul.msk.bf16.gmra.mxu0 %vm3975_vm14, %v3931_v37  ;;  %v2544_v32 = vsel %vm2457_vm3, %v2541_v15, %v2543_v54  ;;  %v12920_v15 = vld [vmem:[%s13030_s19 + $0x128] sm:$0xff]   ;;  %v5439_v37 = vadd.f32 %v16521_v55, %v5334_v39  ;;  %v2844_v39 = vsel %vm2669_vm5, %v16774_v59, %v16934_v53 }
 0x39e   : > { %v16907_v17 = vmax.f32 %v16619_v44, %v4579_v10  ;;  %v16921_v35 = vpop.f32.mrf.mxu1  ;;  %v10906_v44 = vld [vmem:[%s20838_s5 + $0x268] sm:$0xf]  ;;  %v3183_v24 = vsel %vm3107_vm6, %v12920_v15, %v16748_v2  ;;  %v1094_v2 = vor.u32 %v1092_v42, %v16809_v20  ;;  %v2158_v59 = vrot.slane %v2156_v1, 4  ;;  %v16992_v1 = vld [vmem:[%s13030_s19 + $0x17c] sm:$0xff]  }
 0x39f   : > { %2425 = vrot.lane.b32.xlu1 %v16910_v19, %s12946_s20  ;;  %v10907_v38 = vor.u32 %v12019_v60, %v10906_v44  ;;  %v1361_v15 = vrot.slane %v16910_v19, 1 }
 0x3a0   : > { %v5086_v25 = vrot.slane %v16907_v17, 1  ;;  %2317 = vrot.lane.b32.xlu0 %v2151_v50, %s12952_s26  ;;  %v1099_v42 = vsel %vm743_vm2, %v1094_v2, %v16955_v58  ;;  %v11971_v2 = vld [vmem:[%s20838_s5 + $0x100] sm:$0xf0] }
 0x3a1   : > { %2647 = vrot.lane.b32.xlu2 %v2544_v32, %s12951_s25  ;;  %v1725_v10 = vpop.permute.xlu1 %1724 }
 0x3a2   : > { %v16943_v43 = vpop.f32.mrf.mxu0  ;;  %v1454_v52 = vpop.permute.xlu0 %1453  ;;  %v5087_v34 = vsel %vm1273_vm1, %v5084_v31, %v5086_v25  ;;  %6477 = vmatmul.bf16.gmra.mxu1 %v10907_v38  ;;  %6545 = vmatmul.bf16.gmra.mxu2 %v10771_v45  ;;  %v2174_v45 = vshll.u32 %v16992_v1, 16 }
 0x3a3   : > { %v4580_v51 = vrot.slane %v16943_v43, 6  ;;  %v5335_v50 = vmax.f32 %v16819_v47, %v5087_v34  ;;  %6623 = vmatmul.bf16.gmra.mxu3 %v10691_v49  ;;  %v16953_v48 = vpop.permute.xlu2 %2417  ;;  %v3291_v31 = vsel %vm3215_vm7, %v3183_v24, %v1454_v52  ;;  %v16970_v47 = vsel %vm1544_vm0, %v1632_v27, %v1634_v21  ;;  %v10718_v52 = vld [vmem:[%s20838_s5 + $0xe8] sm:$0xf] }
 0x3a4   : > { %v2155_v49 = vrot.slane %v2153_v28, 3  ;;  %v3398_v60 = vsel %vm3322_vm8, %v3291_v31, %v1725_v10 }
 0x3a5   : > { %v4581_v20 = vsel %vm4464_vm15, %v4578_v18, %v4580_v51  ;;  %v5440_v32 = vadd.f32 %v16521_v55, %v5335_v50  ;;  %v5541_v18 = vmax.f32 %v5439_v37, 0.0  ;;  %v10719_v50 = vor.u32 %v11971_v2, %v10718_v52 }
 0x3a6   : > { %v16979_v14 = vmax.f32 %v16664_v23, %v4581_v20  ;;  %v16983_v27 = vpop.f32.mrf.mxu1  ;;  %v3505_v23 = vsel %vm3429_vm9, %v3398_v60, %v16785_v46  ;;  %v16997_v61 = vor.u32 %v2158_v59, %v2155_v49  ;;  %v2171_v46 = vshrl.u32 %v16992_v1, 16  ;;  %v10796_v49 = vld [vmem:[%s20838_s5 + $0x1a4] sm:$0xf0] }
 0x3a7   : > { %v5542_v44 = vmax.f32 %v5440_v32, 0.0  ;;  %3085 = vrot.lane.b32.xlu1 %v16970_v47, %s12949_s23  ;;  %v2846_v32 = vrot.slane %v2174_v45, 3 }
 0x3a8   : > { %2975 = vrot.lane.b32.xlu0 %v2844_v39, %s12953_s27  ;;  %v5088_v28 = vrot.slane %v16979_v14, 1  ;;  %v2160_v31 = vsel %vm1756_vm4, %v16873_v29, %v16997_v61  ;;  %v2845_v39 = vrot.slane %v2171_v46, 2  ;;  %v11988_v29 = vld [vmem:[%s20838_s5 + $0x18c] sm:$0xf] }
 0x3a9   : > { %v16989_v24 = vpack.c.bf16 %v5542_v44, %v5541_v18  ;;  %1253 = vrot.lane.b32.xlu2 %v1099_v42, %s12950_s24  ;;  %v2638_v38 = vpop.permute.xlu1 %2637 }
 0x3aa   : > { %v2416_v12 = vpop.permute.xlu0 %2415  ;;  %v5089_v33 = vsel %vm1273_vm1, %v5086_v25, %v5088_v28  ;;  %v1362_v25 = vsel %vm1273_vm1, %v1359_v16, %v1361_v15  ;;  %v10934_v16 = vld [vmem:[%s20838_s5 + $0x2a0] sm:$0xf] }
 0x3ab   : > { %v3612_v34 = vsel %vm3536_vm10, %v3505_v23, %v2416_v12  ;;  %v17009_v37 = vpop.permute.xlu2 %3077  ;;  %v5336_v10 = vmax.f32 %v16907_v17, %v5089_v33  ;;  %v12026_v17 = vld [vmem:[%s20838_s5 + $0x2b8] sm:$0xf0]  ;;  %v2545_v12 = vrot.slane %v16992_v1, 2  ;;  %v17052_v33 = vor.u32 %v2846_v32, %v2845_v39 }
 0x3ac   : > { %v3719_v20 = vsel %vm3643_vm11, %v3612_v34, %v2638_v38  ;;  %v10935_v18 = vor.u32 %v12026_v17, %v10934_v16  ;;  %v17064_v34 = vld [vmem:[%s13030_s19 + $0x168] sm:$0xff]  }
 0x3ad   : > { %v3826_v59 = vsel %vm3750_vm12, %v3719_v20, %v16851_v62  ;;  %v12921_v20 = vld [vmem:[%s13030_s19 + $0x130] sm:$0xff]  }
 0x3ae   : > { %v17028_v4 = vpop.f32.mrf.mxu1 }
 0x3af   : > { %1736 = vrot.lane.b32.xlu1 %v16816_v40, %s12947_s21  ;;  %v10799_v40 = vor.u32 %v11988_v29, %v10796_v49 }
 0x3b0   : > { %1465 = vrot.lane.b32.xlu0 %v1362_v25, %s12948_s22  ;;  %v1100_v25 = vshrl.u32 %v16910_v19, 16 }
 0x3b1   : > { %v17041_v42 = vpop.f32.mrf.mxu0  ;;  %2319 = vrot.lane.b32.xlu2 %v2160_v31, %s12952_s26  ;;  %v1244_v38 = vpop.permute.xlu1 %1243 }
 0x3b2   : > { %v4582_v44 = vrot.slane %v17041_v42, 6  ;;  %v3076_v60 = vpop.permute.xlu0 %3075  ;;  %6482 = vmatmul.bf16.gmra.mxu1 %v10935_v18  ;;  %6550 = vmatmul.bf16.gmra.mxu2 %v10799_v40  ;;  %v3185_v31 = vsel %vm3107_vm6, %v12921_v20, %v1244_v38  ;;  %v1102_v29 = vor.u32 %v1100_v25, %v16955_v58  ;;  %v1363_v58 = vrot.slane %v17064_v34, 1  ;;  %v10746_v25 = vld [vmem:[%s20838_s5 + $0x120] sm:$0xf] }
 0x3b3   : > { %v3933_v23 = vsel %vm3857_vm13, %v3826_v59, %v3076_v60  ;;  %6628 = vmatmul.bf16.gmra.mxu3 %v10719_v50  ;;  %v17058_v52 = vpop.permute.xlu2 %1728  ;;  %v1104_v50 = vshll.u32 %v17064_v34, 16  ;;  %v3293_v16 = vsel %vm3215_vm7, %v3185_v31, %v16887_v22  ;;  %v5441_v60 = vadd.f32 %v16521_v55, %v5336_v10 }
 0x3b4   : > { %v4583_v62 = vsel %vm4464_vm15, %v4580_v51, %v4582_v44  ;;  %10580 = vmatmul.msk.bf16.gmra.mxu0 %vm3975_vm14, %v3933_v23  ;;  %v2546_v51 = vsel %vm2457_vm3, %v2543_v54, %v2545_v12  ;;  %v1636_v54 = vrot.slane %v16992_v1, 3  ;;  %v2167_v20 = vrot.slane %v2165_v0, 4 }
 0x3b5   : > { %v17061_v2 = vmax.f32 %v16744_v5, %v4583_v62  ;;  %v2848_v5 = vsel %vm2669_vm5, %v16934_v53, %v17052_v33  ;;  %v17096_v59 = vrot.slane %v1104_v50, 1  ;;  %v17130_v50 = vld [vmem:[%s13030_s19 + $0x184] sm:$0xff]  }
 0x3b6   : > { %v17081_v32 = vpop.f32.mrf.mxu1  ;;  %v17118_v10 = vsel %vm1544_vm0, %v1634_v21, %v1636_v54  ;;  %v10962_v21 = vld [vmem:[%s20838_s5 + $0x2d8] sm:$0xf] }
 0x3b7   : > { %v5090_v39 = vrot.slane %v17061_v2, 1  ;;  %20889 = vst [vmem:[#allocation3_spill] sm:$0xff] %v17081_v32  ;;  %2649 = vrot.lane.b32.xlu1 %v2546_v51, %s12951_s25  ;;  %v1107_v51 = vsel %vm743_vm2, %v1102_v29, %v17096_v59  ;;  %v12033_v29 = vld [vmem:[%s20838_s5 + $0x2f0] sm:$0xf0] }
 0x3b8   : > { %2427 = vrot.lane.b32.xlu0 %v17064_v34, %s12946_s20 }
 0x3b9   : > { %v17086_v17 = vpop.f32.mrf.mxu0  ;;  %v5091_v53 = vsel %vm1273_vm1, %v5088_v28, %v5090_v39  ;;  %2977 = vrot.lane.b32.xlu2 %v2848_v5, %s12953_s27  ;;  %v2310_v40 = vpop.permute.xlu1 %2309  ;;  %v5543_v5 = vmax.f32 %v5441_v60, 0.0  ;;  %v10824_v60 = vld [vmem:[%s20838_s5 + $0x1dc] sm:$0xf0] }
 0x3ba   : > { %v4584_v18 = vrot.slane %v17086_v17, 6  ;;  %v1727_v49 = vpop.permute.xlu0 %1726  ;;  %v5337_v22 = vmax.f32 %v16979_v14, %v5091_v53  ;;  %v11978_v14 = vld [vmem:[%s20838_s5 + $0x138] sm:$0xf0] }
 0x3bb   : > { %v3400_v38 = vsel %vm3322_vm8, %v3293_v16, %v1727_v49  ;;  %v17104_v28 = vpop.permute.xlu2 %2641  ;;  %v10747_v3 = vor.u32 %v11978_v14, %v10746_v25  ;;  %v10963_v49 = vor.u32 %v12033_v29, %v10962_v21 }
 0x3bc   : > { %v4585_v23 = vsel %vm4464_vm15, %v4582_v44, %v4584_v18  ;;  %v5442_v62 = vadd.f32 %v16521_v55, %v5337_v22  ;;  %v2164_v44 = vrot.slane %v2162_v30, 3  ;;  %v3507_v53 = vsel %vm3429_vm9, %v3400_v38, %v2310_v40  ;;  %v11995_v22 = vld [vmem:[%s20838_s5 + $0x1c4] sm:$0xf] }
 0x3bd   : > { %v17125_v31 = vmax.f32 %v16778_v13, %v4585_v23  ;;  %v1364_v30 = vsel %vm1273_vm1, %v1361_v15, %v1363_v58  ;;  %v3614_v40 = vsel %vm3536_vm10, %v3507_v53, %v16953_v48  ;;  %v20852_v38 = vshrl.u32 %v17130_v50, 16 }
 0x3be   : > { %v5544_v16 = vmax.f32 %v5442_v62, 0.0  ;;  %v17142_v0 = vpop.f32.mrf.mxu1  ;;  %v17151_v19 = vor.u32 %v2167_v20, %v2164_v44  ;;  %v20851_v62 = vshll.u32 %v17130_v50, 16  ;;  %v10827_v25 = vor.u32 %v11995_v22, %v10824_v60  ;;  %v17202_v60 = vld [vmem:[%s13030_s19 + $0x170] sm:$0xff]  }
 0x3bf   : > { %20890 = vst [vmem:[#allocation4_spill] sm:$0xff] %v17142_v0  ;;  %1255 = vrot.lane.b32.xlu1 %v1107_v51, %s12950_s24  ;;  %v5092_v15 = vrot.slane %v17125_v31, 1  ;;  %v2849_v21 = vrot.slane %v20852_v38, 2  ;;  %v2547_v22 = vrot.slane %v17130_v50, 2 }
 0x3c0   : > { %3087 = vrot.lane.b32.xlu0 %v17118_v10, %s12949_s23  ;;  %v17140_v13 = vpack.c.bf16 %v5544_v16, %v5543_v5 }
 0x3c1   : > { %1467 = vrot.lane.b32.xlu2 %v1364_v30, %s12948_s22  ;;  %v2968_v44 = vpop.permute.xlu1 %2967  ;;  %v5093_v53 = vsel %vm1273_vm1, %v5090_v39, %v5092_v15 }
 0x3c2   : > { %v2640_v23 = vpop.permute.xlu0 %2639  ;;  %6487 = vmatmul.bf16.gmra.mxu1 %v10963_v49  ;;  %6555 = vmatmul.bf16.gmra.mxu2 %v10827_v25 }
 0x3c3   : > { %v3721_v14 = vsel %vm3643_vm11, %v3614_v40, %v2640_v23  ;;  %v17166_v20 = vpop.f32.mrf.mxu0  ;;  %6633 = vmatmul.bf16.gmra.mxu3 %v10747_v3  ;;  %v17170_v48 = vpop.permute.xlu2 %1247  ;;  %v2169_v3 = vsel %vm1756_vm4, %v16997_v61, %v17151_v19 }
 0x3c4   : > { %v3828_v51 = vsel %vm3750_vm12, %v3721_v14, %v2968_v44  ;;  %v20846_v5 = vrot.slane %v17166_v20, 6  ;;  %v17191_v39 = vpop.f32.mrf.mxu2 }
 0x3c5   : > { %v3935_v16 = vsel %vm3857_vm13, %v3828_v51, %v17009_v37  ;;  %v2850_v37 = vrot.slane %v20851_v62, 3  ;;  %v10774_v51 = vld [vmem:[%s20838_s5 + $0x158] sm:$0xf] }
 0x3c6   : > { %v4587_v30 = vsel %vm4464_vm15, %v4584_v18, %v20846_v5  ;;  %10581 = vmatmul.msk.bf16.gmra.mxu0 %vm3975_vm14, %v3935_v16  ;;  %v5338_v18 = vmax.f32 %v17061_v2, %v5093_v53  ;;  %v17196_v49 = vpop.f32.mrf.mxu1  ;;  %v1638_v2 = vrot.slane %v17130_v50, 3  ;;  %v11985_v16 = vld [vmem:[%s20838_s5 + $0x170] sm:$0xf0]  ;;  %v12922_v53 = vld [vmem:[%s13030_s19 + $0x138] sm:$0xff]   ;;  %v2173_v5 = vrot.slane %v2171_v46, 3 }
 0x3c7   : > { %v17189_v29 = vmax.f32 %v16879_v63, %v4587_v30  ;;  %20891 = vst [vmem:[#allocation5_spill] sm:$0xff] %v17196_v49  ;;  %2321 = vrot.lane.b32.xlu1 %v2169_v3, %s12952_s26  ;;  %v17204_v40 = vor.u32 %v2850_v37, %v2849_v21  ;;  %v1112_v3 = vshll.u32 %v17202_v60, 16 }
 0x3c8   : > { %1738 = vrot.lane.b32.xlu0 %v16970_v47, %s12947_s21  ;;  %v5443_v44 = vadd.f32 %v16521_v55, %v5338_v18  ;;  %v17240_v18 = vsel %vm1544_vm0, %v1636_v54, %v1638_v2 }
 0x3c9   : > { %v20845_v61 = vrot.slane %v17189_v29, 1  ;;  %2429 = vrot.lane.b32.xlu2 %v17202_v60, %s12946_s20  ;;  %v1458_v47 = vpop.permute.xlu1 %1457  ;;  %v2852_v21 = vsel %vm2669_vm5, %v17052_v33, %v17204_v40  ;;  %v12040_v33 = vld [vmem:[%s20838_s5 + $0x328] sm:$0xf0] }
 0x3ca   : > { %v1246_v63 = vpop.permute.xlu0 %1245 }
 0x3cb   : > { %v5095_v23 = vsel %vm1273_vm1, %v5092_v15, %v20845_v61  ;;  %v17212_v25 = vpop.permute.xlu2 %2313  ;;  %v3187_v30 = vsel %vm3107_vm6, %v12922_v53, %v1246_v63  ;;  %v2548_v15 = vsel %vm2457_vm3, %v2545_v12, %v2547_v22  ;;  %v10775_v12 = vor.u32 %v11985_v16, %v10774_v51  ;;  %v10852_v51 = vld [vmem:[%s20838_s5 + $0x214] sm:$0xf0]  ;;  %v17264_v16 = vpop.f32.mrf.mxu0 }
 0x3cc   : > { %v5339_v14 = vmax.f32 %v17125_v31, %v5095_v23  ;;  %v1108_v31 = vshrl.u32 %v17064_v34, 16  ;;  %v17242_v63 = vpop.f32.mrf.mxu2  ;;  %v3295_v23 = vsel %vm3215_vm7, %v3187_v30, %v1458_v47  ;;  %v5545_v53 = vmax.f32 %v5443_v44, 0.0  ;;  %v12002_v44 = vld [vmem:[%s20838_s5 + $0x1fc] sm:$0xf] }
 0x3ce   : > { %v5444_v37 = vadd.f32 %v16521_v55, %v5339_v14  ;;  %v17246_v61 = vpop.f32.mrf.mxu1  ;;  %v10990_v55 = vld [vmem:[%s20838_s5 + $0x310] sm:$0xf]  ;;  %v1110_v54 = vor.u32 %v1108_v31, %v17096_v59  ;;  %v17256_v14 = vrot.slane %v1112_v3, 1  ;;  %v10855_v31 = vor.u32 %v12002_v44, %v10852_v51 }
 0x3cf   : > { %20892 = vst [vmem:[#allocation6_spill] sm:$0xff] %v17246_v61  ;;  %2979 = vrot.lane.b32.xlu1 %v2852_v21, %s12953_s27  ;;  %v10991_v47 = vor.u32 %v12040_v33, %v10990_v55  ;;  %v3402_v3 = vsel %vm3322_vm8, %v3295_v23, %v17058_v52 }
 0x3d0   : > { %2651 = vrot.lane.b32.xlu0 %v2548_v15, %s12951_s25  ;;  %v5546_v26 = vmax.f32 %v5444_v37, 0.0  ;;  %v20850_v15 = vrot.slane %v17202_v60, 1  ;;  %v1115_v33 = vsel %vm743_vm2, %v1110_v54, %v17256_v14 }
 0x3d1   : > { %3089 = vrot.lane.b32.xlu2 %v17240_v18, %s12949_s23  ;;  %v2420_v21 = vpop.permute.xlu1 %2419 }
 0x3d2   : > { %v2312_v30 = vpop.permute.xlu0 %2311  ;;  %v17269_v59 = vpack.c.bf16 %v5546_v26, %v5545_v53  ;;  %6492 = vmatmul.bf16.gmra.mxu1 %v10991_v47  ;;  %6560 = vmatmul.bf16.gmra.mxu2 %v10855_v31  ;;  %v2176_v26 = vrot.slane %v2174_v45, 4  ;;  %v17283_v53 = vld [vmem:[%s13030_s19 + $0x18c] sm:$0xff]   ;;  %v1366_v52 = vsel %vm1273_vm1, %v1363_v58, %v20850_v15 }
 0x3d3   : > { %6638 = vmatmul.bf16.gmra.mxu3 %v10775_v12  ;;  %v3509_v37 = vsel %vm3429_vm9, %v3402_v3, %v2312_v30  ;;  %v17274_v55 = vpop.permute.xlu2 %2971  ;;  %v20848_v46 = vshrl.u32 %v17283_v53, 16  ;;  %v20847_v45 = vshll.u32 %v17283_v53, 16  ;;  %v10802_v3 = vld [vmem:[%s20838_s5 + $0x190] sm:$0xf] }
 0x3d4   : > { %v3616_v12 = vsel %vm3536_vm10, %v3509_v37, %v2420_v21  ;;  %v17291_v23 = vpop.f32.mrf.mxu2  ;;  %v17297_v1 = vor.u32 %v2176_v26, %v2173_v5  ;;  %v20849_v5 = vrot.slane %v17283_v53, 2 }
 0x3d5   : > { %v3723_v34 = vsel %vm3643_vm11, %v3616_v12, %v17104_v28  ;;  %v11992_v28 = vld [vmem:[%s20838_s5 + $0x1a8] sm:$0xf0]  ;;  %v2853_v21 = vrot.slane %v20848_v46, 2  ;;  %v2854_v37 = vrot.slane %v20847_v45, 3 }
 0x3d6   : > { %v17294_v54 = vpop.f32.mrf.mxu1  ;;  %v2550_v26 = vsel %vm2457_vm3, %v2547_v22, %v20849_v5 }
 0x3d7   : > { %20893 = vst [vmem:[#allocation7_spill] sm:$0xff] %v17294_v54  ;;  %1469 = vrot.lane.b32.xlu1 %v1366_v52, %s12948_s22  ;;  %v1116_v52 = vshrl.u32 %v17202_v60, 16  ;;  %v17348_v22 = vor.u32 %v2854_v37, %v2853_v21  ;;  %v20853_v21 = vrot.slane %v17283_v53, 3 }
 0x3d8   : > { %1257 = vrot.lane.b32.xlu0 %v1115_v33, %s12950_s24  ;;  %v17327_v33 = vld [vmem:[%s13030_s19 + $0x178] sm:$0xff]  }
 0x3d9   : > { %1740 = vrot.lane.b32.xlu2 %v17118_v10, %s12947_s21  ;;  %v3080_v51 = vpop.permute.xlu1 %3079  ;;  %v2178_v10 = vsel %vm1756_vm4, %v17151_v19, %v17297_v1  ;;  %v10803_v19 = vor.u32 %v11992_v28, %v10802_v3  ;;  %v12009_v3 = vld [vmem:[%s20838_s5 + $0x234] sm:$0xf]  ;;  %v10880_v28 = vld [vmem:[%s20838_s5 + $0x24c] sm:$0xf0]  ;;  %v1118_v62 = vor.u32 %v1116_v52, %v17256_v14  ;;  %v17381_v14 = vsel %vm1544_vm0, %v1638_v2, %v20853_v21 }
 0x3da   : > { %v17303_v58 = vpop.f32.mrf.mxu0  ;;  %v2970_v47 = vpop.permute.xlu0 %2969  ;;  %v10883_v37 = vor.u32 %v12009_v3, %v10880_v28  ;;  %v20895_v52 = vshrl.u32 %v17130_v50, 16  ;;  %v17406_v21 = vld [vmem:[%s13030_s19 + $0x194] sm:$0xff]  }
 0x3db   : > { %v3830_v44 = vsel %vm3750_vm12, %v3723_v34, %v2970_v47  ;;  %v17310_v31 = vpop.permute.xlu2 %1461  ;;  %v11018_v47 = vld [vmem:[%s20838_s5 + $0x348] sm:$0xf] }
 0x3dc   : > { %v3937_v30 = vsel %vm3857_vm13, %v3830_v44, %v3080_v51  ;;  %v17335_v12 = vpop.f32.mrf.mxu2  ;;  %v12047_v44 = vld [vmem:[%s20838_s5 + $0x360] sm:$0xf0]  ;;  %v1120_v51 = vshll.u32 %v17327_v33, 16 }
 0x3dd   : > { %10582 = vmatmul.msk.bf16.gmra.mxu0 %vm3975_vm14, %v3937_v30  ;;  %v11019_v30 = vor.u32 %v12047_v44, %v11018_v47  ;;  %v4588_v47 = vrot.slane %v17264_v16, 6 }
 0x3de   : > { %v17338_v34 = vpop.f32.mrf.mxu1  ;;  %v17374_v3 = vrot.slane %v1120_v51, 1 }
 0x3df   : > { %20894 = vst [vmem:[#allocation8_spill] sm:$0xff] %v17338_v34  ;;  %2431 = vrot.lane.b32.xlu1 %v17327_v33, %s12946_s20  ;;  %v20902_v34 = vrot.slane %v17189_v29, 1 }
 0x3e0   : > { %2323 = vrot.lane.b32.xlu0 %v2178_v10, %s12952_s26  ;;  %v12923_v10 = vld [vmem:[%s13030_s19 + $0x140] sm:$0xff]   ;;  %v1123_v28 = vsel %vm743_vm2, %v1118_v62, %v17374_v3 }
 0x3e1   : > { %v3189_v45 = vsel %vm3107_vm6, %v12923_v10, %v17170_v48  ;;  %2653 = vrot.lane.b32.xlu2 %v2550_v26, %s12951_s25  ;;  %v1731_v15 = vpop.permute.xlu1 %1730  ;;  %v4590_v48 = vrot.slane %v17303_v58, 6  ;;  %v2856_v26 = vsel %vm2669_vm5, %v17204_v40, %v17348_v22 }
 0x3e2   : > { %v17360_v46 = vpop.f32.mrf.mxu0  ;;  %v1460_v5 = vpop.permute.xlu0 %1459  ;;  %6497 = vmatmul.bf16.gmra.mxu1 %v11019_v30  ;;  %6565 = vmatmul.bf16.gmra.mxu2 %v10883_v37  ;;  %v20896_v30 = vshll.u32 %v17130_v50, 16  ;;  %v20855_v50 = vrot.slane %v17327_v33, 1 }
 0x3e3   : > { %v20854_v44 = vrot.slane %v17360_v46, 6  ;;  %6643 = vmatmul.bf16.gmra.mxu3 %v10803_v19  ;;  %v17367_v38 = vpop.permute.xlu2 %2423  ;;  %v3297_v10 = vsel %vm3215_vm7, %v3189_v45, %v1460_v5  ;;  %v2182_v19 = vrot.slane %v20895_v52, 3  ;;  %v20897_v5 = vrot.slane %v17166_v20, 6 }
 0x3e4   : > { %v2185_v45 = vrot.slane %v20896_v30, 4  ;;  %v3404_v2 = vsel %vm3322_vm8, %v3297_v10, %v1731_v15  ;;  %v4591_v30 = vsel %vm4464_vm15, %v4588_v47, %v4590_v48 }
 0x3e5   : > { %v4589_v40 = vsel %vm4464_vm15, %v20897_v5, %v4588_v47  ;;  %v4593_v51 = vsel %vm4464_vm15, %v4590_v48, %v20854_v44  ;;  %v17395_v37 = vpop.f32.mrf.mxu2  ;;  %v10830_v47 = vld [vmem:[%s20838_s5 + $0x1c8] sm:$0xf]  ;;  %v11999_v48 = vld [vmem:[%s20838_s5 + $0x1e0] sm:$0xf0] }
 0x3e6   : > { %v17399_v52 = vpop.f32.mrf.mxu1  ;;  %v17410_v62 = vmax.f32 %v17086_v17, %v4593_v51  ;;  %v17413_v15 = vmax.f32 %v16943_v43, %v4589_v40  ;;  %v17415_v10 = vor.u32 %v2185_v45, %v2182_v19  ;;  %v20857_v43 = vshrl.u32 %v17406_v21, 16 }
 0x3e7   : > { %20898 = vst [vmem:[#allocation9_spill] sm:$0xff] %v17399_v52  ;;  %3091 = vrot.lane.b32.xlu1 %v17381_v14, %s12949_s23  ;;  %v20856_v19 = vshll.u32 %v17406_v21, 16  ;;  %v17431_v45 = vmax.f32 %v17041_v42, %v4591_v30  ;;  %v10831_v42 = vor.u32 %v11999_v48, %v10830_v47  ;;  %v12016_v47 = vld [vmem:[%s20838_s5 + $0x26c] sm:$0xf] }
 0x3e8   : > { %2981 = vrot.lane.b32.xlu0 %v2856_v26, %s12953_s27  ;;  %v3511_v26 = vsel %vm3429_vm9, %v3404_v2, %v17212_v25  ;;  %v20899_v25 = vrot.slane %v17202_v60, 1  ;;  %v5096_v2 = vrot.slane %v17413_v15, 1  ;;  %v2857_v60 = vrot.slane %v20857_v43, 2 }
 0x3e9   : > { %1259 = vrot.lane.b32.xlu2 %v1123_v28, %s12950_s24  ;;  %v2644_v44 = vpop.permute.xlu1 %2643  ;;  %v5100_v28 = vrot.slane %v17410_v62, 1  ;;  %v5098_v48 = vrot.slane %v17431_v45, 1 }
 0x3ea   : > { %v2422_v5 = vpop.permute.xlu0 %2421  ;;  %v1368_v40 = vsel %vm1273_vm1, %v20899_v25, %v20855_v50  ;;  %v2858_v25 = vrot.slane %v20856_v19, 3  ;;  %v5097_v61 = vsel %vm1273_vm1, %v20902_v34, %v5096_v2  ;;  %v1124_v34 = vshrl.u32 %v17327_v33, 16 }
 0x3eb   : > { %v3618_v17 = vsel %vm3536_vm10, %v3511_v26, %v2422_v5  ;;  %v17426_v51 = vpop.permute.xlu2 %3083  ;;  %v2187_v5 = vsel %vm1756_vm4, %v17297_v1, %v17415_v10  ;;  %v17446_v26 = vld [vmem:[%s20838_s5 + $0x380] sm:$0x11] }
 0x3ec   : > { %20900 = vst [vmem:[#allocation10_spill] sm:$0xff] %v17446_v26  ;;  %v3725_v30 = vsel %vm3643_vm11, %v3618_v17, %v2644_v44  ;;  %v6128_v50 = vunpack.c.l.b16 %v17446_v26  ;;  %v10908_v44 = vld [vmem:[%s20838_s5 + $0x284] sm:$0xf0]  ;;  %v17509_v26 = vld [vmem:[%s13030_s19 + $0x198] sm:$0xff]  }
 0x3ed   : > { %v17454_v52 = vpop.f32.mrf.mxu2  ;;  %v10911_v43 = vor.u32 %v12016_v47, %v10908_v44  ;;  %v5101_v47 = vsel %vm1273_vm1, %v5098_v48, %v5100_v28  ;;  %v17480_v44 = vor.u32 %v2858_v25, %v2857_v60  ;;  %v17493_v60 = vld [vmem:[%s13030_s19 + $0x180] sm:$0xff]   ;;  %v6517_v25 = vadd.f32 %v17191_v39, %v16606_v9  ;;  %20905 = vst [vmem:[#allocation12_spill] sm:$0xff] %v17509_v26 }
 0x3ee   : > { %v6247_v19 = vpack.c.b16 %v6128_v50, %v6128_v50  ;;  %v20860_v39 = vrot.slane %v17406_v21, 3 }
 0x3ef   : > { %v17457_v1 = vpop.f32.mrf.mxu1  ;;  %1742 = vrot.lane.b32.xlu1 %v17240_v18, %s12947_s21 }
 0x3f0   : > { %1471 = vrot.lane.b32.xlu0 %v1368_v40, %s12948_s22  ;;  %20901 = vst [vmem:[#allocation11_spill] sm:$0xff] %v17457_v1  ;;  %v3832_v40 = vsel %vm3750_vm12, %v3725_v30, %v17274_v55  ;;  %v20859_v1 = vrot.slane %v17406_v21, 2  ;;  %v20903_v55 = vrot.slane %v17360_v46, 6 }
 0x3f1   : > { %v17468_v17 = vpop.f32.mrf.mxu0  ;;  %2325 = vrot.lane.b32.xlu2 %v2187_v5, %s12952_s26  ;;  %v1250_v50 = vpop.permute.xlu1 %1249 }
 0x3f2   : > { %v4594_v54 = vrot.slane %v17468_v17, 6  ;;  %v3082_v49 = vpop.permute.xlu0 %3081  ;;  %6502 = vmatmul.bf16.gmra.mxu1 %v6247_v19  ;;  %6570 = vmatmul.bf16.gmra.mxu2 %v10911_v43  ;;  %v5099_v19 = vsel %vm1273_vm1, %v5096_v2, %v5098_v48  ;;  %v17512_v2 = vld [vmem:[%s13030_s19 + $0x1a0] sm:$0xff]  }
 0x3f3   : > { %v3939_v18 = vsel %vm3857_vm13, %v3832_v40, %v3082_v49  ;;  %6648 = vmatmul.bf16.gmra.mxu3 %v10831_v42  ;;  %v17487_v5 = vpop.permute.xlu2 %1734  ;;  %v5340_v42 = vmax.f32 %v17189_v29, %v5097_v61  ;;  %v12924_v40 = vld [vmem:[%s13030_s19 + $0x148] sm:$0xff]   ;;  %20906 = vst [vmem:[#allocation13_spill] sm:$0xff] %v17512_v2  ;;  %v2860_v61 = vsel %vm2669_vm5, %v17348_v22, %v17480_v44 }
 0x3f4   : > { %v4595_v30 = vsel %vm4464_vm15, %v20903_v55, %v4594_v54  ;;  %10583 = vmatmul.msk.bf16.gmra.mxu0 %vm3975_vm14, %v3939_v18  ;;  %v3191_v18 = vsel %vm3107_vm6, %v12924_v40, %v1250_v50  ;;  %v20904_v55 = vrot.slane %v17283_v53, 2 }
 0x3f5   : > { %v17490_v49 = vmax.f32 %v17166_v20, %v4595_v30  ;;  %v1128_v20 = vshll.u32 %v17493_v60, 16  ;;  %v5342_v30 = vmax.f32 %v17431_v45, %v5101_v47  ;;  %v17519_v48 = vpop.f32.mrf.mxu2  ;;  %v1126_v45 = vor.u32 %v1124_v34, %v17374_v3 }
 0x3f6   : > { %v2552_v43 = vsel %vm2457_vm3, %v20904_v55, %v20859_v1  ;;  %v6609_v29 = vpop.f32.mrf.mxu3  ;;  %v5341_v47 = vmax.f32 %v17413_v15, %v5099_v19  ;;  %v3299_v55 = vsel %vm3215_vm7, %v3191_v18, %v17310_v31  ;;  %v17546_v31 = vld [vmem:[%s20835_s2] ss:$0 sm:$0xff] }
 0x3f7   : > { %v5102_v9 = vrot.slane %v17490_v49, 1  ;;  %v17521_v50 = vadd.f32 %v6609_v29, %v6517_v25  ;;  %v17527_v40 = vpop.f32.mrf.mxu1  ;;  %2655 = vrot.lane.b32.xlu1 %v2552_v43, %s12951_s25  ;;  %v12468_v25 = vunpack.c.h.b16 %v17509_v26  ;;  %v17537_v29 = vunpack.c.l.b16 %v17512_v2 }
 0x3f8   : > { %2433 = vrot.lane.b32.xlu0 %v17493_v60, %s12946_s20  ;;  %20908 = vst [vmem:[#allocation15_spill] sm:$0xff] %v17527_v40  ;;  %v17540_v15 = vrot.slane %v1128_v20, 1  ;;  %v5447_v18 = vadd.f32 %v17546_v31, %v5342_v30  ;;  %v20910_v43 = vrot.slane %v17283_v53, 3  ;;  %v5445_v20 = vadd.f32 %v17546_v31, %v5340_v42  ;;  %v10858_v30 = vld [vmem:[%s20838_s5 + $0x200] sm:$0xf] }
 0x3f9   : > { %20907 = vst [vmem:[#allocation14_spill] sm:$0xff] %v17521_v50  ;;  %v17532_v1 = vpop.f32.mrf.mxu0  ;;  %v5103_v22 = vsel %vm1273_vm1, %v5100_v28, %v5102_v9  ;;  %2983 = vrot.lane.b32.xlu2 %v2860_v61, %s12953_s27  ;;  %v2316_v28 = vpop.permute.xlu1 %2315  ;;  %v12006_v61 = vld [vmem:[%s20838_s5 + $0x218] sm:$0xf0]  ;;  %v20913_v2 = vshll.u32 %v17283_v53, 16  ;;  %v17580_v32 = vpack.c.b16 %v17537_v29, %v12468_v25 }
 0x3fa   : > { %20909 = vst [vmem:[#allocation16_spill] sm:$0xff] %v17537_v29  ;;  %v1733_v34 = vpop.permute.xlu0 %1732  ;;  %v5343_v19 = vmax.f32 %v17410_v62, %v5103_v22  ;;  %v17555_v3 = vsel %vm1544_vm0, %v20910_v43, %v20860_v39  ;;  %v6519_v22 = vadd.f32 %v17242_v63, %v16659_v7  ;;  %v20911_v40 = vrot.slane %v17532_v1, 6 }
 0x3fb   : > { %v3406_v39 = vsel %vm3322_vm8, %v3299_v55, %v1733_v34  ;;  %v5446_v62 = vadd.f32 %v17546_v31, %v5341_v47  ;;  %v17573_v50 = vpop.permute.xlu2 %2647  ;;  %v20912_v7 = vshrl.u32 %v17283_v53, 16  ;;  %v2194_v0 = vrot.slane %v20913_v2, 4 }
 0x3fc   : > { %v4597_v43 = vsel %vm4464_vm15, %v4594_v54, %v20911_v40  ;;  %v5448_v42 = vadd.f32 %v17546_v31, %v5343_v19  ;;  %v1131_v54 = vsel %vm743_vm2, %v1126_v45, %v17540_v15  ;;  %v5549_v40 = vmax.f32 %v5447_v18, 0.0 }
 0x3fd   : > { %v2191_v63 = vrot.slane %v20912_v7, 3  ;;  %v17583_v26 = vmax.f32 %v17264_v16, %v4597_v43  ;;  %v10859_v34 = vor.u32 %v12006_v61, %v10858_v30  ;;  %v3513_v19 = vsel %vm3429_vm9, %v3406_v39, %v2316_v28  ;;  %v17593_v25 = vpop.f32.mrf.mxu2  ;;  %v12023_v61 = vld [vmem:[%s20838_s5 + $0x2a4] sm:$0xf] }
 0x3fe   : > { %v5550_v55 = vmax.f32 %v5448_v42, 0.0  ;;  %v6611_v47 = vpop.f32.mrf.mxu3  ;;  %v20914_v7 = vrot.slane %v17493_v60, 1  ;;  %v20915_v53 = vrot.slane %v17327_v33, 1  ;;  %v5548_v18 = vmax.f32 %v5446_v62, 0.0 }
 0x3ff   : > { %v5104_v16 = vrot.slane %v17583_v26, 1  ;;  %v17596_v43 = vadd.f32 %v6611_v47, %v6519_v22  ;;  %v17600_v30 = vpop.f32.mrf.mxu1  ;;  %1261 = vrot.lane.b32.xlu1 %v1131_v54, %s12950_s24  ;;  %v5547_v39 = vmax.f32 %v5445_v20, 0.0  ;;  %v17603_v28 = vor.u32 %v2194_v0, %v2191_v63  ;;  %v10936_v22 = vld [vmem:[%s20838_s5 + $0x2bc] sm:$0xf0] }
 0x400   : > { %v1370_v2 = vsel %vm1273_vm1, %v20915_v53, %v20914_v7  ;;  %3093 = vrot.lane.b32.xlu0 %v17555_v3, %s12949_s23  ;;  %v5752_v45 = vpack.c.bf16 %v5550_v55, %v5549_v40  ;;  %v20866_v33 = vshrl.u32 %v17580_v32, 16  ;;  %v3620_v62 = vsel %vm3536_vm10, %v3513_v19, %v17367_v38 }
 0x401   : > { %v5105_v42 = vsel %vm1273_vm1, %v5102_v9, %v5104_v16  ;;  %v20865_v0 = vshll.u32 %v17580_v32, 16  ;;  %1473 = vrot.lane.b32.xlu2 %v1370_v2, %s12948_s22  ;;  %v10939_v20 = vor.u32 %v12023_v61, %v10936_v22  ;;  %v2974_v55 = vpop.permute.xlu1 %2973  ;;  %v5751_v38 = vpack.c.bf16 %v5548_v18, %v5547_v39 }
 0x402   : > { %6693 = vmatpush.bf16.msrb.mxu1 %v5752_v45  ;;  %v2646_v54 = vpop.permute.xlu0 %2645  ;;  %v5344_v63 = vmax.f32 %v17490_v49, %v5105_v42  ;;  %v6522_v49 = vadd.f32 %v17291_v23, %v16717_v36  ;;  %v20916_v2 = vrot.slane %v17532_v1, 6  ;;  %v2861_v18 = vrot.slane %v20866_v33, 2 }
 0x403   : > { %v3727_v40 = vsel %vm3643_vm11, %v3620_v62, %v2646_v54  ;;  %v17619_v47 = vpop.f32.mrf.mxu0  ;;  %6653 = vmatmul.bf16.gmra.mxu3 %v10859_v34  ;;  %v17623_v19 = vpop.permute.xlu2 %1253  ;;  %6575 = vmatmul.bf16.gmra.mxu2 %v10939_v20  ;;  %v2196_v34 = vsel %vm1756_vm4, %v17415_v10, %v17603_v28  ;;  %v2553_v42 = vrot.slane %v17580_v32, 2  ;;  %v17655_v62 = vld [vmem:[%s13030_s19 + $0x188] sm:$0xff]  }
 0x404   : > { %v3834_v9 = vsel %vm3750_vm12, %v3727_v40, %v2974_v55  ;;  %v4598_v7 = vrot.slane %v17619_v47, 6  ;;  %v20867_v40 = vrot.slane %v17580_v32, 3 }
 0x405   : > { %v3941_v53 = vsel %vm3857_vm13, %v3834_v9, %v17426_v51  ;;  %v2862_v51 = vrot.slane %v20865_v0, 3  ;;  %v17643_v23 = vpop.f32.mrf.mxu2 }
 0x406   : > { %v4599_v45 = vsel %vm4464_vm15, %v20916_v2, %v4598_v7  ;;  %10584 = vmatmul.msk.bf16.gmra.mxu0 %vm3975_vm14, %v3941_v53  ;;  %6694 = vmatpush.bf16.msrb.mxu1 %v5751_v38  ;;  %v6614_v39 = vpop.f32.mrf.mxu3  ;;  %v1132_v38 = vshrl.u32 %v17493_v60, 16  ;;  %v10886_v2 = vld [vmem:[%s20838_s5 + $0x238] sm:$0xf] }
 0x407   : > { %v17641_v36 = vmax.f32 %v17303_v58, %v4599_v45  ;;  %v17645_v61 = vadd.f32 %v6614_v39, %v6522_v49  ;;  %v17649_v22 = vpop.f32.mrf.mxu1  ;;  %2327 = vrot.lane.b32.xlu1 %v2196_v34, %s12952_s26  ;;  %v17658_v54 = vor.u32 %v2862_v51, %v2861_v18  ;;  %v12013_v45 = vld [vmem:[%s20838_s5 + $0x250] sm:$0xf0]  ;;  %v20918_v18 = vrot.slane %v17406_v21, 2 }
 0x408   : > { %1744 = vrot.lane.b32.xlu0 %v17381_v14, %s12947_s21  ;;  %20917 = vst [vmem:[#allocation17_spill] sm:$0xff] %v17649_v22  ;;  %v10887_v0 = vor.u32 %v12013_v45, %v10886_v2 }
 0x409   : > { %v5106_v10 = vrot.slane %v17641_v36, 1  ;;  %2435 = vrot.lane.b32.xlu2 %v17655_v62, %s12946_s20  ;;  %v1464_v14 = vpop.permute.xlu1 %1463  ;;  %v2554_v51 = vsel %vm2457_vm3, %v20918_v18, %v2553_v42  ;;  %v2864_v39 = vsel %vm2669_vm5, %v17480_v44, %v17658_v54 }
 0x40a   : > { %6695 = vmatpush.bf16.msrb.mxu1 %v17269_v59  ;;  %v1252_v58 = vpop.permute.xlu0 %1251  ;;  %v6524_v59 = vadd.f32 %v17335_v12, %v16769_v41  ;;  %v1136_v41 = vshll.u32 %v17655_v62, 16  ;;  %v5449_v12 = vadd.f32 %v17546_v31, %v5344_v63 }
 0x40b   : > { %v17662_v20 = vpop.f32.mrf.mxu0  ;;  %v5107_v55 = vsel %vm1273_vm1, %v5104_v16, %v5106_v10  ;;  %v17668_v53 = vpop.permute.xlu2 %2319  ;;  %v12926_v16 = vld [vmem:[%s13030_s19 + $0x150] sm:$0xff]  }
 0x40c   : > { %v4600_v9 = vrot.slane %v17662_v20, 6  ;;  %v5345_v49 = vmax.f32 %v17583_v26, %v5107_v55  ;;  %v3193_v34 = vsel %vm3107_vm6, %v12926_v16, %v1252_v58  ;;  %v20919_v16 = vrot.slane %v17406_v21, 3 }
 0x40d   : > { %v17703_v63 = vpop.f32.mrf.mxu2  ;;  %v3301_v44 = vsel %vm3215_vm7, %v3193_v34, %v1464_v14 }
 0x40e   : > { %v4601_v26 = vsel %vm4464_vm15, %v4598_v7, %v4600_v9  ;;  %6696 = vmatpush.bf16.msrb.mxu1 %v17140_v13  ;;  %v5450_v58 = vadd.f32 %v17546_v31, %v5345_v49  ;;  %v6616_v55 = vpop.f32.mrf.mxu3  ;;  %v17701_v18 = vsel %vm1544_vm0, %v20919_v16, %v20867_v40  ;;  %v1134_v49 = vor.u32 %v1132_v38, %v17540_v15  ;;  %v12030_v16 = vld [vmem:[%s20838_s5 + $0x2dc] sm:$0xf] }
 0x40f   : > { %v17706_v7 = vmax.f32 %v17360_v46, %v4601_v26  ;;  %v17708_v13 = vadd.f32 %v6616_v55, %v6524_v59  ;;  %v17713_v33 = vpop.f32.mrf.mxu1  ;;  %2985 = vrot.lane.b32.xlu1 %v2864_v39, %s12953_s27  ;;  %v17719_v40 = vrot.slane %v1136_v41, 1  ;;  %v10964_v46 = vld [vmem:[%s20838_s5 + $0x2f4] sm:$0xf0]  ;;  %v5551_v59 = vmax.f32 %v5449_v12, 0.0  ;;  %v17740_v26 = vld [vmem:[%s13030_s19 + $0x1a4] sm:$0xff]  }
 0x410   : > { %2657 = vrot.lane.b32.xlu0 %v2554_v51, %s12951_s25  ;;  %v5552_v2 = vmax.f32 %v5450_v58, 0.0  ;;  %v20871_v38 = vrot.slane %v17655_v62, 1  ;;  %v10967_v45 = vor.u32 %v12030_v16, %v10964_v46  ;;  %v3408_v34 = vsel %vm3322_vm8, %v3301_v44, %v17487_v5 }
 0x411   : > { %v5108_v14 = vrot.slane %v17706_v7, 1  ;;  %3095 = vrot.lane.b32.xlu2 %v17701_v18, %s12949_s23  ;;  %v2426_v51 = vpop.permute.xlu1 %2425  ;;  %v1139_v5 = vsel %vm743_vm2, %v1134_v49, %v17719_v40  ;;  %v20920_v55 = vshrl.u32 %v17406_v21, 16  ;;  %v20921_v44 = vshll.u32 %v17406_v21, 16 }
 0x412   : > { %6697 = vmatpush.bf16.msrb.mxu1 %v16989_v24  ;;  %v2318_v15 = vpop.permute.xlu0 %2317  ;;  %v17736_v12 = vpack.c.bf16 %v5552_v2, %v5551_v59  ;;  %v20922_v46 = vrot.slane %v17493_v60, 1  ;;  %v20869_v21 = vshrl.u32 %v17740_v26, 16  ;;  %v20942_v22 = vshll.u32 %v17740_v26, 16 }
 0x413   : > { %v17734_v41 = vsel %vm1273_vm1, %v5106_v10, %v5108_v14  ;;  %6658 = vmatmul.bf16.gmra.mxu3 %v10887_v0  ;;  %v3515_v24 = vsel %vm3429_vm9, %v3408_v34, %v2318_v15  ;;  %v17742_v39 = vpop.permute.xlu2 %2977  ;;  %6580 = vmatmul.bf16.gmra.mxu2 %v10967_v45  ;;  %v2200_v10 = vrot.slane %v20920_v55, 3  ;;  %v2203_v16 = vrot.slane %v20921_v44, 4 }
 0x414   : > { %v5346_v58 = vmax.f32 %v17641_v36, %v17734_v41  ;;  %v6527_v0 = vadd.f32 %v17395_v37, %v16824_v11  ;;  %v1372_v59 = vsel %vm1273_vm1, %v20922_v46, %v20871_v38  ;;  %v3622_v49 = vsel %vm3536_vm10, %v3515_v24, %v2426_v51  ;;  %v11940_v24 = vld [vmem:[%s20838_s5 + $0xc] sm:$0xf]  ;;  %v10914_v46 = vld [vmem:[%s20838_s5 + $0x270] sm:$0xf] }
 0x415   : > { %v17761_v15 = vpop.f32.mrf.mxu2  ;;  %v20868_v11 = vshll.u32 %v17740_v26, 16  ;;  %v17771_v37 = vor.u32 %v2203_v16, %v2200_v10  ;;  %v3729_v60 = vsel %vm3643_vm11, %v3622_v49, %v17573_v50 }
 0x416   : > { %6698 = vmatpush.bf16.msrb.mxu1 %v16848_v8  ;;  %v6619_v2 = vpop.f32.mrf.mxu3 }
 0x417   : > { %v17763_v45 = vadd.f32 %v6619_v2, %v6527_v0  ;;  %v17768_v8 = vpop.f32.mrf.mxu1  ;;  %1475 = vrot.lane.b32.xlu1 %v1372_v59, %s12948_s22  ;;  %v2866_v16 = vrot.slane %v20868_v11, 3  ;;  %v12020_v59 = vld [vmem:[%s20838_s5 + $0x288] sm:$0xf0]  ;;  %v2205_v49 = vsel %vm1756_vm4, %v17603_v28, %v17771_v37  ;;  %v1140_v28 = vshrl.u32 %v17655_v62, 16 }
 0x418   : > { %1263 = vrot.lane.b32.xlu0 %v1139_v5, %s12950_s24  ;;  %20923 = vst [vmem:[#allocation18_spill] sm:$0xff] %v17768_v8  ;;  %v10608_v5 = vld [vmem:[%s20838_s5 + $0x24] sm:$0xf0] }
 0x419   : > { %1746 = vrot.lane.b32.xlu2 %v17555_v3, %s12947_s21  ;;  %v3086_v10 = vpop.permute.xlu1 %3085  ;;  %v2865_v3 = vrot.slane %v20869_v21, 2  ;;  %v5451_v21 = vadd.f32 %v17546_v31, %v5346_v58 }
 0x41a   : > { %v17775_v34 = vpop.f32.mrf.mxu0  ;;  %6699 = vmatpush.bf16.msrb.mxu1 %v16725_v6  ;;  %v2976_v51 = vpop.permute.xlu0 %2975  ;;  %v20870_v6 = vrot.slane %v17740_v26, 2 }
 0x41b   : > { %v4602_v55 = vrot.slane %v17775_v34, 6  ;;  %v3836_v50 = vsel %vm3750_vm12, %v3729_v60, %v2976_v51  ;;  %v17794_v0 = vpop.permute.xlu2 %1467  ;;  %v6529_v60 = vadd.f32 %v17454_v52, %v16870_v57  ;;  %v10611_v51 = vor.u32 %v11940_v24, %v10608_v5  ;;  %v467_v5 = vld [vmem:[%s13030_s19 + $0x1b0] sm:$0xf] }
 0x41c   : > { %v3943_v44 = vsel %vm3857_vm13, %v3836_v50, %v3086_v10  ;;  %v17816_v10 = vld [vmem:[%s13030_s19 + $0x190] sm:$0xff]  }
 0x41d   : > { %v4603_v2 = vsel %vm4464_vm15, %v4600_v9, %v4602_v55  ;;  %10585 = vmatmul.msk.bf16.gmra.mxu0 %vm3975_vm14, %v3943_v44  ;;  %v2556_v9 = vsel %vm2457_vm3, %v2553_v42, %v20870_v6  ;;  %v17824_v57 = vpop.f32.mrf.mxu2  ;;  %v17838_v42 = vld [vmem:[%s13030_s19 + $0x1a8] sm:$0xff]  }
 0x41e   : > { %v17812_v50 = vmax.f32 %v17468_v17, %v4603_v2  ;;  %6700 = vmatpush.bf16.msrb.mxu1 %v16562_v56  ;;  %v6621_v11 = vpop.f32.mrf.mxu3  ;;  %20924 = vst [vmem:[#allocation19_spill] sm:$0xff] %v17824_v57  ;;  %v10915_v17 = vor.u32 %v12020_v59, %v10914_v46  ;;  %v17830_v56 = vor.u32 %v2866_v16, %v2865_v3  ;;  %v12037_v46 = vld [vmem:[%s20838_s5 + $0x314] sm:$0xf]  ;;  %v10992_v3 = vld [vmem:[%s20838_s5 + $0x32c] sm:$0xf0]  ;;  %v12927_v16 = vld [vmem:[%s13030_s19 + $0x158] sm:$0xff]   ;;  %v12476_v41 = vunpack.c.h.b16 %v17838_v42 }
 0x41f   : > { %v17826_v52 = vadd.f32 %v6621_v11, %v6529_v60  ;;  %v17833_v44 = vpop.f32.mrf.mxu1  ;;  %2437 = vrot.lane.b32.xlu1 %v17816_v10, %s12946_s20  ;;  %v1144_v11 = vshll.u32 %v17816_v10, 16  ;;  %v3195_v59 = vsel %vm3107_vm6, %v12927_v16, %v17623_v19  ;;  %v10995_v60 = vor.u32 %v12037_v46, %v10992_v3 }
 0x420   : > { %v5110_v24 = vrot.slane %v17812_v50, 1  ;;  %2329 = vrot.lane.b32.xlu0 %v2205_v49, %s12952_s26  ;;  %v1142_v19 = vor.u32 %v1140_v28, %v17719_v40  ;;  %v20926_v46 = vrot.slane %v17580_v32, 3  ;;  %v6532_v40 = vadd.f32 %v17519_v48, %v16921_v35 }
 0x421   : > { %6701 = vmatmul.bf16.vlgmr.msrb.gmra.mxu1 %v10611_v51  ;;  %2659 = vrot.lane.b32.xlu2 %v2556_v9, %s12951_s25  ;;  %v1737_v38 = vpop.permute.xlu1 %1736  ;;  %v2868_v9 = vsel %vm2669_vm5, %v17658_v54, %v17830_v56  ;;  %v17883_v28 = vrot.slane %v1144_v11, 1  ;;  %v17886_v3 = vunpack.c.l.b16 %v467_v5  ;;  %v5553_v35 = vmax.f32 %v5451_v21, 0.0 }
 0x422   : > { %v17850_v2 = vpop.f32.mrf.mxu0  ;;  %v1466_v49 = vpop.permute.xlu0 %1465  ;;  %v5111_v51 = vsel %vm1273_vm1, %v5108_v14, %v5110_v24  ;;  %v20925_v14 = vrot.slane %v17740_v26, 3 }
 0x423   : > { %v20873_v6 = vrot.slane %v17850_v2, 6  ;;  %v5347_v16 = vmax.f32 %v17706_v7, %v5111_v51  ;;  %6663 = vmatmul.bf16.gmra.mxu3 %v10915_v17  ;;  %v17875_v58 = vpop.permute.xlu2 %2429  ;;  %6585 = vmatmul.bf16.gmra.mxu2 %v10995_v60  ;;  %v3303_v54 = vsel %vm3215_vm7, %v3195_v59, %v1466_v49  ;;  %v20927_v51 = vshrl.u32 %v17580_v32, 16 }
 0x424   : > { %v17872_v36 = vsel %vm1544_vm0, %v20926_v46, %v20925_v14  ;;  %v20928_v46 = vshll.u32 %v17580_v32, 16  ;;  %v1147_v60 = vsel %vm743_vm2, %v1142_v19, %v17883_v28  ;;  %v3410_v5 = vsel %vm3322_vm8, %v3303_v54, %v1737_v38 }
 0x425   : > { %v4605_v7 = vsel %vm4464_vm15, %v4602_v55, %v20873_v6  ;;  %v5452_v17 = vadd.f32 %v17546_v31, %v5347_v16  ;;  %v2209_v14 = vrot.slane %v20927_v51, 3  ;;  %v17894_v55 = vpop.f32.mrf.mxu2  ;;  %v20874_v32 = vrot.slane %v17816_v10, 1  ;;  %v12027_v51 = vld [vmem:[%s20838_s5 + $0x2c0] sm:$0xf0] }
 0x426   : > { %v2212_v8 = vrot.slane %v20928_v46, 4  ;;  %v6624_v48 = vpop.f32.mrf.mxu3  ;;  %v17897_v11 = vmax.f32 %v17532_v1, %v4605_v7  ;;  %v17912_v7 = vpack.c.b16 %v17886_v3, %v12476_v41  ;;  %v3517_v54 = vsel %vm3429_vm9, %v3410_v5, %v17668_v53 }
 0x427   : > { %v5554_v59 = vmax.f32 %v5452_v17, 0.0  ;;  %v17899_v49 = vadd.f32 %v6624_v48, %v6532_v40  ;;  %v17903_v16 = vpop.f32.mrf.mxu1  ;;  %3097 = vrot.lane.b32.xlu1 %v17872_v36, %s12949_s23  ;;  %v10636_v40 = vld [vmem:[%s20838_s5 + $0x5c] sm:$0xf0] }
 0x428   : > { %2987 = vrot.lane.b32.xlu0 %v2868_v9, %s12953_s27  ;;  %20929 = vst [vmem:[#allocation20_spill] sm:$0xff] %v17903_v16  ;;  %v20872_v21 = vrot.slane %v17897_v11, 1  ;;  %v17915_v38 = vor.u32 %v2212_v8, %v2209_v14  ;;  %v11947_v9 = vld [vmem:[%s20838_s5 + $0x44] sm:$0xf]  ;;  %v10942_v8 = vld [vmem:[%s20838_s5 + $0x2a8] sm:$0xf] }
 0x429   : > { %v17909_v19 = vpack.c.bf16 %v5554_v59, %v5553_v35  ;;  %1265 = vrot.lane.b32.xlu2 %v1147_v60, %s12950_s24  ;;  %v2650_v17 = vpop.permute.xlu1 %2649  ;;  %v20876_v53 = vshrl.u32 %v17912_v7, 16  ;;  %v20875_v35 = vshll.u32 %v17912_v7, 16  ;;  %v6534_v60 = vadd.f32 %v17593_v25, %v16983_v27 }
 0x42a   : > { %v2428_v1 = vpop.permute.xlu0 %2427  ;;  %v17928_v41 = vsel %vm1273_vm1, %v5110_v24, %v20872_v21  ;;  %v20930_v24 = vrot.slane %v17655_v62, 1  ;;  %v10639_v59 = vor.u32 %v11947_v9, %v10636_v40  ;;  %v10943_v21 = vor.u32 %v12027_v51, %v10942_v8  ;;  %v11020_v9 = vld [vmem:[%s20838_s5 + $0x364] sm:$0xf0] }
 0x42b   : > { %v3624_v14 = vsel %vm3536_vm10, %v3517_v54, %v2428_v1  ;;  %v17937_v46 = vpop.permute.xlu2 %3089  ;;  %v5348_v5 = vmax.f32 %v17812_v50, %v17928_v41  ;;  %v2214_v1 = vsel %vm1756_vm4, %v17771_v37, %v17915_v38  ;;  %v2869_v62 = vrot.slane %v20876_v53, 2  ;;  %v12044_v37 = vld [vmem:[%s20838_s5 + $0x34c] sm:$0xf] }
 0x42c   : > { %v1374_v48 = vsel %vm1273_vm1, %v20930_v24, %v20874_v32  ;;  %v3731_v6 = vsel %vm3643_vm11, %v3624_v14, %v2650_v17  ;;  %v2870_v24 = vrot.slane %v20875_v35, 3  ;;  %v20877_v8 = vrot.slane %v17912_v7, 2 }
 0x42d   : > { %v17958_v32 = vpop.f32.mrf.mxu2  ;;  %v3838_v40 = vsel %vm3750_vm12, %v3731_v6, %v17742_v39  ;;  %v11023_v51 = vor.u32 %v12044_v37, %v11020_v9  ;;  %v20935_v9 = vld [vmem:[#allocation12_spill] sm:$0xff] }
 0x42e   : > { %v6626_v54 = vpop.f32.mrf.mxu3  ;;  %20931 = vst [vmem:[#allocation21_spill] sm:$0xff] %v17958_v32  ;;  %v2221_v32 = vrot.slane %v20942_v22, 4 }
 0x42f   : > { %v17960_v27 = vadd.f32 %v6626_v54, %v6534_v60  ;;  %v17963_v25 = vpop.f32.mrf.mxu1  ;;  %1748 = vrot.lane.b32.xlu1 %v17701_v18, %s12947_s21  ;;  %v20933_v60 = vrot.slane %v17850_v2, 6  ;;  %v6537_v54 = vadd.f32 %v17643_v23, %v17028_v4  ;;  %v18014_v23 = vrot.slane %v17912_v7, 3 }
 0x430   : > { %1477 = vrot.lane.b32.xlu0 %v1374_v48, %s12948_s22  ;;  %v17981_v48 = vor.u32 %v2870_v24, %v2869_v62  ;;  %v12928_v62 = vld [vmem:[%s13030_s19 + $0x160] sm:$0xff]   ;;  %v20934_v24 = vrot.slane %v17740_v26, 2 }
 0x431   : > { %20932 = vst [vmem:[#allocation22_spill] sm:$0xff] %v17960_v27  ;;  %v17970_v50 = vpop.f32.mrf.mxu0  ;;  %6706 = vmatmul.bf16.gmra.mxu1 %v10639_v59  ;;  %2331 = vrot.lane.b32.xlu2 %v2214_v1, %s12952_s26  ;;  %v1256_v14 = vpop.permute.xlu1 %1255  ;;  %v1148_v1 = vshrl.u32 %v17816_v10, 16 }
 0x432   : > { %v4606_v17 = vrot.slane %v17970_v50, 6  ;;  %v3088_v41 = vpop.permute.xlu0 %3087  ;;  %v2558_v37 = vsel %vm2457_vm3, %v20934_v24, %v20877_v8  ;;  %v12034_v8 = vld [vmem:[%s20838_s5 + $0x2f8] sm:$0xf0] }
 0x433   : > { %v3945_v18 = vsel %vm3857_vm13, %v3838_v40, %v3088_v41  ;;  %6668 = vmatmul.bf16.gmra.mxu3 %v10943_v21  ;;  %v17987_v39 = vpop.permute.xlu2 %1740  ;;  %6590 = vmatmul.bf16.gmra.mxu2 %v11023_v51  ;;  %v3197_v21 = vsel %vm3107_vm6, %v12928_v62, %v1256_v14  ;;  %v1152_v40 = vshll.u32 %v20935_v9, 16  ;;  %v2872_v51 = vsel %vm2669_vm5, %v17830_v56, %v17981_v48 }
 0x434   : > { %v4607_v59 = vsel %vm4464_vm15, %v20933_v60, %v4606_v17  ;;  %10586 = vmatmul.msk.bf16.gmra.mxu0 %vm3975_vm14, %v3945_v18  ;;  %v3305_v60 = vsel %vm3215_vm7, %v3197_v21, %v17794_v0  ;;  %v1150_v56 = vor.u32 %v1148_v1, %v17883_v28  ;;  %v11954_v0 = vld [vmem:[%s20838_s5 + $0x7c] sm:$0xf]  ;;  %v10664_v21 = vld [vmem:[%s20838_s5 + $0x94] sm:$0xf0]  ;;  %v5453_v1 = vadd.f32 %v17546_v31, %v5348_v5 }
 0x435   : > { %v17990_v6 = vmax.f32 %v17619_v47, %v4607_v59  ;;  %v18007_v18 = vpop.f32.mrf.mxu2  ;;  %v18028_v35 = vrot.slane %v1152_v40, 1  ;;  %v20939_v40 = vld [vmem:[#allocation3_spill] sm:$0xff]  ;;  %v20940_v5 = vrot.slane %v17740_v26, 3  ;;  %v10667_v57 = vor.u32 %v11954_v0, %v10664_v21 }
 0x436   : > { %v6629_v41 = vpop.f32.mrf.mxu3  ;;  %v6539_v53 = vadd.f32 %v17703_v63, %v20939_v40  ;;  %v20941_v40 = vshrl.u32 %v17740_v26, 16  ;;  %v20944_v26 = vrot.slane %v17816_v10, 1 }
 0x437   : > { %v5114_v47 = vrot.slane %v17990_v6, 1  ;;  %v18009_v4 = vadd.f32 %v6629_v41, %v6537_v54  ;;  %v18016_v14 = vpop.f32.mrf.mxu1  ;;  %2661 = vrot.lane.b32.xlu1 %v2558_v37, %s12951_s25  ;;  %v20938_v54 = vrot.slane %v17897_v11, 1 }
 0x438   : > { %2439 = vrot.lane.b32.xlu0 %v20935_v9, %s12946_s20  ;;  %20937 = vst [vmem:[#allocation23_spill] sm:$0xff] %v18016_v14  ;;  %v2218_v16 = vrot.slane %v20941_v40, 3  ;;  %v20943_v40 = vrot.slane %v20935_v9, 1 }
 0x439   : > { %20936 = vst [vmem:[#allocation12_spill] sm:$0xff] %v18009_v4  ;;  %v18021_v59 = vpop.f32.mrf.mxu0  ;;  %v5115_v62 = vsel %vm1273_vm1, %v20938_v54, %v5114_v47  ;;  %2989 = vrot.lane.b32.xlu2 %v2872_v51, %s12953_s27  ;;  %v2322_v37 = vpop.permute.xlu1 %2321  ;;  %v10970_v51 = vld [vmem:[%s20838_s5 + $0x2e0] sm:$0xf] }
 0x43a   : > { %v4608_v24 = vrot.slane %v18021_v59, 6  ;;  %v1739_v41 = vpop.permute.xlu0 %1738  ;;  %v5349_v28 = vmax.f32 %v17897_v11, %v5115_v62  ;;  %v18054_v62 = vsel %vm1544_vm0, %v20940_v5, %v18014_v23  ;;  %v5555_v5 = vmax.f32 %v5453_v1, 0.0 }
 0x43b   : > { %v3412_v11 = vsel %vm3322_vm8, %v3305_v60, %v1739_v41  ;;  %v18056_v54 = vpop.permute.xlu2 %2653  ;;  %v1155_v60 = vsel %vm743_vm2, %v1150_v56, %v18028_v35  ;;  %v18069_v41 = vld [vmem:[%s13030_s19 + $0x1b4] sm:$0xff]  ;;  %v10971_v27 = vor.u32 %v12034_v8, %v10970_v51  ;;  %v1376_v22 = vsel %vm1273_vm1, %v20944_v26, %v20943_v40 }
 0x43c   : > { %v4609_v14 = vsel %vm4464_vm15, %v4606_v17, %v4608_v24  ;;  %v5454_v63 = vadd.f32 %v17546_v31, %v5349_v28  ;;  %v3519_v28 = vsel %vm3429_vm9, %v3412_v11, %v2322_v37  ;;  %v18089_v21 = vor.u32 %v2221_v32, %v2218_v16 }
 0x43d   : > { %v18064_v17 = vmax.f32 %v17662_v20, %v4609_v14  ;;  %v18077_v0 = vpop.f32.mrf.mxu2  ;;  %v3626_v1 = vsel %vm3536_vm10, %v3519_v28, %v17875_v58 }
 0x43e   : > { %v5556_v4 = vmax.f32 %v5454_v63, 0.0  ;;  %v6631_v29 = vpop.f32.mrf.mxu3  ;;  %20945 = vst [vmem:[#allocation3_spill] sm:$0xff] %v18077_v0  ;;  %v20946_v63 = vld [vmem:[#allocation4_spill] sm:$0xff]  ;;  %v20952_v0 = vrot.slane %v18069_v41, 3 }
 0x43f   : > { %v5116_v20 = vrot.slane %v18064_v17, 1  ;;  %v18080_v14 = vadd.f32 %v6631_v29, %v6539_v53  ;;  %v18084_v56 = vpop.f32.mrf.mxu1  ;;  %1267 = vrot.lane.b32.xlu1 %v1155_v60, %s12950_s24  ;;  %v2874_v29 = vshrl.u32 %v18069_v41, 16  ;;  %v2877_v53 = vshll.u32 %v18069_v41, 16 }
 0x440   : > { %3099 = vrot.lane.b32.xlu0 %v18054_v62, %s12949_s23  ;;  %v18086_v8 = vpack.c.bf16 %v5556_v4, %v5555_v5  ;;  %v6542_v60 = vadd.f32 %v17761_v15, %v20946_v63  ;;  %v20879_v15 = vrot.slane %v18069_v41, 2 }
 0x441   : > { %6711 = vmatmul.bf16.gmra.mxu1 %v10667_v57  ;;  %v5117_v10 = vsel %vm1273_vm1, %v5114_v47, %v5116_v20  ;;  %1479 = vrot.lane.b32.xlu2 %v1376_v22, %s12948_s22  ;;  %v2980_v11 = vpop.permute.xlu1 %2979  ;;  %v2876_v5 = vrot.slane %v2874_v29, 2  ;;  %v2879_v28 = vrot.slane %v2877_v53, 3  ;;  %v20947_v22 = vld [vmem:[#allocation10_spill] sm:$0xff]  ;;  %v20949_v53 = vld [vmem:[#allocation13_spill] sm:$0xff] }
 0x442   : > { %v2652_v37 = vpop.permute.xlu0 %2651  ;;  %v5350_v4 = vmax.f32 %v17990_v6, %v5117_v10  ;;  %v6129_v10 = vunpack.c.h.b16 %v20947_v22  ;;  %v10998_v22 = vld [vmem:[%s20838_s5 + $0x318] sm:$0xf] }
 0x443   : > { %v3733_v51 = vsel %vm3643_vm11, %v3626_v1, %v2652_v37  ;;  %v18099_v16 = vpop.f32.mrf.mxu0  ;;  %6673 = vmatmul.bf16.gmra.mxu3 %v10971_v27  ;;  %v18103_v58 = vpop.permute.xlu2 %1259  ;;  %v2223_v27 = vsel %vm1756_vm4, %v17915_v38, %v18089_v21  ;;  %v18129_v29 = vor.u32 %v2879_v28, %v2876_v5 }
 0x444   : > { %v3840_v57 = vsel %vm3750_vm12, %v3733_v51, %v2980_v11  ;;  %v4610_v32 = vrot.slane %v18099_v16, 6  ;;  %v6248_v37 = vpack.c.b16 %v6129_v10, %v6129_v10  ;;  %v10692_v51 = vld [vmem:[%s20838_s5 + $0xcc] sm:$0xf0]  ;;  %v12929_v10 = vld [vmem:[%s13030_s19 + $0x168] sm:$0xff]  }
 0x445   : > { %v3947_v47 = vsel %vm3857_vm13, %v3840_v57, %v17937_v46  ;;  %v18118_v46 = vpop.f32.mrf.mxu2 }
 0x446   : > { %v4611_v6 = vsel %vm4464_vm15, %v4608_v24, %v4610_v32  ;;  %10587 = vmatmul.msk.bf16.gmra.mxu0 %vm3975_vm14, %v3947_v47  ;;  %v6634_v40 = vpop.f32.mrf.mxu3  ;;  %6595 = vmatmul.bf16.gmra.mxu2 %v6248_v37  ;;  %v1156_v47 = vshrl.u32 %v20935_v9, 16 }
 0x447   : > { %v18115_v26 = vmax.f32 %v17775_v34, %v4611_v6  ;;  %v18120_v1 = vadd.f32 %v6634_v40, %v6542_v60  ;;  %v18125_v24 = vpop.f32.mrf.mxu1  ;;  %2333 = vrot.lane.b32.xlu1 %v2223_v27, %s12952_s26  ;;  %v20950_v6 = vrot.slane %v17912_v7, 2  ;;  %v5455_v40 = vadd.f32 %v17546_v31, %v5350_v4 }
 0x448   : > { %1750 = vrot.lane.b32.xlu0 %v17872_v36, %s12947_s21  ;;  %20948 = vst [vmem:[#allocation4_spill] sm:$0xff] %v18125_v24  ;;  %v11961_v36 = vld [vmem:[%s20838_s5 + $0xb4] sm:$0xf]  ;;  %v2881_v4 = vsel %vm2669_vm5, %v17981_v48, %v18129_v29 }
 0x449   : > { %v5118_v38 = vrot.slane %v18115_v26, 1  ;;  %2441 = vrot.lane.b32.xlu2 %v20949_v53, %s12946_s20  ;;  %v1470_v11 = vpop.permute.xlu1 %1469  ;;  %v2560_v27 = vsel %vm2457_vm3, %v20950_v6, %v20879_v15  ;;  %v1160_v6 = vshll.u32 %v20949_v53, 16  ;;  %v10695_v15 = vor.u32 %v11961_v36, %v10692_v51 }
 0x44a   : > { %v1258_v34 = vpop.permute.xlu0 %1257  ;;  %v5557_v48 = vmax.f32 %v5455_v40, 0.0 }
 0x44b   : > { %v18139_v57 = vpop.f32.mrf.mxu0  ;;  %v5119_v63 = vsel %vm1273_vm1, %v5116_v20, %v5118_v38  ;;  %v18149_v5 = vpop.permute.xlu2 %2325  ;;  %v12041_v20 = vld [vmem:[%s20838_s5 + $0x330] sm:$0xf0]  ;;  %v3199_v37 = vsel %vm3107_vm6, %v12929_v10, %v1258_v34  ;;  %v2998_v34 = vsel %vm1544_vm0, %v18014_v23, %v20952_v0  ;;  %v1158_v0 = vor.u32 %v1156_v47, %v18028_v35 }
 0x44c   : > { %v20880_v60 = vrot.slane %v18139_v57, 6  ;;  %v5351_v28 = vmax.f32 %v18064_v17, %v5119_v63  ;;  %v3307_v10 = vsel %vm3215_vm7, %v3199_v37, %v1470_v11  ;;  %v11936_v11 = vld [vmem:[%s13030_s19 + $0x1bc] sm:$0x70]  ;;  %v20954_v47 = vshrl.u32 %v17912_v7, 16 }
 0x44d   : > { %v18179_v51 = vpop.f32.mrf.mxu2  ;;  %v3414_v40 = vsel %vm3322_vm8, %v3307_v10, %v17987_v39 }
 0x44e   : > { %v4613_v17 = vsel %vm4464_vm15, %v4610_v32, %v20880_v60  ;;  %v5456_v63 = vadd.f32 %v17546_v31, %v5351_v28  ;;  %v18170_v24 = vpop.f32.mrf.mxu3  ;;  %20953 = vst [vmem:[#allocation13_spill] sm:$0xff] %v18179_v51  ;;  %v10999_v32 = vor.u32 %v12041_v20, %v10998_v22  ;;  %v20881_v22 = vrot.slane %v20949_v53, 1  ;;  %v10533_v20 = vld [vmem:[%s13030_s19 + $0x1bc] sm:$0xf] }
 0x44f   : > { %20951 = vst [vmem:[#allocation10_spill] sm:$0xff] %v18170_v24  ;;  %v18177_v36 = vmax.f32 %v17850_v2, %v4613_v17  ;;  %v18183_v60 = vpop.f32.mrf.mxu1  ;;  %2991 = vrot.lane.b32.xlu1 %v2881_v4, %s12953_s27  ;;  %v18187_v24 = vrot.slane %v1160_v6, 1  ;;  %v2227_v6 = vrot.slane %v20954_v47, 3  ;;  %v20955_v4 = vshll.u32 %v17912_v7, 16 }
 0x450   : > { %2663 = vrot.lane.b32.xlu0 %v2560_v27, %s12951_s25  ;;  %v5558_v28 = vmax.f32 %v5456_v63, 0.0 }
 0x451   : > { %6716 = vmatmul.bf16.gmra.mxu1 %v10695_v15  ;;  %v20882_v2 = vrot.slane %v18177_v36, 1  ;;  %3101 = vrot.lane.b32.xlu2 %v2998_v34, %s12949_s23  ;;  %v2432_v37 = vpop.permute.xlu1 %2431  ;;  %v2230_v63 = vrot.slane %v20955_v4, 4  ;;  %v1163_v10 = vsel %vm743_vm2, %v1158_v0, %v18187_v24 }
 0x452   : > { %v2324_v17 = vpop.permute.xlu0 %2323  ;;  %v18194_v27 = vpack.c.bf16 %v5558_v28, %v5557_v48  ;;  %v18214_v48 = vor.u32 %v11936_v11, %v10533_v20  ;;  %v20957_v28 = vrot.slane %v20935_v9, 1 }
 0x453   : > { %v18201_v35 = vsel %vm1273_vm1, %v5118_v38, %v20882_v2  ;;  %6678 = vmatmul.bf16.gmra.mxu3 %v10999_v32  ;;  %v3521_v15 = vsel %vm3429_vm9, %v3414_v40, %v2324_v17  ;;  %v18208_v34 = vpop.permute.xlu2 %2983  ;;  %v20956_v38 = vld [vmem:[#allocation6_spill] sm:$0xff]  ;;  %v18229_v0 = vor.u32 %v2230_v63, %v2227_v6  ;;  %v10720_v6 = vld [vmem:[%s20838_s5 + $0x104] sm:$0xf0] }
 0x454   : > { %v5352_v39 = vmax.f32 %v18115_v26, %v18201_v35  ;;  %v6547_v32 = vadd.f32 %v17894_v55, %v20956_v38  ;;  %v1378_v7 = vsel %vm1273_vm1, %v20957_v28, %v20881_v22  ;;  %v3628_v40 = vsel %vm3536_vm10, %v3521_v15, %v2432_v37  ;;  %v11968_v15 = vld [vmem:[%s20838_s5 + $0xec] sm:$0xf]  ;;  %v11026_v28 = vld [vmem:[%s20838_s5 + $0x350] sm:$0xf] }
 0x455   : > { %v18224_v47 = vpop.f32.mrf.mxu2  ;;  %v2883_v55 = vshrl.u32 %v18214_v48, 16  ;;  %v2886_v9 = vshll.u32 %v18214_v48, 16  ;;  %v3735_v11 = vsel %vm3643_vm11, %v3628_v40, %v18056_v54  ;;  %v20883_v54 = vrot.slane %v18214_v48, 2 }
 0x456   : > { %v6639_v17 = vpop.f32.mrf.mxu3  ;;  %v20960_v22 = vrot.slane %v18069_v41, 2 }
 0x457   : > { %v18226_v26 = vadd.f32 %v6639_v17, %v6547_v32  ;;  %v18231_v20 = vpop.f32.mrf.mxu1  ;;  %1481 = vrot.lane.b32.xlu1 %v1378_v7, %s12948_s22  ;;  %v12048_v7 = vld [vmem:[%s20838_s5 + $0x368] sm:$0xf0]  ;;  %v20959_v17 = vrot.slane %v18139_v57, 6 }
 0x458   : > { %1269 = vrot.lane.b32.xlu0 %v1163_v10, %s12950_s24  ;;  %20958 = vst [vmem:[#allocation6_spill] sm:$0xff] %v18231_v20  ;;  %v2562_v2 = vsel %vm2457_vm3, %v20960_v22, %v20883_v54  ;;  %vm6408_vm3 = vcmask 1043456  }
 0x459   : > { %1752 = vrot.lane.b32.xlu2 %v18054_v62, %s12947_s21  ;;  %v3092_v10 = vpop.permute.xlu1 %3091  ;;  %v2232_v62 = vsel %vm1756_vm4, %v18089_v21, %v18229_v0  ;;  %v10723_v21 = vor.u32 %v11968_v15, %v10720_v6  ;;  %vm7567_vm4 = vcmask 261120  }
 0x45a   : > { %v18238_v37 = vpop.f32.mrf.mxu0  ;;  %v2982_v35 = vpop.permute.xlu0 %2981 }
 0x45b   : > { %v4614_v4 = vrot.slane %v18238_v37, 6  ;;  %v3842_v63 = vsel %vm3750_vm12, %v3735_v11, %v2982_v35  ;;  %v18255_v32 = vpop.permute.xlu2 %1473  ;;  %v2885_v11 = vrot.slane %v2883_v55, 2  ;;  %v2888_v35 = vrot.slane %v2886_v9, 3  ;;  %v12930_v9 = vld [vmem:[%s13030_s19 + $0x170] sm:$0xff]  }
 0x45c   : > { %v3949_v38 = vsel %vm3857_vm13, %v3842_v63, %v3092_v10  ;;  %v3201_v15 = vsel %vm3107_vm6, %v12930_v9, %v18103_v58  ;;  %v5457_v58 = vadd.f32 %v17546_v31, %v5352_v39  ;;  %v20963_v9 = vld [vmem:[#allocation8_spill] sm:$0xff] }
 0x45d   : > { %v4615_v40 = vsel %vm4464_vm15, %v20959_v17, %v4614_v4  ;;  %10588 = vmatmul.msk.bf16.gmra.mxu0 %vm3975_vm14, %v3949_v38  ;;  %v18277_v20 = vpop.f32.mrf.mxu2  ;;  %v11027_v17 = vor.u32 %v12048_v7, %v11026_v28  ;;  %v2999_v38 = vrot.slane %v18214_v48, 3  ;;  %v6552_v54 = vadd.f32 %v18007_v18, %v20963_v9 }
 0x45e   : > { %v18268_v63 = vmax.f32 %v17970_v50, %v4615_v40  ;;  %v18270_v10 = vpop.f32.mrf.mxu3  ;;  %20961 = vst [vmem:[#allocation24_spill] sm:$0xff] %v18277_v20  ;;  %v18285_v50 = vor.u32 %v2888_v35, %v2885_v11 }
 0x45f   : > { %v18281_v55 = vpop.f32.mrf.mxu1  ;;  %2443 = vrot.lane.b32.xlu1 %v17838_v42, %s12946_s20  ;;  %v20962_v42 = vrot.slane %v18177_v36, 1 }
 0x460   : > { %v20884_v51 = vrot.slane %v18268_v63, 1  ;;  %2335 = vrot.lane.b32.xlu0 %v2232_v62, %s12952_s26  ;;  %v1164_v62 = vshrl.u32 %v20949_v53, 16 }
 0x461   : > { %6721 = vmatmul.bf16.gmra.mxu1 %v10723_v21  ;;  %2665 = vrot.lane.b32.xlu2 %v2562_v2, %s12951_s25  ;;  %v1743_v7 = vpop.permute.xlu1 %1742  ;;  %v2890_v21 = vsel %vm2669_vm5, %v18129_v29, %v18285_v50  ;;  %vm7596_vm5 = vcmask 523264  }
 0x462   : > { %v18290_v22 = vpop.f32.mrf.mxu0  ;;  %v1472_v6 = vpop.permute.xlu0 %1471  ;;  %v5123_v28 = vsel %vm1273_vm1, %v20962_v42, %v20884_v51  ;;  %v5559_v51 = vmax.f32 %v5457_v58, 0.0 }
 0x463   : > { %v5353_v40 = vmax.f32 %v18177_v36, %v5123_v28  ;;  %6683 = vmatmul.bf16.gmra.mxu3 %v11027_v17  ;;  %v4616_v11 = vrot.slane %v18290_v22, 6  ;;  %v18303_v35 = vpop.permute.xlu2 %2435  ;;  %v3309_v2 = vsel %vm3215_vm7, %v3201_v15, %v1472_v6  ;;  %v20964_v36 = vrot.slane %v18069_v41, 3  ;;  %v18330_v41 = vld [vmem:[%s20838_s5 + $0x388] sm:$0x11] }
 0x464   : > { %v1166_v17 = vor.u32 %v1164_v62, %v18187_v24  ;;  %v3416_v18 = vsel %vm3322_vm8, %v3309_v2, %v1743_v7 }
 0x465   : > { %v5458_v42 = vadd.f32 %v17546_v31, %v5353_v40  ;;  %v3000_v39 = vsel %vm1544_vm0, %v20964_v36, %v2999_v38  ;;  %v18318_v6 = vpop.f32.mrf.mxu2  ;;  %v4617_v29 = vsel %vm4464_vm15, %v4614_v4, %v4616_v11  ;;  %v11975_v4 = vld [vmem:[%s20838_s5 + $0x124] sm:$0xf]  ;;  %v3523_v7 = vsel %vm3429_vm9, %v3416_v18, %v18149_v5 }
 0x466   : > { %v6644_v28 = vpop.f32.mrf.mxu3  ;;  %v4845_v58 = vmax.f32 %v18021_v59, %v4617_v29  ;;  %v20967_v5 = vrot.slane %v20949_v53, 1 }
 0x467   : > { %v5560_v15 = vmax.f32 %v5458_v42, 0.0  ;;  %v18320_v20 = vadd.f32 %v6644_v28, %v6552_v54  ;;  %v18325_v31 = vpop.f32.mrf.mxu1  ;;  %3103 = vrot.lane.b32.xlu1 %v3000_v39, %s12949_s23  ;;  %v10748_v54 = vld [vmem:[%s20838_s5 + $0x13c] sm:$0xf0] }
 0x468   : > { %2993 = vrot.lane.b32.xlu0 %v2890_v21, %s12953_s27  ;;  %20965 = vst [vmem:[#allocation8_spill] sm:$0xff] %v18325_v31  ;;  %v10751_v9 = vor.u32 %v11975_v4, %v10748_v54  ;;  %v5124_v39 = vrot.slane %v4845_v58, 1  ;;  %v20968_v54 = vrot.slane %v18268_v63, 1 }
 0x469   : > { %v18333_v24 = vpack.c.bf16 %v5560_v15, %v5559_v51  ;;  %1271 = vrot.lane.b32.xlu2 %v1166_v17, %s12950_s24  ;;  %v2656_v40 = vpop.permute.xlu1 %2655  ;;  %v6130_v51 = vunpack.c.l.b16 %v18330_v41 }
 0x46a   : > { %v2434_v62 = vpop.permute.xlu0 %2433 }
 0x46b   : > { %v3630_v2 = vsel %vm3536_vm10, %v3523_v7, %v2434_v62  ;;  %v18347_v21 = vpop.permute.xlu2 %3095  ;;  %v6249_v28 = vpack.c.b16 %v6130_v51, %v6130_v51 }
 0x46c   : > { %v3737_v36 = vsel %vm3643_vm11, %v3630_v2, %v2656_v40  ;;  %v12931_v2 = vld [vmem:[%s13030_s19 + $0x178] sm:$0xff]  }
 0x46d   : > { %v18352_v17 = vpop.f32.mrf.mxu2  ;;  %v3844_v29 = vsel %vm3750_vm12, %v3737_v36, %v18208_v34  ;;  %v2340_v34 = vpack.c.b16 %v17886_v3, %v17886_v3 }
 0x46e   : > { %v18349_v42 = vpop.f32.mrf.mxu3  ;;  %20966 = vst [vmem:[#allocation25_spill] sm:$0xff] %v18352_v17 }
 0x46f   : > { %v18357_v59 = vpop.f32.mrf.mxu1  ;;  %1754 = vrot.lane.b32.xlu1 %v18014_v23, %s12947_s21  ;;  %v5125_v23 = vsel %vm1273_vm1, %v20968_v54, %v5124_v39  ;;  %v18407_v54 = vld [vmem:[%s20835_s2] ss:$0 sm:$0xff]  ;;  %s12957_s21 = smov 32  }
 0x470   : > { %1483 = vrot.lane.b32.xlu0 %v20967_v5, %s12948_s22  ;;  %s357_s22 = scalar_lea.vmem %s20843_s10, %s21032_s16 }
 0x471   : > { %v18361_v15 = vpop.f32.mrf.mxu0  ;;  %6726 = vmatmul.bf16.gmra.mxu1 %v10751_v9  ;;  %2337 = vrot.lane.b32.xlu2 %v18229_v0, %s12952_s26  ;;  %v1262_v4 = vpop.permute.xlu1 %1261  ;;  %v20969_v0 = vld [vmem:[#allocation11_spill] sm:$0xff] }
 0x472   : > { %v4618_v18 = vrot.slane %v18361_v15, 6  ;;  %v3094_v62 = vpop.permute.xlu0 %3093  ;;  %v6557_v51 = vadd.f32 %v18118_v46, %v20969_v0  ;;  %v3203_v9 = vsel %vm3107_vm6, %v12931_v2, %v1262_v4  ;;  %v20970_v46 = vrot.slane %v18214_v48, 2 }
 0x473   : > { %v3951_v53 = vsel %vm3857_vm13, %v3844_v29, %v3094_v62  ;;  %6688 = vmatmul.bf16.gmra.mxu3 %v6249_v28  ;;  %v18385_v36 = vpop.permute.xlu2 %1746  ;;  %v5354_v28 = vmax.f32 %v18268_v63, %v5125_v23  ;;  %v11982_v23 = vld [vmem:[%s20838_s5 + $0x15c] sm:$0xf] }
 0x474   : > { %v4619_v7 = vsel %vm4464_vm15, %v4616_v11, %v4618_v18  ;;  %10589 = vmatmul.msk.bf16.gmra.mxu0 %vm3975_vm14, %v3951_v53 }
 0x475   : > { %v18379_v40 = vmax.f32 %v18099_v16, %v4619_v7  ;;  %v18389_v29 = vpop.f32.mrf.mxu2  ;;  %v3311_v16 = vsel %vm3215_vm7, %v3203_v9, %v18255_v32  ;;  %v5459_v32 = vadd.f32 %v18407_v54, %v5354_v28 }
 0x476   : > { %v6649_v5 = vpop.f32.mrf.mxu3 }
 0x477   : > { %v20885_v11 = vrot.slane %v18379_v40, 1  ;;  %v18391_v62 = vadd.f32 %v6649_v5, %v6557_v51  ;;  %v6505_v3 = vpop.f32.mrf.mxu1  ;;  %2667 = vrot.lane.b32.xlu1 %v20970_v46, %s12951_s25  ;;  %v5561_v51 = vmax.f32 %v5459_v32, 0.0 }
 0x478   : > { %2445 = vrot.lane.b32.xlu0 %v2340_v34, %s12946_s20 }
 0x479   : > { %v5127_v63 = vsel %vm1273_vm1, %v5124_v39, %v20885_v11  ;;  %2995 = vrot.lane.b32.xlu2 %v18285_v50, %s12953_s27  ;;  %v10776_v39 = vld [vmem:[%s20838_s5 + $0x174] sm:$0xf0]  ;;  %v18416_v7 = vpop.f32.mrf.mxu0  ;;  %v2328_v34 = vpop.permute.xlu1 %2327 }
 0x47a   : > { %v1745_v53 = vpop.permute.xlu0 %1744  ;;  %v5355_v4 = vmax.f32 %v4845_v58, %v5127_v63  ;;  %v10779_v0 = vor.u32 %v11982_v23, %v10776_v39 }
 0x47b   : > { %v3418_v50 = vsel %vm3322_vm8, %v3311_v16, %v1745_v53  ;;  %v2660_v3 = vpop.permute.xlu2 %2659 }
 0x47c   : > { %v5460_v58 = vadd.f32 %v18407_v54, %v5355_v4  ;;  %v3525_v28 = vsel %vm3429_vm9, %v3418_v50, %v2328_v34 }
 0x47d   : > { %v18423_v5 = vpop.f32.mrf.mxu2  ;;  %v3632_v16 = vsel %vm3536_vm10, %v3525_v28, %v18303_v35 }
 0x47e   : > { %v5562_v2 = vmax.f32 %v5460_v58, 0.0  ;;  %v18420_v9 = vpop.f32.mrf.mxu3  ;;  %20972 = vst [vmem:[#allocation26_spill] sm:$0xff] %v18423_v5 }
 0x47f   : > { %20971 = vst [vmem:[#allocation11_spill] sm:$0xff] %v18420_v9 }
 0x480   : > { %3105 = vrot.lane.b32.xlu0 %v2999_v38, %s12949_s23  ;;  %v18428_v46 = vpack.c.bf16 %v5562_v2, %v5561_v51  ;;  %v6562_v38 = vadd.f32 %v18224_v47, %v17600_v30  ;;  %v12933_v30 = vld [vmem:[%s13030_s19 + $0x180] sm:$0xff]  }
 0x481   : > { %6731 = vmatmul.bf16.gmra.mxu1 %v10779_v0  ;;  %v2986_v4 = vpop.permute.xlu1 %2985  ;;  %v11989_v0 = vld [vmem:[%s20838_s5 + $0x194] sm:$0xf] }
 0x482   : > { %v2658_v63 = vpop.permute.xlu0 %2657 }
 0x483   : > { %v3739_v53 = vsel %vm3643_vm11, %v3632_v16, %v2658_v63  ;;  %v18433_v32 = vpop.f32.mrf.mxu0  ;;  %v1266_v58 = vpop.permute.xlu2 %1265 }
 0x484   : > { %v3846_v23 = vsel %vm3750_vm12, %v3739_v53, %v2986_v4  ;;  %v4622_v53 = vrot.slane %v18433_v32, 6 }
 0x485   : > { %v3953_v48 = vsel %vm3857_vm13, %v3846_v23, %v18347_v21  ;;  %v10804_v21 = vld [vmem:[%s20838_s5 + $0x1ac] sm:$0xf0]  ;;  %v4620_v23 = vrot.slane %v18416_v7, 6 }
 0x486   : > { %10590 = vmatmul.msk.bf16.gmra.mxu0 %vm3975_vm14, %v3953_v48  ;;  %v6654_v39 = vpop.f32.mrf.mxu3  ;;  %v18441_v34 = vpop.f32.mrf.mxu2  ;;  %v10807_v16 = vor.u32 %v11989_v0, %v10804_v21 }
 0x487   : > { %v18443_v35 = vadd.f32 %v6654_v39, %v6562_v38  ;;  %v4623_v11 = vsel %vm4464_vm15, %v4620_v23, %v4622_v53  ;;  %v4621_v21 = vsel %vm4464_vm15, %v4618_v18, %v4620_v23 }
 0x489   : > { %v1476_v51 = vpop.permute.xlu1 %1475 }
 0x48a   : > { %v1264_v50 = vpop.permute.xlu0 %1263 }
 0x48b   : > { %v18451_v2 = vpop.f32.mrf.mxu0  ;;  %v3205_v47 = vsel %vm3107_vm6, %v12933_v30, %v1264_v50 }
 0x48c   : > { %v4624_v28 = vrot.slane %v18451_v2, 6  ;;  %v3313_v48 = vsel %vm3215_vm7, %v3205_v47, %v1476_v51  ;;  %v6567_v51 = vadd.f32 %v18318_v6, %v17713_v33  ;;  %v4848_v47 = vmax.f32 %v18238_v37, %v4623_v11  ;;  %v11996_v33 = vld [vmem:[%s20838_s5 + $0x1cc] sm:$0xf]  ;;  %v10832_v37 = vld [vmem:[%s20838_s5 + $0x1e4] sm:$0xf0] }
 0x48d   : > { %v3420_v50 = vsel %vm3322_vm8, %v3313_v48, %v18385_v36  ;;  %v4847_v36 = vmax.f32 %v18139_v57, %v4621_v21 }
 0x48e   : > { %v18456_v63 = vpop.f32.mrf.mxu3  ;;  %v18459_v4 = vpop.f32.mrf.mxu2  ;;  %v4625_v38 = vsel %vm4464_vm15, %v4622_v53, %v4624_v28  ;;  %v5130_v23 = vrot.slane %v4848_v47, 1 }
 0x48f   : > { %20973 = vst [vmem:[#allocation27_spill] sm:$0xff] %v18456_v63  ;;  %v4849_v31 = vmax.f32 %v18290_v22, %v4625_v38  ;;  %v20977_v63 = vld [vmem:[#allocation14_spill] sm:$0xff] }
 0x490   : > { %20974 = vst [vmem:[#allocation28_spill] sm:$0xff] %v18459_v4  ;;  %v18472_v4 = vpop.permute.xlu2 %2331 }
 0x491   : > { %6736 = vmatmul.bf16.gmra.mxu1 %v10807_v16  ;;  %v2438_v0 = vpop.permute.xlu1 %2437  ;;  %v5132_v18 = vrot.slane %v4849_v31, 1 }
 0x492   : > { %v2330_v39 = vpop.permute.xlu0 %2329 }
 0x493   : > { %v3527_v30 = vsel %vm3429_vm9, %v3420_v50, %v2330_v39  ;;  %v5128_v50 = vrot.slane %v4847_v36, 1 }
 0x494   : > { %v3634_v53 = vsel %vm3536_vm10, %v3527_v30, %v2438_v0  ;;  %v10835_v30 = vor.u32 %v11996_v33, %v10832_v37  ;;  %v12934_v37 = vld [vmem:[%s13030_s19 + $0x188] sm:$0xff]  }
 0x495   : > { %v3741_v22 = vsel %vm3643_vm11, %v3634_v53, %v2660_v3  ;;  %v5133_v3 = vsel %vm1273_vm1, %v5130_v23, %v5132_v18 }
 0x496   : > { %v6659_v16 = vpop.f32.mrf.mxu3  ;;  %v18479_v48 = vpop.f32.mrf.mxu2 }
 0x497   : > { %v18481_v5 = vadd.f32 %v6659_v16, %v6567_v51  ;;  %v5131_v16 = vsel %vm1273_vm1, %v5128_v50, %v5130_v23  ;;  %v3207_v23 = vsel %vm3107_vm6, %v12934_v37, %v1266_v58 }
 0x499   : > { %v3098_v11 = vpop.permute.xlu1 %3097 }
 0x49a   : > { %v18484_v38 = vpop.f32.mrf.mxu0  ;;  %v2988_v39 = vpop.permute.xlu0 %2987 }
 0x49b   : > { %v4626_v57 = vrot.slane %v18484_v38, 6  ;;  %v3848_v6 = vsel %vm3750_vm12, %v3741_v22, %v2988_v39  ;;  %v5358_v22 = vmax.f32 %v4848_v47, %v5133_v3  ;;  %v2990_v39 = vpop.permute.xlu2 %2989 }
 0x49c   : > { %v3955_v0 = vsel %vm3857_vm13, %v3848_v6, %v3098_v11  ;;  %v20976_v6 = vrot.slane %v18379_v40, 1 }
 0x49d   : > { %v4627_v21 = vsel %vm4464_vm15, %v4624_v28, %v4626_v57  ;;  %10591 = vmatmul.msk.bf16.gmra.mxu0 %vm3975_vm14, %v3955_v0 }
 0x49e   : > { %v18499_v51 = vmax.f32 %v18361_v15, %v4627_v21  ;;  %v6702_v53 = vpop.f32.mrf.mxu1  ;;  %v18502_v17 = vpop.f32.mrf.mxu3  ;;  %v5129_v11 = vsel %vm1273_vm1, %v20976_v6, %v5128_v50  ;;  %v5357_v15 = vmax.f32 %v4847_v36, %v5131_v16  ;;  %v5463_v6 = vadd.f32 %v18407_v54, %v5358_v22 }
 0x49f   : > { %20975 = vst [vmem:[#allocation29_spill] sm:$0xff] %v18502_v17  ;;  %v18508_v9 = vadd.f32 %v6702_v53, %v20977_v63  ;;  %v18510_v28 = vpop.f32.mrf.mxu2  ;;  %v5356_v21 = vmax.f32 %v18379_v40, %v5129_v11  ;;  %v6572_v36 = vadd.f32 %v18389_v29, %v17833_v44 }
 0x4a0   : > { %20978 = vst [vmem:[#allocation14_spill] sm:$0xff] %v18510_v28  ;;  %v5134_v33 = vrot.slane %v18499_v51, 1  ;;  %v5462_v37 = vadd.f32 %v18407_v54, %v5357_v15 }
 0x4a1   : > { %6741 = vmatmul.bf16.gmra.mxu1 %v10835_v30  ;;  %v1749_v63 = vpop.permute.xlu1 %1748 }
 0x4a2   : > { %v18515_v0 = vpop.f32.mrf.mxu0  ;;  %v1478_v47 = vpop.permute.xlu0 %1477  ;;  %v5135_v3 = vsel %vm1273_vm1, %v5132_v18, %v5134_v33  ;;  %v5461_v18 = vadd.f32 %v18407_v54, %v5356_v21 }
 0x4a3   : > { %v4628_v50 = vrot.slane %v18515_v0, 6  ;;  %v5359_v53 = vmax.f32 %v4849_v31, %v5135_v3  ;;  %v3315_v58 = vsel %vm3215_vm7, %v3207_v23, %v1478_v47  ;;  %v5565_v3 = vmax.f32 %v5463_v6, 0.0  ;;  %v1480_v21 = vpop.permute.xlu2 %1479 }
 0x4a4   : > { %v5564_v47 = vmax.f32 %v5462_v37, 0.0 }
 0x4a5   : > { %v4629_v30 = vsel %vm4464_vm15, %v4626_v57, %v4628_v50  ;;  %v5464_v16 = vadd.f32 %v18407_v54, %v5359_v53  ;;  %v3422_v57 = vsel %vm3322_vm8, %v3315_v58, %v1749_v63 }
 0x4a6   : > { %v6704_v40 = vpop.f32.mrf.mxu1  ;;  %v18529_v11 = vmax.f32 %v18416_v7, %v4629_v30  ;;  %v6664_v31 = vpop.f32.mrf.mxu3  ;;  %v12003_v7 = vld [vmem:[%s20838_s5 + $0x204] sm:$0xf]  ;;  %v5563_v30 = vmax.f32 %v5461_v18, 0.0 }
 0x4a7   : > { %v5566_v22 = vmax.f32 %v5464_v16, 0.0  ;;  %v18532_v28 = vadd.f32 %v6704_v40, %v17596_v43  ;;  %v18534_v44 = vpop.f32.mrf.mxu2  ;;  %v18536_v29 = vadd.f32 %v6664_v31, %v6572_v36  ;;  %v10860_v43 = vld [vmem:[%s20838_s5 + $0x21c] sm:$0xf0]  ;;  %v3529_v36 = vsel %vm3429_vm9, %v3422_v57, %v18472_v4 }
 0x4a8   : > { %v5136_v15 = vrot.slane %v18529_v11, 1  ;;  %v5759_v37 = vpack.c.bf16 %v5564_v47, %v5563_v30  ;;  %v10863_v40 = vor.u32 %v12003_v7, %v10860_v43 }
 0x4a9   : > { %v5760_v23 = vpack.c.bf16 %v5566_v22, %v5565_v3  ;;  %v2662_v63 = vpop.permute.xlu1 %2661 }
 0x4aa   : > { %v2440_v53 = vpop.permute.xlu0 %2439  ;;  %v5137_v6 = vsel %vm1273_vm1, %v5134_v33, %v5136_v15 }
 0x4ab   : > { %6786 = vmatpush.bf16.msrb.mxu2 %v5760_v23  ;;  %v5360_v58 = vmax.f32 %v18499_v51, %v5137_v6  ;;  %v3636_v16 = vsel %vm3536_vm10, %v3529_v36, %v2440_v53  ;;  %v2442_v7 = vpop.permute.xlu2 %2441  ;;  %v6577_v6 = vadd.f32 %v18441_v34, %v17963_v25 }
 0x4ac   : > { %v3743_v22 = vsel %vm3643_vm11, %v3636_v16, %v2662_v63 }
 0x4ad   : > { %v3850_v51 = vsel %vm3750_vm12, %v3743_v22, %v2990_v39  ;;  %v12935_v39 = vld [vmem:[%s13030_s19 + $0x190] sm:$0xff]   ;;  %v5465_v22 = vadd.f32 %v18407_v54, %v5360_v58 }
 0x4ae   : > { %v6707_v31 = vpop.f32.mrf.mxu1  ;;  %v18551_v3 = vpop.f32.mrf.mxu3 }
 0x4af   : > { %20979 = vst [vmem:[#allocation30_spill] sm:$0xff] %v18551_v3  ;;  %6787 = vmatpush.bf16.msrb.mxu2 %v5759_v37  ;;  %v18555_v33 = vadd.f32 %v6707_v31, %v17645_v61  ;;  %v18559_v18 = vpop.f32.mrf.mxu2  ;;  %v12010_v31 = vld [vmem:[%s20838_s5 + $0x23c] sm:$0xf] }
 0x4b0   : > { %20980 = vst [vmem:[#allocation31_spill] sm:$0xff] %v18559_v18 }
 0x4b1   : > { %v18557_v4 = vpop.f32.mrf.mxu0  ;;  %6746 = vmatmul.bf16.gmra.mxu1 %v10863_v40  ;;  %v1268_v53 = vpop.permute.xlu1 %1267 }
 0x4b2   : > { %v4630_v57 = vrot.slane %v18557_v4, 6  ;;  %v3100_v23 = vpop.permute.xlu0 %3099  ;;  %v3209_v36 = vsel %vm3107_vm6, %v12935_v39, %v1268_v53 }
 0x4b3   : > { %v3957_v47 = vsel %vm3857_vm13, %v3850_v51, %v3100_v23  ;;  %6788 = vmatpush.bf16.msrb.mxu2 %v18428_v46  ;;  %v3102_v53 = vpop.permute.xlu2 %3101 }
 0x4b4   : > { %v4631_v43 = vsel %vm4464_vm15, %v4628_v50, %v4630_v57  ;;  %10592 = vmatmul.msk.bf16.gmra.mxu0 %vm3975_vm14, %v3957_v47 }
 0x4b5   : > { %v18568_v61 = vmax.f32 %v18433_v32, %v4631_v43  ;;  %v3317_v32 = vsel %vm3215_vm7, %v3209_v36, %v1480_v21  ;;  %v5567_v36 = vmax.f32 %v5465_v22, 0.0  ;;  %v6582_v22 = vadd.f32 %v18479_v48, %v18084_v56 }
 0x4b6   : > { %v6709_v63 = vpop.f32.mrf.mxu1  ;;  %v6669_v30 = vpop.f32.mrf.mxu3 }
 0x4b7   : > { %v5138_v16 = vrot.slane %v18568_v61, 1  ;;  %6789 = vmatpush.bf16.msrb.mxu2 %v18333_v24  ;;  %v18577_v46 = vadd.f32 %v6709_v63, %v17708_v13  ;;  %v18579_v50 = vadd.f32 %v6669_v30, %v6577_v6  ;;  %v10888_v13 = vld [vmem:[%s20838_s5 + $0x254] sm:$0xf0]  ;;  %v18595_v51 = vpop.f32.mrf.mxu2 }
 0x4b8   : > { %v10891_v43 = vor.u32 %v12010_v31, %v10888_v13 }
 0x4b9   : > { %v18582_v37 = vpop.f32.mrf.mxu0  ;;  %v5139_v25 = vsel %vm1273_vm1, %v5136_v15, %v5138_v16  ;;  %v2334_v21 = vpop.permute.xlu1 %2333 }
 0x4ba   : > { %v4632_v34 = vrot.slane %v18582_v37, 6  ;;  %v1751_v40 = vpop.permute.xlu0 %1750  ;;  %v5361_v24 = vmax.f32 %v18529_v11, %v5139_v25 }
 0x4bb   : > { %6790 = vmatpush.bf16.msrb.mxu2 %v18194_v27  ;;  %v3424_v23 = vsel %vm3322_vm8, %v3317_v32, %v1751_v40 }
 0x4bc   : > { %v4633_v15 = vsel %vm4464_vm15, %v4630_v57, %v4632_v34  ;;  %v5466_v47 = vadd.f32 %v18407_v54, %v5361_v24  ;;  %v3531_v58 = vsel %vm3429_vm9, %v3424_v23, %v2334_v21 }
 0x4bd   : > { %v4853_v6 = vmax.f32 %v18451_v2, %v4633_v15  ;;  %v3638_v2 = vsel %vm3536_vm10, %v3531_v58, %v2442_v7 }
 0x4be   : > { %v6712_v39 = vpop.f32.mrf.mxu1  ;;  %v5568_v11 = vmax.f32 %v5466_v47, 0.0  ;;  %v18601_v63 = vpop.f32.mrf.mxu3 }
 0x4bf   : > { %20981 = vst [vmem:[#allocation32_spill] sm:$0xff] %v18601_v63  ;;  %6791 = vmatpush.bf16.msrb.mxu2 %v18086_v8  ;;  %v18606_v27 = vadd.f32 %v6712_v39, %v17763_v45  ;;  %v5140_v57 = vrot.slane %v4853_v6, 1  ;;  %v10614_v45 = vld [vmem:[%s20838_s5 + $0x10] sm:$0xf]  ;;  %v11944_v8 = vld [vmem:[%s20838_s5 + $0x28] sm:$0xf0]  ;;  %v18628_v21 = vpop.f32.mrf.mxu2  ;;  %v1753_v39 = vpop.permute.xlu2 %1752 }
 0x4c0   : > { %v18608_v30 = vpack.c.bf16 %v5568_v11, %v5567_v36  ;;  %20982 = vst [vmem:[#allocation33_spill] sm:$0xff] %v18628_v21  ;;  %v10615_v15 = vor.u32 %v11944_v8, %v10614_v45  ;;  %v12017_v36 = vld [vmem:[%s20838_s5 + $0x274] sm:$0xf] }
 0x4c1   : > { %6751 = vmatmul.bf16.gmra.mxu1 %v10891_v43  ;;  %v5141_v32 = vsel %vm1273_vm1, %v5138_v16, %v5140_v57  ;;  %v2992_v13 = vpop.permute.xlu1 %2991 }
 0x4c2   : > { %v2664_v25 = vpop.permute.xlu0 %2663  ;;  %v5362_v40 = vmax.f32 %v18568_v61, %v5141_v32 }
 0x4c3   : > { %v3745_v31 = vsel %vm3643_vm11, %v3638_v2, %v2664_v25  ;;  %v18614_v24 = vpop.f32.mrf.mxu0  ;;  %6792 = vmatpush.bf16.msrb.mxu2 %v17909_v19  ;;  %v12936_v25 = vld [vmem:[%s13030_s19 + $0x198] sm:$0xff]  }
 0x4c4   : > { %v3852_v7 = vsel %vm3750_vm12, %v3745_v31, %v2992_v13  ;;  %v4634_v16 = vrot.slane %v18614_v24, 6  ;;  %v5467_v2 = vadd.f32 %v18407_v54, %v5362_v40 }
 0x4c5   : > { %v3959_v61 = vsel %vm3857_vm13, %v3852_v7, %v3102_v53 }
 0x4c6   : > { %v4635_v19 = vsel %vm4464_vm15, %v4632_v34, %v4634_v16  ;;  %10593 = vmatmul.msk.bf16.gmra.mxu0 %vm3975_vm14, %v3959_v61  ;;  %v6714_v23 = vpop.f32.mrf.mxu1  ;;  %v6674_v47 = vpop.f32.mrf.mxu3  ;;  %v5569_v40 = vmax.f32 %v5467_v2, 0.0 }
 0x4c7   : > { %v18633_v43 = vmax.f32 %v18484_v38, %v4635_v19  ;;  %6793 = vmatpush.bf16.msrb.mxu2 %v17736_v12  ;;  %v18637_v53 = vadd.f32 %v6714_v23, %v17826_v52  ;;  %v18639_v56 = vadd.f32 %v6674_v47, %v6582_v22  ;;  %v10916_v38 = vld [vmem:[%s20838_s5 + $0x28c] sm:$0xf0]  ;;  %v2666_v23 = vpop.permute.xlu2 %2665 }
 0x4c8   : > { %v10919_v13 = vor.u32 %v12017_v36, %v10916_v38 }
 0x4c9   : > { %v5142_v48 = vrot.slane %v18633_v43, 1  ;;  %v1482_v11 = vpop.permute.xlu1 %1481  ;;  %v18656_v7 = vpop.f32.mrf.mxu2 }
 0x4ca   : > { %6794 = vmatmul.bf16.vlgmr.msrb.gmra.mxu2 %v10615_v15  ;;  %v1270_v34 = vpop.permute.xlu0 %1269 }
 0x4cb   : > { %v18648_v12 = vpop.f32.mrf.mxu0  ;;  %v5143_v52 = vsel %vm1273_vm1, %v5140_v57, %v5142_v48  ;;  %v3211_v31 = vsel %vm3107_vm6, %v12936_v25, %v1270_v34  ;;  %v6587_v25 = vadd.f32 %v18534_v44, %v18183_v60  ;;  %v12024_v60 = vld [vmem:[%s20838_s5 + $0x2ac] sm:$0xf]  ;;  %v10944_v44 = vld [vmem:[%s20838_s5 + $0x2c4] sm:$0xf0] }
 0x4cc   : > { %v4636_v58 = vrot.slane %v18648_v12, 6  ;;  %v5363_v32 = vmax.f32 %v4853_v6, %v5143_v52  ;;  %v3319_v6 = vsel %vm3215_vm7, %v3211_v31, %v1482_v11 }
 0x4cd   : > { %v3426_v36 = vsel %vm3322_vm8, %v3319_v6, %v1753_v39 }
 0x4ce   : > { %v4637_v45 = vsel %vm4464_vm15, %v4634_v16, %v4636_v58  ;;  %v6717_v8 = vpop.f32.mrf.mxu1  ;;  %v5468_v61 = vadd.f32 %v18407_v54, %v5363_v32  ;;  %v18663_v19 = vpop.f32.mrf.mxu3 }
 0x4cf   : > { %v18660_v22 = vadd.f32 %v6717_v8, %v17899_v49  ;;  %v4855_v57 = vmax.f32 %v18515_v0, %v4637_v45  ;;  %20983 = vst [vmem:[#allocation34_spill] sm:$0xff] %v18663_v19  ;;  %v10642_v49 = vld [vmem:[%s20838_s5 + $0x48] sm:$0xf]  ;;  %v11951_v0 = vld [vmem:[%s20838_s5 + $0x60] sm:$0xf0]  ;;  %v20984_v45 = vld [vmem:[#allocation22_spill] sm:$0xff] }
 0x4d0   : > { %v5570_v15 = vmax.f32 %v5468_v61, 0.0  ;;  %v10643_v2 = vor.u32 %v11951_v0, %v10642_v49  ;;  %v10947_v0 = vor.u32 %v12024_v60, %v10944_v44  ;;  %v10670_v44 = vld [vmem:[%s20838_s5 + $0x80] sm:$0xf] }
 0x4d1   : > { %6756 = vmatmul.bf16.gmra.mxu1 %v10919_v13  ;;  %v5144_v47 = vrot.slane %v4855_v57, 1  ;;  %v2444_v38 = vpop.permute.xlu1 %2443  ;;  %v6598_v31 = vpop.f32.mrf.mxu2 }
 0x4d2   : > { %v2336_v16 = vpop.permute.xlu0 %2335  ;;  %v18666_v34 = vpack.c.bf16 %v5570_v15, %v5569_v40 }
 0x4d3   : > { %v5145_v11 = vsel %vm1273_vm1, %v5142_v48, %v5144_v47  ;;  %v3533_v52 = vsel %vm3429_vm9, %v3426_v36, %v2336_v16 }
 0x4d4   : > { %v5364_v32 = vmax.f32 %v18633_v43, %v5145_v11  ;;  %v3640_v13 = vsel %vm3536_vm10, %v3533_v52, %v2444_v38  ;;  %v1272_v38 = vpop.permute.xlu2 %1271  ;;  %v20985_v52 = vld [vmem:[#allocation16_spill] sm:$0xff] }
 0x4d5   : > { %v3747_v48 = vsel %vm3643_vm11, %v3640_v13, %v2666_v23 }
 0x4d6   : > { %v6719_v39 = vpop.f32.mrf.mxu1  ;;  %v6679_v61 = vpop.f32.mrf.mxu3 }
 0x4d7   : > { %v18682_v8 = vadd.f32 %v6719_v39, %v20984_v45  ;;  %v18684_v6 = vadd.f32 %v6679_v61, %v6587_v25  ;;  %v20986_v39 = vld [vmem:[#allocation12_spill] sm:$0xff] }
 0x4d9   : > { %v3104_v36 = vpop.permute.xlu1 %3103 }
 0x4da   : > { %v18687_v40 = vpop.f32.mrf.mxu0  ;;  %6799 = vmatmul.bf16.gmra.mxu2 %v10643_v2  ;;  %v2994_v43 = vpop.permute.xlu0 %2993  ;;  %v739_v2 = vpack.c.b16 %v20985_v52, %v20985_v52 }
 0x4db   : > { %v4638_v15 = vrot.slane %v18687_v40, 6  ;;  %v3854_v16 = vsel %vm3750_vm12, %v3747_v48, %v2994_v43 }
 0x4dc   : > { %v3961_v23 = vsel %vm3857_vm13, %v3854_v16, %v3104_v36  ;;  %v11958_v16 = vld [vmem:[%s20838_s5 + $0x98] sm:$0xf0] }
 0x4dd   : > { %v4639_v49 = vsel %vm4464_vm15, %v4636_v58, %v4638_v15  ;;  %10594 = vmatmul.msk.bf16.gmra.mxu0 %vm3975_vm14, %v3961_v23  ;;  %v3214_v58 = vsel %vm3107_vm6, %v739_v2, %v1272_v38  ;;  %v5469_v23 = vadd.f32 %v18407_v54, %v5364_v32  ;;  %v10671_v52 = vor.u32 %v11958_v16, %v10670_v44 }
 0x4de   : > { %v18701_v11 = vmax.f32 %v18557_v4, %v4639_v49  ;;  %v6722_v25 = vpop.f32.mrf.mxu1  ;;  %v18708_v13 = vpop.f32.mrf.mxu3  ;;  %v6592_v2 = vadd.f32 %v18595_v51, %v18281_v55  ;;  %v12031_v55 = vld [vmem:[%s20838_s5 + $0x2e4] sm:$0xf]  ;;  %vm7625_vm6 = vcmask 785408  }
 0x4df   : > { %v18706_v31 = vadd.f32 %v6722_v25, %v20986_v39  ;;  %20987 = vst [vmem:[#allocation22_spill] sm:$0xff] %v18708_v13 }
 0x4e0   : > { %v5146_v45 = vrot.slane %v18701_v11, 1 }
 0x4e1   : > { %6761 = vmatmul.bf16.gmra.mxu1 %v10947_v0  ;;  %v1755_v60 = vpop.permute.xlu1 %1754  ;;  %v2338_v0 = vpop.permute.xlu2 %2337 }
 0x4e2   : > { %v18712_v61 = vpop.f32.mrf.mxu0  ;;  %v1484_v48 = vpop.permute.xlu0 %1483  ;;  %v5147_v4 = vsel %vm1273_vm1, %v5144_v47, %v5146_v45 }
 0x4e3   : > { %v4640_v43 = vrot.slane %v18712_v61, 6  ;;  %v5365_v36 = vmax.f32 %v4855_v57, %v5147_v4  ;;  %v3321_v49 = vsel %vm3215_vm7, %v3214_v58, %v1484_v48  ;;  %v5571_v57 = vmax.f32 %v5469_v23, 0.0 }
 0x4e5   : > { %v4641_v38 = vsel %vm4464_vm15, %v4638_v15, %v4640_v43  ;;  %v5470_v47 = vadd.f32 %v18407_v54, %v5365_v36  ;;  %v3428_v15 = vsel %vm3322_vm8, %v3321_v49, %v1755_v60  ;;  %vm10468_vm8 = vcmask 0  }
 0x4e6   : > { %v6724_v25 = vpop.f32.mrf.mxu1  ;;  %v4857_v39 = vmax.f32 %v18582_v37, %v4641_v38  ;;  %v6684_v32 = vpop.f32.mrf.mxu3  ;;  %v3535_v51 = vsel %vm3429_vm9, %v3428_v15, %v2338_v0 }
 0x4e7   : > { %v18730_v21 = vadd.f32 %v6724_v25, %v18080_v14  ;;  %v5572_v4 = vmax.f32 %v5470_v47, 0.0  ;;  %v18733_v58 = vadd.f32 %v6684_v32, %v6592_v2  ;;  %v10972_v14 = vld [vmem:[%s20838_s5 + $0x2fc] sm:$0xf0] }
 0x4e8   : > { %v5148_v13 = vrot.slane %v4857_v39, 1  ;;  %v10975_v23 = vor.u32 %v12031_v55, %v10972_v14  ;;  %v6597_v55 = vadd.f32 %v18656_v7, %v18357_v59  ;;  %v11000_v59 = vld [vmem:[%s20838_s5 + $0x334] sm:$0xf0] }
 0x4e9   : > { %v18735_v48 = vpack.c.bf16 %v5572_v4, %v5571_v57  ;;  %v2668_v36 = vpop.permute.xlu1 %2667  ;;  %v2996_v47 = vpop.permute.xlu2 %2995  ;;  %v10698_v4 = vld [vmem:[%s20838_s5 + $0xb8] sm:$0xf] }
 0x4ea   : > { %6804 = vmatmul.bf16.gmra.mxu2 %v10671_v52  ;;  %v2446_v44 = vpop.permute.xlu0 %2445  ;;  %v5149_v37 = vsel %vm1273_vm1, %v5146_v45, %v5148_v13 }
 0x4eb   : > { %v5366_v60 = vmax.f32 %v18701_v11, %v5149_v37  ;;  %v3642_v16 = vsel %vm3536_vm10, %v3535_v51, %v2446_v44 }
 0x4ec   : > { %v3749_v49 = vsel %vm3643_vm11, %v3642_v16, %v2668_v36 }
 0x4ed   : > { %v3856_v45 = vsel %vm3750_vm12, %v3749_v49, %v2996_v47 }
 0x4ee   : > { %v6727_v38 = vpop.f32.mrf.mxu1  ;;  %v18751_v2 = vpop.f32.mrf.mxu3 }
 0x4ef   : > { %v18749_v52 = vadd.f32 %v6727_v38, %v18120_v1  ;;  %20988 = vst [vmem:[#allocation16_spill] sm:$0xff] %v18751_v2  ;;  %v11965_v1 = vld [vmem:[%s20838_s5 + $0xd0] sm:$0xf0]  ;;  %v5471_v38 = vadd.f32 %v18407_v54, %v5366_v60 }
 0x4f0   : > { %v10699_v44 = vor.u32 %v11965_v1, %v10698_v4 }
 0x4f1   : > { %v18753_v25 = vpop.f32.mrf.mxu0  ;;  %6766 = vmatmul.bf16.gmra.mxu1 %v10975_v23 }
 0x4f2   : > { %v4642_v11 = vrot.slane %v18753_v25, 6  ;;  %v3106_v0 = vpop.permute.xlu0 %3105 }
 0x4f3   : > { %v3963_v57 = vsel %vm3857_vm13, %v3856_v45, %v3106_v0 }
 0x4f4   : > { %v4643_v32 = vsel %vm4464_vm15, %v4640_v43, %v4642_v11  ;;  %10595 = vmatmul.msk.bf16.gmra.mxu0 %vm3975_vm14, %v3963_v57  ;;  %v5573_v57 = vmax.f32 %v5471_v38, 0.0  ;;  %v11028_v38 = vld [vmem:[%s20838_s5 + $0x36c] sm:$0xf0] }
 0x4f5   : > { %v4858_v15 = vmax.f32 %v18614_v24, %v4643_v32  ;;  %v12038_v24 = vld [vmem:[%s20838_s5 + $0x31c] sm:$0xf] }
 0x4f6   : > { %v18769_v14 = vpop.f32.mrf.mxu1  ;;  %v6689_v51 = vpop.f32.mrf.mxu3  ;;  %v11003_v45 = vor.u32 %v12038_v24, %v11000_v59 }
 0x4f7   : > { %v5150_v37 = vrot.slane %v4858_v15, 1  ;;  %v18771_v16 = vadd.f32 %v6689_v51, %v6597_v55  ;;  %v11972_v51 = vld [vmem:[%s20838_s5 + $0x108] sm:$0xf0] }
 0x4f9   : > { %v18773_v36 = vpop.f32.mrf.mxu0  ;;  %v5151_v23 = vsel %vm1273_vm1, %v5148_v13, %v5150_v37 }
 0x4fa   : > { %v4644_v43 = vrot.slane %v18773_v36, 6  ;;  %6809 = vmatmul.bf16.gmra.mxu2 %v10699_v44  ;;  %v5367_v7 = vmax.f32 %v4857_v39, %v5151_v23 }
 0x4fc   : > { %v4645_v49 = vsel %vm4464_vm15, %v4642_v11, %v4644_v43  ;;  %v5472_v47 = vadd.f32 %v18407_v54, %v5367_v7  ;;  %v12045_v7 = vld [vmem:[%s20838_s5 + $0x354] sm:$0xf] }
 0x4fd   : > { %v4859_v13 = vmax.f32 %v18648_v12, %v4645_v49  ;;  %v10726_v12 = vld [vmem:[%s20838_s5 + $0xf0] sm:$0xf] }
 0x4fe   : > { %v6732_v0 = vpop.f32.mrf.mxu1  ;;  %v5574_v4 = vmax.f32 %v5472_v47, 0.0  ;;  %v6691_v44 = vpop.f32.mrf.mxu3  ;;  %v10727_v24 = vor.u32 %v11972_v51, %v10726_v12 }
 0x4ff   : > { %v18788_v1 = vadd.f32 %v6732_v0, %v18226_v26  ;;  %v5152_v32 = vrot.slane %v4859_v13, 1 }
 0x500   : > { %v18790_v55 = vpack.c.bf16 %v5574_v4, %v5573_v57  ;;  %v11031_v57 = vor.u32 %v12045_v7, %v11028_v38  ;;  %v6131_v38 = vunpack.c.h.b16 %v18330_v41 }
 0x501   : > { %6771 = vmatmul.bf16.gmra.mxu1 %v11003_v45  ;;  %v5153_v39 = vsel %vm1273_vm1, %v5150_v37, %v5152_v32 }
 0x502   : > { %v5368_v60 = vmax.f32 %v4858_v15, %v5153_v39 }
 0x503   : > { %v18793_v11 = vpop.f32.mrf.mxu0 }
 0x504   : > { %v4646_v26 = vrot.slane %v18793_v11, 6 }
 0x506   : > { %v4647_v23 = vsel %vm4464_vm15, %v4644_v43, %v4646_v26  ;;  %v18803_v59 = vpop.f32.mrf.mxu1  ;;  %v5473_v43 = vadd.f32 %v18407_v54, %v5368_v60 }
 0x507   : > { %v4860_v37 = vmax.f32 %v18687_v40, %v4647_v23 }
 0x508   : > { %v5575_v39 = vmax.f32 %v5473_v43, 0.0 }
 0x509   : > { %v5154_v15 = vrot.slane %v4860_v37, 1 }
 0x50a   : > { %6814 = vmatmul.bf16.gmra.mxu2 %v10727_v24 }
 0x50b   : > { %v4335_v49 = vpop.f32.mrf.mxu0  ;;  %v5155_v47 = vsel %vm1273_vm1, %v5152_v32, %v5154_v15  ;;  %v11979_v32 = vld [vmem:[%s20838_s5 + $0x140] sm:$0xf0] }
 0x50c   : > { %v5369_v45 = vmax.f32 %v4859_v13, %v5155_v47  ;;  %v4648_v0 = vrot.slane %v4335_v49, 6  ;;  %v10754_v13 = vld [vmem:[%s20838_s5 + $0x128] sm:$0xf] }
 0x50d   : > { %v10755_v24 = vor.u32 %v11979_v32, %v10754_v13 }
 0x50e   : > { %v6737_v4 = vpop.f32.mrf.mxu1  ;;  %v5474_v40 = vadd.f32 %v18407_v54, %v5369_v45  ;;  %v4649_v51 = vsel %vm4464_vm15, %v4646_v26, %v4648_v0 }
 0x50f   : > { %v18816_v44 = vadd.f32 %v6737_v4, %v18320_v20  ;;  %v4861_v60 = vmax.f32 %v18712_v61, %v4649_v51 }
 0x510   : > { %v5576_v12 = vmax.f32 %v5474_v40, 0.0 }
 0x511   : > { %6776 = vmatmul.bf16.gmra.mxu1 %v11031_v57  ;;  %v5156_v7 = vrot.slane %v4861_v60, 1  ;;  %v6250_v57 = vpack.c.b16 %v6131_v38, %v6131_v38 }
 0x512   : > { %v18819_v23 = vpack.c.bf16 %v5576_v12, %v5575_v39 }
 0x513   : > { %v5157_v45 = vsel %vm1273_vm1, %v5154_v15, %v5156_v7  ;;  %v10782_v15 = vld [vmem:[%s20838_s5 + $0x160] sm:$0xf] }
 0x514   : > { %v5370_v39 = vmax.f32 %v4860_v37, %v5157_v45 }
 0x516   : > { %v18828_v20 = vpop.f32.mrf.mxu1  ;;  %v5475_v51 = vadd.f32 %v18407_v54, %v5370_v39 }
 0x517   : > { %20989 = vst [vmem:[#allocation12_spill] sm:$0xff] %v18828_v20 }
 0x518   : > { %v5577_v32 = vmax.f32 %v5475_v51, 0.0 }
 0x51a   : > { %v4338_v26 = vpop.f32.mrf.mxu0  ;;  %6819 = vmatmul.bf16.gmra.mxu2 %v10755_v24 }
 0x51b   : > { %v4650_v47 = vrot.slane %v4338_v26, 6 }
 0x51d   : > { %v4651_v43 = vsel %vm4464_vm15, %v4648_v0, %v4650_v47  ;;  %v11986_v0 = vld [vmem:[%s20838_s5 + $0x178] sm:$0xf0] }
 0x51e   : > { %v18834_v4 = vmax.f32 %v18753_v25, %v4651_v43  ;;  %v6742_v40 = vpop.f32.mrf.mxu1 }
 0x51f   : > { %v18837_v61 = vadd.f32 %v6742_v40, %v18391_v62  ;;  %v10783_v62 = vor.u32 %v11986_v0, %v10782_v15  ;;  %v11993_v40 = vld [vmem:[%s20838_s5 + $0x1b0] sm:$0xf0] }
 0x520   : > { %v5158_v12 = vrot.slane %v18834_v4, 1 }
 0x521   : > { %6781 = vmatmul.bf16.gmra.mxu1 %v6250_v57 }
 0x522   : > { %v5159_v41 = vsel %vm1273_vm1, %v5156_v7, %v5158_v12  ;;  %v4340_v38 = vpop.f32.mrf.mxu0 }
 0x523   : > { %v5371_v25 = vmax.f32 %v4861_v60, %v5159_v41  ;;  %v10810_v60 = vld [vmem:[%s20838_s5 + $0x198] sm:$0xf] }
 0x524   : > { %v10811_v39 = vor.u32 %v11993_v40, %v10810_v60 }
 0x525   : > { %v5476_v37 = vadd.f32 %v18407_v54, %v5371_v25  ;;  %v4652_v25 = vrot.slane %v4340_v38, 6 }
 0x526   : > { %v18849_v13 = vpop.f32.mrf.mxu1 }
 0x527   : > { %20990 = vst [vmem:[#allocation35_spill] sm:$0xff] %v18849_v13  ;;  %v5578_v24 = vmax.f32 %v5476_v37, 0.0 }
 0x529   : > { %v18851_v7 = vpack.c.bf16 %v5578_v24, %v5577_v32  ;;  %v4653_v32 = vsel %vm4464_vm15, %v4650_v47, %v4652_v25 }
 0x52a   : > { %6824 = vmatmul.bf16.gmra.mxu2 %v10783_v62  ;;  %v4863_v40 = vmax.f32 %v18773_v36, %v4653_v32 }
 0x52e   : > { %v6747_v45 = vpop.f32.mrf.mxu1 }
 0x52f   : > { %v18854_v43 = vadd.f32 %v6747_v45, %v18443_v35 }
 0x531   : > { %v18856_v57 = vpop.f32.mrf.mxu0 }
 0x532   : > { %v4654_v15 = vrot.slane %v18856_v57, 6 }
 0x534   : > { %v4655_v51 = vsel %vm4464_vm15, %v4652_v25, %v4654_v15 }
 0x535   : > { %v4864_v45 = vmax.f32 %v18793_v11, %v4655_v51  ;;  %v5160_v11 = vrot.slane %v4863_v40, 1 }
 0x536   : > { %v18864_v41 = vpop.f32.mrf.mxu1 }
 0x537   : > { %20991 = vst [vmem:[#allocation36_spill] sm:$0xff] %v18864_v41  ;;  %v5162_v18 = vrot.slane %v4864_v45, 1  ;;  %v5161_v63 = vsel %vm1273_vm1, %v5158_v12, %v5160_v11 }
 0x539   : > { %v18867_v0 = vpop.f32.mrf.mxu0 }
 0x53a   : > { %v4656_v35 = vrot.slane %v18867_v0, 6  ;;  %6829 = vmatmul.bf16.gmra.mxu2 %v10811_v39  ;;  %v10838_v39 = vld [vmem:[%s20838_s5 + $0x1d0] sm:$0xf] }
 0x53c   : > { %v4657_v37 = vsel %vm4464_vm15, %v4654_v15, %v4656_v35 }
 0x53d   : > { %v4865_v62 = vmax.f32 %v4335_v49, %v4657_v37  ;;  %v12000_v49 = vld [vmem:[%s20838_s5 + $0x1e8] sm:$0xf0]  ;;  %v5163_v37 = vsel %vm1273_vm1, %v5160_v11, %v5162_v18 }
 0x53e   : > { %v6752_v24 = vpop.f32.mrf.mxu1  ;;  %v10839_v36 = vor.u32 %v12000_v49, %v10838_v39  ;;  %v5373_v3 = vmax.f32 %v4863_v40, %v5163_v37 }
 0x53f   : > { %v18875_v60 = vadd.f32 %v6752_v24, %v18481_v5  ;;  %v5164_v2 = vrot.slane %v4865_v62, 1 }
 0x540   : > { %v5478_v12 = vadd.f32 %v18407_v54, %v5373_v3  ;;  %v12007_v3 = vld [vmem:[%s20838_s5 + $0x220] sm:$0xf0] }
 0x541   : > { %v5165_v5 = vsel %vm1273_vm1, %v5162_v18, %v5164_v2 }
 0x542   : > { %v5374_v32 = vmax.f32 %v4864_v45, %v5165_v5  ;;  %v5580_v11 = vmax.f32 %v5478_v12, 0.0 }
 0x543   : > { %v18878_v19 = vpop.f32.mrf.mxu0 }
 0x544   : > { %v4658_v47 = vrot.slane %v18878_v19, 6  ;;  %v5479_v20 = vadd.f32 %v18407_v54, %v5374_v32 }
 0x546   : > { %v4659_v15 = vsel %vm4464_vm15, %v4656_v35, %v4658_v47  ;;  %v18889_v25 = vpop.f32.mrf.mxu1  ;;  %v5372_v35 = vmax.f32 %v18834_v4, %v5161_v63 }
 0x547   : > { %v4866_v51 = vmax.f32 %v4338_v26, %v4659_v15 }
 0x549   : > { %v5166_v24 = vrot.slane %v4866_v51, 1 }
 0x54a   : > { %6834 = vmatmul.bf16.gmra.mxu2 %v10839_v36 }
 0x54b   : > { %v18893_v17 = vpop.f32.mrf.mxu0  ;;  %v5167_v41 = vsel %vm1273_vm1, %v5164_v2, %v5166_v24  ;;  %v5581_v2 = vmax.f32 %v5479_v20, 0.0 }
 0x54c   : > { %v5375_v13 = vmax.f32 %v4865_v62, %v5167_v41  ;;  %v4660_v39 = vrot.slane %v18893_v17, 6  ;;  %v5477_v62 = vadd.f32 %v18407_v54, %v5372_v35 }
 0x54d   : > { %v6795_v26 = vpop.f32.mrf.mxu2 }
 0x54e   : > { %v18900_v18 = vadd.f32 %v6795_v26, %v18508_v9  ;;  %v5480_v45 = vadd.f32 %v18407_v54, %v5375_v13  ;;  %v6757_v40 = vpop.f32.mrf.mxu1  ;;  %v4661_v63 = vsel %vm4464_vm15, %v4658_v47, %v4660_v39  ;;  %v10866_v9 = vld [vmem:[%s20838_s5 + $0x208] sm:$0xf] }
 0x54f   : > { %v18905_v49 = vadd.f32 %v6757_v40, %v18536_v29  ;;  %v4867_v13 = vmax.f32 %v4340_v38, %v4661_v63  ;;  %v5579_v29 = vmax.f32 %v5477_v62, 0.0  ;;  %v10867_v36 = vor.u32 %v12007_v3, %v10866_v9 }
 0x550   : > { %v5582_v41 = vmax.f32 %v5480_v45, 0.0 }
 0x551   : > { %v5767_v15 = vpack.c.bf16 %v5580_v11, %v5579_v29  ;;  %v5168_v37 = vrot.slane %v4867_v13, 1 }
 0x552   : > { %v5768_v4 = vpack.c.bf16 %v5582_v41, %v5581_v2 }
 0x553   : > { %v5169_v26 = vsel %vm1273_vm1, %v5166_v24, %v5168_v37  ;;  %v10894_v24 = vld [vmem:[%s20838_s5 + $0x240] sm:$0xf] }
 0x554   : > { %6879 = vmatpush.bf16.msrb.mxu3 %v5768_v4  ;;  %v5376_v2 = vmax.f32 %v4866_v51, %v5169_v26 }
 0x555   : > { %v6797_v5 = vpop.f32.mrf.mxu2 }
 0x556   : > { %v18916_v20 = vadd.f32 %v6797_v5, %v18532_v28  ;;  %v18918_v47 = vpop.f32.mrf.mxu1  ;;  %v5481_v51 = vadd.f32 %v18407_v54, %v5376_v2 }
 0x558   : > { %6880 = vmatpush.bf16.msrb.mxu3 %v5767_v15  ;;  %v5583_v9 = vmax.f32 %v5481_v51, 0.0 }
 0x55a   : > { %v4353_v32 = vpop.f32.mrf.mxu0  ;;  %6839 = vmatmul.bf16.gmra.mxu2 %v10867_v36 }
 0x55b   : > { %v4662_v35 = vrot.slane %v4353_v32, 6 }
 0x55c   : > { %6881 = vmatpush.bf16.msrb.mxu3 %v18851_v7 }
 0x55d   : > { %v4663_v38 = vsel %vm4464_vm15, %v4660_v39, %v4662_v35  ;;  %v6800_v45 = vpop.f32.mrf.mxu2 }
 0x55e   : > { %v18924_v12 = vmax.f32 %v18856_v57, %v4663_v38  ;;  %v18927_v28 = vadd.f32 %v6800_v45, %v18555_v33  ;;  %v6762_v40 = vpop.f32.mrf.mxu1  ;;  %v12014_v33 = vld [vmem:[%s20838_s5 + $0x258] sm:$0xf0]  ;;  %v10922_v38 = vld [vmem:[%s20838_s5 + $0x278] sm:$0xf] }
 0x55f   : > { %v18930_v41 = vadd.f32 %v6762_v40, %v18579_v50  ;;  %v10895_v63 = vor.u32 %v12014_v33, %v10894_v24 }
 0x560   : > { %v5170_v62 = vrot.slane %v18924_v12, 1  ;;  %6882 = vmatpush.bf16.msrb.mxu3 %v18819_v23 }
 0x562   : > { %v5171_v7 = vsel %vm1273_vm1, %v5168_v37, %v5170_v62  ;;  %v4355_v11 = vpop.f32.mrf.mxu0 }
 0x563   : > { %v5377_v57 = vmax.f32 %v4867_v13, %v5171_v7  ;;  %v4664_v13 = vrot.slane %v4355_v11, 6 }
 0x564   : > { %6883 = vmatpush.bf16.msrb.mxu3 %v18790_v55 }
 0x565   : > { %v6802_v50 = vpop.f32.mrf.mxu2  ;;  %v5482_v39 = vadd.f32 %v18407_v54, %v5377_v57  ;;  %v11941_v54 = vld [vmem:[%s20838_s5 + $0x14] sm:$0xf]  ;;  %v4665_v5 = vsel %vm4464_vm15, %v4662_v35, %v4664_v13 }
 0x566   : > { %v18945_v23 = vadd.f32 %v6802_v50, %v18577_v46  ;;  %v18947_v4 = vpop.f32.mrf.mxu1  ;;  %v10616_v46 = vld [vmem:[%s20838_s5 + $0x2c] sm:$0xf0] }
 0x567   : > { %v5584_v3 = vmax.f32 %v5482_v39, 0.0  ;;  %v10619_v36 = vor.u32 %v11941_v54, %v10616_v46  ;;  %v11948_v54 = vld [vmem:[%s20838_s5 + $0x4c] sm:$0xf] }
 0x568   : > { %6884 = vmatpush.bf16.msrb.mxu3 %v18735_v48 }
 0x569   : > { %v18950_v29 = vpack.c.bf16 %v5584_v3, %v5583_v9  ;;  %v20992_v9 = vmov 65535  }
 0x56a   : > { %6844 = vmatmul.bf16.gmra.mxu2 %v10895_v63  ;;  %v6409_v3 = vsel %vm6408_vm3, 4294967295, %v20992_v9 }
 0x56c   : > { %6885 = vmatpush.bf16.msrb.mxu3 %v18666_v34  ;;  %v4869_v34 = vmax.f32 %v18867_v0, %v4665_v5 }
 0x56d   : > { %v6805_v55 = vpop.f32.mrf.mxu2 }
 0x56e   : > { %v18961_v15 = vadd.f32 %v6805_v55, %v18606_v27  ;;  %v6767_v48 = vpop.f32.mrf.mxu1  ;;  %v12021_v27 = vld [vmem:[%s20838_s5 + $0x290] sm:$0xf0]  ;;  %v5172_v45 = vrot.slane %v4869_v34, 1 }
 0x56f   : > { %v18964_v37 = vadd.f32 %v6767_v48, %v18639_v56  ;;  %v10923_v7 = vor.u32 %v12021_v27, %v10922_v38 }
 0x570   : > { %6886 = vmatpush.bf16.msrb.mxu3 %v18608_v30  ;;  %v5173_v39 = vsel %vm1273_vm1, %v5170_v62, %v5172_v45  ;;  %v10644_v62 = vld [vmem:[%s20838_s5 + $0x64] sm:$0xf0] }
 0x571   : > { %v4358_v32 = vpop.f32.mrf.mxu0  ;;  %v5378_v46 = vmax.f32 %v18924_v12, %v5173_v39  ;;  %v10647_v38 = vor.u32 %v11948_v54, %v10644_v62  ;;  %v10950_v12 = vld [vmem:[%s20838_s5 + $0x2b0] sm:$0xf] }
 0x572   : > { %v4666_v26 = vrot.slane %v4358_v32, 6 }
 0x573   : > { %6887 = vmatmul.bf16.vlgmr.msrb.gmra.mxu3 %v10619_v36 }
 0x574   : > { %v4667_v35 = vsel %vm4464_vm15, %v4664_v13, %v4666_v26  ;;  %v4871_v56 = vmax.f32 %v18893_v17, %v4666_v26  ;;  %v6410_v26 = vsel %vm1544_vm0, %v6409_v3, 0  ;;  %vm6356_vm0 = vcmask 334848   ;;  %v12035_v3 = vld [vmem:[%s20838_s5 + $0x300] sm:$0xf0] }
 0x575   : > { %v4870_v30 = vmax.f32 %v18878_v19, %v4667_v35  ;;  %v6807_v40 = vpop.f32.mrf.mxu2  ;;  %v12937_v19 = vld [vmem:[%s20835_s2] ss:$0 sm:$0xff] }
 0x576   : > { %v5176_v0 = vrot.slane %v4871_v56, 1  ;;  %v18978_v2 = vadd.f32 %v6807_v40, %v18637_v53  ;;  %v18980_v24 = vpop.f32.mrf.mxu1 }
 0x577   : > { %v5174_v33 = vrot.slane %v4870_v30, 1 }
 0x578   : > { %v5381_v57 = vmax.f32 %v4871_v56, %v5176_v0  ;;  %v5483_v56 = vadd.f32 %v12937_v19, %v5378_v46  ;;  %v11952_v46 = vld [vmem:[%s20838_s5 + $0x68] sm:$0xf0] }
 0x579   : > { %v5177_v51 = vsel %vm1273_vm1, %v5174_v33, %v5176_v0  ;;  %v4360_v50 = vpop.f32.mrf.mxu0  ;;  %v5175_v17 = vsel %vm1273_vm1, %v5172_v45, %v5174_v33 }
 0x57a   : > { %v5380_v63 = vmax.f32 %v4870_v30, %v5177_v51  ;;  %v5486_v53 = vadd.f32 %v12937_v19, %v5381_v57  ;;  %6849 = vmatmul.bf16.gmra.mxu2 %v10923_v7  ;;  %v5379_v11 = vmax.f32 %v4869_v34, %v5175_v17  ;;  %v5585_v40 = vmax.f32 %v5483_v56, 0.0  ;;  %v10622_v51 = vld [vmem:[%s20838_s5 + $0x18] sm:$0xf]  ;;  %v11945_v50 = vld [vmem:[%s20838_s5 + $0x30] sm:$0xf0] }
 0x57b   : > { %v10623_v39 = vor.u32 %v11945_v50, %v10622_v51  ;;  %v10672_v17 = vld [vmem:[%s20838_s5 + $0x9c] sm:$0xf0]  ;;  %v12042_v56 = vld [vmem:[%s20838_s5 + $0x338] sm:$0xf0]  ;;  %v11034_v50 = vld [vmem:[%s20838_s5 + $0x358] sm:$0xf] }
 0x57c   : > { %v5485_v13 = vadd.f32 %v12937_v19, %v5380_v63  ;;  %v5588_v48 = vmax.f32 %v5486_v53, 0.0  ;;  %v5484_v34 = vadd.f32 %v12937_v19, %v5379_v11 }
 0x57d   : > { %v6810_v55 = vpop.f32.mrf.mxu2 }
 0x57e   : > { %v5587_v5 = vmax.f32 %v5485_v13, 0.0  ;;  %v18997_v36 = vadd.f32 %v6810_v55, %v18660_v22  ;;  %v6772_v32 = vpop.f32.mrf.mxu1  ;;  %v5586_v30 = vmax.f32 %v5484_v34, 0.0  ;;  %v12028_v22 = vld [vmem:[%s20838_s5 + $0x2c8] sm:$0xf0] }
 0x57f   : > { %v19001_v27 = vadd.f32 %v6772_v32, %v18684_v6  ;;  %v10951_v33 = vor.u32 %v12028_v22, %v10950_v12  ;;  %v10678_v12 = vld [vmem:[%s20838_s5 + $0x88] sm:$0xf] }
 0x580   : > { %v5771_v35 = vpack.c.bf16 %v5588_v48, %v5587_v5  ;;  %v5770_v6 = vpack.c.bf16 %v5586_v30, %v5585_v40  ;;  %v11962_v5 = vld [vmem:[%s20838_s5 + $0xbc] sm:$0xf]  ;;  %v11969_v40 = vld [vmem:[%s20838_s5 + $0xf4] sm:$0xf] }
 0x582   : > { %v6412_v45 = vand.u32 %v6410_v26, %v5771_v35  ;;  %v11006_v35 = vld [vmem:[%s20838_s5 + $0x320] sm:$0xf] }
 0x583   : > { %6892 = vmatmul.bf16.gmra.mxu3 %v10647_v38 }
 0x584   : > { %6977 = vmatpush.bf16.msra.mxu1 %v6412_v45 }
 0x585   : > { %v6812_v0 = vpop.f32.mrf.mxu2 }
 0x586   : > { %v19010_v7 = vadd.f32 %v6812_v0, %v18682_v8  ;;  %v19012_v57 = vpop.f32.mrf.mxu1  ;;  %v11955_v8 = vld [vmem:[%s20838_s5 + $0x84] sm:$0xf]  ;;  %v10728_v0 = vld [vmem:[%s20838_s5 + $0x10c] sm:$0xf0] }
 0x587   : > { %v10675_v11 = vor.u32 %v11955_v8, %v10672_v17  ;;  %v10731_v51 = vor.u32 %v11969_v40, %v10728_v0  ;;  %v10812_v40 = vld [vmem:[%s20838_s5 + $0x1b4] sm:$0xf0] }
 0x588   : > { %6978 = vmatpush.bf16.msra.mxu1 %v5770_v6 }
 0x58a   : > { %6854 = vmatmul.bf16.gmra.mxu2 %v10951_v33 }
 0x58c   : > { %6979 = vmatpush.bf16.msra.mxu1 %v18950_v29  ;;  %v10978_v29 = vld [vmem:[%s20838_s5 + $0x2e8] sm:$0xf] }
 0x58d   : > { %v6815_v63 = vpop.f32.mrf.mxu2  ;;  %v10979_v54 = vor.u32 %v12035_v3, %v10978_v29  ;;  %v10756_v29 = vld [vmem:[%s20838_s5 + $0x144] sm:$0xf0] }
 0x58e   : > { %v19028_v19 = vadd.f32 %v6815_v63, %v18706_v31  ;;  %v6777_v53 = vpop.f32.mrf.mxu1  ;;  %v11966_v63 = vld [vmem:[%s20838_s5 + $0xd8] sm:$0xf0] }
 0x58f   : > { %11044 = vmatmul.msk.bf16.vlgmr.msra.gmra.mxu1 %vm6356_vm0, %v10623_v39  ;;  %v19032_v9 = vadd.f32 %v6777_v53, %v18733_v58  ;;  %v10650_v58 = vld [vmem:[%s20838_s5 + $0x50] sm:$0xf]  ;;  %v12049_v39 = vld [vmem:[%s20838_s5 + $0x370] sm:$0xf0] }
 0x590   : > { %v10651_v55 = vor.u32 %v11952_v46, %v10650_v58  ;;  %v11035_v17 = vor.u32 %v12049_v39, %v11034_v50  ;;  %v19115_v58 = vld [vmem:[%s20838_s5 + $0x390] sm:$0x11]  ;;  %v10790_v39 = vld [vmem:[%s20838_s5 + $0x168] sm:$0xf] }
 0x591   : > { %v6132_v46 = vunpack.c.l.b16 %v19115_v58 }
 0x593   : > { %6897 = vmatmul.bf16.gmra.mxu3 %v10675_v11  ;;  %v11976_v11 = vld [vmem:[%s20838_s5 + $0x12c] sm:$0xf] }
 0x595   : > { %v6817_v13 = vpop.f32.mrf.mxu2 }
 0x596   : > { %v19041_v31 = vadd.f32 %v6817_v13, %v18730_v21  ;;  %v19043_v62 = vpop.f32.mrf.mxu1  ;;  %v10700_v21 = vld [vmem:[%s20838_s5 + $0xd4] sm:$0xf0] }
 0x597   : > { %v10703_v26 = vor.u32 %v11962_v5, %v10700_v21  ;;  %v6251_v5 = vpack.c.b16 %v6132_v46, %v6132_v46  ;;  %v10734_v21 = vld [vmem:[%s20838_s5 + $0xf8] sm:$0xf]  ;;  %v10818_v46 = vld [vmem:[%s20838_s5 + $0x1a0] sm:$0xf] }
 0x59a   : > { %6859 = vmatmul.bf16.gmra.mxu2 %v10979_v54  ;;  %v10759_v54 = vor.u32 %v11976_v11, %v10756_v29 }
 0x59d   : > { %v6820_v48 = vpop.f32.mrf.mxu2 }
 0x59e   : > { %v19058_v34 = vadd.f32 %v6820_v48, %v18749_v52  ;;  %v6782_v32 = vpop.f32.mrf.mxu1  ;;  %v11007_v52 = vor.u32 %v12042_v56, %v11006_v35 }
 0x59f   : > { %11045 = vmatmul.msk.bf16.gmra.mxu1 %vm6356_vm0, %v10651_v55  ;;  %v19062_v38 = vadd.f32 %v6782_v32, %v18771_v16  ;;  %v11959_v16 = vld [vmem:[%s20838_s5 + $0xa0] sm:$0xf0] }
 0x5a0   : > { %v10679_v22 = vor.u32 %v11959_v16, %v10678_v12  ;;  %v11983_v32 = vld [vmem:[%s20838_s5 + $0x164] sm:$0xf]  ;;  %v10762_v12 = vld [vmem:[%s20838_s5 + $0x130] sm:$0xf]  ;;  %v11980_v16 = vld [vmem:[%s20838_s5 + $0x148] sm:$0xf0] }
 0x5a3   : > { %6902 = vmatmul.bf16.gmra.mxu3 %v10703_v26  ;;  %v10784_v26 = vld [vmem:[%s20838_s5 + $0x17c] sm:$0xf0] }
 0x5a5   : > { %v19070_v45 = vpop.f32.mrf.mxu2 }
 0x5a6   : > { %v6784_v30 = vpop.f32.mrf.mxu1 }
 0x5aa   : > { %6864 = vmatmul.bf16.gmra.mxu2 %v11007_v52  ;;  %v10787_v52 = vor.u32 %v11983_v32, %v10784_v26 }
 0x5ad   : > { %v6825_v6 = vpop.f32.mrf.mxu2 }
 0x5ae   : > { %v19085_v33 = vadd.f32 %v6825_v6, %v18788_v1  ;;  %v10706_v1 = vld [vmem:[%s20838_s5 + $0xc0] sm:$0xf] }
 0x5af   : > { %11046 = vmatmul.msk.bf16.gmra.mxu1 %vm6356_vm0, %v10679_v22  ;;  %v10707_v53 = vor.u32 %v11966_v63, %v10706_v1  ;;  %v10763_v22 = vor.u32 %v11980_v16, %v10762_v12  ;;  %v10840_v63 = vld [vmem:[%s20838_s5 + $0x1ec] sm:$0xf0]  ;;  %v10846_v16 = vld [vmem:[%s20838_s5 + $0x1d8] sm:$0xf] }
 0x5b3   : > { %6907 = vmatmul.bf16.gmra.mxu3 %v10731_v51 }
 0x5b5   : > { %v19094_v8 = vpop.f32.mrf.mxu2 }
 0x5ba   : > { %6869 = vmatmul.bf16.gmra.mxu2 %v11035_v17  ;;  %v11987_v17 = vld [vmem:[%s20838_s5 + $0x180] sm:$0xf0] }
 0x5bb   : > { %v10791_v1 = vor.u32 %v11987_v17, %v10790_v39 }
 0x5bd   : > { %v6830_v3 = vpop.f32.mrf.mxu2 }
 0x5be   : > { %v19109_v13 = vadd.f32 %v6830_v3, %v18816_v44  ;;  %v11973_v44 = vld [vmem:[%s20838_s5 + $0x110] sm:$0xf0] }
 0x5bf   : > { %11047 = vmatmul.msk.bf16.gmra.mxu1 %vm6356_vm0, %v10707_v53  ;;  %v10735_v48 = vor.u32 %v11973_v44, %v10734_v21  ;;  %v10868_v44 = vld [vmem:[%s20838_s5 + $0x224] sm:$0xf0] }
 0x5c3   : > { %6912 = vmatmul.bf16.gmra.mxu3 %v10759_v54 }
 0x5c5   : > { %v19118_v55 = vpop.f32.mrf.mxu2 }
 0x5ca   : > { %6874 = vmatmul.bf16.gmra.mxu2 %v6251_v5  ;;  %v11994_v5 = vld [vmem:[%s20838_s5 + $0x1b8] sm:$0xf0] }
 0x5cb   : > { %v10819_v21 = vor.u32 %v11994_v5, %v10818_v46 }
 0x5cd   : > { %v6835_v35 = vpop.f32.mrf.mxu2 }
 0x5ce   : > { %v19133_v56 = vadd.f32 %v6835_v35, %v18837_v61  ;;  %v11990_v61 = vld [vmem:[%s20838_s5 + $0x19c] sm:$0xf] }
 0x5cf   : > { %11048 = vmatmul.msk.bf16.gmra.mxu1 %vm6356_vm0, %v10735_v48  ;;  %v10815_v51 = vor.u32 %v11990_v61, %v10812_v40 }
 0x5d3   : > { %6917 = vmatmul.bf16.gmra.mxu3 %v10787_v52 }
 0x5d5   : > { %v19136_v30 = vpop.f32.mrf.mxu2 }
 0x5dd   : > { %v6840_v0 = vpop.f32.mrf.mxu2 }
 0x5de   : > { %v19151_v6 = vadd.f32 %v6840_v0, %v18854_v43  ;;  %v11997_v43 = vld [vmem:[%s20838_s5 + $0x1d4] sm:$0xf]  ;;  %v10896_v0 = vld [vmem:[%s20838_s5 + $0x25c] sm:$0xf0] }
 0x5df   : > { %11049 = vmatmul.msk.bf16.gmra.mxu1 %vm6356_vm0, %v10763_v22  ;;  %v10843_v29 = vor.u32 %v11997_v43, %v10840_v63  ;;  %v12001_v22 = vld [vmem:[%s20838_s5 + $0x1f0] sm:$0xf0] }
 0x5e0   : > { %v10847_v61 = vor.u32 %v12001_v22, %v10846_v16  ;;  %v12018_v16 = vld [vmem:[%s20838_s5 + $0x27c] sm:$0xf]  ;;  %v10924_v22 = vld [vmem:[%s20838_s5 + $0x294] sm:$0xf0] }
 0x5e3   : > { %6922 = vmatmul.bf16.gmra.mxu3 %v10815_v51 }
 0x5e5   : > { %v19154_v50 = vpop.f32.mrf.mxu2 }
 0x5ed   : > { %v6845_v53 = vpop.f32.mrf.mxu2 }
 0x5ee   : > { %v19169_v11 = vadd.f32 %v6845_v53, %v18875_v60  ;;  %v12004_v60 = vld [vmem:[%s20838_s5 + $0x20c] sm:$0xf] }
 0x5ef   : > { %11050 = vmatmul.msk.bf16.gmra.mxu1 %vm6356_vm0, %v10791_v1  ;;  %v10871_v35 = vor.u32 %v12004_v60, %v10868_v44 }
 0x5f3   : > { %6927 = vmatmul.bf16.gmra.mxu3 %v10843_v29 }
 0x5f5   : > { %v19172_v3 = vpop.f32.mrf.mxu2 }
 0x5f6   : > { %v6888_v54 = vpop.f32.mrf.mxu3 }
 0x5f7   : > { %v6889_v1 = vadd.f32 %v6888_v54, %v18900_v18  ;;  %v12008_v18 = vld [vmem:[%s20838_s5 + $0x228] sm:$0xf0] }
 0x5fd   : > { %v6850_v48 = vpop.f32.mrf.mxu2 }
 0x5fe   : > { %v19187_v32 = vadd.f32 %v6850_v48, %v18905_v49  ;;  %v6890_v26 = vpop.f32.mrf.mxu3  ;;  %v12011_v49 = vld [vmem:[%s20838_s5 + $0x244] sm:$0xf] }
 0x5ff   : > { %11051 = vmatmul.msk.bf16.gmra.mxu1 %vm6356_vm0, %v10819_v21  ;;  %v10899_v43 = vor.u32 %v12011_v49, %v10896_v0  ;;  %v6891_v53 = vadd.f32 %v6890_v26, %v18916_v20 }
 0x603   : > { %6932 = vmatmul.bf16.gmra.mxu3 %v10871_v35 }
 0x605   : > { %v19190_v52 = vpop.f32.mrf.mxu2 }
 0x606   : > { %v6893_v12 = vpop.f32.mrf.mxu3 }
 0x607   : > { %v6894_v0 = vadd.f32 %v6893_v12, %v18927_v28  ;;  %v10902_v28 = vld [vmem:[%s20838_s5 + $0x248] sm:$0xf]  ;;  %v12015_v12 = vld [vmem:[%s20838_s5 + $0x260] sm:$0xf0] }
 0x60c   : > { %v6981_v40 = vpop.f32.mrf.mxu1 }
 0x60d   : > { %v6855_v51 = vpop.f32.mrf.mxu2  ;;  %v6982_v63 = vadd.f32 %v6981_v40, %v6889_v1 }
 0x60e   : > { %v19205_v39 = vadd.f32 %v6855_v51, %v18930_v41  ;;  %v6895_v17 = vpop.f32.mrf.mxu3  ;;  %v10874_v41 = vld [vmem:[%s20838_s5 + $0x210] sm:$0xf]  ;;  %v10927_v51 = vor.u32 %v12018_v16, %v10924_v22 }
 0x60f   : > { %11052 = vmatmul.msk.bf16.gmra.mxu1 %vm6356_vm0, %v10847_v61  ;;  %v7065_v46 = vpack.c.bf16 %v6982_v63, %v6982_v63  ;;  %v10875_v20 = vor.u32 %v12008_v18, %v10874_v41  ;;  %v10903_v18 = vor.u32 %v12015_v12, %v10902_v28 }
 0x611   : > { %v7163_v54 = vunpack.c.l.b16 %v7065_v46 }
 0x613   : > { %6937 = vmatmul.bf16.gmra.mxu3 %v10899_v43  ;;  %v6896_v43 = vadd.f32 %v6895_v17, %v18945_v23 }
 0x614   : > { %v6983_v29 = vpop.f32.mrf.mxu1 }
 0x615   : > { %v6984_v5 = vadd.f32 %v6983_v29, %v6891_v53  ;;  %v19210_v21 = vpop.f32.mrf.mxu2 }
 0x616   : > { %v6898_v60 = vpop.f32.mrf.mxu3 }
 0x617   : > { %v7066_v44 = vpack.c.bf16 %v6984_v5, %v6984_v5 }
 0x619   : > { %v7164_v48 = vunpack.c.l.b16 %v7066_v44 }
 0x61b   : > { %v19218_v35 = vpack.c.b16 %v7164_v48, %v7163_v54  ;;  %v12025_v48 = vld [vmem:[%s20838_s5 + $0x2b4] sm:$0xf] }
 0x61c   : > { %v6986_v26 = vpop.f32.mrf.mxu1 }
 0x61d   : > { %v6860_v61 = vpop.f32.mrf.mxu2  ;;  %v6987_v1 = vadd.f32 %v6986_v26, %v6894_v0  ;;  %v7352_v22 = vrot.slane %v19218_v35, 1  ;;  %v7209_v0 = vshrl.u32 %v19218_v35, 16 }
 0x61e   : > { %v19227_v40 = vadd.f32 %v6860_v61, %v18964_v37  ;;  %v6900_v49 = vpop.f32.mrf.mxu3  ;;  %v7211_v37 = vshll.u32 %v19218_v35, 16 }
 0x61f   : > { %11053 = vmatmul.msk.bf16.gmra.mxu1 %vm6356_vm0, %v10875_v20  ;;  %v7067_v53 = vpack.c.bf16 %v6987_v1, %v6987_v1  ;;  %v10952_v20 = vld [vmem:[%s20838_s5 + $0x2cc] sm:$0xf0] }
 0x620   : > { %v7213_v54 = vrot.slane %v7211_v37, 1 }
 0x621   : > { %v7165_v41 = vunpack.c.l.b16 %v7067_v53  ;;  %v6899_v53 = vadd.f32 %v6898_v60, %v18961_v15 }
 0x623   : > { %6942 = vmatmul.bf16.gmra.mxu3 %v10927_v51 }
 0x624   : > { %v6988_v63 = vpop.f32.mrf.mxu1 }
 0x625   : > { %v6989_v29 = vadd.f32 %v6988_v63, %v6896_v43  ;;  %v19232_v46 = vpop.f32.mrf.mxu2  ;;  %v10955_v63 = vor.u32 %v12025_v48, %v10952_v20  ;;  %v10930_v48 = vld [vmem:[%s20838_s5 + $0x280] sm:$0xf]  ;;  %v12022_v20 = vld [vmem:[%s20838_s5 + $0x298] sm:$0xf0] }
 0x626   : > { %v6903_v5 = vpop.f32.mrf.mxu3 }
 0x627   : > { %v7068_v44 = vpack.c.bf16 %v6989_v29, %v6989_v29 }
 0x629   : > { %v7166_v23 = vunpack.c.l.b16 %v7068_v44  ;;  %v7214_v44 = vor.u32 %v7213_v54, %v7209_v0  ;;  %v10980_v0 = vld [vmem:[%s20838_s5 + $0x304] sm:$0xf0] }
 0x62b   : > { %v19241_v17 = vpack.c.b16 %v7166_v23, %v7165_v41 }
 0x62c   : > { %v6991_v26 = vpop.f32.mrf.mxu1 }
 0x62d   : > { %v6865_v16 = vpop.f32.mrf.mxu2  ;;  %7412 = vrot.lane.b32.xlu0 %v19241_v17, %s12955_s12  ;;  %v7353_v61 = vrot.slane %v19241_v17, 1  ;;  %v7216_v51 = vshll.u32 %v19241_v17, 16  ;;  %v6992_v28 = vadd.f32 %v6991_v26, %v6899_v53 }
 0x62e   : > { %v19256_v1 = vadd.f32 %v6865_v16, %v19001_v27  ;;  %v6905_v43 = vpop.f32.mrf.mxu3  ;;  %v6901_v27 = vadd.f32 %v6900_v49, %v18978_v2  ;;  %v10931_v2 = vor.u32 %v12022_v20, %v10930_v48  ;;  %v12032_v49 = vld [vmem:[%s20838_s5 + $0x2ec] sm:$0xf] }
 0x62f   : > { %11054 = vmatmul.msk.bf16.gmra.mxu1 %vm6356_vm0, %v10903_v18  ;;  %v7354_v29 = vsel %vm1273_vm1, %v7352_v22, %v7353_v61  ;;  %v7218_v37 = vrot.slane %v7216_v51, 1  ;;  %v7069_v15 = vpack.c.bf16 %v6992_v28, %v6992_v28 }
 0x630   : > { %7381 = vrot.lane.b32.xlu2 %v7354_v29, %s12956_s13  ;;  %v7220_v29 = vshrl.u32 %v19241_v17, 16 }
 0x631   : > { %v7219_v12 = vsel %vm743_vm2, %v7214_v44, %v7218_v37  ;;  %v7167_v26 = vunpack.c.l.b16 %v7069_v15 }
 0x632   : > { %7324 = vrot.lane.b32.xlu1 %v7219_v12, %s12957_s21 }
 0x633   : > { %6947 = vmatmul.bf16.gmra.mxu3 %v10955_v63 }
 0x634   : > { %v6993_v41 = vpop.f32.mrf.mxu1 }
 0x635   : > { %v6994_v60 = vadd.f32 %v6993_v41, %v6901_v27  ;;  %v19265_v23 = vpop.f32.mrf.mxu2  ;;  %v10983_v27 = vor.u32 %v12032_v49, %v10980_v0  ;;  %v6904_v41 = vadd.f32 %v6903_v5, %v18997_v36  ;;  %v12029_v49 = vld [vmem:[%s20838_s5 + $0x2d0] sm:$0xf0] }
 0x636   : > { %v6908_v18 = vpop.f32.mrf.mxu3 }
 0x637   : > { %v7070_v54 = vpack.c.bf16 %v6994_v60, %v6994_v60  ;;  %v7222_v60 = vor.u32 %v7220_v29, %v7218_v37  ;;  %v11008_v29 = vld [vmem:[%s20838_s5 + $0x33c] sm:$0xf0] }
 0x639   : > { %v7168_v16 = vunpack.c.l.b16 %v7070_v54 }
 0x63b   : > { %v19273_v22 = vpack.c.b16 %v7168_v16, %v7167_v26 }
 0x63c   : > { %v6996_v51 = vpop.f32.mrf.mxu1 }
 0x63d   : > { %v6870_v63 = vpop.f32.mrf.mxu2  ;;  %7414 = vrot.lane.b32.xlu0 %v19273_v22, %s12955_s12  ;;  %v7355_v53 = vrot.slane %v19273_v22, 1  ;;  %v7224_v44 = vshll.u32 %v19273_v22, 16  ;;  %v6997_v48 = vadd.f32 %v6996_v51, %v6904_v41 }
 0x63e   : > { %v19287_v28 = vadd.f32 %v6870_v63, %v19032_v9  ;;  %v6910_v12 = vpop.f32.mrf.mxu3  ;;  %v6906_v9 = vadd.f32 %v6905_v43, %v19010_v7  ;;  %v12039_v43 = vld [vmem:[%s20838_s5 + $0x324] sm:$0xf] }
 0x63f   : > { %11055 = vmatmul.msk.bf16.gmra.mxu1 %vm6356_vm0, %v10931_v2  ;;  %v19292_v15 = vsel %vm1273_vm1, %v7353_v61, %v7355_v53  ;;  %v7226_v54 = vrot.slane %v7224_v44, 1  ;;  %v7071_v5 = vpack.c.bf16 %v6997_v48, %v6997_v48  ;;  %v10958_v2 = vld [vmem:[%s20838_s5 + $0x2b8] sm:$0xf] }
 0x640   : > { %7383 = vrot.lane.b32.xlu2 %v19292_v15, %s12956_s13  ;;  %v10959_v7 = vor.u32 %v12029_v49, %v10958_v2 }
 0x641   : > { %v19297_v20 = vsel %vm743_vm2, %v7222_v60, %v7226_v54  ;;  %v7169_v0 = vunpack.c.l.b16 %v7071_v5  ;;  %v7228_v60 = vshrl.u32 %v19273_v22, 16  ;;  %v11011_v5 = vor.u32 %v12039_v43, %v11008_v29  ;;  %v10986_v29 = vld [vmem:[%s20838_s5 + $0x2f0] sm:$0xf] }
 0x642   : > { %20993 = vst [vmem:[#allocation37_spill] sm:$0xff] %v19297_v20  ;;  %7326 = vrot.lane.b32.xlu1 %v19297_v20, %s12957_s21 }
 0x643   : > { %6952 = vmatmul.bf16.gmra.mxu3 %v10983_v27  ;;  %v7230_v2 = vor.u32 %v7228_v60, %v7226_v54 }
 0x644   : > { %v6998_v36 = vpop.f32.mrf.mxu1 }
 0x645   : > { %v6999_v26 = vadd.f32 %v6998_v36, %v6906_v9  ;;  %v19302_v61 = vpop.f32.mrf.mxu2 }
 0x646   : > { %v6913_v37 = vpop.f32.mrf.mxu3 }
 0x647   : > { %v7072_v16 = vpack.c.bf16 %v6999_v26, %v6999_v26  ;;  %v6909_v26 = vadd.f32 %v6908_v18, %v19028_v19 }
 0x649   : > { %v7170_v51 = vunpack.c.l.b16 %v7072_v16 }
 0x64b   : > { %v19310_v63 = vpack.c.b16 %v7170_v51, %v7169_v0 }
 0x64c   : > { %v7001_v44 = vpop.f32.mrf.mxu1 }
 0x64d   : > { %v6875_v27 = vpop.f32.mrf.mxu2  ;;  %7416 = vrot.lane.b32.xlu0 %v19310_v63, %s12955_s12  ;;  %v7357_v41 = vrot.slane %v19310_v63, 1  ;;  %v7232_v48 = vshll.u32 %v19310_v63, 16  ;;  %v7002_v0 = vadd.f32 %v7001_v44, %v6909_v26  ;;  %v12036_v44 = vld [vmem:[%s20838_s5 + $0x308] sm:$0xf0]  ;;  %v20996_v26 = vld [vmem:[#allocation19_spill] sm:$0xff] }
 0x64e   : > { %v19324_v9 = vadd.f32 %v6875_v27, %v19062_v38  ;;  %v6915_v36 = vpop.f32.mrf.mxu3  ;;  %v6911_v38 = vadd.f32 %v6910_v12, %v19041_v31 }
 0x64f   : > { %11056 = vmatmul.msk.bf16.gmra.mxu1 %vm6356_vm0, %v10959_v7  ;;  %v19329_v16 = vsel %vm1273_vm1, %v7355_v53, %v7357_v41  ;;  %v7234_v49 = vrot.slane %v7232_v48, 1  ;;  %v7073_v18 = vpack.c.bf16 %v7002_v0, %v7002_v0  ;;  %v20995_v48 = vld [vmem:[#allocation5_spill] sm:$0xff] }
 0x650   : > { %20994 = vst [vmem:[#allocation38_spill] sm:$0xff] %v19329_v16  ;;  %7385 = vrot.lane.b32.xlu2 %v19329_v16, %s12956_s13  ;;  %v6544_v31 = vadd.f32 %v20996_v26, %v20995_v48  ;;  %v11036_v0 = vld [vmem:[%s20838_s5 + $0x374] sm:$0xf0] }
 0x651   : > { %v19334_v51 = vsel %vm743_vm2, %v7230_v2, %v7234_v49  ;;  %v7171_v27 = vunpack.c.l.b16 %v7073_v18  ;;  %v12046_v2 = vld [vmem:[%s20838_s5 + $0x35c] sm:$0xf] }
 0x652   : > { %7328 = vrot.lane.b32.xlu1 %v19334_v51, %s12957_s21 }
 0x653   : > { %6957 = vmatmul.bf16.gmra.mxu3 %v11011_v5  ;;  %v10987_v5 = vor.u32 %v12036_v44, %v10986_v29 }
 0x654   : > { %v7003_v19 = vpop.f32.mrf.mxu1 }
 0x655   : > { %v7004_v7 = vadd.f32 %v7003_v19, %v6911_v38  ;;  %v6877_v53 = vpop.f32.mrf.mxu2  ;;  %v20997_v38 = vld [vmem:[#allocation10_spill] sm:$0xff] }
 0x656   : > { %v6918_v43 = vpop.f32.mrf.mxu3  ;;  %v6637_v19 = vadd.f32 %v20997_v38, %v6544_v31  ;;  %v7236_v53 = vshrl.u32 %v19310_v63, 16 }
 0x657   : > { %v7074_v54 = vpack.c.bf16 %v7004_v7, %v7004_v7 }
 0x658   : > { %v6730_v29 = vadd.f32 %v18769_v14, %v6637_v19  ;;  %v7238_v26 = vor.u32 %v7236_v53, %v7234_v49  ;;  %v20999_v53 = vld [vmem:[#allocation21_spill] sm:$0xff] }
 0x659   : > { %v7172_v60 = vunpack.c.l.b16 %v7074_v54 }
 0x65a   : > { %v6823_v38 = vadd.f32 %v19070_v45, %v6730_v29  ;;  %v12043_v45 = vld [vmem:[%s20838_s5 + $0x340] sm:$0xf0] }
 0x65b   : > { %v19347_v12 = vpack.c.b16 %v7172_v60, %v7171_v27  ;;  %v11039_v27 = vor.u32 %v12046_v2, %v11036_v0  ;;  %v6914_v60 = vadd.f32 %v6913_v37, %v19058_v34  ;;  %v11014_v2 = vld [vmem:[%s20838_s5 + $0x328] sm:$0xf] }
 0x65c   : > { %v7006_v7 = vpop.f32.mrf.mxu1  ;;  %v6916_v14 = vadd.f32 %v6915_v36, %v6823_v38  ;;  %v12058_v36 = vld [vmem:[%s20836_s3 + $0x38] sm:$0xff] }
 0x65d   : > { %7418 = vrot.lane.b32.xlu0 %v19347_v12, %s12955_s12  ;;  %v7359_v18 = vrot.slane %v19347_v12, 1  ;;  %v7240_v54 = vshll.u32 %v19347_v12, 16  ;;  %v7007_v20 = vadd.f32 %v7006_v7, %v6914_v60  ;;  %v20998_v7 = vld [vmem:[#allocation7_spill] sm:$0xff]  ;;  %7930 = vmatpush.bf16.msra.mxu2 %v12058_v36 }
 0x65e   : > { %v6920_v44 = vpop.f32.mrf.mxu3 }
 0x65f   : > { %11057 = vmatmul.msk.bf16.gmra.mxu1 %vm6356_vm0, %v10987_v5  ;;  %v19365_v48 = vsel %vm1273_vm1, %v7357_v41, %v7359_v18  ;;  %v7242_v31 = vrot.slane %v7240_v54, 1  ;;  %v7075_v37 = vpack.c.bf16 %v7007_v20, %v7007_v20  ;;  %v6549_v20 = vadd.f32 %v20999_v53, %v20998_v7 }
 0x660   : > { %7387 = vrot.lane.b32.xlu2 %v19365_v48, %s12956_s13  ;;  %v6133_v54 = vunpack.c.h.b16 %v19115_v58  ;;  %v12057_v58 = vld [vmem:[%s20836_s3 + $0x30] sm:$0xff] }
 0x661   : > { %v19371_v16 = vsel %vm743_vm2, %v7238_v26, %v7242_v31  ;;  %v7173_v0 = vunpack.c.l.b16 %v7075_v37  ;;  %v6642_v60 = vadd.f32 %v18270_v10, %v6549_v20  ;;  %v6919_v10 = vadd.f32 %v6918_v43, %v19085_v33  ;;  %7931 = vmatpush.bf16.msra.mxu2 %v12057_v58  ;;  %v12056_v33 = vld [vmem:[%s20836_s3 + $0x28] sm:$0xff] }
 0x662   : > { %7330 = vrot.lane.b32.xlu1 %v19371_v16, %s12957_s21 }
 0x663   : > { %6962 = vmatmul.bf16.gmra.mxu3 %v11039_v27  ;;  %v11015_v27 = vor.u32 %v12043_v45, %v11014_v2  ;;  %v6735_v37 = vadd.f32 %v18803_v59, %v6642_v60 }
 0x664   : > { %v7008_v34 = vpop.f32.mrf.mxu1 }
 0x665   : > { %v7009_v41 = vadd.f32 %v7008_v34, %v6916_v14  ;;  %v7244_v14 = vshrl.u32 %v19347_v12, 16  ;;  %7932 = vmatpush.bf16.msra.mxu2 %v12056_v33 }
 0x666   : > { %v6923_v5 = vpop.f32.mrf.mxu3 }
 0x667   : > { %v7076_v49 = vpack.c.bf16 %v7009_v41, %v7009_v41  ;;  %v7246_v45 = vor.u32 %v7244_v14, %v7242_v31  ;;  %v21000_v14 = vld [vmem:[#allocation9_spill] sm:$0xff] }
 0x669   : > { %v7174_v19 = vunpack.c.l.b16 %v7076_v49  ;;  %v6252_v49 = vpack.c.b16 %v6133_v54, %v6133_v54  ;;  %v11042_v54 = vld [vmem:[%s20838_s5 + $0x360] sm:$0xf] }
 0x66b   : > { %v19387_v29 = vpack.c.b16 %v7174_v19, %v7173_v0  ;;  %v6828_v19 = vadd.f32 %v19094_v8, %v6735_v37  ;;  %v12055_v8 = vld [vmem:[%s20836_s3 + $0x20] sm:$0xff] }
 0x66c   : > { %v7011_v26 = vpop.f32.mrf.mxu1  ;;  %7933 = vmatpush.bf16.msra.mxu2 %v12055_v8  ;;  %v6924_v8 = vadd.f32 %v6923_v5, %v19109_v13  ;;  %v12052_v13 = vld [vmem:[%s20836_s3 + $0x8] sm:$0xff] }
 0x66d   : > { %7420 = vrot.lane.b32.xlu0 %v19387_v29, %s12955_s12  ;;  %v7361_v38 = vrot.slane %v19387_v29, 1  ;;  %v7248_v34 = vshll.u32 %v19387_v29, 16  ;;  %v7012_v36 = vadd.f32 %v7011_v26, %v6919_v10  ;;  %v6921_v43 = vadd.f32 %v6920_v44, %v6828_v19  ;;  %v12050_v44 = vld [vmem:[%s20838_s5 + $0x378] sm:$0xf0] }
 0x66e   : > { %v6925_v41 = vpop.f32.mrf.mxu3  ;;  %v12054_v26 = vld [vmem:[%s20836_s3 + $0x18] sm:$0xff] }
 0x66f   : > { %11058 = vmatmul.msk.bf16.gmra.mxu1 %vm6356_vm0, %v11015_v27  ;;  %v19402_v2 = vsel %vm1273_vm1, %v7359_v18, %v7361_v38  ;;  %v7250_v0 = vrot.slane %v7248_v34, 1  ;;  %v7077_v31 = vpack.c.bf16 %v7012_v36, %v7012_v36  ;;  %v21001_v34 = vld [vmem:[#allocation3_spill] sm:$0xff]  ;;  %v7252_v36 = vshrl.u32 %v19387_v29, 16 }
 0x670   : > { %7389 = vrot.lane.b32.xlu2 %v19402_v2, %s12956_s13  ;;  %v6554_v58 = vadd.f32 %v21001_v34, %v21000_v14  ;;  %7934 = vmatpush.bf16.msra.mxu2 %v12054_v26  ;;  %v12051_v14 = vld [vmem:[%s20836_s3] sm:$0xff] }
 0x671   : > { %v19408_v59 = vsel %vm743_vm2, %v7246_v45, %v7250_v0  ;;  %v7175_v27 = vunpack.c.l.b16 %v7077_v31 }
 0x672   : > { %7332 = vrot.lane.b32.xlu1 %v19408_v59, %s12957_s21  ;;  %v6647_v10 = vadd.f32 %v18349_v42, %v6554_v58 }
 0x673   : > { %6967 = vmatmul.bf16.gmra.mxu3 %v6252_v49  ;;  %v11043_v49 = vor.u32 %v12050_v44, %v11042_v54 }
 0x674   : > { %v7013_v18 = vpop.f32.mrf.mxu1 }
 0x675   : > { %v7014_v7 = vadd.f32 %v7013_v18, %v6921_v43  ;;  %v12053_v43 = vld [vmem:[%s20836_s3 + $0x10] sm:$0xff] }
 0x676   : > { %v6928_v53 = vpop.f32.mrf.mxu3  ;;  %v21002_v18 = vld [vmem:[#allocation12_spill] sm:$0xff]  ;;  %7935 = vmatpush.bf16.msra.mxu2 %v12053_v43 }
 0x677   : > { %v7078_v20 = vpack.c.bf16 %v7014_v7, %v7014_v7  ;;  %v6740_v31 = vadd.f32 %v21002_v18, %v6647_v10 }
 0x679   : > { %v7176_v60 = vunpack.c.l.b16 %v7078_v20  ;;  %v7254_v20 = vor.u32 %v7252_v36, %v7250_v0  ;;  %v6833_v44 = vadd.f32 %v19118_v55, %v6740_v31  ;;  %v5720_v0 = vld [vmem:[%s20838_s5 + $0x398] sm:$0x1]  ;;  %v21003_v36 = vld [vmem:[#allocation15_spill] sm:$0xff] }
 0x67a   : > { %7936 = vmatpush.bf16.msra.mxu2 %v12052_v13  ;;  %v21005_v31 = vld [vmem:[#allocation11_spill] sm:$0xff] }
 0x67b   : > { %v19429_v37 = vpack.c.b16 %v7176_v60, %v7175_v27  ;;  %v6926_v5 = vadd.f32 %v6925_v41, %v6833_v44  ;;  %v21004_v41 = vld [vmem:[#allocation13_spill] sm:$0xff] }
 0x67c   : > { %v7016_v45 = vpop.f32.mrf.mxu1 }
 0x67d   : > { %7422 = vrot.lane.b32.xlu0 %v19429_v37, %s12955_s12  ;;  %v7363_v19 = vrot.slane %v19429_v37, 1  ;;  %v7256_v33 = vshll.u32 %v19429_v37, 16  ;;  %v7017_v27 = vadd.f32 %v7016_v45, %v6924_v8 }
 0x67e   : > { %v6930_v7 = vpop.f32.mrf.mxu3  ;;  %7937 = vmatpush.bf16.msra.mxu2 %v12051_v14 }
 0x67f   : > { %11059 = vmatmul.msk.bf16.gmra.mxu1 %vm6356_vm0, %v11043_v49  ;;  %v19444_v42 = vsel %vm1273_vm1, %v7361_v38, %v7363_v19  ;;  %v7258_v54 = vrot.slane %v7256_v33, 1  ;;  %v7079_v26 = vpack.c.bf16 %v7017_v27, %v7017_v27  ;;  %v6134_v49 = vunpack.c.l.b16 %v5720_v0 }
 0x680   : > { %7391 = vrot.lane.b32.xlu2 %v19444_v42, %s12956_s13  ;;  %v6559_v33 = vadd.f32 %v21004_v41, %v21003_v36  ;;  %v7260_v27 = vshrl.u32 %v19429_v37, 16 }
 0x681   : > { %v19450_v60 = vsel %vm743_vm2, %v7254_v20, %v7258_v54  ;;  %v7177_v10 = vunpack.c.l.b16 %v7079_v26  ;;  %v6253_v18 = vpack.c.b16 %v6134_v49, %v6134_v49  ;;  %v6929_v26 = vadd.f32 %v6928_v53, %v19133_v56 }
 0x682   : > { %7334 = vrot.lane.b32.xlu1 %v19450_v60, %s12957_s21  ;;  %v6652_v8 = vadd.f32 %v21005_v31, %v6559_v33  ;;  %v7262_v14 = vor.u32 %v7260_v27, %v7258_v54  ;;  %v21007_v31 = vld [vmem:[#allocation17_spill] sm:$0xff] }
 0x684   : > { %v7018_v38 = vpop.f32.mrf.mxu1 }
 0x685   : > { %v7019_v55 = vadd.f32 %v7018_v38, %v6926_v5  ;;  %v21006_v5 = vld [vmem:[#allocation35_spill] sm:$0xff] }
 0x686   : > { %v6933_v34 = vpop.f32.mrf.mxu3  ;;  %v6745_v38 = vadd.f32 %v21006_v5, %v6652_v8  ;;  %v21008_v8 = vld [vmem:[#allocation24_spill] sm:$0xff] }
 0x687   : > { %v7080_v58 = vpack.c.bf16 %v7019_v55, %v7019_v55  ;;  %v6564_v27 = vadd.f32 %v21008_v8, %v21007_v31 }
 0x688   : > { %v6838_v49 = vadd.f32 %v19136_v30, %v6745_v38  ;;  %v21009_v30 = vld [vmem:[#allocation27_spill] sm:$0xff] }
 0x689   : > { %v7178_v45 = vunpack.c.l.b16 %v7080_v58 }
 0x68a   : > { %v6931_v56 = vadd.f32 %v6930_v7, %v6838_v49 }
 0x68b   : > { %v19465_v43 = vpack.c.b16 %v7178_v45, %v7177_v10 }
 0x68c   : > { %v7021_v20 = vpop.f32.mrf.mxu1 }
 0x68d   : > { %7424 = vrot.lane.b32.xlu0 %v19465_v43, %s12955_s12  ;;  %v7365_v44 = vrot.slane %v19465_v43, 1  ;;  %v7264_v13 = vshll.u32 %v19465_v43, 16  ;;  %v7022_v10 = vadd.f32 %v7021_v20, %v6929_v26  ;;  %v6657_v20 = vadd.f32 %v21009_v30, %v6564_v27 }
 0x68e   : > { %v6935_v0 = vpop.f32.mrf.mxu3  ;;  %v7268_v38 = vshrl.u32 %v19465_v43, 16 }
 0x68f   : > { %11060 = vmatmul.msk.bf16.gmra.mxu1 %vm6356_vm0, %v6253_v18  ;;  %v19477_v55 = vsel %vm1273_vm1, %v7363_v19, %v7365_v44  ;;  %v7266_v58 = vrot.slane %v7264_v13, 1  ;;  %v7081_v36 = vpack.c.bf16 %v7022_v10, %v7022_v10 }
 0x690   : > { %7393 = vrot.lane.b32.xlu2 %v19477_v55, %s12956_s13 }
 0x691   : > { %v19483_v45 = vsel %vm743_vm2, %v7262_v14, %v7266_v58  ;;  %v7179_v54 = vunpack.c.l.b16 %v7081_v36  ;;  %v21010_v14 = vld [vmem:[#allocation36_spill] sm:$0xff]  ;;  %v7270_v36 = vor.u32 %v7268_v38, %v7266_v58 }
 0x692   : > { %7336 = vrot.lane.b32.xlu1 %v19483_v45, %s12957_s21  ;;  %v6750_v49 = vadd.f32 %v21010_v14, %v6657_v20  ;;  %v21011_v14 = vld [vmem:[#allocation18_spill] sm:$0xff] }
 0x694   : > { %v7023_v53 = vpop.f32.mrf.mxu1 }
 0x695   : > { %v7024_v41 = vadd.f32 %v7023_v53, %v6931_v56  ;;  %v6934_v56 = vadd.f32 %v6933_v34, %v19151_v6 }
 0x696   : > { %v6938_v19 = vpop.f32.mrf.mxu3 }
 0x697   : > { %v7082_v33 = vpack.c.bf16 %v7024_v41, %v7024_v41 }
 0x699   : > { %v7180_v18 = vunpack.c.l.b16 %v7082_v33  ;;  %v6843_v33 = vadd.f32 %v19154_v50, %v6750_v49  ;;  %v21012_v49 = vld [vmem:[#allocation25_spill] sm:$0xff] }
 0x69b   : > { %v19489_v13 = vpack.c.b16 %v7180_v18, %v7179_v54  ;;  %v6936_v31 = vadd.f32 %v6935_v0, %v6843_v33  ;;  %v12100_v33 = vld [vmem:[%s20839_s6 + $0xf8] sm:$0xff] }
 0x69c   : > { %v7026_v5 = vpop.f32.mrf.mxu1  ;;  %10154 = vmatpush.bf16.msrb.mxu0 %v12100_v33 }
 0x69d   : > { %7426 = vrot.lane.b32.xlu0 %v19489_v13, %s12955_s12  ;;  %v7367_v7 = vrot.slane %v19489_v13, 1  ;;  %v7272_v26 = vshll.u32 %v19489_v13, 16  ;;  %v7027_v54 = vadd.f32 %v7026_v5, %v6934_v56  ;;  %v6569_v56 = vadd.f32 %v21012_v49, %v21011_v14 }
 0x69e   : > { %v6940_v10 = vpop.f32.mrf.mxu3 }
 0x69f   : > { %v19500_v53 = vsel %vm1273_vm1, %v7365_v44, %v7367_v7  ;;  %v7274_v41 = vrot.slane %v7272_v26, 1  ;;  %v7382_v44 = vpop.permute.xlu2 %7381  ;;  %v7083_v58 = vpack.c.bf16 %v7027_v54, %v7027_v54  ;;  %v7413_v50 = vpop.permute.xlu0 %7412 }
 0x6a0   : > { %7395 = vrot.lane.b32.xlu2 %v19500_v53, %s12956_s13 }
 0x6a1   : > { %v19506_v18 = vsel %vm743_vm2, %v7270_v36, %v7274_v41  ;;  %v7181_v26 = vunpack.c.l.b16 %v7083_v58 }
 0x6a2   : > { %7338 = vrot.lane.b32.xlu1 %v19506_v18, %s12957_s21 }
 0x6a4   : > { %v7028_v6 = vpop.f32.mrf.mxu1  ;;  %v7325_v34 = vpop.permute.xlu1 %7324 }
 0x6a5   : > { %v7029_v8 = vadd.f32 %v7028_v6, %v6936_v31  ;;  %v7569_v27 = vsel %vm7567_vm4, %v19218_v35, %v7325_v34  ;;  %v21013_v35 = vld [vmem:[#allocation29_spill] sm:$0xff]  ;;  %v7276_v34 = vshrl.u32 %v19489_v13, 16 }
 0x6a6   : > { %v7598_v30 = vsel %vm7596_vm5, %v7569_v27, %v7382_v44  ;;  %v6943_v20 = vpop.f32.mrf.mxu3  ;;  %v6662_v54 = vadd.f32 %v21013_v35, %v6569_v56  ;;  %v6939_v27 = vadd.f32 %v6938_v19, %v19169_v11 }
 0x6a7   : > { %v7084_v5 = vpack.c.bf16 %v7029_v8, %v7029_v8  ;;  %v7627_v38 = vsel %vm7625_vm6, %v7598_v30, %v7413_v50  ;;  %v7278_v30 = vor.u32 %v7276_v34, %v7274_v41  ;;  %v7384_v19 = vpop.permute.xlu2 %7383 }
 0x6a8   : > { %7938 = vmatmul.bf16.vlgmr.msra.gmra.mxu2 %v7627_v38  ;;  %v6755_v58 = vadd.f32 %v18889_v25, %v6662_v54 }
 0x6a9   : > { %v7182_v0 = vunpack.c.l.b16 %v7084_v5 }
 0x6aa   : > { %v6848_v38 = vadd.f32 %v19172_v3, %v6755_v58 }
 0x6ab   : > { %v19516_v36 = vpack.c.b16 %v7182_v0, %v7181_v26 }
 0x6ac   : > { %v7031_v31 = vpop.f32.mrf.mxu1  ;;  %v6941_v25 = vadd.f32 %v6940_v10, %v6848_v38  ;;  %v21015_v10 = vld [vmem:[#allocation26_spill] sm:$0xff] }
 0x6ad   : > { %7428 = vrot.lane.b32.xlu0 %v19516_v36, %s12955_s12  ;;  %v7369_v6 = vrot.slane %v19516_v36, 1  ;;  %v7280_v44 = vshll.u32 %v19516_v36, 16  ;;  %v7032_v26 = vadd.f32 %v7031_v31, %v6939_v27 }
 0x6ae   : > { %v6945_v8 = vpop.f32.mrf.mxu3 }
 0x6af   : > { %v19530_v50 = vsel %vm1273_vm1, %v7367_v7, %v7369_v6  ;;  %v7282_v5 = vrot.slane %v7280_v44, 1  ;;  %v7085_v7 = vpack.c.bf16 %v7032_v26, %v7032_v26  ;;  %v7415_v56 = vpop.permute.xlu0 %7414  ;;  %v21014_v44 = vld [vmem:[#allocation20_spill] sm:$0xff] }
 0x6b0   : > { %7397 = vrot.lane.b32.xlu2 %v19530_v50, %s12956_s13  ;;  %v6574_v58 = vadd.f32 %v21015_v10, %v21014_v44 }
 0x6b1   : > { %v19536_v0 = vsel %vm743_vm2, %v7278_v30, %v7282_v5  ;;  %v7183_v31 = vunpack.c.l.b16 %v7085_v7  ;;  %v21016_v30 = vld [vmem:[#allocation30_spill] sm:$0xff]  ;;  %v6944_v7 = vadd.f32 %v6943_v20, %v19187_v32  ;;  %v7386_v20 = vpop.permute.xlu2 %7385 }
 0x6b2   : > { %7340 = vrot.lane.b32.xlu1 %v19536_v0, %s12957_s21  ;;  %v6667_v38 = vadd.f32 %v21016_v30, %v6574_v58 }
 0x6b4   : > { %v7033_v14 = vpop.f32.mrf.mxu1  ;;  %v7327_v11 = vpop.permute.xlu1 %7326 }
 0x6b5   : > { %v7034_v49 = vadd.f32 %v7033_v14, %v6941_v25  ;;  %v7571_v41 = vsel %vm7567_vm4, %v19241_v17, %v7327_v11  ;;  %v7284_v25 = vshrl.u32 %v19516_v36, 16  ;;  %v6760_v11 = vadd.f32 %v18918_v47, %v6667_v38 }
 0x6b6   : > { %v6948_v33 = vpop.f32.mrf.mxu3  ;;  %v7600_v3 = vsel %vm7596_vm5, %v7571_v41, %v7384_v19 }
 0x6b7   : > { %v7086_v35 = vpack.c.bf16 %v7034_v49, %v7034_v49  ;;  %v7630_v54 = vsel %vm7625_vm6, %v7600_v3, %v7415_v56  ;;  %v7286_v41 = vor.u32 %v7284_v25, %v7282_v5  ;;  %v6853_v3 = vadd.f32 %v19190_v52, %v6760_v11  ;;  %v21017_v25 = vld [vmem:[#allocation23_spill] sm:$0xff] }
 0x6b8   : > { %7943 = vmatmul.bf16.gmra.mxu2 %v7630_v54 }
 0x6b9   : > { %v7184_v34 = vunpack.c.l.b16 %v7086_v35  ;;  %v6946_v47 = vadd.f32 %v6945_v8, %v6853_v3  ;;  %v21018_v8 = vld [vmem:[#allocation28_spill] sm:$0xff] }
 0x6bb   : > { %v19546_v27 = vpack.c.b16 %v7184_v34, %v7183_v31 }
 0x6bc   : > { %v7036_v26 = vpop.f32.mrf.mxu1 }
 0x6bd   : > { %7430 = vrot.lane.b32.xlu0 %v19546_v27, %s12955_s12  ;;  %v7371_v17 = vrot.slane %v19546_v27, 1  ;;  %v7288_v14 = vshll.u32 %v19546_v27, 16  ;;  %v7037_v35 = vadd.f32 %v7036_v26, %v6944_v7  ;;  %v21019_v7 = vld [vmem:[#allocation32_spill] sm:$0xff] }
 0x6be   : > { %v6950_v19 = vpop.f32.mrf.mxu3 }
 0x6bf   : > { %v19557_v49 = vsel %vm1273_vm1, %v7369_v6, %v7371_v17  ;;  %v7290_v56 = vrot.slane %v7288_v14, 1  ;;  %v7087_v6 = vpack.c.bf16 %v7037_v35, %v7037_v35  ;;  %v7417_v44 = vpop.permute.xlu0 %7416  ;;  %v6579_v14 = vadd.f32 %v21018_v8, %v21017_v25 }
 0x6c0   : > { %7399 = vrot.lane.b32.xlu2 %v19557_v49, %s12956_s13 }
 0x6c1   : > { %v19563_v54 = vsel %vm743_vm2, %v7286_v41, %v7290_v56  ;;  %v7185_v38 = vunpack.c.l.b16 %v7087_v6  ;;  %v6672_v41 = vadd.f32 %v21019_v7, %v6579_v14  ;;  %v6949_v6 = vadd.f32 %v6948_v33, %v19205_v39  ;;  %v7388_v33 = vpop.permute.xlu2 %7387 }
 0x6c2   : > { %7342 = vrot.lane.b32.xlu1 %v19563_v54, %s12957_s21 }
 0x6c4   : > { %v7038_v31 = vpop.f32.mrf.mxu1  ;;  %v7329_v32 = vpop.permute.xlu1 %7328 }
 0x6c5   : > { %v7039_v34 = vadd.f32 %v7038_v31, %v6946_v47  ;;  %v7573_v5 = vsel %vm7567_vm4, %v19273_v22, %v7329_v32  ;;  %v7292_v47 = vshrl.u32 %v19546_v27, 16  ;;  %v6765_v32 = vadd.f32 %v18947_v4, %v6672_v41 }
 0x6c6   : > { %v6953_v10 = vpop.f32.mrf.mxu3  ;;  %v7602_v52 = vsel %vm7596_vm5, %v7573_v5, %v7386_v20 }
 0x6c7   : > { %v7088_v58 = vpack.c.bf16 %v7039_v34, %v7039_v34  ;;  %v7633_v30 = vsel %vm7625_vm6, %v7602_v52, %v7417_v44  ;;  %v7294_v5 = vor.u32 %v7292_v47, %v7290_v56  ;;  %v6858_v52 = vadd.f32 %v19210_v21, %v6765_v32  ;;  %v21020_v47 = vld [vmem:[#allocation4_spill] sm:$0xff] }
 0x6c8   : > { %7948 = vmatmul.bf16.gmra.mxu2 %v7633_v30 }
 0x6c9   : > { %v7186_v26 = vunpack.c.l.b16 %v7088_v58  ;;  %v6951_v4 = vadd.f32 %v6950_v19, %v6858_v52  ;;  %v21021_v19 = vld [vmem:[#allocation14_spill] sm:$0xff] }
 0x6cb   : > { %v19573_v11 = vpack.c.b16 %v7186_v26, %v7185_v38 }
 0x6cc   : > { %v7041_v3 = vpop.f32.mrf.mxu1 }
 0x6cd   : > { %7432 = vrot.lane.b32.xlu0 %v19573_v11, %s12955_s12  ;;  %v7373_v35 = vrot.slane %v19573_v11, 1  ;;  %v7296_v31 = vshll.u32 %v19573_v11, 16  ;;  %v7042_v58 = vadd.f32 %v7041_v3, %v6949_v6  ;;  %v21022_v6 = vld [vmem:[#allocation34_spill] sm:$0xff] }
 0x6ce   : > { %v6955_v20 = vpop.f32.mrf.mxu3 }
 0x6cf   : > { %v19584_v34 = vsel %vm1273_vm1, %v7371_v17, %v7373_v35  ;;  %v7298_v44 = vrot.slane %v7296_v31, 1  ;;  %v7089_v17 = vpack.c.bf16 %v7042_v58, %v7042_v58  ;;  %v7419_v25 = vpop.permute.xlu0 %7418  ;;  %v6584_v31 = vadd.f32 %v21021_v19, %v21020_v47 }
 0x6d0   : > { %7401 = vrot.lane.b32.xlu2 %v19584_v34, %s12956_s13 }
 0x6d1   : > { %v19590_v30 = vsel %vm743_vm2, %v7294_v5, %v7298_v44  ;;  %v7187_v41 = vunpack.c.l.b16 %v7089_v17  ;;  %v6677_v5 = vadd.f32 %v21022_v6, %v6584_v31  ;;  %v6954_v17 = vadd.f32 %v6953_v10, %v19227_v40  ;;  %v7390_v10 = vpop.permute.xlu2 %7389 }
 0x6d2   : > { %7344 = vrot.lane.b32.xlu1 %v19590_v30, %s12957_s21 }
 0x6d4   : > { %v7043_v38 = vpop.f32.mrf.mxu1  ;;  %v7331_v39 = vpop.permute.xlu1 %7330 }
 0x6d5   : > { %v7044_v26 = vadd.f32 %v7043_v38, %v6951_v4  ;;  %v7575_v56 = vsel %vm7567_vm4, %v19310_v63, %v7331_v39  ;;  %v7300_v4 = vshrl.u32 %v19573_v11, 16  ;;  %v6770_v39 = vadd.f32 %v18980_v24, %v6677_v5 }
 0x6d6   : > { %v6958_v8 = vpop.f32.mrf.mxu3  ;;  %v7604_v21 = vsel %vm7596_vm5, %v7575_v56, %v7388_v33 }
 0x6d7   : > { %v7090_v14 = vpack.c.bf16 %v7044_v26, %v7044_v26  ;;  %v7636_v7 = vsel %vm7625_vm6, %v7604_v21, %v7419_v25  ;;  %v7302_v56 = vor.u32 %v7300_v4, %v7298_v44  ;;  %v6863_v21 = vadd.f32 %v19232_v46, %v6770_v39  ;;  %v21023_v4 = vld [vmem:[#allocation6_spill] sm:$0xff] }
 0x6d8   : > { %7953 = vmatmul.bf16.gmra.mxu2 %v7636_v7 }
 0x6d9   : > { %v7188_v3 = vunpack.c.l.b16 %v7090_v14  ;;  %v6956_v24 = vadd.f32 %v6955_v20, %v6863_v21  ;;  %v21025_v21 = vld [vmem:[#allocation22_spill] sm:$0xff] }
 0x6db   : > { %v19600_v32 = vpack.c.b16 %v7188_v3, %v7187_v41 }
 0x6dc   : > { %v7046_v52 = vpop.f32.mrf.mxu1 }
 0x6dd   : > { %7434 = vrot.lane.b32.xlu0 %v19600_v32, %s12955_s12  ;;  %v7375_v58 = vrot.slane %v19600_v32, 1  ;;  %v7304_v38 = vshll.u32 %v19600_v32, 16  ;;  %v7047_v14 = vadd.f32 %v7046_v52, %v6954_v17  ;;  %v6959_v17 = vadd.f32 %v6958_v8, %v19256_v1 }
 0x6de   : > { %v6960_v33 = vpop.f32.mrf.mxu3 }
 0x6df   : > { %v19611_v26 = vsel %vm1273_vm1, %v7373_v35, %v7375_v58  ;;  %v7306_v25 = vrot.slane %v7304_v38, 1  ;;  %v7091_v35 = vpack.c.bf16 %v7047_v14, %v7047_v14  ;;  %v7421_v47 = vpop.permute.xlu0 %7420  ;;  %v21024_v38 = vld [vmem:[#allocation31_spill] sm:$0xff] }
 0x6e0   : > { %7403 = vrot.lane.b32.xlu2 %v19611_v26, %s12956_s13  ;;  %v6589_v39 = vadd.f32 %v21024_v38, %v21023_v4 }
 0x6e1   : > { %v19617_v7 = vsel %vm743_vm2, %v7302_v56, %v7306_v25  ;;  %v7189_v52 = vunpack.c.l.b16 %v7091_v35 }
 0x6e2   : > { %7346 = vrot.lane.b32.xlu1 %v19617_v7, %s12957_s21  ;;  %v6682_v14 = vadd.f32 %v21025_v21, %v6589_v39 }
 0x6e4   : > { %v7048_v41 = vpop.f32.mrf.mxu1  ;;  %v7333_v40 = vpop.permute.xlu1 %7332  ;;  %v6775_v35 = vadd.f32 %v19012_v57, %v6682_v14 }
 0x6e5   : > { %v7049_v3 = vadd.f32 %v7048_v41, %v6956_v24  ;;  %v7577_v44 = vsel %vm7567_vm4, %v19347_v12, %v7333_v40  ;;  %v7308_v40 = vshrl.u32 %v19600_v32, 16 }
 0x6e6   : > { %v6963_v19 = vpop.f32.mrf.mxu3  ;;  %v7606_v46 = vsel %vm7596_vm5, %v7577_v44, %v7390_v10 }
 0x6e7   : > { %v7092_v31 = vpack.c.bf16 %v7049_v3, %v7049_v3  ;;  %v6964_v6 = vadd.f32 %v6963_v19, %v19287_v28  ;;  %v7639_v5 = vsel %vm7625_vm6, %v7606_v46, %v7421_v47  ;;  %v7310_v44 = vor.u32 %v7308_v40, %v7306_v25  ;;  %v7392_v25 = vpop.permute.xlu2 %7391 }
 0x6e8   : > { %7958 = vmatmul.bf16.gmra.mxu2 %v7639_v5  ;;  %v6868_v19 = vadd.f32 %v19265_v23, %v6775_v35 }
 0x6e9   : > { %v7190_v20 = vunpack.c.l.b16 %v7092_v31 }
 0x6ea   : > { %v6961_v57 = vadd.f32 %v6960_v33, %v6868_v19  ;;  %v21027_v19 = vld [vmem:[#allocation33_spill] sm:$0xff] }
 0x6eb   : > { %v19629_v56 = vpack.c.b16 %v7190_v20, %v7189_v52 }
 0x6ec   : > { %v7051_v24 = vpop.f32.mrf.mxu1 }
 0x6ed   : > { %v7052_v41 = vadd.f32 %v7051_v24, %v6959_v17  ;;  %7436 = vrot.lane.b32.xlu0 %v19629_v56, %s12955_s12  ;;  %v19635_v28 = vrot.slane %v19629_v56, 1  ;;  %v7312_v10 = vshll.u32 %v19629_v56, 16 }
 0x6ee   : > { %v6965_v3 = vpop.f32.mrf.mxu3 }
 0x6ef   : > { %v7093_v1 = vpack.c.bf16 %v7052_v41, %v7052_v41  ;;  %v19642_v8 = vsel %vm1273_vm1, %v7375_v58, %v19635_v28  ;;  %v7314_v47 = vrot.slane %v7312_v10, 1  ;;  %v7316_v58 = vshrl.u32 %v19629_v56, 16  ;;  %v7423_v41 = vpop.permute.xlu0 %7422 }
 0x6f0   : > { %7405 = vrot.lane.b32.xlu2 %v19642_v8, %s12956_s13 }
 0x6f1   : > { %v7206_v46 = vunpack.c.l.b16 %v7093_v1  ;;  %v19648_v31 = vsel %vm743_vm2, %v7310_v44, %v7314_v47  ;;  %v19656_v14 = vor.u32 %v7316_v58, %v7314_v47  ;;  %v21026_v47 = vld [vmem:[#allocation8_spill] sm:$0xff] }
 0x6f2   : > { %7348 = vrot.lane.b32.xlu1 %v19648_v31, %s12957_s21 }
 0x6f3   : > { %v7207_v5 = vpack.c.b16 %v7206_v46, %v7206_v46 }
 0x6f4   : > { %v7053_v52 = vpop.f32.mrf.mxu1  ;;  %v7335_v20 = vpop.permute.xlu1 %7334 }
 0x6f5   : > { %v7320_v4 = vshll.u32 %v7207_v5, 16  ;;  %v7379_v38 = vrot.slane %v7207_v5, 1  ;;  %v7054_v39 = vadd.f32 %v7053_v52, %v6961_v57  ;;  %v7579_v23 = vsel %vm7567_vm4, %v19387_v29, %v7335_v20  ;;  %v21028_v52 = vld [vmem:[#allocation16_spill] sm:$0xff] }
 0x6f6   : > { %v6968_v17 = vpop.f32.mrf.mxu3  ;;  %v7608_v21 = vsel %vm7596_vm5, %v7579_v23, %v7392_v25  ;;  %v6594_v57 = vadd.f32 %v21027_v19, %v21026_v47 }
 0x6f7   : > { %v7322_v24 = vrot.slane %v7320_v4, 1  ;;  %v7094_v33 = vpack.c.bf16 %v7054_v39, %v7054_v39  ;;  %v6969_v40 = vadd.f32 %v6968_v17, %v19324_v9  ;;  %v7380_v10 = vsel %vm1273_vm1, %v19635_v28, %v7379_v38 }
 0x6f8   : > { %7407 = vrot.lane.b32.xlu2 %v7380_v10, %s12956_s13  ;;  %v7642_v35 = vsel %vm7625_vm6, %v7608_v21, %v7423_v41  ;;  %v6687_v20 = vadd.f32 %v21028_v52, %v6594_v57 }
 0x6f9   : > { %v7410_v1 = vunpack.c.l.b16 %v7094_v33  ;;  %7963 = vmatmul.bf16.gmra.mxu2 %v7642_v35  ;;  %v7323_v44 = vsel %vm743_vm2, %v19656_v14, %v7322_v24 }
 0x6fa   : > { %7350 = vrot.lane.b32.xlu1 %v7323_v44, %s12957_s21  ;;  %v6780_v4 = vadd.f32 %v19043_v62, %v6687_v20  ;;  %v7394_v62 = vpop.permute.xlu2 %7393 }
 0x6fb   : > { %v19668_v5 = vpack.c.b16 %v7410_v1, %v7206_v46 }
 0x6fc   : > { %v7056_v9 = vpop.f32.mrf.mxu1  ;;  %v6873_v23 = vadd.f32 %v19302_v61, %v6780_v4 }
 0x6fd   : > { %v7057_v58 = vadd.f32 %v7056_v9, %v6964_v6  ;;  %7438 = vrot.lane.b32.xlu0 %v19668_v5, %s12955_s12  ;;  %v7444_v39 = vshll.u32 %v19668_v5, 16  ;;  %v7448_v61 = vshrl.u32 %v19668_v5, 16  ;;  %v21029_v9 = vld [vmem:[#allocation38_spill] sm:$0xff] }
 0x6fe   : > { %v6970_v25 = vpop.f32.mrf.mxu3  ;;  %v6966_v17 = vadd.f32 %v6965_v3, %v6873_v23 }
 0x6ff   : > { %v7095_v38 = vpack.c.bf16 %v7057_v58, %v7057_v58  ;;  %v19682_v21 = vrot.slane %v7444_v39, 1 }
 0x700   : > { %7491 = vrot.lane.b32.xlu2 %v19273_v22, %s12956_s13 }
 0x701   : > { %v7441_v46 = vunpack.c.l.b16 %v7095_v38  ;;  %v19693_v47 = vor.u32 %v7448_v61, %v19682_v21 }
 0x702   : > { %7460 = vrot.lane.b32.xlu1 %v19292_v15, %s12957_s21  ;;  %v7425_v15 = vpop.permute.xlu0 %7424  ;;  %v7396_v38 = vpop.permute.xlu2 %7395 }
 0x703   : > { %v19680_v6 = vpack.c.b16 %v7441_v46, %v7441_v46 }
 0x704   : > { %v7058_v24 = vpop.f32.mrf.mxu1  ;;  %v7337_v41 = vpop.permute.xlu1 %7336 }
 0x705   : > { %v7452_v33 = vshll.u32 %v19680_v6, 16  ;;  %v7059_v10 = vadd.f32 %v7058_v24, %v6966_v17  ;;  %v7581_v22 = vsel %vm7567_vm4, %v19429_v37, %v7337_v41  ;;  %7535 = vrot.lane.b32.xlu0 %v19334_v51, %s12955_s12 }
 0x706   : > { %v7610_v3 = vsel %vm7596_vm5, %v7581_v22, %v7394_v62 }
 0x707   : > { %v7454_v35 = vrot.slane %v7452_v33, 1  ;;  %v7096_v1 = vpack.c.bf16 %v7059_v10, %v7059_v10  ;;  %v7645_v44 = vsel %vm7625_vm6, %v7610_v3, %v7425_v15 }
 0x708   : > { %7493 = vrot.lane.b32.xlu2 %v19310_v63, %s12956_s13  ;;  %v12099_v63 = vld [vmem:[%s20839_s6 + $0xf0] sm:$0xff] }
 0x709   : > { %v7489_v19 = vunpack.c.l.b16 %v7096_v1  ;;  %7968 = vmatmul.bf16.gmra.mxu2 %v7645_v44  ;;  %v19699_v57 = vsel %vm743_vm2, %v19693_v47, %v7454_v35  ;;  %10155 = vmatpush.bf16.msrb.mxu0 %v12099_v63  ;;  %v12065_v1 = vld [vmem:[%s20836_s3 + $0x70] sm:$0xff] }
 0x70a   : > { %7462 = vrot.lane.b32.xlu1 %v21029_v9, %s12957_s21  ;;  %v7398_v17 = vpop.permute.xlu2 %7397 }
 0x70b   : > { %v19703_v52 = vpack.c.b16 %v7489_v19, %v7441_v46 }
 0x70c   : > { %v7061_v20 = vpop.f32.mrf.mxu1 }
 0x70d   : > { %v19705_v58 = vadd.f32 %v7061_v20, %v6969_v40  ;;  %7537 = vrot.lane.b32.xlu0 %v19371_v16, %s12955_s12 }
 0x70f   : > { %v7427_v39 = vpop.permute.xlu0 %7426 }
 0x710   : > { %7495 = vrot.lane.b32.xlu2 %v19347_v12, %s12956_s13 }
 0x712   : > { %7464 = vrot.lane.b32.xlu1 %v19365_v48, %s12957_s21 }
 0x714   : > { %v7339_v25 = vpop.permute.xlu1 %7338  ;;  %v7063_v4 = vpop.f32.mrf.mxu1 }
 0x715   : > { %v7583_v40 = vsel %vm7567_vm4, %v19465_v43, %v7339_v25  ;;  %7539 = vrot.lane.b32.xlu0 %v19408_v59, %s12955_s12  ;;  %v12063_v25 = vld [vmem:[%s20836_s3 + $0x60] sm:$0xff] }
 0x716   : > { %v7612_v23 = vsel %vm7596_vm5, %v7583_v40, %v7396_v38 }
 0x717   : > { %v7648_v46 = vsel %vm7625_vm6, %v7612_v23, %v7427_v39  ;;  %v12061_v23 = vld [vmem:[%s20836_s3 + $0x50] sm:$0xff] }
 0x718   : > { %7497 = vrot.lane.b32.xlu2 %v19387_v29, %s12956_s13 }
 0x719   : > { %7973 = vmatmul.bf16.gmra.mxu2 %v7648_v46  ;;  %v12060_v46 = vld [vmem:[%s20836_s3 + $0x48] sm:$0xff] }
 0x71a   : > { %7466 = vrot.lane.b32.xlu1 %v19402_v2, %s12957_s21  ;;  %v7400_v22 = vpop.permute.xlu2 %7399 }
 0x71d   : > { %7541 = vrot.lane.b32.xlu0 %v19450_v60, %s12955_s12 }
 0x71f   : > { %v7429_v29 = vpop.permute.xlu0 %7428 }
 0x720   : > { %7499 = vrot.lane.b32.xlu2 %v19429_v37, %s12956_s13 }
 0x722   : > { %7468 = vrot.lane.b32.xlu1 %v19444_v42, %s12957_s21 }
 0x724   : > { %v7341_v12 = vpop.permute.xlu1 %7340 }
 0x725   : > { %v7585_v24 = vsel %vm7567_vm4, %v19489_v13, %v7341_v12  ;;  %7543 = vrot.lane.b32.xlu0 %v19483_v45, %s12955_s12 }
 0x726   : > { %v7614_v41 = vsel %vm7596_vm5, %v7585_v24, %v7398_v17 }
 0x727   : > { %v7651_v62 = vsel %vm7625_vm6, %v7614_v41, %v7429_v29  ;;  %v12059_v41 = vld [vmem:[%s20836_s3 + $0x40] sm:$0xff] }
 0x728   : > { %7501 = vrot.lane.b32.xlu2 %v19465_v43, %s12956_s13 }
 0x729   : > { %7978 = vmatmul.bf16.gmra.mxu2 %v7651_v62 }
 0x72a   : > { %7470 = vrot.lane.b32.xlu1 %v19477_v55, %s12957_s21  ;;  %v7402_v20 = vpop.permute.xlu2 %7401 }
 0x72b   : > { %v19742_v37 = vpop.f32.mrf.mxu2 }
 0x72d   : > { %7545 = vrot.lane.b32.xlu0 %v19506_v18, %s12955_s12 }
 0x72f   : > { %v7431_v61 = vpop.permute.xlu0 %7430 }
 0x730   : > { %7503 = vrot.lane.b32.xlu2 %v19489_v13, %s12956_s13  ;;  %v12066_v13 = vld [vmem:[%s20836_s3 + $0x78] sm:$0xff] }
 0x731   : > { %8009 = vmatpush.bf16.msra.mxu3 %v12066_v13  ;;  %v12068_v13 = vld [vmem:[%s20836_s3 + $0x88] sm:$0xff] }
 0x732   : > { %7472 = vrot.lane.b32.xlu1 %v19500_v53, %s12957_s21  ;;  %8094 = vmatpush.bf16.msrb.mxu2 %v12068_v13 }
 0x733   : > { %v19750_v33 = vpop.f32.mrf.mxu2 }
 0x734   : > { %v7343_v10 = vpop.permute.xlu1 %7342 }
 0x735   : > { %v7587_v43 = vsel %vm7567_vm4, %v19516_v36, %v7343_v10  ;;  %7547 = vrot.lane.b32.xlu0 %v19536_v0, %s12955_s12  ;;  %8010 = vmatpush.bf16.msra.mxu3 %v12065_v1 }
 0x736   : > { %v7616_v15 = vsel %vm7596_vm5, %v7587_v43, %v7400_v22  ;;  %v7097_v43 = vpack.c.bf16 %v19705_v58, %v19705_v58  ;;  %v19839_v58 = vrot.slane %v19668_v5, 1 }
 0x737   : > { %v7654_v3 = vsel %vm7625_vm6, %v7616_v15, %v7431_v61  ;;  %v19833_v15 = vsel %vm743_vm2, %v19656_v14, %v19682_v21 }
 0x738   : > { %7505 = vrot.lane.b32.xlu2 %v19516_v36, %s12956_s13  ;;  %v12064_v36 = vld [vmem:[%s20836_s3 + $0x68] sm:$0xff]  ;;  %v7520_v61 = vunpack.c.l.b16 %v7097_v43  ;;  %v19851_v21 = vsel %vm1273_vm1, %v19635_v28, %v19839_v58  ;;  %v12067_v28 = vld [vmem:[%s20836_s3 + $0x80] sm:$0xff] }
 0x739   : > { %7983 = vmatmul.bf16.gmra.mxu2 %v7654_v3  ;;  %8011 = vmatpush.bf16.msra.mxu3 %v12064_v36  ;;  %v7523_v3 = vshll.u32 %v19703_v52, 16 }
 0x73a   : > { %7474 = vrot.lane.b32.xlu1 %v19530_v50, %s12957_s21  ;;  %v7404_v24 = vpop.permute.xlu2 %7403  ;;  %v19844_v1 = vpack.c.b16 %v7520_v61, %v7520_v61  ;;  %8095 = vmatpush.bf16.msrb.mxu2 %v12067_v28  ;;  %v21030_v61 = vld [vmem:[#allocation37_spill] sm:$0xff] }
 0x73b   : > { %v19765_v35 = vpop.f32.mrf.mxu2  ;;  %v7525_v36 = vrot.slane %v7523_v3, 1 }
 0x73d   : > { %7549 = vrot.lane.b32.xlu0 %v19563_v54, %s12955_s12  ;;  %8012 = vmatpush.bf16.msra.mxu3 %v12063_v25  ;;  %v7526_v25 = vsel %vm743_vm2, %v19693_v47, %v7525_v36 }
 0x73f   : > { %v7433_v4 = vpop.permute.xlu0 %7432 }
 0x740   : > { %7507 = vrot.lane.b32.xlu2 %v19546_v27, %s12956_s13 }
 0x742   : > { %7476 = vrot.lane.b32.xlu1 %v19557_v49, %s12957_s21 }
 0x743   : > { %v19779_v44 = vpop.f32.mrf.mxu2 }
 0x744   : > { %v7345_v19 = vpop.permute.xlu1 %7344 }
 0x745   : > { %v7589_v63 = vsel %vm7567_vm4, %v19546_v27, %v7345_v19  ;;  %7551 = vrot.lane.b32.xlu0 %v19590_v30, %s12955_s12  ;;  %v12062_v27 = vld [vmem:[%s20836_s3 + $0x58] sm:$0xff] }
 0x746   : > { %v7618_v38 = vsel %vm7596_vm5, %v7589_v63, %v7402_v20  ;;  %8013 = vmatpush.bf16.msra.mxu3 %v12062_v27  ;;  %v7531_v20 = vshll.u32 %v19844_v1, 16 }
 0x747   : > { %v7657_v40 = vsel %vm7625_vm6, %v7618_v38, %v7433_v4 }
 0x748   : > { %7509 = vrot.lane.b32.xlu2 %v19573_v11, %s12956_s13 }
 0x749   : > { %7988 = vmatmul.bf16.gmra.mxu2 %v7657_v40 }
 0x74a   : > { %7478 = vrot.lane.b32.xlu1 %v19584_v34, %s12957_s21  ;;  %8014 = vmatpush.bf16.msra.mxu3 %v12061_v23  ;;  %v7406_v14 = vpop.permute.xlu2 %7405  ;;  %v7533_v23 = vrot.slane %v7531_v20, 1 }
 0x74b   : > { %v19797_v39 = vpop.f32.mrf.mxu2 }
 0x74d   : > { %7553 = vrot.lane.b32.xlu0 %v19617_v7, %s12955_s12 }
 0x74e   : > { %8015 = vmatpush.bf16.msra.mxu3 %v12060_v46 }
 0x74f   : > { %v7435_v62 = vpop.permute.xlu0 %7434 }
 0x750   : > { %7511 = vrot.lane.b32.xlu2 %v19600_v32, %s12956_s13 }
 0x752   : > { %7480 = vrot.lane.b32.xlu1 %v19611_v26, %s12957_s21  ;;  %8016 = vmatpush.bf16.msra.mxu3 %v12059_v41  ;;  %v7408_v46 = vpop.permute.xlu2 %7407 }
 0x753   : > { %v19811_v12 = vpop.f32.mrf.mxu2 }
 0x754   : > { %v7347_v17 = vpop.permute.xlu1 %7346 }
 0x755   : > { %v7591_v29 = vsel %vm7567_vm4, %v19573_v11, %v7347_v17  ;;  %7555 = vrot.lane.b32.xlu0 %v19648_v31, %s12955_s12 }
 0x756   : > { %v7620_v10 = vsel %vm7596_vm5, %v7591_v29, %v7404_v24 }
 0x757   : > { %v7660_v22 = vsel %vm7625_vm6, %v7620_v10, %v7435_v62 }
 0x758   : > { %7513 = vrot.lane.b32.xlu2 %v19629_v56, %s12956_s13 }
 0x759   : > { %7993 = vmatmul.bf16.gmra.mxu2 %v7660_v22 }
 0x75a   : > { %7482 = vrot.lane.b32.xlu1 %v19642_v8, %s12957_s21  ;;  %v7492_v43 = vpop.permute.xlu2 %7491 }
 0x75b   : > { %v19828_v11 = vpop.f32.mrf.mxu2 }
 0x75d   : > { %7557 = vrot.lane.b32.xlu0 %v19833_v15, %s12955_s12 }
 0x75f   : > { %v7437_v38 = vpop.permute.xlu0 %7436 }
 0x760   : > { %7515 = vrot.lane.b32.xlu2 %v19668_v5, %s12956_s13  ;;  %v7458_v5 = vrot.slane %v19680_v6, 1  ;;  %v7527_v6 = vshrl.u32 %v19703_v52, 16 }
 0x762   : > { %7484 = vrot.lane.b32.xlu1 %v19851_v21, %s12957_s21  ;;  %v7529_v47 = vor.u32 %v7527_v6, %v7525_v36  ;;  %v7494_v28 = vpop.permute.xlu2 %7493 }
 0x763   : > { %v19855_v19 = vpop.f32.mrf.mxu2 }
 0x764   : > { %v7349_v63 = vpop.permute.xlu1 %7348  ;;  %v7534_v29 = vsel %vm743_vm2, %v7529_v47, %v7533_v23 }
 0x765   : > { %v7593_v4 = vsel %vm7567_vm4, %v19600_v32, %v7349_v63  ;;  %7559 = vrot.lane.b32.xlu0 %v7526_v25, %s12955_s12  ;;  %v7459_v32 = vsel %vm1273_vm1, %v19839_v58, %v7458_v5 }
 0x766   : > { %v7622_v40 = vsel %vm7596_vm5, %v7593_v4, %v7406_v14 }
 0x767   : > { %v7663_v27 = vsel %vm7625_vm6, %v7622_v40, %v7437_v38 }
 0x768   : > { %7517 = vrot.lane.b32.xlu2 %v19703_v52, %s12956_s13 }
 0x769   : > { %7998 = vmatmul.bf16.gmra.mxu2 %v7663_v27 }
 0x76a   : > { %7486 = vrot.lane.b32.xlu1 %v7459_v32, %s12957_s21 }
 0x76b   : > { %v19875_v17 = vpop.f32.mrf.mxu2 }
 0x76c   : > { %v7351_v24 = vpop.permute.xlu1 %7350 }
 0x76d   : > { %7561 = vrot.lane.b32.xlu0 %v7534_v29, %s12955_s12  ;;  %v7595_v62 = vsel %vm7567_vm4, %v19629_v56, %v7351_v24  ;;  %v12098_v56 = vld [vmem:[%s20839_s6 + $0xe8] sm:$0xff] }
 0x76e   : > { %v7624_v13 = vsel %vm7596_vm5, %v7595_v62, %v7408_v46  ;;  %10156 = vmatpush.bf16.msrb.mxu0 %v12098_v56  ;;  %v7496_v46 = vpop.permute.xlu2 %7495 }
 0x76f   : > { %v7439_v41 = vpop.permute.xlu0 %7438 }
 0x770   : > { %v7666_v63 = vsel %vm7625_vm6, %v7624_v13, %v7439_v41 }
 0x773   : > { %v19881_v10 = vpop.f32.mrf.mxu2 }
 0x774   : > { %v7461_v22 = vpop.permute.xlu1 %7460 }
 0x775   : > { %v7670_v3 = vsel %vm7567_vm4, %v21030_v61, %v7461_v22 }
 0x776   : > { %v7711_v36 = vsel %vm7596_vm5, %v7670_v3, %v7492_v43  ;;  %v7498_v43 = vpop.permute.xlu2 %7497 }
 0x777   : > { %v7536_v14 = vpop.permute.xlu0 %7535 }
 0x778   : > { %v7739_v20 = vsel %vm7625_vm6, %v7711_v36, %v7536_v14 }
 0x779   : > { %8003 = vmatmul.bf16.gmra.mxu2 %v7666_v63  ;;  %8017 = vmatmul.bf16.vlgmr.msra.gmra.mxu3 %v7739_v20 }
 0x77c   : > { %v19892_v25 = vpop.f32.mrf.mxu2  ;;  %v7463_v5 = vpop.permute.xlu1 %7462 }
 0x77d   : > { %v7673_v4 = vsel %vm7567_vm4, %v19334_v51, %v7463_v5 }
 0x77e   : > { %v7713_v27 = vsel %vm7596_vm5, %v7673_v4, %v7494_v28  ;;  %v7500_v20 = vpop.permute.xlu2 %7499 }
 0x77f   : > { %v7538_v40 = vpop.permute.xlu0 %7537 }
 0x780   : > { %v7742_v23 = vsel %vm7625_vm6, %v7713_v27, %v7538_v40 }
 0x784   : > { %v19896_v38 = vpop.f32.mrf.mxu2  ;;  %v7465_v32 = vpop.permute.xlu1 %7464 }
 0x785   : > { %v7676_v47 = vsel %vm7567_vm4, %v19371_v16, %v7465_v32 }
 0x786   : > { %v7715_v29 = vsel %vm7596_vm5, %v7676_v47, %v7496_v46  ;;  %v7502_v40 = vpop.permute.xlu2 %7501 }
 0x787   : > { %v7540_v24 = vpop.permute.xlu0 %7539 }
 0x788   : > { %v7745_v41 = vsel %vm7625_vm6, %v7715_v29, %v7540_v24 }
 0x789   : > { %11133 = vmatmul.msk.bf16.vlgmr.msrb.gmra.mxu2 %vm7567_vm4, %v21029_v9  ;;  %8022 = vmatmul.bf16.gmra.mxu3 %v7742_v23 }
 0x78c   : > { %v19902_v6 = vpop.f32.mrf.mxu2  ;;  %v7467_v62 = vpop.permute.xlu1 %7466 }
 0x78d   : > { %v7679_v22 = vsel %vm7567_vm4, %v19408_v59, %v7467_v62 }
 0x78e   : > { %v7717_v3 = vsel %vm7596_vm5, %v7679_v22, %v7498_v43  ;;  %v7504_v24 = vpop.permute.xlu2 %7503 }
 0x78f   : > { %v7542_v61 = vpop.permute.xlu0 %7541 }
 0x790   : > { %v7748_v13 = vsel %vm7625_vm6, %v7717_v3, %v7542_v61  ;;  %v12097_v3 = vld [vmem:[%s20839_s6 + $0xe0] sm:$0xff] }
 0x791   : > { %10157 = vmatpush.bf16.msrb.mxu0 %v12097_v3 }
 0x794   : > { %v19906_v51 = vpop.f32.mrf.mxu2  ;;  %v7469_v36 = vpop.permute.xlu1 %7468 }
 0x795   : > { %v7682_v14 = vsel %vm7567_vm4, %v19450_v60, %v7469_v36 }
 0x796   : > { %v7719_v56 = vsel %vm7596_vm5, %v7682_v14, %v7500_v20  ;;  %v7506_v61 = vpop.permute.xlu2 %7505 }
 0x797   : > { %v7544_v63 = vpop.permute.xlu0 %7543 }
 0x798   : > { %v7751_v5 = vsel %vm7625_vm6, %v7719_v56, %v7544_v63 }
 0x799   : > { %11134 = vmatmul.msk.bf16.gmra.mxu2 %vm7567_vm4, %v19365_v48  ;;  %8027 = vmatmul.bf16.gmra.mxu3 %v7745_v41 }
 0x79c   : > { %v19912_v9 = vpop.f32.mrf.mxu2  ;;  %v7471_v4 = vpop.permute.xlu1 %7470 }
 0x79d   : > { %v7685_v28 = vsel %vm7567_vm4, %v19483_v45, %v7471_v4 }
 0x79e   : > { %v7721_v23 = vsel %vm7596_vm5, %v7685_v28, %v7502_v40  ;;  %v7508_v63 = vpop.permute.xlu2 %7507 }
 0x79f   : > { %v7546_v27 = vpop.permute.xlu0 %7545 }
 0x7a0   : > { %v7754_v32 = vsel %vm7625_vm6, %v7721_v23, %v7546_v27 }
 0x7a4   : > { %v19916_v16 = vpop.f32.mrf.mxu2  ;;  %v7473_v47 = vpop.permute.xlu1 %7472 }
 0x7a5   : > { %v7688_v46 = vsel %vm7567_vm4, %v19506_v18, %v7473_v47 }
 0x7a6   : > { %v7723_v41 = vsel %vm7596_vm5, %v7688_v46, %v7504_v24 }
 0x7a7   : > { %v7548_v29 = vpop.permute.xlu0 %7547 }
 0x7a8   : > { %v7757_v62 = vsel %vm7625_vm6, %v7723_v41, %v7548_v29 }
 0x7a9   : > { %11135 = vmatmul.msk.bf16.gmra.mxu2 %vm7567_vm4, %v19402_v2  ;;  %8032 = vmatmul.bf16.gmra.mxu3 %v7748_v13 }
 0x7ac   : > { %v19922_v48 = vpop.f32.mrf.mxu2  ;;  %v7475_v22 = vpop.permute.xlu1 %7474 }
 0x7ad   : > { %v7691_v43 = vsel %vm7567_vm4, %v19536_v0, %v7475_v22 }
 0x7ae   : > { %v7725_v36 = vsel %vm7596_vm5, %v7691_v43, %v7506_v61 }
 0x7af   : > { %v7550_v13 = vpop.permute.xlu0 %7549 }
 0x7b4   : > { %v19926_v59 = vpop.f32.mrf.mxu2  ;;  %v7477_v0 = vpop.permute.xlu1 %7476 }
 0x7b5   : > { %v7694_v20 = vsel %vm7567_vm4, %v19563_v54, %v7477_v0  ;;  %v7510_v54 = vpop.permute.xlu2 %7509 }
 0x7b6   : > { %v7727_v4 = vsel %vm7596_vm5, %v7694_v20, %v7508_v63 }
 0x7b9   : > { %11136 = vmatmul.msk.bf16.gmra.mxu2 %vm7567_vm4, %v19444_v42  ;;  %8037 = vmatmul.bf16.gmra.mxu3 %v7751_v5  ;;  %v7552_v5 = vpop.permute.xlu0 %7551 }
 0x7ba   : > { %v7763_v28 = vsel %vm7625_vm6, %v7727_v4, %v7552_v5 }
 0x7bc   : > { %v19932_v2 = vpop.f32.mrf.mxu2  ;;  %v7479_v27 = vpop.permute.xlu1 %7478 }
 0x7bd   : > { %v7697_v23 = vsel %vm7567_vm4, %v19590_v30, %v7479_v27  ;;  %v7512_v30 = vpop.permute.xlu2 %7511 }
 0x7be   : > { %v7729_v24 = vsel %vm7596_vm5, %v7697_v23, %v7510_v54 }
 0x7c1   : > { %v7554_v46 = vpop.permute.xlu0 %7553 }
 0x7c2   : > { %v7766_v29 = vsel %vm7625_vm6, %v7729_v24, %v7554_v46 }
 0x7c4   : > { %v19936_v60 = vpop.f32.mrf.mxu2 }
 0x7c5   : > { %v7514_v4 = vpop.permute.xlu2 %7513 }
 0x7c9   : > { %11137 = vmatmul.msk.bf16.gmra.mxu2 %vm7567_vm4, %v19477_v55  ;;  %8042 = vmatmul.bf16.gmra.mxu3 %v7754_v32  ;;  %v7556_v3 = vpop.permute.xlu0 %7555 }
 0x7cc   : > { %v19942_v42 = vpop.f32.mrf.mxu2 }
 0x7d1   : > { %v7558_v46 = vpop.permute.xlu0 %7557 }
 0x7d4   : > { %v19946_v45 = vpop.f32.mrf.mxu2 }
 0x7d9   : > { %11138 = vmatmul.msk.bf16.gmra.mxu2 %vm7567_vm4, %v19500_v53  ;;  %8047 = vmatmul.bf16.gmra.mxu3 %v7757_v62  ;;  %v7760_v53 = vsel %vm7625_vm6, %v7725_v36, %v7550_v13  ;;  %v7481_v62 = vpop.permute.xlu1 %7480 }
 0x7da   : > { %v7700_v22 = vsel %vm7567_vm4, %v19617_v7, %v7481_v62 }
 0x7db   : > { %v7731_v13 = vsel %vm7596_vm5, %v7700_v22, %v7512_v30 }
 0x7dc   : > { %v19952_v55 = vpop.f32.mrf.mxu2  ;;  %v7769_v36 = vsel %vm7625_vm6, %v7731_v13, %v7556_v3 }
 0x7e1   : > { %v7483_v0 = vpop.permute.xlu1 %7482 }
 0x7e2   : > { %v7703_v5 = vsel %vm7567_vm4, %v19648_v31, %v7483_v0  ;;  %v20004_v31 = vld [vmem:[%s20837_s4] ss:$0 sm:$0xff] }
 0x7e4   : > { %v19956_v18 = vpop.f32.mrf.mxu2 }
 0x7e9   : > { %11139 = vmatmul.msk.bf16.gmra.mxu2 %vm7567_vm4, %v19530_v50  ;;  %8052 = vmatmul.bf16.gmra.mxu3 %v7760_v53  ;;  %v7485_v3 = vpop.permute.xlu1 %7484 }
 0x7ec   : > { %v19965_v14 = vpop.f32.mrf.mxu2 }
 0x7f4   : > { %v19969_v56 = vpop.f32.mrf.mxu2 }
 0x7f9   : > { %11140 = vmatmul.msk.bf16.gmra.mxu2 %vm7567_vm4, %v19557_v49  ;;  %8057 = vmatmul.bf16.gmra.mxu3 %v7763_v28 }
 0x7fc   : > { %v19975_v50 = vpop.f32.mrf.mxu2  ;;  %v8018_v40 = vpop.f32.mrf.mxu3 }
 0x7fd   : > { %v8019_v63 = vadd.f32 %v8018_v40, %v19742_v37 }
 0x804   : > { %v19979_v32 = vpop.f32.mrf.mxu2  ;;  %v8020_v47 = vpop.f32.mrf.mxu3 }
 0x805   : > { %v8021_v28 = vadd.f32 %v8020_v47, %v19750_v33 }
 0x809   : > { %11141 = vmatmul.msk.bf16.gmra.mxu2 %vm7567_vm4, %v19584_v34  ;;  %8062 = vmatmul.bf16.gmra.mxu3 %v7766_v29 }
 0x80c   : > { %v8097_v49 = vpop.f32.mrf.mxu2  ;;  %v8023_v41 = vpop.f32.mrf.mxu3 }
 0x80d   : > { %v8024_v20 = vadd.f32 %v8023_v41, %v19765_v35  ;;  %v8098_v27 = vadd.f32 %v8097_v49, %v8019_v63  ;;  %v7733_v35 = vsel %vm7596_vm5, %v7703_v5, %v7514_v4 }
 0x80e   : > { %v7772_v37 = vsel %vm7625_vm6, %v7733_v35, %v7558_v46 }
 0x814   : > { %v8099_v43 = vpop.f32.mrf.mxu2  ;;  %v8025_v61 = vpop.f32.mrf.mxu3 }
 0x815   : > { %v8026_v23 = vadd.f32 %v8025_v61, %v19779_v44  ;;  %v8100_v24 = vadd.f32 %v8099_v43, %v8021_v28  ;;  %v7560_v28 = vpop.permute.xlu0 %7559 }
 0x819   : > { %11142 = vmatmul.msk.bf16.gmra.mxu2 %vm7567_vm4, %v19611_v26  ;;  %8067 = vmatmul.bf16.gmra.mxu3 %v7769_v36 }
 0x81c   : > { %v8102_v34 = vpop.f32.mrf.mxu2  ;;  %v8028_v53 = vpop.f32.mrf.mxu3 }
 0x81d   : > { %v8103_v7 = vadd.f32 %v8102_v34, %v8024_v20  ;;  %v8029_v33 = vadd.f32 %v8028_v53, %v19797_v39  ;;  %v7706_v34 = vsel %vm7567_vm4, %v19833_v15, %v7485_v3  ;;  %v7516_v20 = vpop.permute.xlu2 %7515 }
 0x81f   : > { %v8167_v29 = vmax.f32 %v8098_v27, %v8103_v7  ;;  %v7735_v27 = vsel %vm7596_vm5, %v7706_v34, %v7516_v20 }
 0x821   : > { %v8207_v40 = vrot.slane %v8167_v29, 1 }
 0x824   : > { %v8104_v54 = vpop.f32.mrf.mxu2  ;;  %v8030_v26 = vpop.f32.mrf.mxu3 }
 0x825   : > { %v8105_v62 = vadd.f32 %v8104_v54, %v8026_v23 }
 0x827   : > { %v8168_v41 = vmax.f32 %v8100_v24, %v8105_v62  ;;  %v7775_v24 = vsel %vm7625_vm6, %v7735_v27, %v7560_v28 }
 0x829   : > { %v8208_v22 = vrot.slane %v8168_v41, 1  ;;  %11143 = vmatmul.msk.bf16.gmra.mxu2 %vm7567_vm4, %v19642_v8  ;;  %8072 = vmatmul.bf16.gmra.mxu3 %v7772_v37 }
 0x82b   : > { %v8209_v44 = vsel %vm1273_vm1, %v8207_v40, %v8208_v22  ;;  %v7487_v40 = vpop.permute.xlu1 %7486 }
 0x82c   : > { %v8254_v47 = vmax.f32 %v8167_v29, %v8209_v44  ;;  %v8107_v49 = vpop.f32.mrf.mxu2  ;;  %v8033_v30 = vpop.f32.mrf.mxu3 }
 0x82d   : > { %v8108_v43 = vadd.f32 %v8107_v49, %v8029_v33  ;;  %v8031_v49 = vadd.f32 %v8030_v26, %v19811_v12 }
 0x82e   : > { %v8271_v61 = vadd.f32 %v20004_v31, %v8254_v47  ;;  %v7518_v47 = vpop.permute.xlu2 %7517 }
 0x82f   : > { %v8169_v13 = vmax.f32 %v8103_v7, %v8108_v43 }
 0x830   : > { %v8285_v36 = vmax.f32 %v8271_v61, 0.0 }
 0x831   : > { %v8210_v8 = vrot.slane %v8169_v13, 1 }
 0x832   : > { %v20011_v0 = vpack.c.bf16 %v8285_v36, %v8285_v36  ;;  %v7563_v36 = vrot.slane %v19703_v52, 1 }
 0x833   : > { %v8211_v39 = vsel %vm1273_vm1, %v8208_v22, %v8210_v8  ;;  %v8034_v22 = vadd.f32 %v8033_v30, %v19828_v11  ;;  %v7562_v8 = vpop.permute.xlu0 %7561 }
 0x834   : > { %v8255_v53 = vmax.f32 %v8168_v41, %v8211_v39  ;;  %v8109_v63 = vpop.f32.mrf.mxu2  ;;  %v8035_v5 = vpop.f32.mrf.mxu3  ;;  %v8314_v4 = vunpack.c.l.b16 %v20011_v0 }
 0x835   : > { %v8036_v61 = vadd.f32 %v8035_v5, %v19855_v19  ;;  %v8110_v34 = vadd.f32 %v8109_v63, %v8031_v49  ;;  %v12096_v49 = vld [vmem:[%s20839_s6 + $0xd8] sm:$0xff] }
 0x836   : > { %v8272_v7 = vadd.f32 %v20004_v31, %v8255_v53  ;;  %v20017_v23 = vpack.c.b16 %v8314_v4, %v8314_v4  ;;  %10158 = vmatpush.bf16.msrb.mxu0 %v12096_v49 }
 0x838   : > { %v8286_v54 = vmax.f32 %v8272_v7, 0.0  ;;  %v8320_v15 = vrot.slane %v20017_v23, 3  ;;  %v8316_v46 = vrot.slane %v20017_v23, 1 }
 0x839   : > { %11144 = vmatmul.msk.bf16.gmra.mxu2 %vm7567_vm4, %v19851_v21  ;;  %8077 = vmatmul.bf16.gmra.mxu3 %v7775_v24  ;;  %v7709_v21 = vsel %vm7567_vm4, %v19699_v57, %v7487_v40  ;;  %v7564_v57 = vsel %vm1273_vm1, %v19839_v58, %v7563_v36 }
 0x83a   : > { %v20024_v29 = vpack.c.bf16 %v8286_v54, %v8286_v54  ;;  %8321 = vrot.lane.b32.xlu2 %v8320_v15, %s12956_s13  ;;  %8317 = vrot.lane.b32.xlu1 %v8316_v46, %s12956_s13  ;;  %v7737_v20 = vsel %vm7596_vm5, %v7709_v21, %v7518_v47  ;;  %v12076_v46 = vld [vmem:[%s20839_s6 + $0x38] sm:$0xff] }
 0x83b   : > { %v7778_v53 = vsel %vm7625_vm6, %v7737_v20, %v7562_v8  ;;  %10115 = vmatpush.bf16.msrb.mxu3 %v12076_v46  ;;  %v12090_v46 = vld [vmem:[%s20839_s6 + $0xa8] sm:$0xff] }
 0x83c   : > { %v8112_v62 = vpop.f32.mrf.mxu2  ;;  %v8038_v35 = vpop.f32.mrf.mxu3  ;;  %v8324_v41 = vunpack.c.l.b16 %v20024_v29 }
 0x83d   : > { %v8113_v44 = vadd.f32 %v8112_v62, %v8034_v22  ;;  %v8039_v19 = vadd.f32 %v8038_v35, %v19875_v17  ;;  %v7565_v17 = vrot.slane %v19844_v1, 1 }
 0x83e   : > { %v20029_v37 = vpack.c.b16 %v8324_v41, %v8324_v41 }
 0x83f   : > { %v8170_v11 = vmax.f32 %v8108_v43, %v8113_v44 }
 0x840   : > { %v8326_v33 = vrot.slane %v20029_v37, 1 }
 0x841   : > { %v8212_v4 = vrot.slane %v8170_v11, 1 }
 0x842   : > { %8327 = vrot.lane.b32.xlu0 %v8326_v33, %s12956_s13  ;;  %v12075_v33 = vld [vmem:[%s20839_s6 + $0x30] sm:$0xff] }
 0x843   : > { %10116 = vmatpush.bf16.msrb.mxu3 %v12075_v33 }
 0x844   : > { %v8114_v3 = vpop.f32.mrf.mxu2  ;;  %v8040_v13 = vpop.f32.mrf.mxu3 }
 0x845   : > { %v8115_v30 = vadd.f32 %v8114_v3, %v8036_v61  ;;  %v12074_v61 = vld [vmem:[%s20839_s6 + $0x28] sm:$0xff] }
 0x847   : > { %v8171_v39 = vmax.f32 %v8110_v34, %v8115_v30  ;;  %10117 = vmatpush.bf16.msrb.mxu3 %v12074_v61  ;;  %v12073_v30 = vld [vmem:[%s20839_s6 + $0x20] sm:$0xff] }
 0x849   : > { %v8213_v12 = vrot.slane %v8171_v39, 1  ;;  %11145 = vmatmul.msk.bf16.gmra.mxu2 %vm7567_vm4, %v7564_v57  ;;  %8082 = vmatmul.bf16.gmra.mxu3 %v7778_v53  ;;  %v8041_v57 = vadd.f32 %v8040_v13, %v19881_v10  ;;  %v12071_v10 = vld [vmem:[%s20839_s6 + $0x10] sm:$0xff] }
 0x84b   : > { %v8214_v52 = vsel %vm1273_vm1, %v8212_v4, %v8213_v12  ;;  %10118 = vmatpush.bf16.msrb.mxu3 %v12073_v30 }
 0x84c   : > { %v8256_v26 = vmax.f32 %v8170_v11, %v8214_v52  ;;  %v8117_v43 = vpop.f32.mrf.mxu2  ;;  %v8043_v63 = vpop.f32.mrf.mxu3 }
 0x84d   : > { %v8118_v5 = vadd.f32 %v8117_v43, %v8039_v19  ;;  %v8044_v11 = vadd.f32 %v8043_v63, %v19892_v25  ;;  %v12072_v25 = vld [vmem:[%s20839_s6 + $0x18] sm:$0xff] }
 0x84e   : > { %v8273_v28 = vadd.f32 %v20004_v31, %v8256_v26  ;;  %v12092_v19 = vld [vmem:[%s20839_s6 + $0xb8] sm:$0xff] }
 0x84f   : > { %v8172_v27 = vmax.f32 %v8113_v44, %v8118_v5  ;;  %v7566_v44 = vsel %vm1273_vm1, %v7563_v36, %v7565_v17  ;;  %10119 = vmatpush.bf16.msrb.mxu3 %v12072_v25  ;;  %10141 = vmatpush.bf16.msrb.mxu1 %v12092_v19  ;;  %v12095_v25 = vld [vmem:[%s20839_s6 + $0xd0] sm:$0xff] }
 0x850   : > { %v8287_v7 = vmax.f32 %v8273_v28, 0.0  ;;  %10159 = vmatpush.bf16.msrb.mxu0 %v12095_v25 }
 0x851   : > { %v8215_v58 = vrot.slane %v8172_v27, 1 }
 0x852   : > { %v8301_v54 = vpack.c.bf16 %v8287_v7, %v8287_v7  ;;  %v12070_v7 = vld [vmem:[%s20839_s6 + $0x8] sm:$0xff] }
 0x853   : > { %v8216_v15 = vsel %vm1273_vm1, %v8213_v12, %v8215_v58  ;;  %10120 = vmatpush.bf16.msrb.mxu3 %v12071_v10 }
 0x854   : > { %v8257_v24 = vmax.f32 %v8171_v39, %v8216_v15  ;;  %v8119_v62 = vpop.f32.mrf.mxu2  ;;  %v8045_v35 = vpop.f32.mrf.mxu3  ;;  %v8331_v41 = vunpack.c.l.b16 %v8301_v54 }
 0x855   : > { %v8046_v53 = vadd.f32 %v8045_v35, %v19896_v38  ;;  %v8120_v52 = vadd.f32 %v8119_v62, %v8041_v57  ;;  %v12091_v38 = vld [vmem:[%s20839_s6 + $0xb0] sm:$0xff]  ;;  %v12069_v62 = vld [vmem:[%s20839_s6] sm:$0xff] }
 0x856   : > { %v20052_v40 = vpack.c.b16 %v8331_v41, %v8331_v41  ;;  %v8274_v22 = vadd.f32 %v20004_v31, %v8257_v24  ;;  %10142 = vmatpush.bf16.msrb.mxu1 %v12091_v38  ;;  %v12084_v41 = vld [vmem:[%s20839_s6 + $0x78] sm:$0xff]  ;;  %v12087_v57 = vld [vmem:[%s20839_s6 + $0x90] sm:$0xff]  ;;  %v12094_v38 = vld [vmem:[%s20839_s6 + $0xc8] sm:$0xff] }
 0x857   : > { %10121 = vmatpush.bf16.msrb.mxu3 %v12070_v7  ;;  %10160 = vmatpush.bf16.msrb.mxu0 %v12094_v38  ;;  %v12120_v38 = vld [vmem:[%s20839_s6 + $0x198] sm:$0xff] }
 0x858   : > { %8333 = vrot.lane.b32.xlu2 %v20052_v40, %s12956_s13  ;;  %v8336_v1 = vrot.slane %v20052_v40, 2  ;;  %v8288_v21 = vmax.f32 %v8274_v22, 0.0  ;;  %v12089_v22 = vld [vmem:[%s20839_s6 + $0xa0] sm:$0xff] }
 0x859   : > { %11146 = vmatmul.msk.bf16.gmra.mxu2 %vm7567_vm4, %v7566_v44 }
 0x85a   : > { %8337 = vrot.lane.b32.xlu1 %v8336_v1, %s12956_s13  ;;  %v8302_v47 = vpack.c.bf16 %v8288_v21, %v8288_v21  ;;  %10143 = vmatpush.bf16.msrb.mxu1 %v12090_v46 }
 0x85b   : > { %10122 = vmatpush.bf16.msrb.mxu3 %v12069_v62  ;;  %v12115_v62 = vld [vmem:[%s20839_s6 + $0x170] sm:$0xff] }
 0x85c   : > { %v8122_v3 = vpop.f32.mrf.mxu2  ;;  %v8048_v8 = vpop.f32.mrf.mxu3  ;;  %v8341_v36 = vunpack.c.l.b16 %v8302_v47 }
 0x85d   : > { %v8123_v39 = vadd.f32 %v8122_v3, %v8044_v11  ;;  %v8049_v27 = vadd.f32 %v8048_v8, %v19902_v6  ;;  %v12083_v3 = vld [vmem:[%s20839_s6 + $0x70] sm:$0xff]  ;;  %v12088_v8 = vld [vmem:[%s20839_s6 + $0x98] sm:$0xff] }
 0x85e   : > { %v20070_v34 = vpack.c.b16 %v8341_v36, %v8341_v36  ;;  %10144 = vmatpush.bf16.msrb.mxu1 %v12089_v22  ;;  %v12123_v22 = vld [vmem:[%s20839_s6 + $0x1b0] sm:$0xff] }
 0x85f   : > { %v8173_v26 = vmax.f32 %v8118_v5, %v8123_v39  ;;  %10128 = vmatpush.bf16.msra.mxu3 %v12084_v41  ;;  %v12078_v41 = vld [vmem:[%s20839_s6 + $0x48] sm:$0xff] }
 0x860   : > { %8343 = vrot.lane.b32.xlu0 %v20070_v34, %s12956_s13  ;;  %v8346_v20 = vrot.slane %v20070_v34, 2 }
 0x861   : > { %v8217_v13 = vrot.slane %v8173_v26, 1 }
 0x862   : > { %8347 = vrot.lane.b32.xlu2 %v8346_v20, %s12956_s13  ;;  %10145 = vmatpush.bf16.msrb.mxu1 %v12088_v8  ;;  %v12077_v8 = vld [vmem:[%s20839_s6 + $0x40] sm:$0xff] }
 0x863   : > { %10129 = vmatpush.bf16.msra.mxu3 %v12083_v3 }
 0x864   : > { %v8124_v4 = vpop.f32.mrf.mxu2  ;;  %v20085_v12 = vpop.f32.mrf.mxu3 }
 0x865   : > { %v8125_v43 = vadd.f32 %v8124_v4, %v8046_v53  ;;  %v8051_v7 = vadd.f32 %v20085_v12, %v19906_v51 }
 0x866   : > { %10146 = vmatpush.bf16.msrb.mxu1 %v12087_v57  ;;  %v12121_v57 = vld [vmem:[%s20839_s6 + $0x1a0] sm:$0xff] }
 0x867   : > { %v8174_v63 = vmax.f32 %v8120_v52, %v8125_v43  ;;  %v12086_v43 = vld [vmem:[%s20839_s6 + $0x88] sm:$0xff] }
 0x869   : > { %v8218_v28 = vrot.slane %v8174_v63, 1 }
 0x86a   : > { %10147 = vmatpush.bf16.msrb.mxu1 %v12086_v43 }
 0x86b   : > { %v8219_v5 = vsel %vm1273_vm1, %v8217_v13, %v8218_v28 }
 0x86c   : > { %v8258_v58 = vmax.f32 %v8173_v26, %v8219_v5  ;;  %v8127_v54 = vpop.f32.mrf.mxu2  ;;  %v8053_v15 = vpop.f32.mrf.mxu3  ;;  %v12081_v26 = vld [vmem:[%s20839_s6 + $0x60] sm:$0xff] }
 0x86d   : > { %v20104_v17 = vadd.f32 %v8127_v54, %v8049_v27  ;;  %v8054_v10 = vadd.f32 %v8053_v15, %v19912_v9  ;;  %v12085_v27 = vld [vmem:[%s20839_s6 + $0x80] sm:$0xff]  ;;  %v12116_v9 = vld [vmem:[%s20839_s6 + $0x178] sm:$0xff] }
 0x86e   : > { %v8275_v24 = vadd.f32 %v20004_v31, %v8258_v58  ;;  %10148 = vmatpush.bf16.msrb.mxu1 %v12085_v27  ;;  %v12093_v54 = vld [vmem:[%s20839_s6 + $0xc0] sm:$0xff] }
 0x86f   : > { %v8175_v6 = vmax.f32 %v8123_v39, %v20104_v17  ;;  %v12082_v39 = vld [vmem:[%s20839_s6 + $0x68] sm:$0xff]  ;;  %10161 = vmatpush.bf16.msrb.mxu0 %v12093_v54 }
 0x870   : > { %v8289_v35 = vmax.f32 %v8275_v24, 0.0  ;;  %10130 = vmatpush.bf16.msra.mxu3 %v12082_v39  ;;  %v12079_v24 = vld [vmem:[%s20839_s6 + $0x50] sm:$0xff]  ;;  %v12110_v54 = vld [vmem:[%s20839_s6 + $0x148] sm:$0xff] }
 0x871   : > { %v8220_v33 = vrot.slane %v8175_v6, 1  ;;  %v12124_v6 = vld [vmem:[%s20839_s6 + $0x1b8] sm:$0xff] }
 0x872   : > { %v20117_v44 = vpack.c.bf16 %v8289_v35, %v8289_v35  ;;  %10180 = vmatpush.bf16.msra.mxu1 %v12116_v9 }
 0x873   : > { %v8221_v1 = vsel %vm1273_vm1, %v8218_v28, %v8220_v33  ;;  %v12080_v28 = vld [vmem:[%s20839_s6 + $0x58] sm:$0xff]  ;;  %10193 = vmatpush.bf16.msra.mxu0 %v12124_v6 }
 0x874   : > { %v8259_v21 = vmax.f32 %v8174_v63, %v8221_v1  ;;  %v8129_v47 = vpop.f32.mrf.mxu2  ;;  %v8055_v49 = vpop.f32.mrf.mxu3  ;;  %v8350_v61 = vunpack.c.l.b16 %v20117_v44  ;;  %10131 = vmatpush.bf16.msra.mxu3 %v12081_v26  ;;  %v12114_v1 = vld [vmem:[%s20839_s6 + $0x168] sm:$0xff] }
 0x875   : > { %v8056_v58 = vadd.f32 %v8055_v49, %v19916_v16  ;;  %v8130_v51 = vadd.f32 %v8129_v47, %v8051_v7 }
 0x876   : > { %v8276_v36 = vadd.f32 %v20004_v31, %v8259_v21  ;;  %v8351_v11 = vpack.c.b16 %v8350_v61, %v8350_v61  ;;  %10181 = vmatpush.bf16.msra.mxu1 %v12115_v62 }
 0x877   : > { %10194 = vmatpush.bf16.msra.mxu0 %v12123_v22  ;;  %v12117_v22 = vld [vmem:[%s20839_s6 + $0x180] sm:$0xff] }
 0x878   : > { %v8290_v30 = vmax.f32 %v8276_v36, 0.0  ;;  %v8352_v20 = vrot.slane %v8351_v11, 1  ;;  %10132 = vmatpush.bf16.msra.mxu3 %v12080_v28  ;;  %v12122_v36 = vld [vmem:[%s20839_s6 + $0x1a8] sm:$0xff]  ;;  %v12111_v28 = vld [vmem:[%s20839_s6 + $0x150] sm:$0xff] }
 0x87a   : > { %v20134_v53 = vpack.c.bf16 %v8290_v30, %v8290_v30  ;;  %8353 = vrot.lane.b32.xlu1 %v8352_v20, %s12956_s13  ;;  %10182 = vmatpush.bf16.msra.mxu1 %v12114_v1  ;;  %v12113_v30 = vld [vmem:[%s20839_s6 + $0x160] sm:$0xff] }
 0x87b   : > { %10195 = vmatpush.bf16.msra.mxu0 %v12122_v36 }
 0x87c   : > { %v8132_v4 = vpop.f32.mrf.mxu2  ;;  %v8058_v19 = vpop.f32.mrf.mxu3  ;;  %v8388_v52 = vunpack.c.l.b16 %v20134_v53  ;;  %10133 = vmatpush.bf16.msra.mxu3 %v12079_v24 }
 0x87d   : > { %v8133_v5 = vadd.f32 %v8132_v4, %v8054_v10  ;;  %v8059_v21 = vadd.f32 %v8058_v19, %v19922_v48  ;;  %v12112_v4 = vld [vmem:[%s20839_s6 + $0x158] sm:$0xff] }
 0x87e   : > { %v20147_v63 = vpack.c.b16 %v8388_v52, %v8388_v52  ;;  %10183 = vmatpush.bf16.msra.mxu1 %v12113_v30 }
 0x87f   : > { %v8176_v16 = vmax.f32 %v20104_v17, %v8133_v5  ;;  %10196 = vmatpush.bf16.msra.mxu0 %v12121_v57 }
 0x880   : > { %v8391_v13 = vrot.slane %v20147_v63, 7  ;;  %10134 = vmatpush.bf16.msra.mxu3 %v12078_v41 }
 0x881   : > { %v8222_v33 = vrot.slane %v8176_v16, 1 }
 0x882   : > { %8392 = vrot.lane.b32.xlu1 %v8391_v13, %s12956_s13  ;;  %10184 = vmatpush.bf16.msra.mxu1 %v12112_v4 }
 0x883   : > { %10197 = vmatpush.bf16.msra.mxu0 %v12120_v38 }
 0x884   : > { %v8134_v15 = vpop.f32.mrf.mxu2  ;;  %v20170_v46 = vpop.f32.mrf.mxu3  ;;  %10135 = vmatpush.bf16.msra.mxu3 %v12077_v8 }
 0x885   : > { %v8135_v12 = vadd.f32 %v8134_v15, %v8056_v58  ;;  %v12119_v58 = vld [vmem:[%s20839_s6 + $0x190] sm:$0xff] }
 0x886   : > { %10185 = vmatpush.bf16.msra.mxu1 %v12111_v28 }
 0x887   : > { %v8177_v35 = vmax.f32 %v8130_v51, %v8135_v12  ;;  %10198 = vmatpush.bf16.msra.mxu0 %v12119_v58  ;;  %v12118_v51 = vld [vmem:[%s20839_s6 + $0x188] sm:$0xff]  ;;  %v12109_v12 = vld [vmem:[%s20839_s6 + $0x140] sm:$0xff] }
 0x889   : > { %v8223_v17 = vrot.slane %v8177_v35, 1 }
 0x88a   : > { %10186 = vmatpush.bf16.msra.mxu1 %v12110_v54 }
 0x88b   : > { %v8224_v47 = vsel %vm1273_vm1, %v8222_v33, %v8223_v17  ;;  %10199 = vmatpush.bf16.msra.mxu0 %v12118_v51 }
 0x88c   : > { %v8260_v49 = vmax.f32 %v8176_v16, %v8224_v47  ;;  %v8137_v61 = vpop.f32.mrf.mxu2  ;;  %v8063_v3 = vpop.f32.mrf.mxu3 }
 0x88d   : > { %v8138_v11 = vadd.f32 %v8137_v61, %v8059_v21 }
 0x88e   : > { %v8277_v48 = vadd.f32 %v20004_v31, %v8260_v49  ;;  %10187 = vmatpush.bf16.msra.mxu1 %v12109_v12  ;;  %v12105_v12 = vld [vmem:[%s20839_s6 + $0x120] sm:$0xff] }
 0x88f   : > { %v8178_v20 = vmax.f32 %v8133_v5, %v8138_v11  ;;  %10200 = vmatpush.bf16.msra.mxu0 %v12117_v22 }
 0x890   : > { %v8291_v39 = vmax.f32 %v8277_v48, 0.0 }
 0x891   : > { %v8225_v25 = vrot.slane %v8178_v20, 1 }
 0x892   : > { %v8305_v19 = vpack.c.bf16 %v8291_v39, %v8291_v39 }
 0x893   : > { %v8226_v52 = vsel %vm1273_vm1, %v8223_v17, %v8225_v25  ;;  %v8061_v17 = vadd.f32 %v20170_v46, %v19926_v59  ;;  %v12108_v59 = vld [vmem:[%s20839_s6 + $0x138] sm:$0xff] }
 0x894   : > { %v8261_v26 = vmax.f32 %v8177_v35, %v8226_v52  ;;  %v8139_v43 = vpop.f32.mrf.mxu2  ;;  %v8395_v10 = vunpack.c.l.b16 %v8305_v19  ;;  %v8065_v13 = vpop.f32.mrf.mxu3  ;;  %v8064_v35 = vadd.f32 %v8063_v3, %v19932_v2  ;;  %v12107_v19 = vld [vmem:[%s20839_s6 + $0x130] sm:$0xff] }
 0x895   : > { %v8066_v1 = vadd.f32 %v8065_v13, %v19936_v60  ;;  %v8140_v21 = vadd.f32 %v8139_v43, %v8061_v17  ;;  %v8322_v30 = vpop.permute.xlu2 %8321  ;;  %v8329_v43 = vrot.slane %v20029_v37, 2  ;;  %v12140_v37 = vld [vmem:[%s20839_s6 + $0x238] sm:$0xff] }
 0x896   : > { %v20216_v27 = vpack.c.b16 %v8395_v10, %v8395_v10  ;;  %v8278_v5 = vadd.f32 %v20004_v31, %v8261_v26  ;;  %v12148_v10 = vld [vmem:[%s20839_s6 + $0x278] sm:$0xff] }
 0x898   : > { %8401 = vrot.lane.b32.xlu2 %v20216_v27, %s12956_s13  ;;  %v8397_v9 = vrot.slane %v20216_v27, 6  ;;  %v8292_v7 = vmax.f32 %v8278_v5, 0.0  ;;  %v12106_v5 = vld [vmem:[%s20839_s6 + $0x128] sm:$0xff] }
 0x89a   : > { %8398 = vrot.lane.b32.xlu0 %v8397_v9, %s12956_s13  ;;  %v8306_v15 = vpack.c.bf16 %v8292_v7, %v8292_v7 }
 0x89c   : > { %v8142_v24 = vpop.f32.mrf.mxu2  ;;  %v8405_v6 = vunpack.c.l.b16 %v8306_v15  ;;  %v8068_v16 = vpop.f32.mrf.mxu3 }
 0x89d   : > { %v8143_v33 = vadd.f32 %v8142_v24, %v8064_v35  ;;  %v8069_v48 = vadd.f32 %v8068_v16, %v19942_v42  ;;  %v12147_v24 = vld [vmem:[%s20839_s6 + $0x270] sm:$0xff] }
 0x89e   : > { %v20235_v62 = vpack.c.b16 %v8405_v6, %v8405_v6 }
 0x89f   : > { %v8179_v47 = vmax.f32 %v8138_v11, %v8143_v33 }
 0x8a0   : > { %v8407_v41 = vrot.slane %v20235_v62, 6 }
 0x8a1   : > { %v8227_v8 = vrot.slane %v8179_v47, 1 }
 0x8a2   : > { %8411 = vrot.lane.b32.xlu0 %v20235_v62, %s12956_s13  ;;  %8408 = vrot.lane.b32.xlu1 %v8407_v41, %s12956_s13 }
 0x8a4   : > { %v8144_v2 = vpop.f32.mrf.mxu2  ;;  %v20248_v61 = vpop.f32.mrf.mxu3 }
 0x8a5   : > { %v8145_v49 = vadd.f32 %v8144_v2, %v8066_v1  ;;  %v8319_v1 = vrot.slane %v20017_v23, 2  ;;  %v12104_v2 = vld [vmem:[%s20839_s6 + $0x118] sm:$0xff]  ;;  %v12145_v23 = vld [vmem:[%s20839_s6 + $0x260] sm:$0xff] }
 0x8a7   : > { %v8180_v3 = vmax.f32 %v8140_v21, %v8145_v49  ;;  %v12138_v21 = vld [vmem:[%s20839_s6 + $0x228] sm:$0xff] }
 0x8a9   : > { %v8228_v36 = vrot.slane %v8180_v3, 1 }
 0x8ab   : > { %v8229_v20 = vsel %vm1273_vm1, %v8227_v8, %v8228_v36 }
 0x8ac   : > { %v8262_v60 = vmax.f32 %v8179_v47, %v8229_v20  ;;  %v8147_v46 = vpop.f32.mrf.mxu2  ;;  %v8318_v39 = vpop.permute.xlu1 %8317 }
 0x8ad   : > { %v20255_v57 = vadd.f32 %v8147_v46, %v8069_v48  ;;  %v8357_v11 = vsel %vm7596_vm5, %v20011_v0, %v8318_v39  ;;  %v8073_v25 = vpop.f32.mrf.mxu3  ;;  %v12103_v48 = vld [vmem:[%s20839_s6 + $0x110] sm:$0xff]  ;;  %v8345_v46 = vrot.slane %v20070_v34, 1  ;;  %v12102_v34 = vld [vmem:[%s20839_s6 + $0x108] sm:$0xff] }
 0x8ae   : > { %v8279_v4 = vadd.f32 %v20004_v31, %v8262_v60  ;;  %10123 = vmatmul.bf16.vlgmr.msrb.gmra.mxu3 %v8357_v11  ;;  %v8071_v11 = vadd.f32 %v20248_v61, %v19946_v45 }
 0x8af   : > { %v8181_v42 = vmax.f32 %v8143_v33, %v20255_v57  ;;  %10167 = vmatpush.bf16.msrb.mxu3 %v12108_v59  ;;  %v12146_v33 = vld [vmem:[%s20839_s6 + $0x268] sm:$0xff] }
 0x8b0   : > { %v8293_v52 = vmax.f32 %v8279_v4, 0.0 }
 0x8b1   : > { %v8230_v26 = vrot.slane %v8181_v42, 1  ;;  %v12136_v42 = vld [vmem:[%s20839_s6 + $0x218] sm:$0xff] }
 0x8b2   : > { %v20268_v0 = vpack.c.bf16 %v8293_v52, %v8293_v52  ;;  %v8334_v38 = vpop.permute.xlu2 %8333 }
 0x8b3   : > { %v8231_v13 = vsel %vm1273_vm1, %v8228_v36, %v8230_v26  ;;  %v8369_v28 = vsel %vm7596_vm5, %v8329_v43, %v8334_v38  ;;  %10168 = vmatpush.bf16.msrb.mxu3 %v12107_v19  ;;  %v8074_v36 = vadd.f32 %v8073_v25, %v19952_v55  ;;  %v12144_v55 = vld [vmem:[%s20839_s6 + $0x258] sm:$0xff]  ;;  %v12101_v43 = vld [vmem:[%s20839_s6 + $0x100] sm:$0xff] }
 0x8b4   : > { %v8263_v9 = vmax.f32 %v8180_v3, %v8231_v13  ;;  %v8149_v7 = vpop.f32.mrf.mxu2  ;;  %v8328_v58 = vpop.permute.xlu0 %8327  ;;  %10162 = vmatmul.bf16.vlgmr.msrb.gmra.mxu0 %v8369_v28  ;;  %v8414_v54 = vunpack.c.l.b16 %v20268_v0  ;;  %v8361_v3 = vsel %vm7596_vm5, %v8319_v1, %v8322_v30  ;;  %v12137_v30 = vld [vmem:[%s20839_s6 + $0x220] sm:$0xff]  ;;  %v12142_v28 = vld [vmem:[%s20839_s6 + $0x248] sm:$0xff] }
 0x8b5   : > { %v8365_v15 = vsel %vm7596_vm5, %v20024_v29, %v8328_v58  ;;  %10232 = vmatpush.bf16.msrb.mxu0 %v12148_v10  ;;  %v8075_v16 = vpop.f32.mrf.mxu3  ;;  %v12139_v29 = vld [vmem:[%s20839_s6 + $0x230] sm:$0xff]  ;;  %v8150_v52 = vadd.f32 %v8149_v7, %v8071_v11  ;;  %v8335_v7 = vrot.slane %v20052_v40, 1  ;;  %v12134_v58 = vld [vmem:[%s20839_s6 + $0x208] sm:$0xff] }
 0x8b6   : > { %v8280_v6 = vadd.f32 %v20004_v31, %v8263_v9  ;;  %10149 = vmatmul.bf16.vlgmr.msrb.gmra.mxu1 %v8365_v15  ;;  %v20285_v51 = vpack.c.b16 %v8414_v54, %v8414_v54  ;;  %v8076_v25 = vadd.f32 %v8075_v16, %v19956_v18  ;;  %v12143_v18 = vld [vmem:[%s20839_s6 + $0x250] sm:$0xff]  ;;  %v12170_v11 = vld [vmem:[%s20839_s6 + $0x328] sm:$0xff] }
 0x8b7   : > { %10169 = vmatpush.bf16.msrb.mxu3 %v12106_v5  ;;  %10219 = vmatpush.bf16.msrb.mxu1 %v12140_v37  ;;  %v12135_v10 = vld [vmem:[%s20839_s6 + $0x210] sm:$0xff] }
 0x8b8   : > { %v8294_v35 = vmax.f32 %v8280_v6, 0.0  ;;  %v8420_v41 = vrot.slane %v20285_v51, 1  ;;  %v8417_v22 = vrot.slane %v20285_v51, 7 }
 0x8b9   : > { %10233 = vmatpush.bf16.msrb.mxu0 %v12147_v24 }
 0x8ba   : > { %v20298_v17 = vpack.c.bf16 %v8294_v35, %v8294_v35  ;;  %8421 = vrot.lane.b32.xlu0 %v8420_v41, %s12956_s13  ;;  %8418 = vrot.lane.b32.xlu2 %v8417_v22, %s12956_s13  ;;  %v12172_v35 = vld [vmem:[%s20839_s6 + $0x338] sm:$0xff]  ;;  %v12133_v22 = vld [vmem:[%s20839_s6 + $0x200] sm:$0xff] }
 0x8bb   : > { %10170 = vmatpush.bf16.msrb.mxu3 %v12105_v12  ;;  %10220 = vmatpush.bf16.msrb.mxu1 %v12139_v29  ;;  %v12141_v12 = vld [vmem:[%s20839_s6 + $0x240] sm:$0xff] }
 0x8bc   : > { %v8152_v47 = vpop.f32.mrf.mxu2  ;;  %v8445_v49 = vunpack.c.l.b16 %v20298_v17  ;;  %v8348_v20 = vpop.permute.xlu2 %8347 }
 0x8bd   : > { %10234 = vmatpush.bf16.msrb.mxu0 %v12146_v33  ;;  %v8153_v60 = vadd.f32 %v8152_v47, %v8074_v36  ;;  %v8078_v39 = vpop.f32.mrf.mxu3  ;;  %v8381_v4 = vsel %vm7596_vm5, %v8345_v46, %v8348_v20  ;;  %v12130_v33 = vld [vmem:[%s20839_s6 + $0x1e8] sm:$0xff]  ;;  %v12164_v47 = vld [vmem:[%s20839_s6 + $0x2f8] sm:$0xff]  ;;  %v12129_v20 = vld [vmem:[%s20839_s6 + $0x1e0] sm:$0xff] }
 0x8be   : > { %10136 = vmatmul.bf16.vlgmr.msra.gmra.mxu3 %v8361_v3  ;;  %v20314_v8 = vpack.c.b16 %v8445_v49, %v8445_v49  ;;  %v8079_v5 = vadd.f32 %v8078_v39, %v19965_v14  ;;  %v12131_v14 = vld [vmem:[%s20839_s6 + $0x1f0] sm:$0xff] }
 0x8bf   : > { %10171 = vmatpush.bf16.msrb.mxu3 %v12104_v2  ;;  %10221 = vmatpush.bf16.msrb.mxu1 %v12138_v21  ;;  %v8182_v26 = vmax.f32 %v20255_v57, %v8153_v60  ;;  %v12132_v57 = vld [vmem:[%s20839_s6 + $0x1f8] sm:$0xff]  ;;  %v8339_v21 = vrot.slane %v20052_v40, 3 }
 0x8c0   : > { %v8447_v59 = vrot.slane %v20314_v8, 1 }
 0x8c1   : > { %10235 = vmatpush.bf16.msrb.mxu0 %v12145_v23  ;;  %v8232_v38 = vrot.slane %v8182_v26, 1  ;;  %v12171_v23 = vld [vmem:[%s20839_s6 + $0x330] sm:$0xff] }
 0x8c2   : > { %8448 = vrot.lane.b32.xlu1 %v8447_v59, %s12956_s13 }
 0x8c3   : > { %10172 = vmatpush.bf16.msrb.mxu3 %v12103_v48  ;;  %10222 = vmatpush.bf16.msrb.mxu1 %v12137_v30 }
 0x8c4   : > { %v8154_v19 = vpop.f32.mrf.mxu2  ;;  %10201 = vmatmul.bf16.vlgmr.msra.gmra.mxu0 %v8381_v4 }
 0x8c5   : > { %v8155_v45 = vadd.f32 %v8154_v19, %v8076_v25  ;;  %10236 = vmatpush.bf16.msrb.mxu0 %v12144_v55  ;;  %v20357_v9 = vpop.f32.mrf.mxu3  ;;  %v12128_v25 = vld [vmem:[%s20839_s6 + $0x1d8] sm:$0xff]  ;;  %v12169_v19 = vld [vmem:[%s20839_s6 + $0x320] sm:$0xff] }
 0x8c7   : > { %v8183_v61 = vmax.f32 %v8150_v52, %v8155_v45  ;;  %10173 = vmatpush.bf16.msrb.mxu3 %v12102_v34  ;;  %10223 = vmatpush.bf16.msrb.mxu1 %v12136_v42  ;;  %v12162_v34 = vld [vmem:[%s20839_s6 + $0x2e8] sm:$0xff] }
 0x8c9   : > { %v8233_v13 = vrot.slane %v8183_v61, 1  ;;  %10237 = vmatpush.bf16.msrb.mxu0 %v12143_v18  ;;  %v12161_v18 = vld [vmem:[%s20839_s6 + $0x2e0] sm:$0xff] }
 0x8cb   : > { %v8234_v37 = vsel %vm1273_vm1, %v8232_v38, %v8233_v13  ;;  %10174 = vmatpush.bf16.msrb.mxu3 %v12101_v43  ;;  %10224 = vmatpush.bf16.msrb.mxu1 %v12135_v10  ;;  %v12168_v43 = vld [vmem:[%s20839_s6 + $0x318] sm:$0xff] }
 0x8cc   : > { %v8264_v54 = vmax.f32 %v8182_v26, %v8234_v37  ;;  %v8157_v15 = vpop.f32.mrf.mxu2  ;;  %v8338_v24 = vpop.permute.xlu1 %8337  ;;  %v12127_v26 = vld [vmem:[%s20839_s6 + $0x1d0] sm:$0xff]  ;;  %v8081_v37 = vadd.f32 %v20357_v9, %v19969_v56  ;;  %v12166_v9 = vld [vmem:[%s20839_s6 + $0x308] sm:$0xff] }
 0x8cd   : > { %v20366_v6 = vadd.f32 %v8157_v15, %v8079_v5  ;;  %v8373_v16 = vsel %vm7596_vm5, %v8335_v7, %v8338_v24  ;;  %10238 = vmatpush.bf16.msrb.mxu0 %v12142_v28  ;;  %v8083_v46 = vpop.f32.mrf.mxu3  ;;  %v12160_v5 = vld [vmem:[%s20839_s6 + $0x2d8] sm:$0xff]  ;;  %v12159_v56 = vld [vmem:[%s20839_s6 + $0x2d0] sm:$0xff] }
 0x8ce   : > { %10175 = vmatmul.bf16.vlgmr.msrb.gmra.mxu3 %v8373_v16  ;;  %v8281_v29 = vadd.f32 %v20004_v31, %v8264_v54  ;;  %v8084_v10 = vadd.f32 %v8083_v46, %v19975_v50  ;;  %v12167_v50 = vld [vmem:[%s20839_s6 + $0x310] sm:$0xff]  ;;  %v12125_v54 = vld [vmem:[%s20839_s6 + $0x1c0] sm:$0xff]  ;;  %v12156_v16 = vld [vmem:[%s20839_s6 + $0x2b8] sm:$0xff] }
 0x8cf   : > { %10206 = vmatpush.bf16.msra.mxu3 %v12132_v57  ;;  %v8184_v41 = vmax.f32 %v8153_v60, %v20366_v6  ;;  %10225 = vmatpush.bf16.msrb.mxu1 %v12134_v58  ;;  %v12163_v60 = vld [vmem:[%s20839_s6 + $0x2f0] sm:$0xff] }
 0x8d0   : > { %v8295_v1 = vmax.f32 %v8281_v29, 0.0 }
 0x8d1   : > { %v8235_v2 = vrot.slane %v8184_v41, 1  ;;  %10239 = vmatpush.bf16.msrb.mxu0 %v12141_v12  ;;  %v12158_v41 = vld [vmem:[%s20839_s6 + $0x2c8] sm:$0xff] }
 0x8d2   : > { %v8344_v49 = vpop.permute.xlu0 %8343  ;;  %v8309_v3 = vpack.c.bf16 %v8295_v1, %v8295_v1 }
 0x8d3   : > { %10207 = vmatpush.bf16.msra.mxu3 %v12131_v14  ;;  %v8236_v36 = vsel %vm1273_vm1, %v8233_v13, %v8235_v2  ;;  %v8377_v48 = vsel %vm7596_vm5, %v8339_v21, %v8344_v49  ;;  %10226 = vmatpush.bf16.msrb.mxu1 %v12133_v22  ;;  %v12126_v13 = vld [vmem:[%s20839_s6 + $0x1c8] sm:$0xff]  ;;  %v12165_v22 = vld [vmem:[%s20839_s6 + $0x300] sm:$0xff] }
 0x8d4   : > { %v8265_v30 = vmax.f32 %v8183_v61, %v8236_v36  ;;  %v8159_v40 = vpop.f32.mrf.mxu2  ;;  %10188 = vmatmul.bf16.vlgmr.msra.gmra.mxu1 %v8377_v48  ;;  %v8452_v59 = vunpack.c.l.b16 %v8309_v3  ;;  %v12154_v3 = vld [vmem:[%s20839_s6 + $0x2a8] sm:$0xff] }
 0x8d5   : > { %10271 = vmatpush.bf16.msra.mxu0 %v12172_v35  ;;  %v8085_v57 = vpop.f32.mrf.mxu3  ;;  %v8160_v15 = vadd.f32 %v8159_v40, %v8081_v37  ;;  %v12155_v35 = vld [vmem:[%s20839_s6 + $0x2b0] sm:$0xff]  ;;  %v12150_v37 = vld [vmem:[%s20839_s6 + $0x288] sm:$0xff] }
 0x8d6   : > { %v20398_v39 = vpack.c.b16 %v8452_v59, %v8452_v59  ;;  %v8282_v55 = vadd.f32 %v20004_v31, %v8265_v30  ;;  %v8086_v7 = vadd.f32 %v8085_v57, %v19979_v32  ;;  %v12188_v30 = vld [vmem:[%s20839_s6 + $0x3b8] sm:$0xff]  ;;  %v12153_v59 = vld [vmem:[%s20839_s6 + $0x2a0] sm:$0xff]  ;;  %v8400_v57 = vrot.slane %v20216_v27, 7 }
 0x8d7   : > { %10208 = vmatpush.bf16.msra.mxu3 %v12130_v33  ;;  %10258 = vmatpush.bf16.msra.mxu1 %v12164_v47 }
 0x8d8   : > { %8454 = vrot.lane.b32.xlu0 %v20398_v39, %s12956_s13  ;;  %v8296_v4 = vmax.f32 %v8282_v55, 0.0  ;;  %v8457_v32 = vrot.slane %v20398_v39, 2  ;;  %v8390_v55 = vrot.slane %v20147_v63, 6  ;;  %v12196_v63 = vld [vmem:[%s20839_s6 + $0x3f8] sm:$0xff] }
 0x8d9   : > { %10272 = vmatpush.bf16.msra.mxu0 %v12171_v23  ;;  %v12157_v23 = vld [vmem:[%s20839_s6 + $0x2c0] sm:$0xff] }
 0x8da   : > { %v8310_v42 = vpack.c.bf16 %v8296_v4, %v8296_v4 }
 0x8db   : > { %10209 = vmatpush.bf16.msra.mxu3 %v12129_v20  ;;  %10259 = vmatpush.bf16.msra.mxu1 %v12163_v60 }
 0x8dc   : > { %v8162_v52 = vpop.f32.mrf.mxu2  ;;  %v8462_v45 = vunpack.c.l.b16 %v8310_v42 }
 0x8dd   : > { %10273 = vmatpush.bf16.msra.mxu0 %v12170_v11  ;;  %v8163_v28 = vadd.f32 %v8162_v52, %v8084_v10 }
 0x8de   : > { %v20421_v61 = vpack.c.b16 %v8462_v45, %v8462_v45  ;;  %v12186_v45 = vld [vmem:[%s20839_s6 + $0x3a8] sm:$0xff] }
 0x8df   : > { %10210 = vmatpush.bf16.msra.mxu3 %v12128_v25  ;;  %10260 = vmatpush.bf16.msra.mxu1 %v12162_v34  ;;  %v8185_v24 = vmax.f32 %v20366_v6, %v8163_v28  ;;  %v12152_v34 = vld [vmem:[%s20839_s6 + $0x298] sm:$0xff]  ;;  %v12195_v28 = vld [vmem:[%s20839_s6 + $0x3f0] sm:$0xff] }
 0x8e0   : > { %8464 = vrot.lane.b32.xlu2 %v20421_v61, %s12956_s13  ;;  %v8467_v38 = vrot.slane %v20421_v61, 2 }
 0x8e1   : > { %10274 = vmatpush.bf16.msra.mxu0 %v12169_v19  ;;  %v8237_v6 = vrot.slane %v8185_v24, 1 }
 0x8e2   : > { %8468 = vrot.lane.b32.xlu1 %v8467_v38, %s12956_s13  ;;  %v12151_v38 = vld [vmem:[%s20839_s6 + $0x290] sm:$0xff] }
 0x8e3   : > { %10211 = vmatpush.bf16.msra.mxu3 %v12127_v26  ;;  %10261 = vmatpush.bf16.msra.mxu1 %v12161_v18 }
 0x8e4   : > { %v8164_v58 = vpop.f32.mrf.mxu2 }
 0x8e5   : > { %10275 = vmatpush.bf16.msra.mxu0 %v12168_v43  ;;  %v8165_v14 = vadd.f32 %v8164_v58, %v8086_v7  ;;  %v12194_v58 = vld [vmem:[%s20839_s6 + $0x3e8] sm:$0xff] }
 0x8e7   : > { %10212 = vmatpush.bf16.msra.mxu3 %v12126_v13  ;;  %10262 = vmatpush.bf16.msra.mxu1 %v12160_v5  ;;  %v8186_v12 = vmax.f32 %v8160_v15, %v8165_v14  ;;  %v12185_v5 = vld [vmem:[%s20839_s6 + $0x3a0] sm:$0xff]  ;;  %v12227_v15 = vld [vmem:[%s20839_s6 + $0x4f0] sm:$0xff]  ;;  %v12180_v14 = vld [vmem:[%s20839_s6 + $0x378] sm:$0xff] }
 0x8e8   : > { %8458 = vrot.lane.b32.xlu2 %v8457_v32, %s12956_s13  ;;  %v12226_v32 = vld [vmem:[%s20839_s6 + $0x4e8] sm:$0xff] }
 0x8e9   : > { %10276 = vmatpush.bf16.msra.mxu0 %v12167_v50  ;;  %v8238_v29 = vrot.slane %v8186_v12, 1  ;;  %v12228_v50 = vld [vmem:[%s20839_s6 + $0x4f8] sm:$0xff] }
 0x8ea   : > { %10362 = vmatpush.bf16.msra.mxu2 %v12228_v50  ;;  %v12203_v50 = vld [vmem:[%s20839_s6 + $0x430] sm:$0xff] }
 0x8eb   : > { %10213 = vmatpush.bf16.msra.mxu3 %v12125_v54  ;;  %10263 = vmatpush.bf16.msra.mxu1 %v12159_v56  ;;  %v8239_v33 = vsel %vm1273_vm1, %v8237_v6, %v8238_v29  ;;  %v8267_v1 = vmax.f32 %v8186_v12, %v8238_v29  ;;  %v12184_v54 = vld [vmem:[%s20839_s6 + $0x398] sm:$0xff]  ;;  %v12183_v56 = vld [vmem:[%s20839_s6 + $0x390] sm:$0xff]  ;;  %v12182_v6 = vld [vmem:[%s20839_s6 + $0x388] sm:$0xff]  ;;  %vm10443_vm1 = vcmask 1040384  }
 0x8ec   : > { %v8266_v2 = vmax.f32 %v8185_v24, %v8239_v33  ;;  %v8354_v21 = vpop.permute.xlu1 %8353  ;;  %v12149_v24 = vld [vmem:[%s20839_s6 + $0x280] sm:$0xff]  ;;  %v12192_v12 = vld [vmem:[%s20839_s6 + $0x3d8] sm:$0xff] }
 0x8ed   : > { %10277 = vmatpush.bf16.msra.mxu0 %v12166_v9  ;;  %v8284_v47 = vadd.f32 %v20004_v31, %v8267_v1  ;;  %v8385_v49 = vsel %vm7596_vm5, %v20117_v44, %v8354_v21  ;;  %v12179_v9 = vld [vmem:[%s20839_s6 + $0x370] sm:$0xff]  ;;  %v12225_v29 = vld [vmem:[%s20839_s6 + $0x4e0] sm:$0xff]  ;;  %v12212_v1 = vld [vmem:[%s20839_s6 + $0x478] sm:$0xff] }
 0x8ee   : > { %v8283_v36 = vadd.f32 %v20004_v31, %v8266_v2  ;;  %v8526_v48 = vrot.slane %v8385_v49, 2  ;;  %10214 = vmatmul.bf16.vlgmr.msra.gmra.mxu3 %v8385_v49  ;;  %v12187_v31 = vld [vmem:[%s20839_s6 + $0x3b0] sm:$0xff]  ;;  %10363 = vmatpush.bf16.msra.mxu2 %v12227_v15  ;;  %v12224_v2 = vld [vmem:[%s20839_s6 + $0x4d8] sm:$0xff]  ;;  %v12177_v49 = vld [vmem:[%s20839_s6 + $0x360] sm:$0xff] }
 0x8ef   : > { %10245 = vmatpush.bf16.msrb.mxu3 %v12156_v16  ;;  %10264 = vmatpush.bf16.msra.mxu1 %v12158_v41  ;;  %v8298_v40 = vmax.f32 %v8284_v47, 0.0  ;;  %v12193_v16 = vld [vmem:[%s20839_s6 + $0x3e0] sm:$0xff]  ;;  %v12191_v41 = vld [vmem:[%s20839_s6 + $0x3d0] sm:$0xff] }
 0x8f0   : > { %v8297_v44 = vmax.f32 %v8283_v36, 0.0  ;;  %10227 = vmatmul.bf16.vlgmr.msrb.gmra.mxu1 %v8526_v48  ;;  %v12176_v36 = vld [vmem:[%s20839_s6 + $0x358] sm:$0xff]  ;;  %v8416_v48 = vrot.slane %v20285_v51, 6  ;;  %v12210_v51 = vld [vmem:[%s20839_s6 + $0x468] sm:$0xff]  ;;  %v12215_v15 = vld [vmem:[%s20839_s6 + $0x490] sm:$0xff] }
 0x8f1   : > { %10278 = vmatpush.bf16.msra.mxu0 %v12165_v22  ;;  %v20481_v20 = vpack.c.bf16 %v8298_v40, %v8298_v40  ;;  %v12181_v22 = vld [vmem:[%s20839_s6 + $0x380] sm:$0xff] }
 0x8f2   : > { %v20486_v60 = vpack.c.bf16 %v8297_v44, %v8297_v44  ;;  %v8402_v18 = vpop.permute.xlu2 %8401  ;;  %10364 = vmatpush.bf16.msra.mxu2 %v12226_v32  ;;  %v8403_v44 = vrot.slane %v20216_v27, 1  ;;  %v12175_v27 = vld [vmem:[%s20839_s6 + $0x350] sm:$0xff] }
 0x8f3   : > { %10246 = vmatpush.bf16.msrb.mxu3 %v12155_v35  ;;  %10265 = vmatpush.bf16.msra.mxu1 %v12157_v23  ;;  %v8481_v46 = vunpack.c.l.b16 %v20481_v20  ;;  %v8431_v13 = vsel %vm7596_vm5, %v8400_v57, %v8402_v18  ;;  %v12178_v35 = vld [vmem:[%s20839_s6 + $0x368] sm:$0xff]  ;;  %v12211_v23 = vld [vmem:[%s20839_s6 + $0x470] sm:$0xff]  ;;  %v12208_v18 = vld [vmem:[%s20839_s6 + $0x458] sm:$0xff] }
 0x8f4   : > { %v8393_v11 = vpop.permute.xlu1 %8392  ;;  %v8471_v25 = vunpack.c.l.b16 %v20486_v60  ;;  %v8529_v7 = vrot.slane %v8431_v13, 2  ;;  %v12218_v57 = vld [vmem:[%s20839_s6 + $0x4a8] sm:$0xff] }
 0x8f5   : > { %v8425_v4 = vsel %vm7596_vm5, %v8390_v55, %v8393_v11  ;;  %v20498_v42 = vpack.c.b16 %v8481_v46, %v8481_v46 }
 0x8f6   : > { %v8527_v19 = vrot.slane %v8425_v4, 2  ;;  %v20500_v52 = vpack.c.b16 %v8471_v25, %v8471_v25  ;;  %10365 = vmatpush.bf16.msra.mxu2 %v12225_v29  ;;  %v12220_v25 = vld [vmem:[%s20839_s6 + $0x4b8] sm:$0xff] }
 0x8f7   : > { %10247 = vmatpush.bf16.msrb.mxu3 %v12154_v3  ;;  %10297 = vmatpush.bf16.msrb.mxu1 %v12188_v30  ;;  %v8483_v26 = vrot.slane %v20498_v42, 1  ;;  %v12190_v3 = vld [vmem:[%s20839_s6 + $0x3c8] sm:$0xff]  ;;  %v12189_v30 = vld [vmem:[%s20839_s6 + $0x3c0] sm:$0xff] }
 0x8f8   : > { %10240 = vmatmul.bf16.vlgmr.msrb.gmra.mxu0 %v8527_v19  ;;  %v8477_v43 = vrot.slane %v20500_v52, 3  ;;  %v8473_v10 = vrot.slane %v20500_v52, 1  ;;  %v12209_v19 = vld [vmem:[%s20839_s6 + $0x460] sm:$0xff] }
 0x8f9   : > { %8484 = vrot.lane.b32.xlu0 %v8483_v26, %s12956_s13  ;;  %10310 = vmatpush.bf16.msrb.mxu0 %v12196_v63  ;;  %v12174_v26 = vld [vmem:[%s20839_s6 + $0x348] sm:$0xff]  ;;  %v12219_v63 = vld [vmem:[%s20839_s6 + $0x4b0] sm:$0xff] }
 0x8fa   : > { %8478 = vrot.lane.b32.xlu2 %v8477_v43, %s12956_s13  ;;  %8474 = vrot.lane.b32.xlu1 %v8473_v10, %s12956_s13  ;;  %v8410_v43 = vrot.slane %v20235_v62, 7  ;;  %v12173_v10 = vld [vmem:[%s20839_s6 + $0x340] sm:$0xff]  ;;  %v12207_v62 = vld [vmem:[%s20839_s6 + $0x450] sm:$0xff] }
 0x8fb   : > { %10248 = vmatpush.bf16.msrb.mxu3 %v12153_v59  ;;  %10298 = vmatpush.bf16.msrb.mxu1 %v12187_v31  ;;  %v12222_v59 = vld [vmem:[%s20839_s6 + $0x4c8] sm:$0xff] }
 0x8fc   : > { %10366 = vmatpush.bf16.msra.mxu2 %v12224_v2  ;;  %v12252_v2 = vld [vmem:[%s20839_s6 + $0x5b8] sm:$0xff] }
 0x8fd   : > { %10311 = vmatpush.bf16.msrb.mxu0 %v12195_v28  ;;  %v12217_v28 = vld [vmem:[%s20839_s6 + $0x4a0] sm:$0xff] }
 0x8ff   : > { %10249 = vmatpush.bf16.msrb.mxu3 %v12152_v34  ;;  %10299 = vmatpush.bf16.msrb.mxu1 %v12186_v45  ;;  %v12221_v34 = vld [vmem:[%s20839_s6 + $0x4c0] sm:$0xff] }
 0x900   : > { %10266 = vmatmul.bf16.vlgmr.msra.gmra.mxu1 %v8529_v7  ;;  %v12216_v7 = vld [vmem:[%s20839_s6 + $0x498] sm:$0xff] }
 0x901   : > { %10312 = vmatpush.bf16.msrb.mxu0 %v12194_v58  ;;  %v12202_v58 = vld [vmem:[%s20839_s6 + $0x428] sm:$0xff] }
 0x903   : > { %10250 = vmatpush.bf16.msrb.mxu3 %v12151_v38  ;;  %10300 = vmatpush.bf16.msrb.mxu1 %v12185_v5  ;;  %v12204_v38 = vld [vmem:[%s20839_s6 + $0x438] sm:$0xff] }
 0x905   : > { %10313 = vmatpush.bf16.msrb.mxu0 %v12193_v16  ;;  %v12260_v16 = vld [vmem:[%s20839_s6 + $0x5f8] sm:$0xff] }
 0x907   : > { %10251 = vmatpush.bf16.msrb.mxu3 %v12150_v37  ;;  %10301 = vmatpush.bf16.msrb.mxu1 %v12184_v54  ;;  %v12206_v37 = vld [vmem:[%s20839_s6 + $0x448] sm:$0xff]  ;;  %v12205_v54 = vld [vmem:[%s20839_s6 + $0x440] sm:$0xff] }
 0x909   : > { %10314 = vmatpush.bf16.msrb.mxu0 %v12192_v12  ;;  %v12244_v12 = vld [vmem:[%s20839_s6 + $0x578] sm:$0xff] }
 0x90b   : > { %10252 = vmatpush.bf16.msrb.mxu3 %v12149_v24  ;;  %10302 = vmatpush.bf16.msrb.mxu1 %v12183_v56  ;;  %v12201_v24 = vld [vmem:[%s20839_s6 + $0x420] sm:$0xff] }
 0x90c   : > { %v8399_v33 = vpop.permute.xlu0 %8398 }
 0x90d   : > { %v8428_v21 = vsel %vm7596_vm5, %v20134_v53, %v8399_v33  ;;  %10315 = vmatpush.bf16.msrb.mxu0 %v12191_v41  ;;  %v12223_v53 = vld [vmem:[%s20839_s6 + $0x4d0] sm:$0xff]  ;;  %v12213_v41 = vld [vmem:[%s20839_s6 + $0x480] sm:$0xff] }
 0x90e   : > { %v8528_v47 = vrot.slane %v8428_v21, 2  ;;  %10367 = vmatpush.bf16.msra.mxu2 %v12223_v53  ;;  %v12258_v21 = vld [vmem:[%s20839_s6 + $0x5e8] sm:$0xff] }
 0x90f   : > { %10284 = vmatpush.bf16.msra.mxu3 %v12180_v14  ;;  %10303 = vmatpush.bf16.msrb.mxu1 %v12182_v6  ;;  %v12200_v6 = vld [vmem:[%s20839_s6 + $0x418] sm:$0xff] }
 0x910   : > { %10253 = vmatmul.bf16.vlgmr.msrb.gmra.mxu3 %v8528_v47  ;;  %v12242_v47 = vld [vmem:[%s20839_s6 + $0x568] sm:$0xff] }
 0x911   : > { %10316 = vmatpush.bf16.msrb.mxu0 %v12190_v3  ;;  %v12251_v3 = vld [vmem:[%s20839_s6 + $0x5b0] sm:$0xff] }
 0x912   : > { %10368 = vmatpush.bf16.msra.mxu2 %v12222_v59 }
 0x913   : > { %10285 = vmatpush.bf16.msra.mxu3 %v12179_v9  ;;  %10304 = vmatpush.bf16.msrb.mxu1 %v12181_v22  ;;  %v12214_v9 = vld [vmem:[%s20839_s6 + $0x488] sm:$0xff]  ;;  %v12243_v22 = vld [vmem:[%s20839_s6 + $0x570] sm:$0xff] }
 0x914   : > { %v8419_v40 = vpop.permute.xlu2 %8418  ;;  %v8409_v46 = vpop.permute.xlu1 %8408 }
 0x915   : > { %v8440_v31 = vsel %vm7596_vm5, %v8416_v48, %v8419_v40  ;;  %v8434_v11 = vsel %vm7596_vm5, %v8403_v44, %v8409_v46  ;;  %10317 = vmatpush.bf16.msrb.mxu0 %v12189_v30  ;;  %v8412_v45 = vpop.permute.xlu0 %8411  ;;  %v12257_v48 = vld [vmem:[%s20839_s6 + $0x5e0] sm:$0xff]  ;;  %v12250_v46 = vld [vmem:[%s20839_s6 + $0x5a8] sm:$0xff] }
 0x916   : > { %v8532_v55 = vrot.slane %v8440_v31, 2  ;;  %v8530_v4 = vrot.slane %v8434_v11, 2  ;;  %10369 = vmatpush.bf16.msra.mxu2 %v12221_v34  ;;  %v8437_v13 = vsel %vm7596_vm5, %v8410_v43, %v8412_v45  ;;  %v12241_v40 = vld [vmem:[%s20839_s6 + $0x560] sm:$0xff]  ;;  %v12256_v11 = vld [vmem:[%s20839_s6 + $0x5d8] sm:$0xff]  ;;  %v12255_v43 = vld [vmem:[%s20839_s6 + $0x5d0] sm:$0xff] }
 0x917   : > { %10286 = vmatpush.bf16.msra.mxu3 %v12178_v35  ;;  %10336 = vmatpush.bf16.msra.mxu1 %v12212_v1  ;;  %v8531_v5 = vrot.slane %v8437_v13, 2  ;;  %v12259_v35 = vld [vmem:[%s20839_s6 + $0x5f0] sm:$0xff]  ;;  %v12197_v31 = vld [vmem:[%s20839_s6 + $0x400] sm:$0xff] }
 0x918   : > { %10305 = vmatmul.bf16.vlgmr.msrb.gmra.mxu1 %v8532_v55  ;;  %10279 = vmatmul.bf16.vlgmr.msra.gmra.mxu0 %v8530_v4  ;;  %v12199_v1 = vld [vmem:[%s20839_s6 + $0x410] sm:$0xff]  ;;  %v8935_v55 = vld [vmem:[%s20840_s7] sm:$0x1] }
 0x919   : > { %10349 = vmatpush.bf16.msra.mxu0 %v12220_v25  ;;  %v12240_v25 = vld [vmem:[%s20839_s6 + $0x558] sm:$0xff]  ;;  %v12249_v4 = vld [vmem:[%s20839_s6 + $0x5a0] sm:$0xff] }
 0x91a   : > { %10414 = vmatpush.bf16.msrb.mxu2 %v12260_v16  ;;  %v12237_v16 = vld [vmem:[%s20839_s6 + $0x540] sm:$0xff] }
 0x91b   : > { %10287 = vmatpush.bf16.msra.mxu3 %v12177_v49  ;;  %10337 = vmatpush.bf16.msra.mxu1 %v12211_v23  ;;  %v12198_v49 = vld [vmem:[%s20839_s6 + $0x408] sm:$0xff] }
 0x91d   : > { %10350 = vmatpush.bf16.msra.mxu0 %v12219_v63 }
 0x91e   : > { %10415 = vmatpush.bf16.msrb.mxu2 %v12259_v35  ;;  %v8476_v35 = vrot.slane %v20500_v52, 2  ;;  %v12264_v52 = vld [vmem:[%s20839_s6 + $0x618] sm:$0xff] }
 0x91f   : > { %10288 = vmatpush.bf16.msra.mxu3 %v12176_v36  ;;  %10338 = vmatpush.bf16.msra.mxu1 %v12210_v51  ;;  %v8460_v36 = vrot.slane %v20398_v39, 3  ;;  %v12236_v51 = vld [vmem:[%s20839_s6 + $0x538] sm:$0xff] }
 0x921   : > { %10351 = vmatpush.bf16.msra.mxu0 %v12218_v57 }
 0x922   : > { %10416 = vmatpush.bf16.msrb.mxu2 %v12258_v21  ;;  %v12229_v21 = vld [vmem:[%s20839_s6 + $0x500] sm:$0xff] }
 0x923   : > { %10289 = vmatpush.bf16.msra.mxu3 %v12175_v27  ;;  %10339 = vmatpush.bf16.msra.mxu1 %v12209_v19  ;;  %v12235_v19 = vld [vmem:[%s20839_s6 + $0x530] sm:$0xff] }
 0x925   : > { %10352 = vmatpush.bf16.msra.mxu0 %v12217_v28  ;;  %v12254_v28 = vld [vmem:[%s20839_s6 + $0x5c8] sm:$0xff] }
 0x926   : > { %10417 = vmatpush.bf16.msrb.mxu2 %v12257_v48  ;;  %v12262_v48 = vld [vmem:[%s20839_s6 + $0x608] sm:$0xff] }
 0x927   : > { %10290 = vmatpush.bf16.msra.mxu3 %v12174_v26  ;;  %10340 = vmatpush.bf16.msra.mxu1 %v12208_v18  ;;  %v8456_v18 = vrot.slane %v20398_v39, 1 }
 0x929   : > { %10353 = vmatpush.bf16.msra.mxu0 %v12216_v7  ;;  %v12233_v7 = vld [vmem:[%s20839_s6 + $0x520] sm:$0xff] }
 0x92a   : > { %10418 = vmatpush.bf16.msrb.mxu2 %v12256_v11 }
 0x92b   : > { %10291 = vmatpush.bf16.msra.mxu3 %v12173_v10  ;;  %10341 = vmatpush.bf16.msra.mxu1 %v12207_v62  ;;  %v12239_v10 = vld [vmem:[%s20839_s6 + $0x550] sm:$0xff]  ;;  %v12234_v62 = vld [vmem:[%s20839_s6 + $0x528] sm:$0xff] }
 0x92c   : > { %v8422_v14 = vpop.permute.xlu0 %8421 }
 0x92d   : > { %v8443_v56 = vsel %vm7596_vm5, %v20268_v0, %v8422_v14  ;;  %10354 = vmatpush.bf16.msra.mxu0 %v12215_v15  ;;  %v8450_v15 = vrot.slane %v20314_v8, 2  ;;  %v12232_v8 = vld [vmem:[%s20839_s6 + $0x518] sm:$0xff] }
 0x92e   : > { %10292 = vmatmul.bf16.vlgmr.msra.gmra.mxu3 %v8531_v5  ;;  %v8533_v32 = vrot.slane %v8443_v56, 2  ;;  %10419 = vmatpush.bf16.msrb.mxu2 %v12255_v43  ;;  %v12238_v5 = vld [vmem:[%s20839_s6 + $0x548] sm:$0xff] }
 0x92f   : > { %10323 = vmatpush.bf16.msrb.mxu3 %v12204_v38  ;;  %10342 = vmatpush.bf16.msra.mxu1 %v12206_v37  ;;  %v12247_v37 = vld [vmem:[%s20839_s6 + $0x590] sm:$0xff] }
 0x930   : > { %10318 = vmatmul.bf16.vlgmr.msrb.gmra.mxu0 %v8533_v32  ;;  %v12246_v32 = vld [vmem:[%s20839_s6 + $0x588] sm:$0xff] }
 0x931   : > { %v10124_v0 = vpop.f32.mrf.mxu3  ;;  %v20685_v29 = vpop.f32.mrf.mxu0  ;;  %10355 = vmatpush.bf16.msra.mxu0 %v12214_v9  ;;  %v12245_v9 = vld [vmem:[%s20839_s6 + $0x580] sm:$0xff] }
 0x932   : > { %v10125_v34 = vadd.f32 %v10124_v0, %v8935_v55  ;;  %10420 = vmatpush.bf16.msrb.mxu2 %v12254_v28 }
 0x933   : > { %10324 = vmatpush.bf16.msrb.mxu3 %v12203_v50  ;;  %10343 = vmatpush.bf16.msra.mxu1 %v12205_v54  ;;  %v10150_v33 = vpop.f32.mrf.mxu1 }
 0x934   : > { %v8449_v27 = vpop.permute.xlu1 %8448 }
 0x935   : > { %10356 = vmatpush.bf16.msra.mxu0 %v12213_v41  ;;  %v8488_v26 = vsel %vm7596_vm5, %v20298_v17, %v8449_v27  ;;  %v12248_v17 = vld [vmem:[%s20839_s6 + $0x598] sm:$0xff] }
 0x937   : > { %10325 = vmatpush.bf16.msrb.mxu3 %v12202_v58  ;;  %10388 = vmatpush.bf16.msrb.mxu1 %v12244_v12  ;;  %v12231_v12 = vld [vmem:[%s20839_s6 + $0x510] sm:$0xff] }
 0x939   : > { %10401 = vmatpush.bf16.msrb.mxu0 %v12252_v2  ;;  %v10126_v23 = vpop.f32.mrf.mxu3  ;;  %v10165_v53 = vpop.f32.mrf.mxu0 }
 0x93a   : > { %v8465_v30 = vpop.permute.xlu2 %8464  ;;  %v8466_v23 = vrot.slane %v20421_v61, 1  ;;  %v12263_v53 = vld [vmem:[%s20839_s6 + $0x610] sm:$0xff] }
 0x93b   : > { %10326 = vmatpush.bf16.msrb.mxu3 %v12201_v24  ;;  %10389 = vmatpush.bf16.msrb.mxu1 %v12243_v22  ;;  %v8500_v44 = vsel %vm7596_vm5, %v8460_v36, %v8465_v30  ;;  %v10152_v59 = vpop.f32.mrf.mxu1  ;;  %v12253_v24 = vld [vmem:[%s20839_s6 + $0x5c0] sm:$0xff] }
 0x93c   : > { %10370 = vmatmul.bf16.vlgmr.msra.gmra.mxu2 %v8500_v44  ;;  %v12261_v30 = vld [vmem:[%s20839_s6 + $0x600] sm:$0xff]  ;;  %v8542_v59 = vrot.slane %v20498_v42, 2 }
 0x93d   : > { %10402 = vmatpush.bf16.msrb.mxu0 %v12251_v3  ;;  %10421 = vmatpush.bf16.msrb.mxu2 %v12253_v24 }
 0x93f   : > { %10327 = vmatpush.bf16.msrb.mxu3 %v12200_v6  ;;  %10390 = vmatpush.bf16.msrb.mxu1 %v12242_v47 }
 0x941   : > { %10403 = vmatpush.bf16.msrb.mxu0 %v12250_v46  ;;  %v10137_v63 = vpop.f32.mrf.mxu3  ;;  %v10202_v45 = vpop.f32.mrf.mxu0 }
 0x942   : > { %v10138_v57 = vadd.f32 %v10137_v63, %v10125_v34  ;;  %v8459_v38 = vpop.permute.xlu2 %8458 }
 0x943   : > { %10328 = vmatpush.bf16.msrb.mxu3 %v12199_v1  ;;  %10391 = vmatpush.bf16.msrb.mxu1 %v12241_v40  ;;  %v8496_v13 = vsel %vm7596_vm5, %v8456_v18, %v8459_v38 }
 0x944   : > { %v10151_v39 = vadd.f32 %v10150_v33, %v10138_v57  ;;  %10357 = vmatmul.bf16.vlgmr.msra.gmra.mxu0 %v8496_v13  ;;  %v12230_v33 = vld [vmem:[%s20839_s6 + $0x508] sm:$0xff] }
 0x945   : > { %10404 = vmatpush.bf16.msrb.mxu0 %v12249_v4 }
 0x946   : > { %v10164_v50 = vadd.f32 %v20685_v29, %v10151_v39 }
 0x947   : > { %10329 = vmatpush.bf16.msrb.mxu3 %v12198_v49  ;;  %10392 = vmatpush.bf16.msrb.mxu1 %v12240_v25 }
 0x949   : > { %10405 = vmatpush.bf16.msrb.mxu0 %v12248_v17  ;;  %v10139_v58 = vpop.f32.mrf.mxu3  ;;  %v10204_v54 = vpop.f32.mrf.mxu0 }
 0x94a   : > { %v8455_v14 = vpop.permute.xlu0 %8454 }
 0x94b   : > { %10330 = vmatpush.bf16.msrb.mxu3 %v12197_v31  ;;  %10393 = vmatpush.bf16.msrb.mxu1 %v12239_v10  ;;  %v8492_v56 = vsel %vm7596_vm5, %v8450_v15, %v8455_v14 }
 0x94c   : > { %10344 = vmatmul.bf16.vlgmr.msra.gmra.mxu1 %v8492_v56 }
 0x94d   : > { %10406 = vmatpush.bf16.msrb.mxu0 %v12247_v37 }
 0x94e   : > { %10331 = vmatmul.bf16.vlgmr.msrb.gmra.mxu3 %v8488_v26 }
 0x94f   : > { %10375 = vmatpush.bf16.msra.mxu3 %v12236_v51  ;;  %10394 = vmatpush.bf16.msrb.mxu1 %v12238_v5 }
 0x951   : > { %10407 = vmatpush.bf16.msrb.mxu0 %v12246_v32  ;;  %v10176_v6 = vpop.f32.mrf.mxu3  ;;  %v10189_v0 = vpop.f32.mrf.mxu1 }
 0x952   : > { %v10177_v29 = vadd.f32 %v10176_v6, %v10164_v50 }
 0x953   : > { %10376 = vmatpush.bf16.msra.mxu3 %v12235_v19  ;;  %10395 = vmatpush.bf16.msrb.mxu1 %v12237_v16 }
 0x954   : > { %v10190_v41 = vadd.f32 %v10189_v0, %v10177_v29  ;;  %v8479_v22 = vpop.permute.xlu2 %8478  ;;  %v8469_v3 = vpop.permute.xlu1 %8468 }
 0x955   : > { %10408 = vmatpush.bf16.msrb.mxu0 %v12245_v9  ;;  %v8512_v1 = vsel %vm7596_vm5, %v8476_v35, %v8479_v22  ;;  %v8504_v36 = vsel %vm7596_vm5, %v8466_v23, %v8469_v3 }
 0x956   : > { %v10203_v2 = vadd.f32 %v10202_v45, %v10190_v41 }
 0x957   : > { %10377 = vmatpush.bf16.msra.mxu3 %v12234_v62 }
 0x958   : > { %10409 = vmatmul.bf16.vlgmr.msrb.gmra.mxu0 %v8512_v1 }
 0x959   : > { %v10178_v47 = vpop.f32.mrf.mxu3  ;;  %v10191_v49 = vpop.f32.mrf.mxu1 }
 0x95b   : > { %10378 = vmatpush.bf16.msra.mxu3 %v12233_v7 }
 0x95f   : > { %10379 = vmatpush.bf16.msra.mxu3 %v12232_v8 }
 0x963   : > { %10380 = vmatpush.bf16.msra.mxu3 %v12231_v12 }
 0x967   : > { %10381 = vmatpush.bf16.msra.mxu3 %v12230_v33 }
 0x96b   : > { %10382 = vmatpush.bf16.msra.mxu3 %v12229_v21  ;;  %v8485_v61 = vpop.permute.xlu0 %8484 }
 0x96c   : > { %v8516_v40 = vsel %vm7596_vm5, %v20481_v20, %v8485_v61  ;;  %v8475_v44 = vpop.permute.xlu1 %8474 }
 0x96d   : > { %v8508_v31 = vsel %vm7596_vm5, %v20486_v60, %v8475_v44  ;;  %v10228_v46 = vpop.f32.mrf.mxu1  ;;  %10422 = vmatmul.bf16.vlgmr.msrb.gmra.mxu2 %v8516_v40 }
 0x96e   : > { %10383 = vmatmul.bf16.vlgmr.msra.gmra.mxu3 %v8504_v36  ;;  %10396 = vmatmul.bf16.vlgmr.msrb.gmra.mxu1 %v8508_v31 }
 0x96f   : > { %10431 = vmatpush.bf16.msrb.mxu3 %v12264_v52  ;;  %v10441_v52 = vld [vmem:[%s20841_s8] sm:$0x1] }
 0x971   : > { %v10215_v51 = vpop.f32.mrf.mxu3 }
 0x972   : > { %v10216_v55 = vadd.f32 %v10215_v51, %v10203_v2 }
 0x973   : > { %10432 = vmatpush.bf16.msrb.mxu3 %v12263_v53 }
 0x974   : > { %v10229_v11 = vadd.f32 %v10228_v46, %v10216_v55 }
 0x975   : > { %v10230_v27 = vpop.f32.mrf.mxu1  ;;  %v10241_v25 = vpop.f32.mrf.mxu0 }
 0x976   : > { %v10242_v4 = vadd.f32 %v10241_v25, %v10229_v11 }
 0x977   : > { %10433 = vmatpush.bf16.msrb.mxu3 %v12262_v48 }
 0x979   : > { %v10217_v34 = vpop.f32.mrf.mxu3 }
 0x97b   : > { %10434 = vmatpush.bf16.msrb.mxu3 %v12261_v30  ;;  %v10447_v30 = vld [vmem:[#allocation2] sm:$0x1] }
 0x97d   : > { %v10243_v19 = vpop.f32.mrf.mxu0  ;;  %v10267_v20 = vpop.f32.mrf.mxu1 }
 0x97e   : > { %11931 = vmatmul.msk.bf16.vlgmr.msrb.gmra.mxu3 %vm7596_vm5, %v8542_v59 }
 0x985   : > { %v10269_v26 = vpop.f32.mrf.mxu1 }
 0x993   : > { %v10254_v63 = vpop.f32.mrf.mxu3 }
 0x994   : > { %v10255_v42 = vadd.f32 %v10254_v63, %v10242_v4 }
 0x995   : > { %v10306_v45 = vpop.f32.mrf.mxu1  ;;  %v10280_v60 = vpop.f32.mrf.mxu0 }
 0x996   : > { %v10268_v18 = vadd.f32 %v10267_v20, %v10255_v42 }
 0x998   : > { %v10281_v43 = vadd.f32 %v10280_v60, %v10268_v18 }
 0x99b   : > { %v10256_v10 = vpop.f32.mrf.mxu3 }
 0x99d   : > { %v10308_v57 = vpop.f32.mrf.mxu1  ;;  %v10282_v38 = vpop.f32.mrf.mxu0 }
 0x9ad   : > { %v10319_v62 = vpop.f32.mrf.mxu0 }
 0x9b1   : > { %v10293_v13 = vpop.f32.mrf.mxu3 }
 0x9b2   : > { %v10294_v17 = vadd.f32 %v10293_v13, %v10281_v43 }
 0x9b4   : > { %v10307_v39 = vadd.f32 %v10306_v45, %v10294_v17 }
 0x9b5   : > { %v10321_v5 = vpop.f32.mrf.mxu0 }
 0x9b6   : > { %v10320_v32 = vadd.f32 %v10319_v62, %v10307_v39 }
 0x9b9   : > { %v10295_v28 = vpop.f32.mrf.mxu3 }
 0x9bf   : > { %v10371_v50 = vpop.f32.mrf.mxu2 }
 0x9c1   : > { %v10358_v37 = vpop.f32.mrf.mxu0 }
 0x9c7   : > { %v10373_v58 = vpop.f32.mrf.mxu2 }
 0x9c9   : > { %v10345_v54 = vpop.f32.mrf.mxu1  ;;  %v10360_v15 = vpop.f32.mrf.mxu0 }
 0x9d1   : > { %v10332_v7 = vpop.f32.mrf.mxu3  ;;  %v10347_v14 = vpop.f32.mrf.mxu1 }
 0x9d2   : > { %v10333_v8 = vadd.f32 %v10332_v7, %v10320_v32 }
 0x9d4   : > { %v10346_v9 = vadd.f32 %v10345_v54, %v10333_v8 }
 0x9d5   : > { %v10410_v16 = vpop.f32.mrf.mxu0 }
 0x9d6   : > { %v10359_v6 = vadd.f32 %v10358_v37, %v10346_v9 }
 0x9d8   : > { %v10372_v0 = vadd.f32 %v10371_v50, %v10359_v6 }
 0x9d9   : > { %v10334_v24 = vpop.f32.mrf.mxu3 }
 0x9dd   : > { %v10412_v56 = vpop.f32.mrf.mxu0 }
 0x9eb   : > { %v10397_v41 = vpop.f32.mrf.mxu1 }
 0x9f0   : > { %v10423_v1 = vpop.f32.mrf.mxu2 }
 0x9f1   : > { %v10384_v12 = vpop.f32.mrf.mxu3 }
 0x9f2   : > { %v10385_v29 = vadd.f32 %v10384_v12, %v10372_v0 }
 0x9f3   : > { %v10399_v49 = vpop.f32.mrf.mxu1 }
 0x9f4   : > { %v10398_v22 = vadd.f32 %v10397_v41, %v10385_v29 }
 0x9f6   : > { %v10411_v33 = vadd.f32 %v10410_v16, %v10398_v22 }
 0x9f8   : > { %v10424_v2 = vadd.f32 %v10423_v1, %v10411_v33  ;;  %v10425_v53 = vpop.f32.mrf.mxu2 }
 0x9f9   : > { %v10386_v35 = vpop.f32.mrf.mxu3 }
 0xa01   : > { %v10436_v21 = vpop.f32.mrf.mxu3 }
 0xa02   : > { %v10437_v47 = vadd.f32 %v10436_v21, %v10424_v2 }
 0xa04   : > { %v10440_v3 = vmax.f32 %v10437_v47, 0.0 }
 0xa06   : > { %v10442_v23 = vmul.f32 %v10441_v52, %v10440_v3 }
 0xa08   : > { %v10444_v36 = vsel %vm10443_vm1, %v10442_v23, 0.0 }
 0xa09   : > { %v10438_v48 = vpop.f32.mrf.mxu3  ;;  %10445 = vadd.xlane.f32.xlu0 %v10444_v36 }
 0xa7c   : > { %v10446_v61 = vpop.xlane.xlu0 %10445 }
 0xa7d   : > { %v10448_v40 = vadd.f32 %v10447_v30, %v10446_v61 }
 0xa7f   : > { %v10449_v44 = vsub.f32 0.0, %v10448_v40 }
 0xa81   : > { %v10450_v59 = vmul.f32 1.442695, %v10449_v44 }
 0xa83   : > { %12910 = vpow2.f32 %v10450_v59 }
 0xa89   : > { %v12911_v31 = vpop.eup %12910 }
 0xa8a   : > { %v10452_v46 = vadd.f32 1.0, %v12911_v31 }
 0xa8c   : > { %12912 = vrcp.f32 %v10452_v46  ;;  %v10464_v27 = vand.u32 2147483648, %v10452_v46  ;;  %v10462_v4 = vand.u32 2147483647, %v10452_v46  ;;  %vm10458_vm7 = vweird.f32 %v10452_v46 }
 0xa8e   : > { %v10465_v19 = vor.u32 1.1754944e-38, %v10464_v27  ;;  %vm10463_vm10 = vcmp.eq.f32.partialorder %v10462_v4, 8.507059e+37 }
 0xa92   : > { %v12913_v51 = vpop.eup %12912 }
 0xa93   : > { %v10454_v55 = vmul.f32 %v12913_v51, %v10452_v46  ;;  %vm10459_vm2 = vweird.f32 %v12913_v51 }
 0xa94   : > { %vm10460_vm9 = vmor %vm10458_vm7, %vm10459_vm2 }
 0xa95   : > { %v10455_v11 = vsub.f32 1.0, %v10454_v55 }
 0xa97   : > { %v10456_v25 = vmul.f32 %v12913_v51, %v10455_v11 }
 0xa99   : > { %v10457_v34 = vadd.f32 %v12913_v51, %v10456_v25 }
 0xa9b   : > { %v10461_v20 = vsel %vm10460_vm9, %v12913_v51, %v10457_v34 }
 0xa9c   : > { %v10466_v26 = vsel %vm10463_vm10, %v10465_v19, %v10461_v20 }
 0xa9d   : > { %10469 = vst.msk [vmem:[%s357_s22] sm:$0x1] %vm10468_vm8, %v10466_v26 }
 0xa9e PF: > { %s22_s15 = sadd.s32 1, %s12944_s15  }
 0xa9f   : > { %p19_p4 = scmp.ge.s32.totalorder %s22_s15, 4  }
 0xaa1   :  { %21 = sbr.rel (!%p19_p4) target bundleno = 3 (0x3), region = 90 }

</bundles_post_ra>
